<compile_context>
chip_gen: v7x
topology: tpu7x:2x2x1
jax: 0.10.0
libtpu: 0.0.40
codegen_flags: <defaults>
</compile_context>

<pallas_src>
import jax
import jax.numpy as jnp
from jax import lax
from jax.experimental import pallas as pl
from jax.experimental.pallas import tpu as pltpu


def _round_up(x, m):
    return (x + m - 1) // m * m


def _pick_pack(c):
    # pack P images onto the 128-lane axis when channels divide 128
    return 128 // c if (c < 128 and 128 % c == 0) else 1


def _pick_group(bp, max_group=4):
    # groups per grid step; keep >= 2 grid steps when possible (v7x has 2 TensorCores)
    for g in range(min(max_group, bp), 0, -1):
        if bp % g == 0 and (bp // g >= 2 or g == 1):
            return g
    return 1


# ----------------------------------------------------------------------------- kernel
def se_resblock_kernel(x_ref, w1_ref, s1_ref, b1_ref, w2_ref, s2_ref, b2_ref,
                       wse1_ref, wse2_ref, o_ref, shft_ref):
    # x_ref / o_ref : (G, H, W, Cp) f32      w*_ref : (9, Cp, Cp) bf16 block-diag taps
    # s*/b*_ref     : (1, Cp) f32 folded BN  wse*_ref: (Crp, Cp) f32 block-diag SE fc
    # shft_ref      : (3, H+2, W, Cp) bf16 scratch -- three dx-pre-shifted, H-padded
    #                 copies of the current conv input.
    G, H, W, Cp = x_ref.shape

    # Zero the two H-halo rows of all three planes.  Done every grid step (a couple of
    # tiny stores); interior rows are fully rewritten before each conv.
    shft_ref[:, 0:1] = jnp.zeros((3, 1, W, Cp), jnp.bfloat16)
    shft_ref[:, H + 1:H + 2] = jnp.zeros((3, 1, W, Cp), jnp.bfloat16)

    def write_planes(xin):
        # xin: (H, W, Cp) f32.  One f32->bf16 cast per conv; the dx=0/2 planes are two
        # value-level shifted copies (instead of 9 misaligned per-tap slice copies).
        xb = xin.astype(jnp.bfloat16)
        zcol = jnp.zeros((H, 1, Cp), jnp.bfloat16)
        shft_ref[0, 1:H + 1] = jnp.concatenate([zcol, xb[:, :W - 1, :]], axis=1)  # x[w-1]
        shft_ref[1, 1:H + 1] = xb                                                 # x[w]
        shft_ref[2, 1:H + 1] = jnp.concatenate([xb[:, 1:, :], zcol], axis=1)      # x[w+1]

    def conv3x3(w_ref):
        # 9 shifted taps; each operand is an aligned leading-dim window of the planes,
        # reshaped (layout-preserving) to (H*W, Cp) for a bf16 MXU matmul, f32 acc.
        acc = jnp.zeros((H * W, Cp), jnp.float32)
        for t in range(9):                                     # static unroll
            dy, dx = t // 3, t % 3
            patch = shft_ref[dx, dy:dy + H].reshape(H * W, Cp)
            acc = acc + jnp.dot(patch, w_ref[t], preferred_element_type=jnp.float32)
        return acc                                             # (H*W, Cp) f32

    for g in range(G):                 # static unroll over packed-image groups per step
        # conv1 -> bn1 -> relu
        write_planes(x_ref[g])
        h = conv3x3(w1_ref)
        h = jnp.maximum(h * s1_ref[...] + b1_ref[...], 0.0)

        # conv2 -> bn2
        write_planes(h.reshape(H, W, Cp))
        h = conv3x3(w2_ref)
        h = h * s2_ref[...] + b2_ref[...]

        # SE: global average pool -> fc1 -> relu -> fc2 -> sigmoid.
        # Computed on the VPU as broadcast-multiply + reduce (no M=1 MXU matmuls);
        # block-diagonal packed weights keep each packed image's channels independent.
        y = jnp.mean(h, axis=0, keepdims=True)                                    # (1, Cp)
        t1 = jnp.maximum(jnp.sum(y * wse1_ref[...], axis=1, keepdims=True), 0.0)  # (Crp,1)
        gate = jax.nn.sigmoid(jnp.sum(t1 * wse2_ref[...], axis=0, keepdims=True)) # (1, Cp)

        # channel gate + residual add + relu; lane-dense output store (last dim = Cp)
        res = x_ref[g].reshape(H * W, Cp)
        out = jnp.maximum(h * gate + res, 0.0)
        o_ref[g] = out.reshape(H, W, Cp).astype(o_ref.dtype)


# ------------------------------------------------------------------------ host wrappers
def _const_spec(shape):
    n = len(shape)
    return pl.BlockSpec(shape, lambda b, _n=n: (0,) * _n)


def se_resblock_packed(x_packed, params, *, group):
    Bp, H, W, Cp = x_packed.shape
    w1, s1, b1, w2, s2, b2, wse1, wse2 = params
    return pl.pallas_call(
        se_resblock_kernel,
        out_shape=jax.ShapeDtypeStruct((Bp, H, W, Cp), x_packed.dtype),
        grid=(Bp // group,),
        in_specs=[
            pl.BlockSpec((group, H, W, Cp), lambda b: (b, 0, 0, 0)),   # x block
            _const_spec(w1.shape), _const_spec(s1.shape), _const_spec(b1.shape),
            _const_spec(w2.shape), _const_spec(s2.shape), _const_spec(b2.shape),
            _const_spec(wse1.shape), _const_spec(wse2.shape),
        ],
        out_specs=pl.BlockSpec((group, H, W, Cp), lambda b: (b, 0, 0, 0)),
        scratch_shapes=[pltpu.VMEM((3, H + 2, W, Cp), jnp.bfloat16)],
        compiler_params=pltpu.CompilerParams(
            dimension_semantics=("parallel",)),    # grid steps independent (v7x 2 TCs)
    )(x_packed, w1, s1, b1, w2, s2, b2, wse1, wse2)


def prepare_params(w1, s1, b1, w2, s2, b2, wfc1, wfc2, *, pack):
    """Pack weights once: block-diagonal lane-packed layouts + bf16 conv taps."""
    C = w1.shape[0]
    P = pack
    eye_p = jnp.eye(P, dtype=jnp.float32)

    def pack_conv(w):   # torch (Cout, Cin, 3, 3) -> (9, P*C, P*C) bf16, (tap, Cin, Cout)
        taps = jnp.transpose(w, (2, 3, 1, 0)).reshape(9, C, C)
        return jnp.stack([jnp.kron(eye_p, taps[t]) for t in range(9)]).astype(jnp.bfloat16)

    def pack_vec(v):    # per-channel (C,) -> (1, P*C)
        return jnp.tile(v, P).reshape(1, P * C)

    wse1p = jnp.kron(eye_p, wfc1)      # (P*Cr, P*C): t1[j] = sum_c y[c] * wfc1[j, c]
    wse2p = jnp.kron(eye_p, wfc2.T)    # (P*Cr, P*C): gate[c] = sum_j t1[j] * wfc2[c, j]
    return (pack_conv(w1), pack_vec(s1), pack_vec(b1),
            pack_conv(w2), pack_vec(s2), pack_vec(b2), wse1p, wse2p)


def se_residual_block(x_nchw, packed_params, *, pack):
    """NCHW in/out wrapper: lane-pack `pack` images per group and call the kernel."""
    B, C, H, W = x_nchw.shape
    P = pack
    Cp = P * C
    x = jnp.transpose(x_nchw, (0, 2, 3, 1))                       # NHWC
    b_pad = _round_up(B, P)
    if b_pad != B:
        x = jnp.concatenate([x, jnp.zeros((b_pad - B, H, W, C), x.dtype)], axis=0)
    bp = b_pad // P
    xp = x.reshape(bp, P, H, W, C).transpose(0, 2, 3, 1, 4).reshape(bp, H, W, Cp)

    group = _pick_group(bp)
    outp = se_resblock_packed(xp, packed_params, group=group)

    out = outp.reshape(bp, H, W, P, C).transpose(0, 3, 1, 2, 4).reshape(b_pad, H, W, C)
    out = out[:B]
    return jnp.transpose(out, (0, 3, 1, 2))                       # back to NCHW


# -------------------------------------------------------------------------- reference
def ref_forward(x, w1, s1, b1, w2, s2, b2, wfc1, wfc2, *, matmul_dtype=jnp.float32):
    """Pure-JAX reference in PyTorch NCHW conventions (BN folded, eval mode)."""
    def conv(z, w):
        return lax.conv_general_dilated(
            z.astype(matmul_dtype), w.astype(matmul_dtype), (1, 1), "SAME",
            dimension_numbers=("NCHW", "OIHW", "NCHW"),
            preferred_element_type=jnp.float32)

    def bn(z, s, b):
        return z * s[None, :, None, None] + b[None, :, None, None]

    out = jax.nn.relu(bn(conv(x, w1), s1, b1))
    out = bn(conv(out, w2), s2, b2)
    y = out.mean(axis=(2, 3))                      # (B, C)
    y = jax.nn.relu(y @ wfc1.T)                    # torch Linear: x @ W.T
    y = jax.nn.sigmoid(y @ wfc2.T)
    out = out * y[:, :, None, None]
    return jax.nn.relu(out + x)


if __name__ == "__main__":
    B, C, H, W, reduction = 16, 32, 16, 16, 16
    Cr = C // reduction
    eps = 1e-5

    keys = jax.random.split(jax.random.PRNGKey(0), 13)
    x = jax.random.normal(keys[0], (B, C, H, W), jnp.float32)

    # conv weights in PyTorch (Cout, Cin, kh, kw) layout
    w1 = jax.random.normal(keys[1], (C, C, 3, 3), jnp.float32) * 0.1
    w2 = jax.random.normal(keys[2], (C, C, 3, 3), jnp.float32) * 0.1

    # BatchNorm parameters (eval mode), folded to per-channel scale/bias
    g1 = 1.0 + 0.1 * jax.random.normal(keys[3], (C,), jnp.float32)
    be1 = 0.1 * jax.random.normal(keys[4], (C,), jnp.float32)
    m1 = 0.1 * jax.random.normal(keys[5], (C,), jnp.float32)
    v1 = 1.0 + 0.1 * jnp.abs(jax.random.normal(keys[6], (C,), jnp.float32))
    g2 = 1.0 + 0.1 * jax.random.normal(keys[7], (C,), jnp.float32)
    be2 = 0.1 * jax.random.normal(keys[8], (C,), jnp.float32)
    m2 = 0.1 * jax.random.normal(keys[9], (C,), jnp.float32)
    v2 = 1.0 + 0.1 * jnp.abs(jax.random.normal(keys[10], (C,), jnp.float32))

    s1 = g1 / jnp.sqrt(v1 + eps)
    b1 = be1 - m1 * s1
    s2 = g2 / jnp.sqrt(v2 + eps)
    b2 = be2 - m2 * s2

    # SE fc weights in PyTorch (out_features, in_features) layout, bias=False
    wfc1 = jax.random.normal(keys[11], (Cr, C), jnp.float32) * 0.3
    wfc2 = jax.random.normal(keys[12], (C, Cr), jnp.float32) * 0.3

    # ---- pack parameters once (block-diag lane packing + bf16 conv taps) ----
    P = _pick_pack(C)
    params = prepare_params(w1, s1, b1, w2, s2, b2, wfc1, wfc2, pack=P)

    out = se_residual_block(x, params, pack=P)
    jax.block_until_ready(out)

    # tight check vs a reference with the same bf16 conv operands (f32 accumulate)
    ref_bf16 = ref_forward(x, w1, s1, b1, w2, s2, b2, wfc1, wfc2,
                           matmul_dtype=jnp.bfloat16)
    # loose sanity check vs the pure-f32 reference (bf16 MXU operands vs f32)
    ref_f32 = ref_forward(x, w1, s1, b1, w2, s2, b2, wfc1, wfc2)

    assert out.shape == ref_bf16.shape == (B, C, H, W)
    assert jnp.allclose(out, ref_bf16, atol=3e-2, rtol=3e-2), (
        float(jnp.max(jnp.abs(out - ref_bf16))))
    assert jnp.allclose(out, ref_f32, atol=3e-1, rtol=1e-1), (
        float(jnp.max(jnp.abs(out - ref_f32))))
    print("KERNEL_OK")
</pallas_src>

<mosaic_0001>
module attributes {stable_mosaic.version = 11 : i64} {
  func.func @se_resblock_kernel(%arg0: i32, %arg1: memref<2x16x16x128xf32, #tpu.memory_space<vmem>>, %arg2: memref<9x128x128xbf16, #tpu.memory_space<vmem>>, %arg3: memref<1x128xf32, #tpu.memory_space<vmem>>, %arg4: memref<1x128xf32, #tpu.memory_space<vmem>>, %arg5: memref<9x128x128xbf16, #tpu.memory_space<vmem>>, %arg6: memref<1x128xf32, #tpu.memory_space<vmem>>, %arg7: memref<1x128xf32, #tpu.memory_space<vmem>>, %arg8: memref<8x128xf32, #tpu.memory_space<vmem>>, %arg9: memref<8x128xf32, #tpu.memory_space<vmem>>, %arg10: memref<2x16x16x128xf32, #tpu.memory_space<vmem>>, %arg11: memref<3x18x16x128xbf16, #tpu.memory_space<vmem>>) attributes {dimension_semantics = [#tpu.dimension_semantics<parallel>], iteration_bounds = array<i64: 2>, scalar_prefetch = 0 : i64, scratch_operands = 1 : i64, tpu.core_type = #tpu.core_type<tc>, window_params = [{transform_indices = @transform_0, window_bounds = array<i64: 2, 16, 16, 128>}, {pipeline_mode = #tpu.pipeline_mode<synchronous>, transform_indices = @transform_1, window_bounds = array<i64: 9, 128, 128>}, {pipeline_mode = #tpu.pipeline_mode<synchronous>, transform_indices = @transform_2, window_bounds = array<i64: 1, 128>}, {pipeline_mode = #tpu.pipeline_mode<synchronous>, transform_indices = @transform_3, window_bounds = array<i64: 1, 128>}, {pipeline_mode = #tpu.pipeline_mode<synchronous>, transform_indices = @transform_4, window_bounds = array<i64: 9, 128, 128>}, {pipeline_mode = #tpu.pipeline_mode<synchronous>, transform_indices = @transform_5, window_bounds = array<i64: 1, 128>}, {pipeline_mode = #tpu.pipeline_mode<synchronous>, transform_indices = @transform_6, window_bounds = array<i64: 1, 128>}, {pipeline_mode = #tpu.pipeline_mode<synchronous>, transform_indices = @transform_7, window_bounds = array<i64: 8, 128>}, {pipeline_mode = #tpu.pipeline_mode<synchronous>, transform_indices = @transform_8, window_bounds = array<i64: 8, 128>}, {transform_indices = @transform_9, window_bounds = array<i64: 2, 16, 16, 128>}]} {
    %cst = arith.constant 0.000000e+00 : bf16
    %0 = vector.broadcast %cst : bf16 to vector<3x1x16x128xbf16>
    %c0 = arith.constant 0 : index
    %c0_0 = arith.constant 0 : index
    %c0_1 = arith.constant 0 : index
    %c0_2 = arith.constant 0 : index
    %1 = vector.load %arg11[%c0, %c0_0, %c0_1, %c0_2] : memref<3x18x16x128xbf16, #tpu.memory_space<vmem>>, vector<3x1x16x128xbf16>
    tpu.vector_store %arg11[%c0, %c0_0, %c0_1, %c0_2], %0 {strides = array<i32>} : memref<3x18x16x128xbf16, #tpu.memory_space<vmem>>, vector<3x1x16x128xbf16>,
    %cst_3 = arith.constant 0.000000e+00 : bf16
    %2 = vector.broadcast %cst_3 : bf16 to vector<3x1x16x128xbf16>
    %c0_4 = arith.constant 0 : index
    %c17 = arith.constant 17 : index
    %c0_5 = arith.constant 0 : index
    %c0_6 = arith.constant 0 : index
    %3 = vector.load %arg11[%c0_4, %c17, %c0_5, %c0_6] : memref<3x18x16x128xbf16, #tpu.memory_space<vmem>>, vector<3x1x16x128xbf16>
    tpu.vector_store %arg11[%c0_4, %c17, %c0_5, %c0_6], %2 {strides = array<i32>} : memref<3x18x16x128xbf16, #tpu.memory_space<vmem>>, vector<3x1x16x128xbf16>,
    %c0_7 = arith.constant 0 : index
    %c0_8 = arith.constant 0 : index
    %c0_9 = arith.constant 0 : index
    %c0_10 = arith.constant 0 : index
    %4 = vector.load %arg1[%c0_7, %c0_8, %c0_9, %c0_10] : memref<2x16x16x128xf32, #tpu.memory_space<vmem>>, vector<1x16x16x128xf32>
    %5 = vector.shape_cast %4 : vector<1x16x16x128xf32> to vector<16x16x128xf32>
    %6 = arith.truncf %5 : vector<16x16x128xf32> to vector<16x16x128xbf16>
    %cst_11 = arith.constant 0.000000e+00 : bf16
    %7 = vector.broadcast %cst_11 : bf16 to vector<16x1x128xbf16>
    %8 = vector.extract_strided_slice %6 {offsets = [0, 0, 0], sizes = [16, 15, 128], strides = [1, 1, 1]} : vector<16x16x128xbf16> to vector<16x15x128xbf16>
    %9 = tpu.concatenate %7, %8 in 1 : vector<16x1x128xbf16>, vector<16x15x128xbf16> -> vector<16x16x128xbf16>
    %c0_12 = arith.constant 0 : index
    %c1 = arith.constant 1 : index
    %c0_13 = arith.constant 0 : index
    %c0_14 = arith.constant 0 : index
    %10 = vector.load %arg11[%c0_12, %c1, %c0_13, %c0_14] : memref<3x18x16x128xbf16, #tpu.memory_space<vmem>>, vector<1x16x16x128xbf16>
    %11 = vector.shape_cast %10 : vector<1x16x16x128xbf16> to vector<16x16x128xbf16>
    %12 = vector.shape_cast %9 : vector<16x16x128xbf16> to vector<1x16x16x128xbf16>
    tpu.vector_store %arg11[%c0_12, %c1, %c0_13, %c0_14], %12 {strides = array<i32>} : memref<3x18x16x128xbf16, #tpu.memory_space<vmem>>, vector<1x16x16x128xbf16>,
    %c1_15 = arith.constant 1 : index
    %c1_16 = arith.constant 1 : index
    %c0_17 = arith.constant 0 : index
    %c0_18 = arith.constant 0 : index
    %13 = vector.load %arg11[%c1_15, %c1_16, %c0_17, %c0_18] : memref<3x18x16x128xbf16, #tpu.memory_space<vmem>>, vector<1x16x16x128xbf16>
    %14 = vector.shape_cast %13 : vector<1x16x16x128xbf16> to vector<16x16x128xbf16>
    %15 = vector.shape_cast %6 : vector<16x16x128xbf16> to vector<1x16x16x128xbf16>
    tpu.vector_store %arg11[%c1_15, %c1_16, %c0_17, %c0_18], %15 {strides = array<i32>} : memref<3x18x16x128xbf16, #tpu.memory_space<vmem>>, vector<1x16x16x128xbf16>,
    %16 = vector.extract_strided_slice %6 {offsets = [0, 1, 0], sizes = [16, 15, 128], strides = [1, 1, 1]} : vector<16x16x128xbf16> to vector<16x15x128xbf16>
    %17 = tpu.concatenate %16, %7 in 1 : vector<16x15x128xbf16>, vector<16x1x128xbf16> -> vector<16x16x128xbf16>
    %c2 = arith.constant 2 : index
    %c1_19 = arith.constant 1 : index
    %c0_20 = arith.constant 0 : index
    %c0_21 = arith.constant 0 : index
    %18 = vector.load %arg11[%c2, %c1_19, %c0_20, %c0_21] : memref<3x18x16x128xbf16, #tpu.memory_space<vmem>>, vector<1x16x16x128xbf16>
    %19 = vector.shape_cast %18 : vector<1x16x16x128xbf16> to vector<16x16x128xbf16>
    %20 = vector.shape_cast %17 : vector<16x16x128xbf16> to vector<1x16x16x128xbf16>
    tpu.vector_store %arg11[%c2, %c1_19, %c0_20, %c0_21], %20 {strides = array<i32>} : memref<3x18x16x128xbf16, #tpu.memory_space<vmem>>, vector<1x16x16x128xbf16>,
    %cst_22 = arith.constant 0.000000e+00 : f32
    %21 = vector.broadcast %cst_22 : f32 to vector<256x128xf32>
    %c0_23 = arith.constant 0 : index
    %c0_24 = arith.constant 0 : index
    %c0_25 = arith.constant 0 : index
    %c0_26 = arith.constant 0 : index
    %22 = vector.load %arg11[%c0_23, %c0_24, %c0_25, %c0_26] : memref<3x18x16x128xbf16, #tpu.memory_space<vmem>>, vector<1x16x16x128xbf16>
    %23 = vector.shape_cast %22 : vector<1x16x16x128xbf16> to vector<16x16x128xbf16>
    %24 = vector.shape_cast %23 : vector<16x16x128xbf16> to vector<256x128xbf16>
    %c0_27 = arith.constant 0 : index
    %c0_28 = arith.constant 0 : index
    %c0_29 = arith.constant 0 : index
    %25 = vector.load %arg2[%c0_27, %c0_28, %c0_29] : memref<9x128x128xbf16, #tpu.memory_space<vmem>>, vector<1x128x128xbf16>
    %26 = vector.shape_cast %25 : vector<1x128x128xbf16> to vector<128x128xbf16>
    %cst_30 = arith.constant dense<0.000000e+00> : vector<256x128xf32>
    %27 = tpu.matmul %24, %26, %cst_30 {dimension_numbers = #tpu.dot_dimension_numbers<[1], [0], [0], [1], [0, 0, 1, 1], [], []>} : vector<256x128xbf16>, vector<128x128xbf16>, vector<256x128xf32> -> vector<256x128xf32>
    %28 = arith.addf %21, %27 : vector<256x128xf32>
    %c1_31 = arith.constant 1 : index
    %c0_32 = arith.constant 0 : index
    %c0_33 = arith.constant 0 : index
    %c0_34 = arith.constant 0 : index
    %29 = vector.load %arg11[%c1_31, %c0_32, %c0_33, %c0_34] : memref<3x18x16x128xbf16, #tpu.memory_space<vmem>>, vector<1x16x16x128xbf16>
    %30 = vector.shape_cast %29 : vector<1x16x16x128xbf16> to vector<16x16x128xbf16>
    %31 = vector.shape_cast %30 : vector<16x16x128xbf16> to vector<256x128xbf16>
    %c1_35 = arith.constant 1 : index
    %c0_36 = arith.constant 0 : index
    %c0_37 = arith.constant 0 : index
    %32 = vector.load %arg2[%c1_35, %c0_36, %c0_37] : memref<9x128x128xbf16, #tpu.memory_space<vmem>>, vector<1x128x128xbf16>
    %33 = vector.shape_cast %32 : vector<1x128x128xbf16> to vector<128x128xbf16>
    %cst_38 = arith.constant dense<0.000000e+00> : vector<256x128xf32>
    %34 = tpu.matmul %31, %33, %cst_38 {dimension_numbers = #tpu.dot_dimension_numbers<[1], [0], [0], [1], [0, 0, 1, 1], [], []>} : vector<256x128xbf16>, vector<128x128xbf16>, vector<256x128xf32> -> vector<256x128xf32>
    %35 = arith.addf %28, %34 : vector<256x128xf32>
    %c2_39 = arith.constant 2 : index
    %c0_40 = arith.constant 0 : index
    %c0_41 = arith.constant 0 : index
    %c0_42 = arith.constant 0 : index
    %36 = vector.load %arg11[%c2_39, %c0_40, %c0_41, %c0_42] : memref<3x18x16x128xbf16, #tpu.memory_space<vmem>>, vector<1x16x16x128xbf16>
    %37 = vector.shape_cast %36 : vector<1x16x16x128xbf16> to vector<16x16x128xbf16>
    %38 = vector.shape_cast %37 : vector<16x16x128xbf16> to vector<256x128xbf16>
    %c2_43 = arith.constant 2 : index
    %c0_44 = arith.constant 0 : index
    %c0_45 = arith.constant 0 : index
    %39 = vector.load %arg2[%c2_43, %c0_44, %c0_45] : memref<9x128x128xbf16, #tpu.memory_space<vmem>>, vector<1x128x128xbf16>
    %40 = vector.shape_cast %39 : vector<1x128x128xbf16> to vector<128x128xbf16>
    %cst_46 = arith.constant dense<0.000000e+00> : vector<256x128xf32>
    %41 = tpu.matmul %38, %40, %cst_46 {dimension_numbers = #tpu.dot_dimension_numbers<[1], [0], [0], [1], [0, 0, 1, 1], [], []>} : vector<256x128xbf16>, vector<128x128xbf16>, vector<256x128xf32> -> vector<256x128xf32>
    %42 = arith.addf %35, %41 : vector<256x128xf32>
    %c0_47 = arith.constant 0 : index
    %c1_48 = arith.constant 1 : index
    %c0_49 = arith.constant 0 : index
    %c0_50 = arith.constant 0 : index
    %43 = vector.load %arg11[%c0_47, %c1_48, %c0_49, %c0_50] : memref<3x18x16x128xbf16, #tpu.memory_space<vmem>>, vector<1x16x16x128xbf16>
    %44 = vector.shape_cast %43 : vector<1x16x16x128xbf16> to vector<16x16x128xbf16>
    %45 = vector.shape_cast %44 : vector<16x16x128xbf16> to vector<256x128xbf16>
    %c3 = arith.constant 3 : index
    %c0_51 = arith.constant 0 : index
    %c0_52 = arith.constant 0 : index
    %46 = vector.load %arg2[%c3, %c0_51, %c0_52] : memref<9x128x128xbf16, #tpu.memory_space<vmem>>, vector<1x128x128xbf16>
    %47 = vector.shape_cast %46 : vector<1x128x128xbf16> to vector<128x128xbf16>
    %cst_53 = arith.constant dense<0.000000e+00> : vector<256x128xf32>
    %48 = tpu.matmul %45, %47, %cst_53 {dimension_numbers = #tpu.dot_dimension_numbers<[1], [0], [0], [1], [0, 0, 1, 1], [], []>} : vector<256x128xbf16>, vector<128x128xbf16>, vector<256x128xf32> -> vector<256x128xf32>
    %49 = arith.addf %42, %48 : vector<256x128xf32>
    %c1_54 = arith.constant 1 : index
    %c1_55 = arith.constant 1 : index
    %c0_56 = arith.constant 0 : index
    %c0_57 = arith.constant 0 : index
    %50 = vector.load %arg11[%c1_54, %c1_55, %c0_56, %c0_57] : memref<3x18x16x128xbf16, #tpu.memory_space<vmem>>, vector<1x16x16x128xbf16>
    %51 = vector.shape_cast %50 : vector<1x16x16x128xbf16> to vector<16x16x128xbf16>
    %52 = vector.shape_cast %51 : vector<16x16x128xbf16> to vector<256x128xbf16>
    %c4 = arith.constant 4 : index
    %c0_58 = arith.constant 0 : index
    %c0_59 = arith.constant 0 : index
    %53 = vector.load %arg2[%c4, %c0_58, %c0_59] : memref<9x128x128xbf16, #tpu.memory_space<vmem>>, vector<1x128x128xbf16>
    %54 = vector.shape_cast %53 : vector<1x128x128xbf16> to vector<128x128xbf16>
    %cst_60 = arith.constant dense<0.000000e+00> : vector<256x128xf32>
    %55 = tpu.matmul %52, %54, %cst_60 {dimension_numbers = #tpu.dot_dimension_numbers<[1], [0], [0], [1], [0, 0, 1, 1], [], []>} : vector<256x128xbf16>, vector<128x128xbf16>, vector<256x128xf32> -> vector<256x128xf32>
    %56 = arith.addf %49, %55 : vector<256x128xf32>
    %c2_61 = arith.constant 2 : index
    %c1_62 = arith.constant 1 : index
    %c0_63 = arith.constant 0 : index
    %c0_64 = arith.constant 0 : index
    %57 = vector.load %arg11[%c2_61, %c1_62, %c0_63, %c0_64] : memref<3x18x16x128xbf16, #tpu.memory_space<vmem>>, vector<1x16x16x128xbf16>
    %58 = vector.shape_cast %57 : vector<1x16x16x128xbf16> to vector<16x16x128xbf16>
    %59 = vector.shape_cast %58 : vector<16x16x128xbf16> to vector<256x128xbf16>
    %c5 = arith.constant 5 : index
    %c0_65 = arith.constant 0 : index
    %c0_66 = arith.constant 0 : index
    %60 = vector.load %arg2[%c5, %c0_65, %c0_66] : memref<9x128x128xbf16, #tpu.memory_space<vmem>>, vector<1x128x128xbf16>
    %61 = vector.shape_cast %60 : vector<1x128x128xbf16> to vector<128x128xbf16>
    %cst_67 = arith.constant dense<0.000000e+00> : vector<256x128xf32>
    %62 = tpu.matmul %59, %61, %cst_67 {dimension_numbers = #tpu.dot_dimension_numbers<[1], [0], [0], [1], [0, 0, 1, 1], [], []>} : vector<256x128xbf16>, vector<128x128xbf16>, vector<256x128xf32> -> vector<256x128xf32>
    %63 = arith.addf %56, %62 : vector<256x128xf32>
    %c0_68 = arith.constant 0 : index
    %c2_69 = arith.constant 2 : index
    %c0_70 = arith.constant 0 : index
    %c0_71 = arith.constant 0 : index
    %64 = vector.load %arg11[%c0_68, %c2_69, %c0_70, %c0_71] : memref<3x18x16x128xbf16, #tpu.memory_space<vmem>>, vector<1x16x16x128xbf16>
    %65 = vector.shape_cast %64 : vector<1x16x16x128xbf16> to vector<16x16x128xbf16>
    %66 = vector.shape_cast %65 : vector<16x16x128xbf16> to vector<256x128xbf16>
    %c6 = arith.constant 6 : index
    %c0_72 = arith.constant 0 : index
    %c0_73 = arith.constant 0 : index
    %67 = vector.load %arg2[%c6, %c0_72, %c0_73] : memref<9x128x128xbf16, #tpu.memory_space<vmem>>, vector<1x128x128xbf16>
    %68 = vector.shape_cast %67 : vector<1x128x128xbf16> to vector<128x128xbf16>
    %cst_74 = arith.constant dense<0.000000e+00> : vector<256x128xf32>
    %69 = tpu.matmul %66, %68, %cst_74 {dimension_numbers = #tpu.dot_dimension_numbers<[1], [0], [0], [1], [0, 0, 1, 1], [], []>} : vector<256x128xbf16>, vector<128x128xbf16>, vector<256x128xf32> -> vector<256x128xf32>
    %70 = arith.addf %63, %69 : vector<256x128xf32>
    %c1_75 = arith.constant 1 : index
    %c2_76 = arith.constant 2 : index
    %c0_77 = arith.constant 0 : index
    %c0_78 = arith.constant 0 : index
    %71 = vector.load %arg11[%c1_75, %c2_76, %c0_77, %c0_78] : memref<3x18x16x128xbf16, #tpu.memory_space<vmem>>, vector<1x16x16x128xbf16>
    %72 = vector.shape_cast %71 : vector<1x16x16x128xbf16> to vector<16x16x128xbf16>
    %73 = vector.shape_cast %72 : vector<16x16x128xbf16> to vector<256x128xbf16>
    %c7 = arith.constant 7 : index
    %c0_79 = arith.constant 0 : index
    %c0_80 = arith.constant 0 : index
    %74 = vector.load %arg2[%c7, %c0_79, %c0_80] : memref<9x128x128xbf16, #tpu.memory_space<vmem>>, vector<1x128x128xbf16>
    %75 = vector.shape_cast %74 : vector<1x128x128xbf16> to vector<128x128xbf16>
    %cst_81 = arith.constant dense<0.000000e+00> : vector<256x128xf32>
    %76 = tpu.matmul %73, %75, %cst_81 {dimension_numbers = #tpu.dot_dimension_numbers<[1], [0], [0], [1], [0, 0, 1, 1], [], []>} : vector<256x128xbf16>, vector<128x128xbf16>, vector<256x128xf32> -> vector<256x128xf32>
    %77 = arith.addf %70, %76 : vector<256x128xf32>
    %c2_82 = arith.constant 2 : index
    %c2_83 = arith.constant 2 : index
    %c0_84 = arith.constant 0 : index
    %c0_85 = arith.constant 0 : index
    %78 = vector.load %arg11[%c2_82, %c2_83, %c0_84, %c0_85] : memref<3x18x16x128xbf16, #tpu.memory_space<vmem>>, vector<1x16x16x128xbf16>
    %79 = vector.shape_cast %78 : vector<1x16x16x128xbf16> to vector<16x16x128xbf16>
    %80 = vector.shape_cast %79 : vector<16x16x128xbf16> to vector<256x128xbf16>
    %c8 = arith.constant 8 : index
    %c0_86 = arith.constant 0 : index
    %c0_87 = arith.constant 0 : index
    %81 = vector.load %arg2[%c8, %c0_86, %c0_87] : memref<9x128x128xbf16, #tpu.memory_space<vmem>>, vector<1x128x128xbf16>
    %82 = vector.shape_cast %81 : vector<1x128x128xbf16> to vector<128x128xbf16>
    %cst_88 = arith.constant dense<0.000000e+00> : vector<256x128xf32>
    %83 = tpu.matmul %80, %82, %cst_88 {dimension_numbers = #tpu.dot_dimension_numbers<[1], [0], [0], [1], [0, 0, 1, 1], [], []>} : vector<256x128xbf16>, vector<128x128xbf16>, vector<256x128xf32> -> vector<256x128xf32>
    %84 = arith.addf %77, %83 : vector<256x128xf32>
    %c0_89 = arith.constant 0 : index
    %c0_90 = arith.constant 0 : index
    %85 = vector.load %arg3[%c0_89, %c0_90] : memref<1x128xf32, #tpu.memory_space<vmem>>, vector<1x128xf32>
    %86 = vector.broadcast %85 : vector<1x128xf32> to vector<256x128xf32>
    %87 = arith.mulf %84, %86 : vector<256x128xf32>
    %c0_91 = arith.constant 0 : index
    %c0_92 = arith.constant 0 : index
    %88 = vector.load %arg4[%c0_91, %c0_92] : memref<1x128xf32, #tpu.memory_space<vmem>>, vector<1x128xf32>
    %89 = vector.broadcast %88 : vector<1x128xf32> to vector<256x128xf32>
    %90 = arith.addf %87, %89 : vector<256x128xf32>
    %cst_93 = arith.constant 0.000000e+00 : f32
    %91 = vector.broadcast %cst_93 : f32 to vector<256x128xf32>
    %92 = arith.maximumf %90, %91 : vector<256x128xf32>
    %93 = vector.shape_cast %92 : vector<256x128xf32> to vector<16x16x128xf32>
    %94 = arith.truncf %93 : vector<16x16x128xf32> to vector<16x16x128xbf16>
    %cst_94 = arith.constant 0.000000e+00 : bf16
    %95 = vector.broadcast %cst_94 : bf16 to vector<16x1x128xbf16>
    %96 = vector.extract_strided_slice %94 {offsets = [0, 0, 0], sizes = [16, 15, 128], strides = [1, 1, 1]} : vector<16x16x128xbf16> to vector<16x15x128xbf16>
    %97 = tpu.concatenate %95, %96 in 1 : vector<16x1x128xbf16>, vector<16x15x128xbf16> -> vector<16x16x128xbf16>
    %c0_95 = arith.constant 0 : index
    %c1_96 = arith.constant 1 : index
    %c0_97 = arith.constant 0 : index
    %c0_98 = arith.constant 0 : index
    %98 = vector.load %arg11[%c0_95, %c1_96, %c0_97, %c0_98] : memref<3x18x16x128xbf16, #tpu.memory_space<vmem>>, vector<1x16x16x128xbf16>
    %99 = vector.shape_cast %98 : vector<1x16x16x128xbf16> to vector<16x16x128xbf16>
    %100 = vector.shape_cast %97 : vector<16x16x128xbf16> to vector<1x16x16x128xbf16>
    tpu.vector_store %arg11[%c0_95, %c1_96, %c0_97, %c0_98], %100 {strides = array<i32>} : memref<3x18x16x128xbf16, #tpu.memory_space<vmem>>, vector<1x16x16x128xbf16>,
    %c1_99 = arith.constant 1 : index
    %c1_100 = arith.constant 1 : index
    %c0_101 = arith.constant 0 : index
    %c0_102 = arith.constant 0 : index
    %101 = vector.load %arg11[%c1_99, %c1_100, %c0_101, %c0_102] : memref<3x18x16x128xbf16, #tpu.memory_space<vmem>>, vector<1x16x16x128xbf16>
    %102 = vector.shape_cast %101 : vector<1x16x16x128xbf16> to vector<16x16x128xbf16>
    %103 = vector.shape_cast %94 : vector<16x16x128xbf16> to vector<1x16x16x128xbf16>
    tpu.vector_store %arg11[%c1_99, %c1_100, %c0_101, %c0_102], %103 {strides = array<i32>} : memref<3x18x16x128xbf16, #tpu.memory_space<vmem>>, vector<1x16x16x128xbf16>,
    %104 = vector.extract_strided_slice %94 {offsets = [0, 1, 0], sizes = [16, 15, 128], strides = [1, 1, 1]} : vector<16x16x128xbf16> to vector<16x15x128xbf16>
    %105 = tpu.concatenate %104, %95 in 1 : vector<16x15x128xbf16>, vector<16x1x128xbf16> -> vector<16x16x128xbf16>
    %c2_103 = arith.constant 2 : index
    %c1_104 = arith.constant 1 : index
    %c0_105 = arith.constant 0 : index
    %c0_106 = arith.constant 0 : index
    %106 = vector.load %arg11[%c2_103, %c1_104, %c0_105, %c0_106] : memref<3x18x16x128xbf16, #tpu.memory_space<vmem>>, vector<1x16x16x128xbf16>
    %107 = vector.shape_cast %106 : vector<1x16x16x128xbf16> to vector<16x16x128xbf16>
    %108 = vector.shape_cast %105 : vector<16x16x128xbf16> to vector<1x16x16x128xbf16>
    tpu.vector_store %arg11[%c2_103, %c1_104, %c0_105, %c0_106], %108 {strides = array<i32>} : memref<3x18x16x128xbf16, #tpu.memory_space<vmem>>, vector<1x16x16x128xbf16>,
    %cst_107 = arith.constant 0.000000e+00 : f32
    %109 = vector.broadcast %cst_107 : f32 to vector<256x128xf32>
    %c0_108 = arith.constant 0 : index
    %c0_109 = arith.constant 0 : index
    %c0_110 = arith.constant 0 : index
    %c0_111 = arith.constant 0 : index
    %110 = vector.load %arg11[%c0_108, %c0_109, %c0_110, %c0_111] : memref<3x18x16x128xbf16, #tpu.memory_space<vmem>>, vector<1x16x16x128xbf16>
    %111 = vector.shape_cast %110 : vector<1x16x16x128xbf16> to vector<16x16x128xbf16>
    %112 = vector.shape_cast %111 : vector<16x16x128xbf16> to vector<256x128xbf16>
    %c0_112 = arith.constant 0 : index
    %c0_113 = arith.constant 0 : index
    %c0_114 = arith.constant 0 : index
    %113 = vector.load %arg5[%c0_112, %c0_113, %c0_114] : memref<9x128x128xbf16, #tpu.memory_space<vmem>>, vector<1x128x128xbf16>
    %114 = vector.shape_cast %113 : vector<1x128x128xbf16> to vector<128x128xbf16>
    %cst_115 = arith.constant dense<0.000000e+00> : vector<256x128xf32>
    %115 = tpu.matmul %112, %114, %cst_115 {dimension_numbers = #tpu.dot_dimension_numbers<[1], [0], [0], [1], [0, 0, 1, 1], [], []>} : vector<256x128xbf16>, vector<128x128xbf16>, vector<256x128xf32> -> vector<256x128xf32>
    %116 = arith.addf %109, %115 : vector<256x128xf32>
    %c1_116 = arith.constant 1 : index
    %c0_117 = arith.constant 0 : index
    %c0_118 = arith.constant 0 : index
    %c0_119 = arith.constant 0 : index
    %117 = vector.load %arg11[%c1_116, %c0_117, %c0_118, %c0_119] : memref<3x18x16x128xbf16, #tpu.memory_space<vmem>>, vector<1x16x16x128xbf16>
    %118 = vector.shape_cast %117 : vector<1x16x16x128xbf16> to vector<16x16x128xbf16>
    %119 = vector.shape_cast %118 : vector<16x16x128xbf16> to vector<256x128xbf16>
    %c1_120 = arith.constant 1 : index
    %c0_121 = arith.constant 0 : index
    %c0_122 = arith.constant 0 : index
    %120 = vector.load %arg5[%c1_120, %c0_121, %c0_122] : memref<9x128x128xbf16, #tpu.memory_space<vmem>>, vector<1x128x128xbf16>
    %121 = vector.shape_cast %120 : vector<1x128x128xbf16> to vector<128x128xbf16>
    %cst_123 = arith.constant dense<0.000000e+00> : vector<256x128xf32>
    %122 = tpu.matmul %119, %121, %cst_123 {dimension_numbers = #tpu.dot_dimension_numbers<[1], [0], [0], [1], [0, 0, 1, 1], [], []>} : vector<256x128xbf16>, vector<128x128xbf16>, vector<256x128xf32> -> vector<256x128xf32>
    %123 = arith.addf %116, %122 : vector<256x128xf32>
    %c2_124 = arith.constant 2 : index
    %c0_125 = arith.constant 0 : index
    %c0_126 = arith.constant 0 : index
    %c0_127 = arith.constant 0 : index
    %124 = vector.load %arg11[%c2_124, %c0_125, %c0_126, %c0_127] : memref<3x18x16x128xbf16, #tpu.memory_space<vmem>>, vector<1x16x16x128xbf16>
    %125 = vector.shape_cast %124 : vector<1x16x16x128xbf16> to vector<16x16x128xbf16>
    %126 = vector.shape_cast %125 : vector<16x16x128xbf16> to vector<256x128xbf16>
    %c2_128 = arith.constant 2 : index
    %c0_129 = arith.constant 0 : index
    %c0_130 = arith.constant 0 : index
    %127 = vector.load %arg5[%c2_128, %c0_129, %c0_130] : memref<9x128x128xbf16, #tpu.memory_space<vmem>>, vector<1x128x128xbf16>
    %128 = vector.shape_cast %127 : vector<1x128x128xbf16> to vector<128x128xbf16>
    %cst_131 = arith.constant dense<0.000000e+00> : vector<256x128xf32>
    %129 = tpu.matmul %126, %128, %cst_131 {dimension_numbers = #tpu.dot_dimension_numbers<[1], [0], [0], [1], [0, 0, 1, 1], [], []>} : vector<256x128xbf16>, vector<128x128xbf16>, vector<256x128xf32> -> vector<256x128xf32>
    %130 = arith.addf %123, %129 : vector<256x128xf32>
    %c0_132 = arith.constant 0 : index
    %c1_133 = arith.constant 1 : index
    %c0_134 = arith.constant 0 : index
    %c0_135 = arith.constant 0 : index
    %131 = vector.load %arg11[%c0_132, %c1_133, %c0_134, %c0_135] : memref<3x18x16x128xbf16, #tpu.memory_space<vmem>>, vector<1x16x16x128xbf16>
    %132 = vector.shape_cast %131 : vector<1x16x16x128xbf16> to vector<16x16x128xbf16>
    %133 = vector.shape_cast %132 : vector<16x16x128xbf16> to vector<256x128xbf16>
    %c3_136 = arith.constant 3 : index
    %c0_137 = arith.constant 0 : index
    %c0_138 = arith.constant 0 : index
    %134 = vector.load %arg5[%c3_136, %c0_137, %c0_138] : memref<9x128x128xbf16, #tpu.memory_space<vmem>>, vector<1x128x128xbf16>
    %135 = vector.shape_cast %134 : vector<1x128x128xbf16> to vector<128x128xbf16>
    %cst_139 = arith.constant dense<0.000000e+00> : vector<256x128xf32>
    %136 = tpu.matmul %133, %135, %cst_139 {dimension_numbers = #tpu.dot_dimension_numbers<[1], [0], [0], [1], [0, 0, 1, 1], [], []>} : vector<256x128xbf16>, vector<128x128xbf16>, vector<256x128xf32> -> vector<256x128xf32>
    %137 = arith.addf %130, %136 : vector<256x128xf32>
    %c1_140 = arith.constant 1 : index
    %c1_141 = arith.constant 1 : index
    %c0_142 = arith.constant 0 : index
    %c0_143 = arith.constant 0 : index
    %138 = vector.load %arg11[%c1_140, %c1_141, %c0_142, %c0_143] : memref<3x18x16x128xbf16, #tpu.memory_space<vmem>>, vector<1x16x16x128xbf16>
    %139 = vector.shape_cast %138 : vector<1x16x16x128xbf16> to vector<16x16x128xbf16>
    %140 = vector.shape_cast %139 : vector<16x16x128xbf16> to vector<256x128xbf16>
    %c4_144 = arith.constant 4 : index
    %c0_145 = arith.constant 0 : index
    %c0_146 = arith.constant 0 : index
    %141 = vector.load %arg5[%c4_144, %c0_145, %c0_146] : memref<9x128x128xbf16, #tpu.memory_space<vmem>>, vector<1x128x128xbf16>
    %142 = vector.shape_cast %141 : vector<1x128x128xbf16> to vector<128x128xbf16>
    %cst_147 = arith.constant dense<0.000000e+00> : vector<256x128xf32>
    %143 = tpu.matmul %140, %142, %cst_147 {dimension_numbers = #tpu.dot_dimension_numbers<[1], [0], [0], [1], [0, 0, 1, 1], [], []>} : vector<256x128xbf16>, vector<128x128xbf16>, vector<256x128xf32> -> vector<256x128xf32>
    %144 = arith.addf %137, %143 : vector<256x128xf32>
    %c2_148 = arith.constant 2 : index
    %c1_149 = arith.constant 1 : index
    %c0_150 = arith.constant 0 : index
    %c0_151 = arith.constant 0 : index
    %145 = vector.load %arg11[%c2_148, %c1_149, %c0_150, %c0_151] : memref<3x18x16x128xbf16, #tpu.memory_space<vmem>>, vector<1x16x16x128xbf16>
    %146 = vector.shape_cast %145 : vector<1x16x16x128xbf16> to vector<16x16x128xbf16>
    %147 = vector.shape_cast %146 : vector<16x16x128xbf16> to vector<256x128xbf16>
    %c5_152 = arith.constant 5 : index
    %c0_153 = arith.constant 0 : index
    %c0_154 = arith.constant 0 : index
    %148 = vector.load %arg5[%c5_152, %c0_153, %c0_154] : memref<9x128x128xbf16, #tpu.memory_space<vmem>>, vector<1x128x128xbf16>
    %149 = vector.shape_cast %148 : vector<1x128x128xbf16> to vector<128x128xbf16>
    %cst_155 = arith.constant dense<0.000000e+00> : vector<256x128xf32>
    %150 = tpu.matmul %147, %149, %cst_155 {dimension_numbers = #tpu.dot_dimension_numbers<[1], [0], [0], [1], [0, 0, 1, 1], [], []>} : vector<256x128xbf16>, vector<128x128xbf16>, vector<256x128xf32> -> vector<256x128xf32>
    %151 = arith.addf %144, %150 : vector<256x128xf32>
    %c0_156 = arith.constant 0 : index
    %c2_157 = arith.constant 2 : index
    %c0_158 = arith.constant 0 : index
    %c0_159 = arith.constant 0 : index
    %152 = vector.load %arg11[%c0_156, %c2_157, %c0_158, %c0_159] : memref<3x18x16x128xbf16, #tpu.memory_space<vmem>>, vector<1x16x16x128xbf16>
    %153 = vector.shape_cast %152 : vector<1x16x16x128xbf16> to vector<16x16x128xbf16>
    %154 = vector.shape_cast %153 : vector<16x16x128xbf16> to vector<256x128xbf16>
    %c6_160 = arith.constant 6 : index
    %c0_161 = arith.constant 0 : index
    %c0_162 = arith.constant 0 : index
    %155 = vector.load %arg5[%c6_160, %c0_161, %c0_162] : memref<9x128x128xbf16, #tpu.memory_space<vmem>>, vector<1x128x128xbf16>
    %156 = vector.shape_cast %155 : vector<1x128x128xbf16> to vector<128x128xbf16>
    %cst_163 = arith.constant dense<0.000000e+00> : vector<256x128xf32>
    %157 = tpu.matmul %154, %156, %cst_163 {dimension_numbers = #tpu.dot_dimension_numbers<[1], [0], [0], [1], [0, 0, 1, 1], [], []>} : vector<256x128xbf16>, vector<128x128xbf16>, vector<256x128xf32> -> vector<256x128xf32>
    %158 = arith.addf %151, %157 : vector<256x128xf32>
    %c1_164 = arith.constant 1 : index
    %c2_165 = arith.constant 2 : index
    %c0_166 = arith.constant 0 : index
    %c0_167 = arith.constant 0 : index
    %159 = vector.load %arg11[%c1_164, %c2_165, %c0_166, %c0_167] : memref<3x18x16x128xbf16, #tpu.memory_space<vmem>>, vector<1x16x16x128xbf16>
    %160 = vector.shape_cast %159 : vector<1x16x16x128xbf16> to vector<16x16x128xbf16>
    %161 = vector.shape_cast %160 : vector<16x16x128xbf16> to vector<256x128xbf16>
    %c7_168 = arith.constant 7 : index
    %c0_169 = arith.constant 0 : index
    %c0_170 = arith.constant 0 : index
    %162 = vector.load %arg5[%c7_168, %c0_169, %c0_170] : memref<9x128x128xbf16, #tpu.memory_space<vmem>>, vector<1x128x128xbf16>
    %163 = vector.shape_cast %162 : vector<1x128x128xbf16> to vector<128x128xbf16>
    %cst_171 = arith.constant dense<0.000000e+00> : vector<256x128xf32>
    %164 = tpu.matmul %161, %163, %cst_171 {dimension_numbers = #tpu.dot_dimension_numbers<[1], [0], [0], [1], [0, 0, 1, 1], [], []>} : vector<256x128xbf16>, vector<128x128xbf16>, vector<256x128xf32> -> vector<256x128xf32>
    %165 = arith.addf %158, %164 : vector<256x128xf32>
    %c2_172 = arith.constant 2 : index
    %c2_173 = arith.constant 2 : index
    %c0_174 = arith.constant 0 : index
    %c0_175 = arith.constant 0 : index
    %166 = vector.load %arg11[%c2_172, %c2_173, %c0_174, %c0_175] : memref<3x18x16x128xbf16, #tpu.memory_space<vmem>>, vector<1x16x16x128xbf16>
    %167 = vector.shape_cast %166 : vector<1x16x16x128xbf16> to vector<16x16x128xbf16>
    %168 = vector.shape_cast %167 : vector<16x16x128xbf16> to vector<256x128xbf16>
    %c8_176 = arith.constant 8 : index
    %c0_177 = arith.constant 0 : index
    %c0_178 = arith.constant 0 : index
    %169 = vector.load %arg5[%c8_176, %c0_177, %c0_178] : memref<9x128x128xbf16, #tpu.memory_space<vmem>>, vector<1x128x128xbf16>
    %170 = vector.shape_cast %169 : vector<1x128x128xbf16> to vector<128x128xbf16>
    %cst_179 = arith.constant dense<0.000000e+00> : vector<256x128xf32>
    %171 = tpu.matmul %168, %170, %cst_179 {dimension_numbers = #tpu.dot_dimension_numbers<[1], [0], [0], [1], [0, 0, 1, 1], [], []>} : vector<256x128xbf16>, vector<128x128xbf16>, vector<256x128xf32> -> vector<256x128xf32>
    %172 = arith.addf %165, %171 : vector<256x128xf32>
    %c0_180 = arith.constant 0 : index
    %c0_181 = arith.constant 0 : index
    %173 = vector.load %arg6[%c0_180, %c0_181] : memref<1x128xf32, #tpu.memory_space<vmem>>, vector<1x128xf32>
    %174 = vector.broadcast %173 : vector<1x128xf32> to vector<256x128xf32>
    %175 = arith.mulf %172, %174 : vector<256x128xf32>
    %c0_182 = arith.constant 0 : index
    %c0_183 = arith.constant 0 : index
    %176 = vector.load %arg7[%c0_182, %c0_183] : memref<1x128xf32, #tpu.memory_space<vmem>>, vector<1x128xf32>
    %177 = vector.broadcast %176 : vector<1x128xf32> to vector<256x128xf32>
    %178 = arith.addf %175, %177 : vector<256x128xf32>
    %cst_184 = arith.constant dense<0.000000e+00> : vector<128xf32>
    %179 = vector.multi_reduction <add>, %178, %cst_184 [0] : vector<256x128xf32> to vector<128xf32>
    %180 = vector.shape_cast %179 : vector<128xf32> to vector<1x128xf32>
    %cst_185 = arith.constant 2.560000e+02 : f32
    %181 = vector.broadcast %cst_185 : f32 to vector<1x128xf32>
    %182 = arith.divf %180, %181 : vector<1x128xf32>
    %c0_186 = arith.constant 0 : index
    %c0_187 = arith.constant 0 : index
    %183 = vector.load %arg8[%c0_186, %c0_187] : memref<8x128xf32, #tpu.memory_space<vmem>>, vector<8x128xf32>
    %184 = vector.broadcast %182 : vector<1x128xf32> to vector<8x128xf32>
    %185 = arith.mulf %184, %183 : vector<8x128xf32>
    %cst_188 = arith.constant dense<0.000000e+00> : vector<8xf32>
    %186 = vector.multi_reduction <add>, %185, %cst_188 [1] : vector<8x128xf32> to vector<8xf32>
    %187 = vector.shape_cast %186 : vector<8xf32> to vector<8x1xf32>
    %cst_189 = arith.constant 0.000000e+00 : f32
    %188 = vector.broadcast %cst_189 : f32 to vector<8x1xf32>
    %189 = arith.maximumf %187, %188 : vector<8x1xf32>
    %c0_190 = arith.constant 0 : index
    %c0_191 = arith.constant 0 : index
    %190 = vector.load %arg9[%c0_190, %c0_191] : memref<8x128xf32, #tpu.memory_space<vmem>>, vector<8x128xf32>
    %191 = vector.broadcast %189 : vector<8x1xf32> to vector<8x128xf32>
    %192 = arith.mulf %191, %190 : vector<8x128xf32>
    %cst_192 = arith.constant dense<0.000000e+00> : vector<128xf32>
    %193 = vector.multi_reduction <add>, %192, %cst_192 [0] : vector<8x128xf32> to vector<128xf32>
    %194 = vector.shape_cast %193 : vector<128xf32> to vector<1x128xf32>
    %195 = arith.negf %194 : vector<1x128xf32>
    %196 = math.exp %195 : vector<1x128xf32>
    %cst_193 = arith.constant 1.000000e+00 : f32
    %197 = vector.broadcast %cst_193 : f32 to vector<1x128xf32>
    %198 = arith.addf %197, %196 : vector<1x128xf32>
    %199 = arith.divf %197, %198 : vector<1x128xf32>
    %c0_194 = arith.constant 0 : index
    %c0_195 = arith.constant 0 : index
    %c0_196 = arith.constant 0 : index
    %c0_197 = arith.constant 0 : index
    %200 = vector.load %arg1[%c0_194, %c0_195, %c0_196, %c0_197] : memref<2x16x16x128xf32, #tpu.memory_space<vmem>>, vector<1x16x16x128xf32>
    %201 = vector.shape_cast %200 : vector<1x16x16x128xf32> to vector<16x16x128xf32>
    %202 = vector.shape_cast %201 : vector<16x16x128xf32> to vector<256x128xf32>
    %203 = vector.broadcast %199 : vector<1x128xf32> to vector<256x128xf32>
    %204 = arith.mulf %178, %203 : vector<256x128xf32>
    %205 = arith.addf %204, %202 : vector<256x128xf32>
    %cst_198 = arith.constant 0.000000e+00 : f32
    %206 = vector.broadcast %cst_198 : f32 to vector<256x128xf32>
    %207 = arith.maximumf %205, %206 : vector<256x128xf32>
    %208 = vector.shape_cast %207 : vector<256x128xf32> to vector<16x16x128xf32>
    %c0_199 = arith.constant 0 : index
    %c0_200 = arith.constant 0 : index
    %c0_201 = arith.constant 0 : index
    %c0_202 = arith.constant 0 : index
    %209 = vector.load %arg10[%c0_199, %c0_200, %c0_201, %c0_202] : memref<2x16x16x128xf32, #tpu.memory_space<vmem>>, vector<1x16x16x128xf32>
    %210 = vector.shape_cast %209 : vector<1x16x16x128xf32> to vector<16x16x128xf32>
    %211 = vector.shape_cast %208 : vector<16x16x128xf32> to vector<1x16x16x128xf32>
    tpu.vector_store %arg10[%c0_199, %c0_200, %c0_201, %c0_202], %211 {strides = array<i32>} : memref<2x16x16x128xf32, #tpu.memory_space<vmem>>, vector<1x16x16x128xf32>,
    %c1_203 = arith.constant 1 : index
    %c0_204 = arith.constant 0 : index
    %c0_205 = arith.constant 0 : index
    %c0_206 = arith.constant 0 : index
    %212 = vector.load %arg1[%c1_203, %c0_204, %c0_205, %c0_206] : memref<2x16x16x128xf32, #tpu.memory_space<vmem>>, vector<1x16x16x128xf32>
    %213 = vector.shape_cast %212 : vector<1x16x16x128xf32> to vector<16x16x128xf32>
    %214 = arith.truncf %213 : vector<16x16x128xf32> to vector<16x16x128xbf16>
    %cst_207 = arith.constant 0.000000e+00 : bf16
    %215 = vector.broadcast %cst_207 : bf16 to vector<16x1x128xbf16>
    %216 = vector.extract_strided_slice %214 {offsets = [0, 0, 0], sizes = [16, 15, 128], strides = [1, 1, 1]} : vector<16x16x128xbf16> to vector<16x15x128xbf16>
    %217 = tpu.concatenate %215, %216 in 1 : vector<16x1x128xbf16>, vector<16x15x128xbf16> -> vector<16x16x128xbf16>
    %c0_208 = arith.constant 0 : index
    %c1_209 = arith.constant 1 : index
    %c0_210 = arith.constant 0 : index
    %c0_211 = arith.constant 0 : index
    %218 = vector.load %arg11[%c0_208, %c1_209, %c0_210, %c0_211] : memref<3x18x16x128xbf16, #tpu.memory_space<vmem>>, vector<1x16x16x128xbf16>
    %219 = vector.shape_cast %218 : vector<1x16x16x128xbf16> to vector<16x16x128xbf16>
    %220 = vector.shape_cast %217 : vector<16x16x128xbf16> to vector<1x16x16x128xbf16>
    tpu.vector_store %arg11[%c0_208, %c1_209, %c0_210, %c0_211], %220 {strides = array<i32>} : memref<3x18x16x128xbf16, #tpu.memory_space<vmem>>, vector<1x16x16x128xbf16>,
    %c1_212 = arith.constant 1 : index
    %c1_213 = arith.constant 1 : index
    %c0_214 = arith.constant 0 : index
    %c0_215 = arith.constant 0 : index
    %221 = vector.load %arg11[%c1_212, %c1_213, %c0_214, %c0_215] : memref<3x18x16x128xbf16, #tpu.memory_space<vmem>>, vector<1x16x16x128xbf16>
    %222 = vector.shape_cast %221 : vector<1x16x16x128xbf16> to vector<16x16x128xbf16>
    %223 = vector.shape_cast %214 : vector<16x16x128xbf16> to vector<1x16x16x128xbf16>
    tpu.vector_store %arg11[%c1_212, %c1_213, %c0_214, %c0_215], %223 {strides = array<i32>} : memref<3x18x16x128xbf16, #tpu.memory_space<vmem>>, vector<1x16x16x128xbf16>,
    %224 = vector.extract_strided_slice %214 {offsets = [0, 1, 0], sizes = [16, 15, 128], strides = [1, 1, 1]} : vector<16x16x128xbf16> to vector<16x15x128xbf16>
    %225 = tpu.concatenate %224, %215 in 1 : vector<16x15x128xbf16>, vector<16x1x128xbf16> -> vector<16x16x128xbf16>
    %c2_216 = arith.constant 2 : index
    %c1_217 = arith.constant 1 : index
    %c0_218 = arith.constant 0 : index
    %c0_219 = arith.constant 0 : index
    %226 = vector.load %arg11[%c2_216, %c1_217, %c0_218, %c0_219] : memref<3x18x16x128xbf16, #tpu.memory_space<vmem>>, vector<1x16x16x128xbf16>
    %227 = vector.shape_cast %226 : vector<1x16x16x128xbf16> to vector<16x16x128xbf16>
    %228 = vector.shape_cast %225 : vector<16x16x128xbf16> to vector<1x16x16x128xbf16>
    tpu.vector_store %arg11[%c2_216, %c1_217, %c0_218, %c0_219], %228 {strides = array<i32>} : memref<3x18x16x128xbf16, #tpu.memory_space<vmem>>, vector<1x16x16x128xbf16>,
    %cst_220 = arith.constant 0.000000e+00 : f32
    %229 = vector.broadcast %cst_220 : f32 to vector<256x128xf32>
    %c0_221 = arith.constant 0 : index
    %c0_222 = arith.constant 0 : index
    %c0_223 = arith.constant 0 : index
    %c0_224 = arith.constant 0 : index
    %230 = vector.load %arg11[%c0_221, %c0_222, %c0_223, %c0_224] : memref<3x18x16x128xbf16, #tpu.memory_space<vmem>>, vector<1x16x16x128xbf16>
    %231 = vector.shape_cast %230 : vector<1x16x16x128xbf16> to vector<16x16x128xbf16>
    %232 = vector.shape_cast %231 : vector<16x16x128xbf16> to vector<256x128xbf16>
    %c0_225 = arith.constant 0 : index
    %c0_226 = arith.constant 0 : index
    %c0_227 = arith.constant 0 : index
    %233 = vector.load %arg2[%c0_225, %c0_226, %c0_227] : memref<9x128x128xbf16, #tpu.memory_space<vmem>>, vector<1x128x128xbf16>
    %234 = vector.shape_cast %233 : vector<1x128x128xbf16> to vector<128x128xbf16>
    %cst_228 = arith.constant dense<0.000000e+00> : vector<256x128xf32>
    %235 = tpu.matmul %232, %234, %cst_228 {dimension_numbers = #tpu.dot_dimension_numbers<[1], [0], [0], [1], [0, 0, 1, 1], [], []>} : vector<256x128xbf16>, vector<128x128xbf16>, vector<256x128xf32> -> vector<256x128xf32>
    %236 = arith.addf %229, %235 : vector<256x128xf32>
    %c1_229 = arith.constant 1 : index
    %c0_230 = arith.constant 0 : index
    %c0_231 = arith.constant 0 : index
    %c0_232 = arith.constant 0 : index
    %237 = vector.load %arg11[%c1_229, %c0_230, %c0_231, %c0_232] : memref<3x18x16x128xbf16, #tpu.memory_space<vmem>>, vector<1x16x16x128xbf16>
    %238 = vector.shape_cast %237 : vector<1x16x16x128xbf16> to vector<16x16x128xbf16>
    %239 = vector.shape_cast %238 : vector<16x16x128xbf16> to vector<256x128xbf16>
    %c1_233 = arith.constant 1 : index
    %c0_234 = arith.constant 0 : index
    %c0_235 = arith.constant 0 : index
    %240 = vector.load %arg2[%c1_233, %c0_234, %c0_235] : memref<9x128x128xbf16, #tpu.memory_space<vmem>>, vector<1x128x128xbf16>
    %241 = vector.shape_cast %240 : vector<1x128x128xbf16> to vector<128x128xbf16>
    %cst_236 = arith.constant dense<0.000000e+00> : vector<256x128xf32>
    %242 = tpu.matmul %239, %241, %cst_236 {dimension_numbers = #tpu.dot_dimension_numbers<[1], [0], [0], [1], [0, 0, 1, 1], [], []>} : vector<256x128xbf16>, vector<128x128xbf16>, vector<256x128xf32> -> vector<256x128xf32>
    %243 = arith.addf %236, %242 : vector<256x128xf32>
    %c2_237 = arith.constant 2 : index
    %c0_238 = arith.constant 0 : index
    %c0_239 = arith.constant 0 : index
    %c0_240 = arith.constant 0 : index
    %244 = vector.load %arg11[%c2_237, %c0_238, %c0_239, %c0_240] : memref<3x18x16x128xbf16, #tpu.memory_space<vmem>>, vector<1x16x16x128xbf16>
    %245 = vector.shape_cast %244 : vector<1x16x16x128xbf16> to vector<16x16x128xbf16>
    %246 = vector.shape_cast %245 : vector<16x16x128xbf16> to vector<256x128xbf16>
    %c2_241 = arith.constant 2 : index
    %c0_242 = arith.constant 0 : index
    %c0_243 = arith.constant 0 : index
    %247 = vector.load %arg2[%c2_241, %c0_242, %c0_243] : memref<9x128x128xbf16, #tpu.memory_space<vmem>>, vector<1x128x128xbf16>
    %248 = vector.shape_cast %247 : vector<1x128x128xbf16> to vector<128x128xbf16>
    %cst_244 = arith.constant dense<0.000000e+00> : vector<256x128xf32>
    %249 = tpu.matmul %246, %248, %cst_244 {dimension_numbers = #tpu.dot_dimension_numbers<[1], [0], [0], [1], [0, 0, 1, 1], [], []>} : vector<256x128xbf16>, vector<128x128xbf16>, vector<256x128xf32> -> vector<256x128xf32>
    %250 = arith.addf %243, %249 : vector<256x128xf32>
    %c0_245 = arith.constant 0 : index
    %c1_246 = arith.constant 1 : index
    %c0_247 = arith.constant 0 : index
    %c0_248 = arith.constant 0 : index
    %251 = vector.load %arg11[%c0_245, %c1_246, %c0_247, %c0_248] : memref<3x18x16x128xbf16, #tpu.memory_space<vmem>>, vector<1x16x16x128xbf16>
    %252 = vector.shape_cast %251 : vector<1x16x16x128xbf16> to vector<16x16x128xbf16>
    %253 = vector.shape_cast %252 : vector<16x16x128xbf16> to vector<256x128xbf16>
    %c3_249 = arith.constant 3 : index
    %c0_250 = arith.constant 0 : index
    %c0_251 = arith.constant 0 : index
    %254 = vector.load %arg2[%c3_249, %c0_250, %c0_251] : memref<9x128x128xbf16, #tpu.memory_space<vmem>>, vector<1x128x128xbf16>
    %255 = vector.shape_cast %254 : vector<1x128x128xbf16> to vector<128x128xbf16>
    %cst_252 = arith.constant dense<0.000000e+00> : vector<256x128xf32>
    %256 = tpu.matmul %253, %255, %cst_252 {dimension_numbers = #tpu.dot_dimension_numbers<[1], [0], [0], [1], [0, 0, 1, 1], [], []>} : vector<256x128xbf16>, vector<128x128xbf16>, vector<256x128xf32> -> vector<256x128xf32>
    %257 = arith.addf %250, %256 : vector<256x128xf32>
    %c1_253 = arith.constant 1 : index
    %c1_254 = arith.constant 1 : index
    %c0_255 = arith.constant 0 : index
    %c0_256 = arith.constant 0 : index
    %258 = vector.load %arg11[%c1_253, %c1_254, %c0_255, %c0_256] : memref<3x18x16x128xbf16, #tpu.memory_space<vmem>>, vector<1x16x16x128xbf16>
    %259 = vector.shape_cast %258 : vector<1x16x16x128xbf16> to vector<16x16x128xbf16>
    %260 = vector.shape_cast %259 : vector<16x16x128xbf16> to vector<256x128xbf16>
    %c4_257 = arith.constant 4 : index
    %c0_258 = arith.constant 0 : index
    %c0_259 = arith.constant 0 : index
    %261 = vector.load %arg2[%c4_257, %c0_258, %c0_259] : memref<9x128x128xbf16, #tpu.memory_space<vmem>>, vector<1x128x128xbf16>
    %262 = vector.shape_cast %261 : vector<1x128x128xbf16> to vector<128x128xbf16>
    %cst_260 = arith.constant dense<0.000000e+00> : vector<256x128xf32>
    %263 = tpu.matmul %260, %262, %cst_260 {dimension_numbers = #tpu.dot_dimension_numbers<[1], [0], [0], [1], [0, 0, 1, 1], [], []>} : vector<256x128xbf16>, vector<128x128xbf16>, vector<256x128xf32> -> vector<256x128xf32>
    %264 = arith.addf %257, %263 : vector<256x128xf32>
    %c2_261 = arith.constant 2 : index
    %c1_262 = arith.constant 1 : index
    %c0_263 = arith.constant 0 : index
    %c0_264 = arith.constant 0 : index
    %265 = vector.load %arg11[%c2_261, %c1_262, %c0_263, %c0_264] : memref<3x18x16x128xbf16, #tpu.memory_space<vmem>>, vector<1x16x16x128xbf16>
    %266 = vector.shape_cast %265 : vector<1x16x16x128xbf16> to vector<16x16x128xbf16>
    %267 = vector.shape_cast %266 : vector<16x16x128xbf16> to vector<256x128xbf16>
    %c5_265 = arith.constant 5 : index
    %c0_266 = arith.constant 0 : index
    %c0_267 = arith.constant 0 : index
    %268 = vector.load %arg2[%c5_265, %c0_266, %c0_267] : memref<9x128x128xbf16, #tpu.memory_space<vmem>>, vector<1x128x128xbf16>
    %269 = vector.shape_cast %268 : vector<1x128x128xbf16> to vector<128x128xbf16>
    %cst_268 = arith.constant dense<0.000000e+00> : vector<256x128xf32>
    %270 = tpu.matmul %267, %269, %cst_268 {dimension_numbers = #tpu.dot_dimension_numbers<[1], [0], [0], [1], [0, 0, 1, 1], [], []>} : vector<256x128xbf16>, vector<128x128xbf16>, vector<256x128xf32> -> vector<256x128xf32>
    %271 = arith.addf %264, %270 : vector<256x128xf32>
    %c0_269 = arith.constant 0 : index
    %c2_270 = arith.constant 2 : index
    %c0_271 = arith.constant 0 : index
    %c0_272 = arith.constant 0 : index
    %272 = vector.load %arg11[%c0_269, %c2_270, %c0_271, %c0_272] : memref<3x18x16x128xbf16, #tpu.memory_space<vmem>>, vector<1x16x16x128xbf16>
    %273 = vector.shape_cast %272 : vector<1x16x16x128xbf16> to vector<16x16x128xbf16>
    %274 = vector.shape_cast %273 : vector<16x16x128xbf16> to vector<256x128xbf16>
    %c6_273 = arith.constant 6 : index
    %c0_274 = arith.constant 0 : index
    %c0_275 = arith.constant 0 : index
    %275 = vector.load %arg2[%c6_273, %c0_274, %c0_275] : memref<9x128x128xbf16, #tpu.memory_space<vmem>>, vector<1x128x128xbf16>
    %276 = vector.shape_cast %275 : vector<1x128x128xbf16> to vector<128x128xbf16>
    %cst_276 = arith.constant dense<0.000000e+00> : vector<256x128xf32>
    %277 = tpu.matmul %274, %276, %cst_276 {dimension_numbers = #tpu.dot_dimension_numbers<[1], [0], [0], [1], [0, 0, 1, 1], [], []>} : vector<256x128xbf16>, vector<128x128xbf16>, vector<256x128xf32> -> vector<256x128xf32>
    %278 = arith.addf %271, %277 : vector<256x128xf32>
    %c1_277 = arith.constant 1 : index
    %c2_278 = arith.constant 2 : index
    %c0_279 = arith.constant 0 : index
    %c0_280 = arith.constant 0 : index
    %279 = vector.load %arg11[%c1_277, %c2_278, %c0_279, %c0_280] : memref<3x18x16x128xbf16, #tpu.memory_space<vmem>>, vector<1x16x16x128xbf16>
    %280 = vector.shape_cast %279 : vector<1x16x16x128xbf16> to vector<16x16x128xbf16>
    %281 = vector.shape_cast %280 : vector<16x16x128xbf16> to vector<256x128xbf16>
    %c7_281 = arith.constant 7 : index
    %c0_282 = arith.constant 0 : index
    %c0_283 = arith.constant 0 : index
    %282 = vector.load %arg2[%c7_281, %c0_282, %c0_283] : memref<9x128x128xbf16, #tpu.memory_space<vmem>>, vector<1x128x128xbf16>
    %283 = vector.shape_cast %282 : vector<1x128x128xbf16> to vector<128x128xbf16>
    %cst_284 = arith.constant dense<0.000000e+00> : vector<256x128xf32>
    %284 = tpu.matmul %281, %283, %cst_284 {dimension_numbers = #tpu.dot_dimension_numbers<[1], [0], [0], [1], [0, 0, 1, 1], [], []>} : vector<256x128xbf16>, vector<128x128xbf16>, vector<256x128xf32> -> vector<256x128xf32>
    %285 = arith.addf %278, %284 : vector<256x128xf32>
    %c2_285 = arith.constant 2 : index
    %c2_286 = arith.constant 2 : index
    %c0_287 = arith.constant 0 : index
    %c0_288 = arith.constant 0 : index
    %286 = vector.load %arg11[%c2_285, %c2_286, %c0_287, %c0_288] : memref<3x18x16x128xbf16, #tpu.memory_space<vmem>>, vector<1x16x16x128xbf16>
    %287 = vector.shape_cast %286 : vector<1x16x16x128xbf16> to vector<16x16x128xbf16>
    %288 = vector.shape_cast %287 : vector<16x16x128xbf16> to vector<256x128xbf16>
    %c8_289 = arith.constant 8 : index
    %c0_290 = arith.constant 0 : index
    %c0_291 = arith.constant 0 : index
    %289 = vector.load %arg2[%c8_289, %c0_290, %c0_291] : memref<9x128x128xbf16, #tpu.memory_space<vmem>>, vector<1x128x128xbf16>
    %290 = vector.shape_cast %289 : vector<1x128x128xbf16> to vector<128x128xbf16>
    %cst_292 = arith.constant dense<0.000000e+00> : vector<256x128xf32>
    %291 = tpu.matmul %288, %290, %cst_292 {dimension_numbers = #tpu.dot_dimension_numbers<[1], [0], [0], [1], [0, 0, 1, 1], [], []>} : vector<256x128xbf16>, vector<128x128xbf16>, vector<256x128xf32> -> vector<256x128xf32>
    %292 = arith.addf %285, %291 : vector<256x128xf32>
    %c0_293 = arith.constant 0 : index
    %c0_294 = arith.constant 0 : index
    %293 = vector.load %arg3[%c0_293, %c0_294] : memref<1x128xf32, #tpu.memory_space<vmem>>, vector<1x128xf32>
    %294 = vector.broadcast %293 : vector<1x128xf32> to vector<256x128xf32>
    %295 = arith.mulf %292, %294 : vector<256x128xf32>
    %c0_295 = arith.constant 0 : index
    %c0_296 = arith.constant 0 : index
    %296 = vector.load %arg4[%c0_295, %c0_296] : memref<1x128xf32, #tpu.memory_space<vmem>>, vector<1x128xf32>
    %297 = vector.broadcast %296 : vector<1x128xf32> to vector<256x128xf32>
    %298 = arith.addf %295, %297 : vector<256x128xf32>
    %cst_297 = arith.constant 0.000000e+00 : f32
    %299 = vector.broadcast %cst_297 : f32 to vector<256x128xf32>
    %300 = arith.maximumf %298, %299 : vector<256x128xf32>
    %301 = vector.shape_cast %300 : vector<256x128xf32> to vector<16x16x128xf32>
    %302 = arith.truncf %301 : vector<16x16x128xf32> to vector<16x16x128xbf16>
    %cst_298 = arith.constant 0.000000e+00 : bf16
    %303 = vector.broadcast %cst_298 : bf16 to vector<16x1x128xbf16>
    %304 = vector.extract_strided_slice %302 {offsets = [0, 0, 0], sizes = [16, 15, 128], strides = [1, 1, 1]} : vector<16x16x128xbf16> to vector<16x15x128xbf16>
    %305 = tpu.concatenate %303, %304 in 1 : vector<16x1x128xbf16>, vector<16x15x128xbf16> -> vector<16x16x128xbf16>
    %c0_299 = arith.constant 0 : index
    %c1_300 = arith.constant 1 : index
    %c0_301 = arith.constant 0 : index
    %c0_302 = arith.constant 0 : index
    %306 = vector.load %arg11[%c0_299, %c1_300, %c0_301, %c0_302] : memref<3x18x16x128xbf16, #tpu.memory_space<vmem>>, vector<1x16x16x128xbf16>
    %307 = vector.shape_cast %306 : vector<1x16x16x128xbf16> to vector<16x16x128xbf16>
    %308 = vector.shape_cast %305 : vector<16x16x128xbf16> to vector<1x16x16x128xbf16>
    tpu.vector_store %arg11[%c0_299, %c1_300, %c0_301, %c0_302], %308 {strides = array<i32>} : memref<3x18x16x128xbf16, #tpu.memory_space<vmem>>, vector<1x16x16x128xbf16>,
    %c1_303 = arith.constant 1 : index
    %c1_304 = arith.constant 1 : index
    %c0_305 = arith.constant 0 : index
    %c0_306 = arith.constant 0 : index
    %309 = vector.load %arg11[%c1_303, %c1_304, %c0_305, %c0_306] : memref<3x18x16x128xbf16, #tpu.memory_space<vmem>>, vector<1x16x16x128xbf16>
    %310 = vector.shape_cast %309 : vector<1x16x16x128xbf16> to vector<16x16x128xbf16>
    %311 = vector.shape_cast %302 : vector<16x16x128xbf16> to vector<1x16x16x128xbf16>
    tpu.vector_store %arg11[%c1_303, %c1_304, %c0_305, %c0_306], %311 {strides = array<i32>} : memref<3x18x16x128xbf16, #tpu.memory_space<vmem>>, vector<1x16x16x128xbf16>,
    %312 = vector.extract_strided_slice %302 {offsets = [0, 1, 0], sizes = [16, 15, 128], strides = [1, 1, 1]} : vector<16x16x128xbf16> to vector<16x15x128xbf16>
    %313 = tpu.concatenate %312, %303 in 1 : vector<16x15x128xbf16>, vector<16x1x128xbf16> -> vector<16x16x128xbf16>
    %c2_307 = arith.constant 2 : index
    %c1_308 = arith.constant 1 : index
    %c0_309 = arith.constant 0 : index
    %c0_310 = arith.constant 0 : index
    %314 = vector.load %arg11[%c2_307, %c1_308, %c0_309, %c0_310] : memref<3x18x16x128xbf16, #tpu.memory_space<vmem>>, vector<1x16x16x128xbf16>
    %315 = vector.shape_cast %314 : vector<1x16x16x128xbf16> to vector<16x16x128xbf16>
    %316 = vector.shape_cast %313 : vector<16x16x128xbf16> to vector<1x16x16x128xbf16>
    tpu.vector_store %arg11[%c2_307, %c1_308, %c0_309, %c0_310], %316 {strides = array<i32>} : memref<3x18x16x128xbf16, #tpu.memory_space<vmem>>, vector<1x16x16x128xbf16>,
    %cst_311 = arith.constant 0.000000e+00 : f32
    %317 = vector.broadcast %cst_311 : f32 to vector<256x128xf32>
    %c0_312 = arith.constant 0 : index
    %c0_313 = arith.constant 0 : index
    %c0_314 = arith.constant 0 : index
    %c0_315 = arith.constant 0 : index
    %318 = vector.load %arg11[%c0_312, %c0_313, %c0_314, %c0_315] : memref<3x18x16x128xbf16, #tpu.memory_space<vmem>>, vector<1x16x16x128xbf16>
    %319 = vector.shape_cast %318 : vector<1x16x16x128xbf16> to vector<16x16x128xbf16>
    %320 = vector.shape_cast %319 : vector<16x16x128xbf16> to vector<256x128xbf16>
    %c0_316 = arith.constant 0 : index
    %c0_317 = arith.constant 0 : index
    %c0_318 = arith.constant 0 : index
    %321 = vector.load %arg5[%c0_316, %c0_317, %c0_318] : memref<9x128x128xbf16, #tpu.memory_space<vmem>>, vector<1x128x128xbf16>
    %322 = vector.shape_cast %321 : vector<1x128x128xbf16> to vector<128x128xbf16>
    %cst_319 = arith.constant dense<0.000000e+00> : vector<256x128xf32>
    %323 = tpu.matmul %320, %322, %cst_319 {dimension_numbers = #tpu.dot_dimension_numbers<[1], [0], [0], [1], [0, 0, 1, 1], [], []>} : vector<256x128xbf16>, vector<128x128xbf16>, vector<256x128xf32> -> vector<256x128xf32>
    %324 = arith.addf %317, %323 : vector<256x128xf32>
    %c1_320 = arith.constant 1 : index
    %c0_321 = arith.constant 0 : index
    %c0_322 = arith.constant 0 : index
    %c0_323 = arith.constant 0 : index
    %325 = vector.load %arg11[%c1_320, %c0_321, %c0_322, %c0_323] : memref<3x18x16x128xbf16, #tpu.memory_space<vmem>>, vector<1x16x16x128xbf16>
    %326 = vector.shape_cast %325 : vector<1x16x16x128xbf16> to vector<16x16x128xbf16>
    %327 = vector.shape_cast %326 : vector<16x16x128xbf16> to vector<256x128xbf16>
    %c1_324 = arith.constant 1 : index
    %c0_325 = arith.constant 0 : index
    %c0_326 = arith.constant 0 : index
    %328 = vector.load %arg5[%c1_324, %c0_325, %c0_326] : memref<9x128x128xbf16, #tpu.memory_space<vmem>>, vector<1x128x128xbf16>
    %329 = vector.shape_cast %328 : vector<1x128x128xbf16> to vector<128x128xbf16>
    %cst_327 = arith.constant dense<0.000000e+00> : vector<256x128xf32>
    %330 = tpu.matmul %327, %329, %cst_327 {dimension_numbers = #tpu.dot_dimension_numbers<[1], [0], [0], [1], [0, 0, 1, 1], [], []>} : vector<256x128xbf16>, vector<128x128xbf16>, vector<256x128xf32> -> vector<256x128xf32>
    %331 = arith.addf %324, %330 : vector<256x128xf32>
    %c2_328 = arith.constant 2 : index
    %c0_329 = arith.constant 0 : index
    %c0_330 = arith.constant 0 : index
    %c0_331 = arith.constant 0 : index
    %332 = vector.load %arg11[%c2_328, %c0_329, %c0_330, %c0_331] : memref<3x18x16x128xbf16, #tpu.memory_space<vmem>>, vector<1x16x16x128xbf16>
    %333 = vector.shape_cast %332 : vector<1x16x16x128xbf16> to vector<16x16x128xbf16>
    %334 = vector.shape_cast %333 : vector<16x16x128xbf16> to vector<256x128xbf16>
    %c2_332 = arith.constant 2 : index
    %c0_333 = arith.constant 0 : index
    %c0_334 = arith.constant 0 : index
    %335 = vector.load %arg5[%c2_332, %c0_333, %c0_334] : memref<9x128x128xbf16, #tpu.memory_space<vmem>>, vector<1x128x128xbf16>
    %336 = vector.shape_cast %335 : vector<1x128x128xbf16> to vector<128x128xbf16>
    %cst_335 = arith.constant dense<0.000000e+00> : vector<256x128xf32>
    %337 = tpu.matmul %334, %336, %cst_335 {dimension_numbers = #tpu.dot_dimension_numbers<[1], [0], [0], [1], [0, 0, 1, 1], [], []>} : vector<256x128xbf16>, vector<128x128xbf16>, vector<256x128xf32> -> vector<256x128xf32>
    %338 = arith.addf %331, %337 : vector<256x128xf32>
    %c0_336 = arith.constant 0 : index
    %c1_337 = arith.constant 1 : index
    %c0_338 = arith.constant 0 : index
    %c0_339 = arith.constant 0 : index
    %339 = vector.load %arg11[%c0_336, %c1_337, %c0_338, %c0_339] : memref<3x18x16x128xbf16, #tpu.memory_space<vmem>>, vector<1x16x16x128xbf16>
    %340 = vector.shape_cast %339 : vector<1x16x16x128xbf16> to vector<16x16x128xbf16>
    %341 = vector.shape_cast %340 : vector<16x16x128xbf16> to vector<256x128xbf16>
    %c3_340 = arith.constant 3 : index
    %c0_341 = arith.constant 0 : index
    %c0_342 = arith.constant 0 : index
    %342 = vector.load %arg5[%c3_340, %c0_341, %c0_342] : memref<9x128x128xbf16, #tpu.memory_space<vmem>>, vector<1x128x128xbf16>
    %343 = vector.shape_cast %342 : vector<1x128x128xbf16> to vector<128x128xbf16>
    %cst_343 = arith.constant dense<0.000000e+00> : vector<256x128xf32>
    %344 = tpu.matmul %341, %343, %cst_343 {dimension_numbers = #tpu.dot_dimension_numbers<[1], [0], [0], [1], [0, 0, 1, 1], [], []>} : vector<256x128xbf16>, vector<128x128xbf16>, vector<256x128xf32> -> vector<256x128xf32>
    %345 = arith.addf %338, %344 : vector<256x128xf32>
    %c1_344 = arith.constant 1 : index
    %c1_345 = arith.constant 1 : index
    %c0_346 = arith.constant 0 : index
    %c0_347 = arith.constant 0 : index
    %346 = vector.load %arg11[%c1_344, %c1_345, %c0_346, %c0_347] : memref<3x18x16x128xbf16, #tpu.memory_space<vmem>>, vector<1x16x16x128xbf16>
    %347 = vector.shape_cast %346 : vector<1x16x16x128xbf16> to vector<16x16x128xbf16>
    %348 = vector.shape_cast %347 : vector<16x16x128xbf16> to vector<256x128xbf16>
    %c4_348 = arith.constant 4 : index
    %c0_349 = arith.constant 0 : index
    %c0_350 = arith.constant 0 : index
    %349 = vector.load %arg5[%c4_348, %c0_349, %c0_350] : memref<9x128x128xbf16, #tpu.memory_space<vmem>>, vector<1x128x128xbf16>
    %350 = vector.shape_cast %349 : vector<1x128x128xbf16> to vector<128x128xbf16>
    %cst_351 = arith.constant dense<0.000000e+00> : vector<256x128xf32>
    %351 = tpu.matmul %348, %350, %cst_351 {dimension_numbers = #tpu.dot_dimension_numbers<[1], [0], [0], [1], [0, 0, 1, 1], [], []>} : vector<256x128xbf16>, vector<128x128xbf16>, vector<256x128xf32> -> vector<256x128xf32>
    %352 = arith.addf %345, %351 : vector<256x128xf32>
    %c2_352 = arith.constant 2 : index
    %c1_353 = arith.constant 1 : index
    %c0_354 = arith.constant 0 : index
    %c0_355 = arith.constant 0 : index
    %353 = vector.load %arg11[%c2_352, %c1_353, %c0_354, %c0_355] : memref<3x18x16x128xbf16, #tpu.memory_space<vmem>>, vector<1x16x16x128xbf16>
    %354 = vector.shape_cast %353 : vector<1x16x16x128xbf16> to vector<16x16x128xbf16>
    %355 = vector.shape_cast %354 : vector<16x16x128xbf16> to vector<256x128xbf16>
    %c5_356 = arith.constant 5 : index
    %c0_357 = arith.constant 0 : index
    %c0_358 = arith.constant 0 : index
    %356 = vector.load %arg5[%c5_356, %c0_357, %c0_358] : memref<9x128x128xbf16, #tpu.memory_space<vmem>>, vector<1x128x128xbf16>
    %357 = vector.shape_cast %356 : vector<1x128x128xbf16> to vector<128x128xbf16>
    %cst_359 = arith.constant dense<0.000000e+00> : vector<256x128xf32>
    %358 = tpu.matmul %355, %357, %cst_359 {dimension_numbers = #tpu.dot_dimension_numbers<[1], [0], [0], [1], [0, 0, 1, 1], [], []>} : vector<256x128xbf16>, vector<128x128xbf16>, vector<256x128xf32> -> vector<256x128xf32>
    %359 = arith.addf %352, %358 : vector<256x128xf32>
    %c0_360 = arith.constant 0 : index
    %c2_361 = arith.constant 2 : index
    %c0_362 = arith.constant 0 : index
    %c0_363 = arith.constant 0 : index
    %360 = vector.load %arg11[%c0_360, %c2_361, %c0_362, %c0_363] : memref<3x18x16x128xbf16, #tpu.memory_space<vmem>>, vector<1x16x16x128xbf16>
    %361 = vector.shape_cast %360 : vector<1x16x16x128xbf16> to vector<16x16x128xbf16>
    %362 = vector.shape_cast %361 : vector<16x16x128xbf16> to vector<256x128xbf16>
    %c6_364 = arith.constant 6 : index
    %c0_365 = arith.constant 0 : index
    %c0_366 = arith.constant 0 : index
    %363 = vector.load %arg5[%c6_364, %c0_365, %c0_366] : memref<9x128x128xbf16, #tpu.memory_space<vmem>>, vector<1x128x128xbf16>
    %364 = vector.shape_cast %363 : vector<1x128x128xbf16> to vector<128x128xbf16>
    %cst_367 = arith.constant dense<0.000000e+00> : vector<256x128xf32>
    %365 = tpu.matmul %362, %364, %cst_367 {dimension_numbers = #tpu.dot_dimension_numbers<[1], [0], [0], [1], [0, 0, 1, 1], [], []>} : vector<256x128xbf16>, vector<128x128xbf16>, vector<256x128xf32> -> vector<256x128xf32>
    %366 = arith.addf %359, %365 : vector<256x128xf32>
    %c1_368 = arith.constant 1 : index
    %c2_369 = arith.constant 2 : index
    %c0_370 = arith.constant 0 : index
    %c0_371 = arith.constant 0 : index
    %367 = vector.load %arg11[%c1_368, %c2_369, %c0_370, %c0_371] : memref<3x18x16x128xbf16, #tpu.memory_space<vmem>>, vector<1x16x16x128xbf16>
    %368 = vector.shape_cast %367 : vector<1x16x16x128xbf16> to vector<16x16x128xbf16>
    %369 = vector.shape_cast %368 : vector<16x16x128xbf16> to vector<256x128xbf16>
    %c7_372 = arith.constant 7 : index
    %c0_373 = arith.constant 0 : index
    %c0_374 = arith.constant 0 : index
    %370 = vector.load %arg5[%c7_372, %c0_373, %c0_374] : memref<9x128x128xbf16, #tpu.memory_space<vmem>>, vector<1x128x128xbf16>
    %371 = vector.shape_cast %370 : vector<1x128x128xbf16> to vector<128x128xbf16>
    %cst_375 = arith.constant dense<0.000000e+00> : vector<256x128xf32>
    %372 = tpu.matmul %369, %371, %cst_375 {dimension_numbers = #tpu.dot_dimension_numbers<[1], [0], [0], [1], [0, 0, 1, 1], [], []>} : vector<256x128xbf16>, vector<128x128xbf16>, vector<256x128xf32> -> vector<256x128xf32>
    %373 = arith.addf %366, %372 : vector<256x128xf32>
    %c2_376 = arith.constant 2 : index
    %c2_377 = arith.constant 2 : index
    %c0_378 = arith.constant 0 : index
    %c0_379 = arith.constant 0 : index
    %374 = vector.load %arg11[%c2_376, %c2_377, %c0_378, %c0_379] : memref<3x18x16x128xbf16, #tpu.memory_space<vmem>>, vector<1x16x16x128xbf16>
    %375 = vector.shape_cast %374 : vector<1x16x16x128xbf16> to vector<16x16x128xbf16>
    %376 = vector.shape_cast %375 : vector<16x16x128xbf16> to vector<256x128xbf16>
    %c8_380 = arith.constant 8 : index
    %c0_381 = arith.constant 0 : index
    %c0_382 = arith.constant 0 : index
    %377 = vector.load %arg5[%c8_380, %c0_381, %c0_382] : memref<9x128x128xbf16, #tpu.memory_space<vmem>>, vector<1x128x128xbf16>
    %378 = vector.shape_cast %377 : vector<1x128x128xbf16> to vector<128x128xbf16>
    %cst_383 = arith.constant dense<0.000000e+00> : vector<256x128xf32>
    %379 = tpu.matmul %376, %378, %cst_383 {dimension_numbers = #tpu.dot_dimension_numbers<[1], [0], [0], [1], [0, 0, 1, 1], [], []>} : vector<256x128xbf16>, vector<128x128xbf16>, vector<256x128xf32> -> vector<256x128xf32>
    %380 = arith.addf %373, %379 : vector<256x128xf32>
    %c0_384 = arith.constant 0 : index
    %c0_385 = arith.constant 0 : index
    %381 = vector.load %arg6[%c0_384, %c0_385] : memref<1x128xf32, #tpu.memory_space<vmem>>, vector<1x128xf32>
    %382 = vector.broadcast %381 : vector<1x128xf32> to vector<256x128xf32>
    %383 = arith.mulf %380, %382 : vector<256x128xf32>
    %c0_386 = arith.constant 0 : index
    %c0_387 = arith.constant 0 : index
    %384 = vector.load %arg7[%c0_386, %c0_387] : memref<1x128xf32, #tpu.memory_space<vmem>>, vector<1x128xf32>
    %385 = vector.broadcast %384 : vector<1x128xf32> to vector<256x128xf32>
    %386 = arith.addf %383, %385 : vector<256x128xf32>
    %cst_388 = arith.constant dense<0.000000e+00> : vector<128xf32>
    %387 = vector.multi_reduction <add>, %386, %cst_388 [0] : vector<256x128xf32> to vector<128xf32>
    %388 = vector.shape_cast %387 : vector<128xf32> to vector<1x128xf32>
    %cst_389 = arith.constant 2.560000e+02 : f32
    %389 = vector.broadcast %cst_389 : f32 to vector<1x128xf32>
    %390 = arith.divf %388, %389 : vector<1x128xf32>
    %c0_390 = arith.constant 0 : index
    %c0_391 = arith.constant 0 : index
    %391 = vector.load %arg8[%c0_390, %c0_391] : memref<8x128xf32, #tpu.memory_space<vmem>>, vector<8x128xf32>
    %392 = vector.broadcast %390 : vector<1x128xf32> to vector<8x128xf32>
    %393 = arith.mulf %392, %391 : vector<8x128xf32>
    %cst_392 = arith.constant dense<0.000000e+00> : vector<8xf32>
    %394 = vector.multi_reduction <add>, %393, %cst_392 [1] : vector<8x128xf32> to vector<8xf32>
    %395 = vector.shape_cast %394 : vector<8xf32> to vector<8x1xf32>
    %cst_393 = arith.constant 0.000000e+00 : f32
    %396 = vector.broadcast %cst_393 : f32 to vector<8x1xf32>
    %397 = arith.maximumf %395, %396 : vector<8x1xf32>
    %c0_394 = arith.constant 0 : index
    %c0_395 = arith.constant 0 : index
    %398 = vector.load %arg9[%c0_394, %c0_395] : memref<8x128xf32, #tpu.memory_space<vmem>>, vector<8x128xf32>
    %399 = vector.broadcast %397 : vector<8x1xf32> to vector<8x128xf32>
    %400 = arith.mulf %399, %398 : vector<8x128xf32>
    %cst_396 = arith.constant dense<0.000000e+00> : vector<128xf32>
    %401 = vector.multi_reduction <add>, %400, %cst_396 [0] : vector<8x128xf32> to vector<128xf32>
    %402 = vector.shape_cast %401 : vector<128xf32> to vector<1x128xf32>
    %403 = arith.negf %402 : vector<1x128xf32>
    %404 = math.exp %403 : vector<1x128xf32>
    %cst_397 = arith.constant 1.000000e+00 : f32
    %405 = vector.broadcast %cst_397 : f32 to vector<1x128xf32>
    %406 = arith.addf %405, %404 : vector<1x128xf32>
    %407 = arith.divf %405, %406 : vector<1x128xf32>
    %c1_398 = arith.constant 1 : index
    %c0_399 = arith.constant 0 : index
    %c0_400 = arith.constant 0 : index
    %c0_401 = arith.constant 0 : index
    %408 = vector.load %arg1[%c1_398, %c0_399, %c0_400, %c0_401] : memref<2x16x16x128xf32, #tpu.memory_space<vmem>>, vector<1x16x16x128xf32>
    %409 = vector.shape_cast %408 : vector<1x16x16x128xf32> to vector<16x16x128xf32>
    %410 = vector.shape_cast %409 : vector<16x16x128xf32> to vector<256x128xf32>
    %411 = vector.broadcast %407 : vector<1x128xf32> to vector<256x128xf32>
    %412 = arith.mulf %386, %411 : vector<256x128xf32>
    %413 = arith.addf %412, %410 : vector<256x128xf32>
    %cst_402 = arith.constant 0.000000e+00 : f32
    %414 = vector.broadcast %cst_402 : f32 to vector<256x128xf32>
    %415 = arith.maximumf %413, %414 : vector<256x128xf32>
    %416 = vector.shape_cast %415 : vector<256x128xf32> to vector<16x16x128xf32>
    %c1_403 = arith.constant 1 : index
    %c0_404 = arith.constant 0 : index
    %c0_405 = arith.constant 0 : index
    %c0_406 = arith.constant 0 : index
    %417 = vector.load %arg10[%c1_403, %c0_404, %c0_405, %c0_406] : memref<2x16x16x128xf32, #tpu.memory_space<vmem>>, vector<1x16x16x128xf32>
    %418 = vector.shape_cast %417 : vector<1x16x16x128xf32> to vector<16x16x128xf32>
    %419 = vector.shape_cast %416 : vector<16x16x128xf32> to vector<1x16x16x128xf32>
    tpu.vector_store %arg10[%c1_403, %c0_404, %c0_405, %c0_406], %419 {strides = array<i32>} : memref<2x16x16x128xf32, #tpu.memory_space<vmem>>, vector<1x16x16x128xf32>,
    return
  }
  func.func @transform_0(%arg0: i32) -> (i32, i32, i32, i32) {
    %c0_i32 = arith.constant 0 : i32
    %c0_i32_0 = arith.constant 0 : i32
    %c0_i32_1 = arith.constant 0 : i32
    %c0_i32_2 = arith.constant 0 : i32
    return %arg0, %c0_i32, %c0_i32_0, %c0_i32_1 : i32, i32, i32, i32
  }
  func.func @transform_1(%arg0: i32) -> (i32, i32, i32) {
    %c0_i32 = arith.constant 0 : i32
    %c0_i32_0 = arith.constant 0 : i32
    %c0_i32_1 = arith.constant 0 : i32
    %c0_i32_2 = arith.constant 0 : i32
    return %c0_i32, %c0_i32_0, %c0_i32_1 : i32, i32, i32
  }
  func.func @transform_2(%arg0: i32) -> (i32, i32) {
    %c0_i32 = arith.constant 0 : i32
    %c0_i32_0 = arith.constant 0 : i32
    %c0_i32_1 = arith.constant 0 : i32
    return %c0_i32, %c0_i32_0 : i32, i32
  }
  func.func @transform_3(%arg0: i32) -> (i32, i32) {
    %c0_i32 = arith.constant 0 : i32
    %c0_i32_0 = arith.constant 0 : i32
    %c0_i32_1 = arith.constant 0 : i32
    return %c0_i32, %c0_i32_0 : i32, i32
  }
  func.func @transform_4(%arg0: i32) -> (i32, i32, i32) {
    %c0_i32 = arith.constant 0 : i32
    %c0_i32_0 = arith.constant 0 : i32
    %c0_i32_1 = arith.constant 0 : i32
    %c0_i32_2 = arith.constant 0 : i32
    return %c0_i32, %c0_i32_0, %c0_i32_1 : i32, i32, i32
  }
  func.func @transform_5(%arg0: i32) -> (i32, i32) {
    %c0_i32 = arith.constant 0 : i32
    %c0_i32_0 = arith.constant 0 : i32
    %c0_i32_1 = arith.constant 0 : i32
    return %c0_i32, %c0_i32_0 : i32, i32
  }
  func.func @transform_6(%arg0: i32) -> (i32, i32) {
    %c0_i32 = arith.constant 0 : i32
    %c0_i32_0 = arith.constant 0 : i32
    %c0_i32_1 = arith.constant 0 : i32
    return %c0_i32, %c0_i32_0 : i32, i32
  }
  func.func @transform_7(%arg0: i32) -> (i32, i32) {
    %c0_i32 = arith.constant 0 : i32
    %c0_i32_0 = arith.constant 0 : i32
    %c0_i32_1 = arith.constant 0 : i32
    return %c0_i32, %c0_i32_0 : i32, i32
  }
  func.func @transform_8(%arg0: i32) -> (i32, i32) {
    %c0_i32 = arith.constant 0 : i32
    %c0_i32_0 = arith.constant 0 : i32
    %c0_i32_1 = arith.constant 0 : i32
    return %c0_i32, %c0_i32_0 : i32, i32
  }
  func.func @transform_9(%arg0: i32) -> (i32, i32, i32, i32) {
    %c0_i32 = arith.constant 0 : i32
    %c0_i32_0 = arith.constant 0 : i32
    %c0_i32_1 = arith.constant 0 : i32
    %c0_i32_2 = arith.constant 0 : i32
    return %arg0, %c0_i32, %c0_i32_0, %c0_i32_1 : i32, i32, i32, i32
  }
}

</mosaic_0001>

<bundles_post_ra>
// kernel: tpu_custom_call.1
= control target key start
LH: loop header
LB: loop body
LE: loop exit
PB: predicated region body
PF: predicated region fallthrough
CT: control target
= control target key end

     0   :  { %s19773_s0 = inlined_call_operand.hbm [shape: f32[4,16,16,128], index: 0, kind: input, shape index: {}]   ;;  %s19774_s1 = inlined_call_operand.hbm [shape: bf16[9,128,128], index: 1, kind: input, shape index: {}]   ;;  %s19775_s2 = inlined_call_operand.vmem [shape: f32[1,128], index: 2, kind: input, shape index: {}]   ;;  %s19776_s3 = inlined_call_operand.vmem [shape: f32[1,128], index: 3, kind: input, shape index: {}]   ;;  %s19777_s4 = inlined_call_operand.hbm [shape: bf16[9,128,128], index: 4, kind: input, shape index: {}]   ;;  %s19778_s5 = inlined_call_operand.hbm [shape: f32[1,128], index: 5, kind: input, shape index: {}]   ;;  %s19779_s6 = inlined_call_operand.vmem [shape: f32[1,128], index: 6, kind: input, shape index: {}]   ;;  %s19780_s7 = inlined_call_operand.vmem [shape: f32[8,128], index: 7, kind: input, shape index: {}]   ;;  %s19781_s8 = inlined_call_operand.vmem [shape: f32[8,128], index: 8, kind: input, shape index: {}]   ;;  %s19782_s9 = inlined_call_operand.hbm [shape: f32[4,16,16,128], index: 9, kind: output, shape index: {}]  }
   0x1   :  { %19982 = sst [smem:[#allocation78_spill]] %s19782_s9 }
   0x2   :  { %14 = vsyncpa [#allocation4], 0 }
   0x3   :  { %16 = vsyncpa [#allocation4 + $0x1], 0 }
   0x4   :  { %17 = vsyncpa [#allocation7], 0 }
   0x5   :  { %18 = vsyncpa [#allocation10], 0 }
   0x6   :  { %19 = vsyncpa [#allocation5], 0 }
   0x7   :  { %21 = vsyncpa [#allocation5 + $0x1], 0  ;;  %s16756_s30 = smov 0   ;;  %s16758_s10 = smov 0  }
   0x8   :  { %s16760_s11 = smov 0   ;;  %s16762_s12 = smov 0  }
   0x9 LB: > { %19983 = sst [smem:[#allocation16_spill]] %s16680_s30  ;;  %s16777_s13 = sadd.s32 4294967295, %s16692_s12   ;;  %s16692_s12 = sphi %s16762_s12, %s20298_s12   ;;  %s16688_s11 = sphi %s16760_s11, %s20297_s11   ;;  %s16684_s10 = sphi %s16758_s10, %s20296_s10   ;;  %s16680_s30 = sphi %s16756_s30, %s20295_s30  }
   0xa   : > { %s12088_s14 = sadd.s32 4294967294, %s16692_s12   ;;  %p47_p0 = scmp.ne.s32.totalorder %s16684_s10, %s16680_s30 }
   0xb   : > { %p19783_p1 = scmp.eq.s32.totalorder %s16777_s13, 0  ;;  %p245_p3 = scmp.eq.s32.totalorder %s12088_s14, 1 }
   0xc   : > { %p12089_p5 = scmp.ge.s32.totalorder %s16692_s12, 1  ;;  %p252_p7 = scmp.lt.s32.totalorder %s16692_s12, 3 }
   0xd   : > { %p16786_p4 = por %p19783_p1, %p47_p0  ;;  %p16791_p6 = por %p245_p3, %p47_p0 }
   0xe   : > { %p16796_p8 = pnand %p12089_p5, %p252_p7  ;;  %s16694_s18 = smov [#allocation6]  }
   0xf   : > { %s19984_s15 = scalar_select %p16786_p4, 1, 0 }
  0x10   : > { %s19985_s16 = scalar_select %p16791_p6, 1, 0 }
  0x11   : > { %s19987_s17 = scalar_select %p16796_p8, 1, 0 }
  0x12   : > { %19986 = sst [smem:[#allocation17_spill]] %s19985_s16  ;;  %s264_s19 = sshll.u32 %s16694_s18, 4  ;;  %s16800_s19 = int_to_ptr.vmem [resolvable:$true] %s264_s19 }
  0x13   : > { %p16140_p9 = pneg %p16796_p8  ;;  %s16695_s21 = smov [#allocation8]  }
  0x14   : > { %s283_s22 = sshll.u32 %s16695_s21, 4  ;;  %s16696_s23 = smov [#allocation9]   ;;  %s16811_s22 = int_to_ptr.vmem [resolvable:$true] %s283_s22 }
  0x15   : > { %p16807_p11 = pnand %p16140_p9, %p19783_p1  ;;  %s16813_s24 = sshll.u32 %s16696_s23, 4  ;;  %s298_s24 = int_to_ptr.vmem [resolvable:$true] %s16813_s24 }
  0x16   : > { %s16504_s27 = scalar_lea.hbm %s19774_s1, 9216 }
  0x17   : > { %p16505_p12 = scmp.ne.s32.totalorder %s19774_s1, %s16504_s27  ;;  %p16823_p13 = pneg %p16807_p11 }
  0x18   : > { %p16511_p5 = scmp.lt.u32.totalorder %s16504_s27, %s19774_s1 }
  0x19   : > { %p16507_p0 = pnand %p16823_p13, %p16505_p12 }
  0x1b   : > { %p16508_p3 = pneg %p16507_p0 }
  0x1d   : > { %p16513_p7 = pnand %p16511_p5, %p16508_p3 }
  0x1f   : > { %16516 = shalt.err (!%p16513_p7)
}
  0x20   : > { %s16517_s23 = scalar_lea.vmem %s16800_s19, 9216  ;;  %p16525_p2 = scmp.lt.s32.totalorder %s16800_s19, %s16800_s19 }
  0x21   : > { %p16518_p9 = scmp.ne.s32.totalorder %s16800_s19, %s16517_s23  ;;  %p16526_p6 = scmp.lt.s32.totalorder %s16517_s23, %s16517_s23 }
  0x23   : > { %p16520_p10 = pnand %p16518_p9, %p16823_p13  ;;  %p16527_p12 = por %p16526_p6, %p16525_p2 }
  0x25   : > { %p16521_p1 = pneg %p16520_p10 }
  0x27   : > { %p16528_p0 = pnand %p16527_p12, %p16521_p1 }
  0x29   : > { %16531 = shalt.err (!%p16528_p0)
}
  0x2a   : > { %s16697_s25 = smov 64   ;;  %s16698_s26 = smov 4  }
  0x2b   : > { %16143 = dma.hbm_to_vmem [thread:$0]  (!%p16807_p11), %s19774_s1, 9216, %s16800_s19, [#allocation7], %s16697_s25, %s16697_s25, %s16698_s26  }
  0x2c   : > { %s16532_s21 = scalar_lea.hbm %s19777_s4, 9216 }
  0x2d   : > { %p16533_p2 = scmp.ne.s32.totalorder %s19777_s4, %s16532_s21  ;;  %p16539_p10 = scmp.lt.u32.totalorder %s16532_s21, %s19777_s4 }
  0x2f   : > { %p16535_p1 = pnand %p16533_p2, %p16823_p13 }
  0x31   : > { %p16536_p6 = pneg %p16535_p1 }
  0x33   : > { %p16541_p3 = pnand %p16539_p10, %p16536_p6 }
  0x35   : > { %16544 = shalt.err (!%p16541_p3)
}
  0x36   : > { %s16545_s19 = scalar_lea.vmem %s16811_s22, 9216  ;;  %p16553_p12 = scmp.lt.s32.totalorder %s16811_s22, %s16811_s22 }
  0x37   : > { %p16546_p5 = scmp.ne.s32.totalorder %s16811_s22, %s16545_s19  ;;  %p16554_p0 = scmp.lt.s32.totalorder %s16545_s19, %s16545_s19 }
  0x39   : > { %p16548_p7 = pnand %p16546_p5, %p16823_p13  ;;  %p16555_p2 = por %p16554_p0, %p16553_p12 }
  0x3b   : > { %p16549_p9 = pneg %p16548_p7 }
  0x3d   : > { %p16556_p1 = pnand %p16555_p2, %p16549_p9 }
  0x3f   : > { %16559 = shalt.err (!%p16556_p1)
}
  0x40   : > { %16146 = dma.hbm_to_vmem [thread:$0]  (!%p16807_p11), %s19777_s4, 9216, %s16811_s22, [#allocation7], %s16697_s25, %s16697_s25, %s16698_s26  }
  0x41   : > { %s16560_s28 = scalar_lea.hbm %s19778_s5, 16 }
  0x42   : > { %p16561_p6 = scmp.ne.s32.totalorder %s19778_s5, %s16560_s28  ;;  %p16567_p5 = scmp.lt.u32.totalorder %s16560_s28, %s19778_s5 }
  0x44   : > { %p16563_p10 = pnand %p16561_p6, %p16823_p13 }
  0x46   : > { %p16564_p3 = pneg %p16563_p10 }
  0x48   : > { %p16569_p7 = pnand %p16567_p5, %p16564_p3 }
  0x4a   : > { %16572 = shalt.err (!%p16569_p7)
}
  0x4b   : > { %s16573_s19 = scalar_lea.vmem %s298_s24, 16  ;;  %s16580_s22 = scalar_lea.vmem %s298_s24, 32 }
  0x4c   : > { %p16574_p9 = scmp.ne.s32.totalorder %s298_s24, %s16573_s19  ;;  %p16581_p2 = scmp.lt.s32.totalorder %s298_s24, %s298_s24 }
  0x4d   : > { %p16582_p1 = scmp.lt.s32.totalorder %s16580_s22, %s16573_s19 }
  0x4e   : > { %p16576_p12 = pnand %p16574_p9, %p16823_p13 }
  0x4f   : > { %p16583_p4 = por %p16582_p1, %p16581_p2 }
  0x50   : > { %p16577_p0 = pneg %p16576_p12 }
  0x52   : > { %p16584_p8 = pnand %p16583_p4, %p16577_p0 }
  0x54   : > { %16587 = shalt.err (!%p16584_p8)
}
  0x55   : > { %16149 = dma.hbm_to_vmem [thread:$0]  (!%p16807_p11), %s19778_s5, 16, %s298_s24, [#allocation10]  }
  0x56   : > { %s16887_s14 = sadd.s32 1, %s16692_s12   ;;  %s34_s20 = sadd.s32 1, %s16688_s11 }
  0x57   : > { %s31_s9 = ssub.s32 %s16692_s12, %s16887_s14  ;;  %p41_p8 = scmp.ne.s32.totalorder %s16688_s11, %s16684_s10 }
  0x58   : > { %p32_p4 = scmp.eq.s32.totalorder %s31_s9, 0  ;;  %p42_p13 = scmp.eq.s32.totalorder %s16692_s12, 0 }
  0x59   : > { %p16161_p6 = scmp.lt.s32.totalorder %s16692_s12, 2  ;;  %p19990_p3 = scmp.eq.s32.totalorder %s16777_s13, 1 }
  0x5a   : > { %s16897_s30 = scalar_select %p32_p4, %s16688_s11, %s34_s20  }
  0x5b   : > { %p43_p10 = por %p42_p13, %p41_p8  ;;  %p16901_p5 = por %p19990_p3, %p41_p8 }
  0x5c   : > { %s317_s27 = sand.u32 1, %s16688_s11   ;;  %s12505_s28 = sshll.u32 %s16692_s12, 13 }
  0x5d   : > { %s12094_s24 = sshll.u32 %s317_s27, 9  ;;  %s16910_s21 = scalar_lea.hbm %s19773_s0, %s12505_s28 }
  0x5e   : > { %s321_s23 = scalar_lea.vmem [#allocation3], %s12094_s24  ;;  %p16912_p11 = pnand %p16161_p6, %p43_p10 }
  0x5f   : > { %s329_s19 = sshll.u32 %s321_s23, 4  ;;  %s16918_s25 = scalar_lea.sflag [#allocation4], %s317_s27  ;;  %s16916_s19 = int_to_ptr.vmem [resolvable:$true] %s329_s19 }
  0x60   : > { %s16588_s26 = scalar_lea.hbm %s16910_s21, 8192  ;;  %p16590_p9 = pneg %p16912_p11 }
  0x61   : > { %p16589_p7 = scmp.ne.s32.totalorder %s16910_s21, %s16588_s26  ;;  %s16593_s28 = scalar_lea.hbm %s19773_s0, 16384 }
  0x62   : > { %p16594_p2 = scmp.lt.u32.totalorder %s16910_s21, %s19773_s0  ;;  %p16595_p1 = scmp.lt.u32.totalorder %s16593_s28, %s16588_s26 }
  0x63   : > { %p16591_p12 = pnand %p16590_p9, %p16589_p7  ;;  %p16597_p8 = scmp.lt.u32.totalorder %s16588_s26, %s16910_s21 }
  0x64   : > { %p16596_p4 = por %p16595_p1, %p16594_p2 }
  0x65   : > { %p16592_p0 = pneg %p16591_p12 }
  0x66   : > { %p16598_p13 = por %p16597_p8, %p16596_p4 }
  0x68   : > { %p16599_p6 = pnand %p16598_p13, %p16592_p0 }
  0x6a   : > { %16602 = shalt.err (!%p16599_p6)
}
  0x6b   : > { %s16603_s27 = scalar_lea.vmem %s16916_s19, 8192  ;;  %s16699_s18 = smov [#allocation3]  }
  0x6c   : > { %p16604_p10 = scmp.ne.s32.totalorder %s16916_s19, %s16603_s27  ;;  %s16608_s23 = sshll.u32 %s16699_s18, 4  ;;  %s16609_s23 = int_to_ptr.vmem [resolvable:$false] %s16608_s23 }
  0x6d   : > { %s16610_s9 = scalar_lea.vmem %s16609_s23, 16384  ;;  %p16611_p12 = scmp.lt.s32.totalorder %s16916_s19, %s16609_s23 }
  0x6e   : > { %p16606_p3 = pnand %p16604_p10, %p16590_p9  ;;  %p16612_p2 = scmp.lt.s32.totalorder %s16610_s9, %s16603_s27 }
  0x70   : > { %p16607_p7 = pneg %p16606_p3  ;;  %p16613_p1 = por %p16612_p2, %p16611_p12 }
  0x72   : > { %p16614_p4 = pnand %p16613_p1, %p16607_p7 }
  0x74   : > { %16617 = shalt.err (!%p16614_p4)
}
  0x75   : > { %s16700_s26 = smov 128   ;;  %s16701_s20 = smov 8  }
  0x76   : > { %16153 = dma.hbm_to_vmem [thread:$0]  (!%p16912_p11), %s16910_s21, 8192, %s16916_s19, %s16918_s25, %s16700_s26, %s16700_s26, %s16701_s20  }
  0x77   : > { %p19993_p9 = scmp.ne.s32.totalorder %s19987_s17, 0 }
  0x79   : > { %341 = sbr.rel (%p19993_p9) target bundleno = 2527 (0x9df), region = 56 }
  0x80   : > { %s16949_s28 = sand.u32 1, %s16684_s10   ;;  %p19994_p0 = scmp.ne.s32.totalorder %s19984_s15, 0 }
  0x81   : > { %s12099_s24 = sshll.u32 %s16949_s28, 9  ;;  %s344_s29 = scalar_lea.sflag [#allocation4], %s16949_s28 }
  0x82   : > { %s16955_s27 = scalar_lea.vmem [#allocation3], %s12099_s24 }
  0x83   : > { %16663 = dma.done.wait (%p19994_p0), %s344_s29, 8192  }
  0x84   : > { %16665 = vsyncadd (%p19994_p0), %s344_s29, 4294959104  ;;  %p19995_p11 = scmp.eq.s32.totalorder %s16777_s13, 0 }
  0x86   : > { %16667 = dma.done.wait (%p19995_p11), [#allocation7], 18432   ;;  %p19996_p8 = pmov %p19995_p11 }
  0x88   : > { %16669 = vsyncadd (%p19996_p8), [#allocation7], 4294948864  ;;  %p19997_p13 = pmov %p19996_p8 }
  0x89   : > { %p19998_p6 = pmov %p19996_p8 }
  0x8a   : > { %16671 = dma.done.wait (%p19997_p13), [#allocation10], 16  }
  0x8b   : > { %16673 = vsyncadd (%p19998_p6), [#allocation10], 4294967280  ;;  %v19803_v0 = vmov 0   ;;  %v16208_v1 = vld [vmem:[#allocation6 + $0x40] sm:$0xff]   ;;  %v16209_v2 = vld [vmem:[#allocation6 + $0x48] sm:$0xff]   ;;  %vm580_vm1 = vcmask 1040384  }
  0x8c   : > { %13388 = vmatprep.mubr.bf16.mxu0 %v19803_v0  ;;  %13820 = vmatprep.mubr.bf16.mxu1 %v19803_v0  ;;  %v16210_v3 = vld [vmem:[#allocation6 + $0x50] sm:$0xff]   ;;  %v16211_v4 = vld [vmem:[#allocation6 + $0x58] sm:$0xff]   ;;  %v16212_v5 = vld [vmem:[#allocation6 + $0x60] sm:$0xff]   ;;  %vm581_vm0 = vsmask.f32 256  ;;  %vm681_vm3 = vcmask 1047552  }
  0x8d   : > { %13372 = vmatprep.subr.bf16.mxu0 %v16208_v1  ;;  %v16213_v6 = vld [vmem:[#allocation6 + $0x68] sm:$0xff]   ;;  %v16214_v7 = vld [vmem:[#allocation6 + $0x70] sm:$0xff]   ;;  %v16215_v8 = vld [vmem:[#allocation6 + $0x78] sm:$0xff]   ;;  %vm682_vm4 = vsmask.f32 7424  ;;  %s19335_s21 = scalar_lea.vmem [#allocation11], %s12099_s24 }
  0x8e   : > { %13373 = vmatpush3.bf16.msra.mxu0 %v16208_v1  ;;  %v404_v9 = vld [vmem:[%s16955_s27] sm:$0xff]  ;;  %v405_v10 = vld [vmem:[%s16955_s27 + $0x8] sm:$0xff]  ;;  %v406_v12 = vld [vmem:[%s16955_s27 + $0x10] sm:$0xff]  ;;  %s11986_s18 = sshll.u32 %s19335_s21, 4  ;;  %s20289_s9 = sld [smem:[#allocation78_spill]]  ;;  %s19713_s18 = int_to_ptr.vmem [resolvable:$true] %s11986_s18 }
  0x8f   : > { %13374 = vmatprep.subr.bf16.mxu0 %v16209_v2  ;;  %v16216_v11 = vld [vmem:[#allocation6] sm:$0xff]   ;;  %v407_v13 = vld [vmem:[%s16955_s27 + $0x18] sm:$0xff]  ;;  %v16975_v14 = vpack.c.bf16 %v405_v10, %v404_v9  ;;  %v16217_v16 = vld [vmem:[#allocation6 + $0x8] sm:$0xff]   ;;  %s11972_s20 = scalar_lea.sflag [#allocation5], %s16949_s28  ;;  %s16618_s29 = scalar_lea.vmem %s19713_s18, 8192 }
  0x90   : > { %v16977_v15 = vpack.c.bf16 %v407_v13, %v406_v12  ;;  %v408_v18 = vld [vmem:[%s16955_s27 + $0x20] sm:$0xff]  ;;  %v409_v19 = vld [vmem:[%s16955_s27 + $0x28] sm:$0xff]  ;;  %v410_v20 = vld [vmem:[%s16955_s27 + $0x30] sm:$0xff]  ;;  %p16619_p10 = scmp.ne.s32.totalorder %s19713_s18, %s16618_s29  ;;  %s16703_s15 = smov [#allocation11]  }
  0x91   : > { %v453_v17 = vshrl.u32 %v16975_v14, 16  ;;  %v411_v21 = vld [vmem:[%s16955_s27 + $0x38] sm:$0xff]  ;;  %v16218_v22 = vld [vmem:[#allocation6 + $0x10] sm:$0xff]   ;;  %v456_v24 = vshll.u32 %v16975_v14, 16  ;;  %v16989_v25 = vpack.c.bf16 %v409_v19, %v408_v18  ;;  %vm16993_vm2 = vmand %vm580_vm1, %vm581_vm0  ;;  %s16622_s17 = sshll.u32 %s16703_s15, 4  ;;  %s16623_s17 = int_to_ptr.vmem [resolvable:$false] %s16622_s17 }
  0x92   : > { %13375 = vmatpush3.bf16.msra.mxu0 %v16209_v2  ;;  %v16991_v26 = vpack.c.bf16 %v411_v21, %v410_v20  ;;  %v460_v28 = vshrl.u32 %v16977_v15, 16  ;;  %v412_v30 = vld [vmem:[%s16955_s27 + $0x40] sm:$0xff]  ;;  %v16219_v31 = vld [vmem:[#allocation6 + $0x18] sm:$0xff]   ;;  %v413_v33 = vld [vmem:[%s16955_s27 + $0x48] sm:$0xff]  ;;  %v463_v36 = vshll.u32 %v16977_v15, 16  ;;  %p16620_p3 = pnand %p16619_p10, %p16901_p5  ;;  %s16624_s24 = scalar_lea.vmem %s16623_s17, 16384 }
  0x93   : > { %13376 = vmatprep.subr.bf16.mxu0 %v16210_v3  ;;  %v455_v23 = vrot.slane %v453_v17, 7  ;;  %v467_v29 = vshrl.u32 %v16989_v25, 16  ;;  %v414_v34 = vld [vmem:[%s16955_s27 + $0x50] sm:$0xff]  ;;  %v415_v35 = vld [vmem:[%s16955_s27 + $0x58] sm:$0xff]  ;;  %v470_v37 = vshll.u32 %v16989_v25, 16  ;;  %v16220_v41 = vld [vmem:[#allocation6 + $0x20] sm:$0xff]   ;;  %v17018_v43 = vpack.c.bf16 %v413_v33, %v412_v30  ;;  %p16625_p12 = scmp.lt.s32.totalorder %s19713_s18, %s16623_s17  ;;  %p16626_p2 = scmp.lt.s32.totalorder %s16624_s24, %s16618_s29 }
  0x94   : > { %v474_v38 = vshrl.u32 %v16991_v26, 16  ;;  %v462_v39 = vrot.slane %v460_v28, 7  ;;  %v477_v45 = vshll.u32 %v16991_v26, 16  ;;  %v17023_v46 = vpack.c.bf16 %v415_v35, %v414_v34  ;;  %v16221_v47 = vld [vmem:[#allocation6 + $0x28] sm:$0xff]   ;;  %v416_v50 = vld [vmem:[%s16955_s27 + $0x60] sm:$0xff]  ;;  %v418_v52 = vld [vmem:[%s16955_s27 + $0x70] sm:$0xff]  ;;  %p16621_p7 = pneg %p16620_p3 }
  0x95   : > { %v458_v32 = vor.u32 %v456_v24, %v455_v23  ;;  %v469_v40 = vrot.slane %v467_v29, 7  ;;  %v481_v49 = vshrl.u32 %v17018_v43, 16  ;;  %v417_v51 = vld [vmem:[%s16955_s27 + $0x68] sm:$0xff]  ;;  %v419_v53 = vld [vmem:[%s16955_s27 + $0x78] sm:$0xff]  ;;  %v484_v56 = vshll.u32 %v17018_v43, 16  ;;  %v16222_v58 = vld [vmem:[#allocation6 + $0x30] sm:$0xff]   ;;  %p16627_p1 = por %p16626_p2, %p16625_p12 }
  0x96   : > { %13377 = vmatpush3.bf16.msra.mxu0 %v16210_v3  ;;  %v476_v44 = vrot.slane %v474_v38, 7  ;;  %v465_v48 = vor.u32 %v463_v36, %v462_v39  ;;  %v488_v57 = vshrl.u32 %v17023_v46, 16  ;;  %v17044_v60 = vpack.c.bf16 %v417_v51, %v416_v50  ;;  %v16223_v1 = vld [vmem:[#allocation6 + $0x38] sm:$0xff]   ;;  %v420_v3 = vld [vmem:[%s16955_s27 + $0x80] sm:$0xff]  ;;  %v425_v23 = vld [vmem:[%s16955_s27 + $0xa8] sm:$0xff] }
  0x97   : > { %13378 = vmatprep.subr.bf16.mxu0 %v16211_v4  ;;  %v17016_v42 = vsel %vm16993_vm2, 0, %v458_v32  ;;  %v472_v54 = vor.u32 %v470_v37, %v469_v40  ;;  %v17054_v63 = vpack.c.bf16 %v419_v53, %v418_v52  ;;  %v483_v2 = vrot.slane %v481_v49, 7  ;;  %v17067_v9 = vld [vmem:[#allocation6 + $0x80] sm:$0xff]   ;;  %v426_v30 = vld [vmem:[%s16955_s27 + $0xb0] sm:$0xff]  ;;  %v429_v53 = vld [vmem:[%s16955_s27 + $0xc8] sm:$0xff]  ;;  %p16628_p4 = pnand %p16627_p1, %p16621_p7 }
  0x98   : > { %v479_v55 = vor.u32 %v477_v45, %v476_v44  ;;  %v17042_v59 = vsel %vm16993_vm2, 0, %v465_v48  ;;  %v495_v10 = vshrl.u32 %v17044_v60, 16  ;;  %v498_v13 = vshll.u32 %v17044_v60, 16  ;;  %v428_v52 = vld [vmem:[%s16955_s27 + $0xc0] sm:$0xff]  ;;  %vm17218_vm5 = vmand %vm681_vm3, %vm682_vm4 }
  0x99   : > { %v17048_v61 = vsel %vm16993_vm2, 0, %v472_v54  ;;  %v486_v12 = vor.u32 %v484_v56, %v483_v2  ;;  %v505_v21 = vshll.u32 %v17054_v63, 16  ;;  %v430_v54 = vld [vmem:[%s16955_s27 + $0xd0] sm:$0xff]  ;;  %v16468_v27 = vld [vmem:[#allocation8 + $0x160] sm:$0xff]  }
  0x9a   : > { %13379 = vmatpush3.bf16.msra.mxu0 %v16211_v4  ;;  %v17052_v62 = vsel %vm16993_vm2, 0, %v479_v55  ;;  %v421_v4 = vld [vmem:[%s16955_s27 + $0x88] sm:$0xff]  ;;  %v497_v20 = vrot.slane %v495_v10, 7  ;;  %v431_v55 = vld [vmem:[%s16955_s27 + $0xd8] sm:$0xff] }
  0x9b   : > { %13380 = vmatprep.subr.bf16.mxu0 %v16212_v5  ;;  %v17091_v32 = vsel %vm16993_vm2, 0, %v486_v12  ;;  %v17137_v12 = vpack.c.bf16 %v431_v55, %v430_v54 }
  0x9c   : > { %v500_v35 = vor.u32 %v498_v13, %v497_v20 }
  0x9d   : > { %v19795_v54 = vshll.u32 %v17137_v12, 16 }
  0x9e   : > { %13381 = vmatpush3.bf16.msra.mxu0 %v16212_v5  ;;  %v422_v5 = vld [vmem:[%s16955_s27 + $0x90] sm:$0xff]  ;;  %v17112_v48 = vsel %vm16993_vm2, 0, %v500_v35 }
  0x9f   : > { %13382 = vmatprep.subr.bf16.mxu0 %v16213_v6 }
  0xa2   : > { %13383 = vmatpush3.bf16.msra.mxu0 %v16213_v6  ;;  %v423_v6 = vld [vmem:[%s16955_s27 + $0x98] sm:$0xff] }
  0xa3   : > { %13384 = vmatprep.subr.bf16.mxu0 %v16214_v7  ;;  %v17076_v18 = vpack.c.bf16 %v423_v6, %v422_v5 }
  0xa5   : > { %v19792_v51 = vshrl.u32 %v17076_v18, 16 }
  0xa6   : > { %13385 = vmatpush3.bf16.msra.mxu0 %v16214_v7  ;;  %v490_v7 = vrot.slane %v488_v57, 7 }
  0xa7   : > { %13386 = vmatprep.subr.bf16.mxu0 %v16215_v8  ;;  %v518_v6 = vrot.slane %v19792_v51, 7 }
  0xaa   : > { %13387 = vmatpush3.bf16.msra.mxu0 %v16215_v8  ;;  %v491_v8 = vshll.u32 %v17023_v46, 16 }
  0xab   : > { %13420 = vmatprep.subr.bf16.mxu0 %v16216_v11 }
  0xac   : > { %v493_v19 = vor.u32 %v491_v8, %v490_v7 }
  0xad   : > { %13389 = vmatmul.mubr.bf16.vlgmr.msra.gmra.mrb[0].mxu0 %v16975_v14 }
  0xae   : > { %13421 = vmatpush3.bf16.msra.mxu0 %v16216_v11  ;;  %13392 = vmatprep.mubr.bf16.mxu0 %v16977_v15  ;;  %v17070_v11 = vpack.c.bf16 %v421_v4, %v420_v3  ;;  %v17097_v34 = vsel %vm16993_vm2, 0, %v493_v19  ;;  %v17130_v4 = vpack.c.bf16 %v429_v53, %v428_v52  ;;  %v19793_v53 = vshrl.u32 %v17137_v12, 16 }
  0xaf   : > { %13422 = vmatprep.subr.bf16.mxu0 %v16217_v16 }
  0xb0   : > { %v509_v33 = vshrl.u32 %v17070_v11, 16  ;;  %v512_v44 = vshll.u32 %v17070_v11, 16 }
  0xb2   : > { %13423 = vmatpush3.bf16.msra.mxu0 %v16217_v16  ;;  %v502_v16 = vshrl.u32 %v17054_v63, 16 }
  0xb3   : > { %13424 = vmatprep.subr.bf16.mxu0 %v16218_v22 }
  0xb4   : > { %v504_v39 = vrot.slane %v502_v16, 7 }
  0xb5   : > { %13393 = vmatmul.mubr.bf16.gmra.mrb[4].mxu0 %v16989_v25 }
  0xb6   : > { %13396 = vmatprep.mubr.bf16.mxu0 %v16991_v26  ;;  %13425 = vmatpush3.bf16.msra.mxu0 %v16218_v22  ;;  %v424_v22 = vld [vmem:[%s16955_s27 + $0xa0] sm:$0xff]  ;;  %v507_v50 = vor.u32 %v505_v21, %v504_v39  ;;  %v540_v39 = vshll.u32 %v17130_v4, 16 }
  0xb7   : > { %13426 = vmatprep.subr.bf16.mxu0 %v16219_v31  ;;  %v17103_v40 = vpack.c.bf16 %v425_v23, %v424_v22  ;;  %v432_v22 = vld [vmem:[%s16955_s27 + $0xe0] sm:$0xff]  ;;  %v433_v23 = vld [vmem:[%s16955_s27 + $0xe8] sm:$0xff] }
  0xb8   : > { %v17127_v2 = vsel %vm16993_vm2, 0, %v507_v50 }
  0xb9   : > { %v526_v3 = vshll.u32 %v17103_v40, 16 }
  0xba   : > { %13427 = vmatpush3.bf16.msra.mxu0 %v16219_v31  ;;  %v427_v31 = vld [vmem:[%s16955_s27 + $0xb8] sm:$0xff] }
  0xbb   : > { %13428 = vmatprep.subr.bf16.mxu0 %v16220_v41 }
  0xbd   : > { %13397 = vmatmul.mubr.bf16.gmra.mrb[8].mxu0 %v17018_v43 }
  0xbe   : > { %13400 = vmatprep.mubr.bf16.mxu0 %v17023_v46  ;;  %13429 = vmatpush3.bf16.msra.mxu0 %v16220_v41  ;;  %v511_v41 = vrot.slane %v509_v33, 7 }
  0xbf   : > { %13430 = vmatprep.subr.bf16.mxu0 %v16221_v47 }
  0xc0   : > { %v514_v5 = vor.u32 %v512_v44, %v511_v41  ;;  %v17154_v41 = vpack.c.bf16 %v433_v23, %v432_v22 }
  0xc2   : > { %13431 = vmatpush3.bf16.msra.mxu0 %v16221_v47  ;;  %v17108_v47 = vpack.c.bf16 %v427_v31, %v426_v30  ;;  %v17147_v30 = vsel %vm16993_vm2, 0, %v514_v5  ;;  %v19789_v31 = vshrl.u32 %v17130_v4, 16  ;;  %v19794_v55 = vshrl.u32 %v17154_v41, 16 }
  0xc3   : > { %13432 = vmatprep.subr.bf16.mxu0 %v16222_v58  ;;  %v554_v22 = vshll.u32 %v17154_v41, 16 }
  0xc4   : > { %v19790_v7 = vshrl.u32 %v17108_v47, 16  ;;  %v533_v20 = vshll.u32 %v17108_v47, 16  ;;  %v539_v52 = vrot.slane %v19789_v31, 7  ;;  %v16226_v31 = vld [vmem:[#allocation6 + $0x90] sm:$0xff]  }
  0xc5   : > { %13401 = vmatmul.mubr.bf16.gmra.mrb[12].mxu0 %v17044_v60 }
  0xc6   : > { %13404 = vmatprep.mubr.bf16.mxu0 %v17054_v63  ;;  %13433 = vmatpush3.bf16.msra.mxu0 %v16222_v58  ;;  %v519_v58 = vshll.u32 %v17076_v18, 16  ;;  %v532_v35 = vrot.slane %v19790_v7, 7 }
  0xc7   : > { %13434 = vmatprep.subr.bf16.mxu0 %v16223_v1 }
  0xc8   : > { %v521_v50 = vor.u32 %v519_v58, %v518_v6  ;;  %v16225_v6 = vld [vmem:[#allocation6 + $0x88] sm:$0xff]   ;;  %v535_v51 = vor.u32 %v533_v20, %v532_v35  ;;  %v542_v35 = vor.u32 %v540_v39, %v539_v52  ;;  %v16232_v52 = vld [vmem:[#allocation6 + $0xc0] sm:$0xff]  }
  0xca   : > { %13435 = vmatpush3.bf16.msra.mxu0 %v16223_v1  ;;  %v19791_v1 = vshrl.u32 %v17103_v40, 16  ;;  %v17166_v5 = vsel %vm16993_vm2, 0, %v521_v50  ;;  %v16227_v50 = vld [vmem:[#allocation6 + $0x98] sm:$0xff]  }
  0xcb   : > { %13468 = vmatprep.subr.bf16.mxu0 %v17067_v9 }
  0xcc   : > { %v525_v19 = vrot.slane %v19791_v1, 7  ;;  %v546_v1 = vrot.slane %v19793_v53, 7  ;;  %v553_v53 = vrot.slane %v19794_v55, 7  ;;  %v633_v55 = vrot.slane %v456_v24, 1 }
  0xcd   : > { %13405 = vmatmul.mubr.bf16.gmra.mrb[16].mxu0 %v17070_v11 }
  0xce   : > { %13408 = vmatprep.mubr.bf16.mxu0 %v17076_v18  ;;  %v528_v23 = vor.u32 %v526_v3, %v525_v19  ;;  %v16228_v19 = vld [vmem:[#allocation6 + $0xa0] sm:$0xff]   ;;  %v549_v24 = vor.u32 %v19795_v54, %v546_v1  ;;  %v641_v1 = vrot.slane %v484_v56, 1 }
  0xd0   : > { %v17175_v7 = vsel %vm16993_vm2, 0, %v528_v23  ;;  %v17186_v23 = vsel %vm16993_vm2, 0, %v535_v51  ;;  %v16230_v51 = vld [vmem:[#allocation6 + $0xb0] sm:$0xff]  }
  0xd5   : > { %13409 = vmatmul.mubr.bf16.gmra.mrb[20].mxu0 %v17103_v40 }
  0xd6   : > { %13412 = vmatprep.mubr.bf16.mxu0 %v17108_v47 }
  0xdd   : > { %13413 = vmatmul.mubr.bf16.gmra.mrb[24].mxu0 %v17130_v4 }
  0xde   : > { %13416 = vmatprep.mubr.bf16.mxu0 %v17137_v12 }
  0xe5   : > { %13417 = vmatmul.mubr.bf16.gmra.mrb[28].mxu0 %v17154_v41 }
  0xe6   : > { %13436 = vmatprep.mubr.bf16.mxu0 %v19803_v0 }
  0xed   : > { %13437 = vmatmul.mubr.bf16.vlgmr.msra.gmra.mrb[0].mxu0 %v17016_v42 }
  0xee   : > { %13469 = vmatpush3.bf16.msra.mxu0 %v17067_v9  ;;  %13440 = vmatprep.mubr.bf16.mxu0 %v17042_v59  ;;  %v16229_v9 = vld [vmem:[#allocation6 + $0xa8] sm:$0xff]  }
  0xef   : > { %13470 = vmatprep.subr.bf16.mxu0 %v16225_v6 }
  0xf2   : > { %13471 = vmatpush3.bf16.msra.mxu0 %v16225_v6  ;;  %v17196_v6 = vsel %vm16993_vm2, 0, %v542_v35  ;;  %v637_v35 = vrot.slane %v470_v37, 1  ;;  %v16482_v37 = vld [vmem:[#allocation8 + $0x1d0] sm:$0xff]  }
  0xf3   : > { %13472 = vmatprep.subr.bf16.mxu0 %v16226_v31 }
  0xf5   : > { %13441 = vmatmul.mubr.bf16.gmra.mrb[4].mxu0 %v17048_v61 }
  0xf6   : > { %13444 = vmatprep.mubr.bf16.mxu0 %v17052_v62  ;;  %13473 = vmatpush3.bf16.msra.mxu0 %v16226_v31  ;;  %v16231_v31 = vld [vmem:[#allocation6 + $0xb8] sm:$0xff]  }
  0xf7   : > { %13474 = vmatprep.subr.bf16.mxu0 %v16227_v50 }
  0xfa   : > { %13475 = vmatpush3.bf16.msra.mxu0 %v16227_v50  ;;  %v635_v50 = vrot.slane %v463_v36, 1  ;;  %v639_v36 = vrot.slane %v477_v45, 1  ;;  %v634_v45 = vor.u32 %v633_v55, %v453_v17  ;;  %v645_v17 = vrot.slane %v498_v13, 1 }
  0xfb   : > { %13476 = vmatprep.subr.bf16.mxu0 %v16228_v19  ;;  %v649_v55 = vrot.slane %v512_v44, 1 }
  0xfc   : > { %v640_v56 = vor.u32 %v639_v36, %v474_v38  ;;  %v17243_v54 = vsel %vm17218_vm5, %v634_v45, 0  ;;  %v646_v44 = vor.u32 %v645_v17, %v495_v10  ;;  %v651_v10 = vrot.slane %v519_v58, 1  ;;  %v16234_v45 = vld [vmem:[#allocation6 + $0xd0] sm:$0xff]   ;;  %v16235_v58 = vld [vmem:[#allocation6 + $0xd8] sm:$0xff]  }
  0xfd   : > { %13445 = vmatmul.mubr.bf16.gmra.mrb[8].mxu0 %v17091_v32 }
  0xfe   : > { %13448 = vmatprep.mubr.bf16.mxu0 %v17097_v34  ;;  %13477 = vmatpush3.bf16.msra.mxu0 %v16228_v19  ;;  %v17212_v19 = vsel %vm16993_vm2, 0, %v549_v24  ;;  %v638_v24 = vor.u32 %v637_v35, %v467_v29  ;;  %v642_v29 = vor.u32 %v641_v1, %v481_v49  ;;  %v17267_v49 = vsel %vm17218_vm5, %v640_v56, 0 }
  0xff   : > { %13478 = vmatprep.subr.bf16.mxu0 %v16229_v9  ;;  %v650_v35 = vor.u32 %v649_v55, %v509_v33  ;;  %v17285_v36 = vsel %vm17218_vm5, %v646_v44, 0  ;;  %v20003_v33 = vshrl.u32 %v17076_v18, 16  ;;  %v20004_v56 = vshrl.u32 %v17103_v40, 16  ;;  %v16238_v55 = vld [vmem:[#allocation6 + $0xf0] sm:$0xff]  }
 0x100   : > { %v17263_v13 = vsel %vm17218_vm5, %v638_v24, 0  ;;  %v653_v24 = vrot.slane %v526_v3, 1  ;;  %v655_v3 = vrot.slane %v533_v20, 1  ;;  %v20005_v44 = vshrl.u32 %v17108_v47, 16 }
 0x102   : > { %13479 = vmatpush3.bf16.msra.mxu0 %v16229_v9  ;;  %v643_v9 = vrot.slane %v491_v8, 1  ;;  %v654_v17 = vor.u32 %v653_v24, %v20004_v56  ;;  %v656_v20 = vor.u32 %v655_v3, %v20005_v44  ;;  %v20008_v24 = vshrl.u32 %v17137_v12, 16  ;;  %v16244_v44 = vld [vmem:[#allocation6 + $0x120] sm:$0xff]  }
 0x103   : > { %13480 = vmatprep.subr.bf16.mxu0 %v16230_v51 }
 0x104   : > { %v644_v38 = vor.u32 %v643_v9, %v488_v57  ;;  %v17271_v57 = vsel %vm17218_vm5, %v642_v29, 0  ;;  %v17294_v9 = vsel %vm17218_vm5, %v650_v35, 0  ;;  %v17314_v29 = vsel %vm17218_vm5, %v654_v17, 0 }
 0x105   : > { %13449 = vmatmul.mubr.bf16.gmra.mrb[12].mxu0 %v17112_v48  ;;  %v17328_v35 = vsel %vm17218_vm5, %v656_v20, 0  ;;  %v661_v17 = vrot.slane %v554_v22, 1  ;;  %v16246_v20 = vld [vmem:[#allocation6 + $0x130] sm:$0xff]  }
 0x106   : > { %13452 = vmatprep.mubr.bf16.mxu0 %v17127_v2  ;;  %13481 = vmatpush3.bf16.msra.mxu0 %v16230_v51  ;;  %v556_v51 = vor.u32 %v554_v22, %v553_v53  ;;  %v16242_v22 = vld [vmem:[#allocation6 + $0x110] sm:$0xff]  }
 0x107   : > { %13482 = vmatprep.subr.bf16.mxu0 %v16231_v31 }
 0x108   : > { %v17239_v8 = vsel %vm16993_vm2, 0, %v556_v51  ;;  %v652_v51 = vor.u32 %v651_v10, %v20003_v33  ;;  %v16240_v10 = vld [vmem:[#allocation6 + $0x100] sm:$0xff]  }
 0x10a   : > { %13483 = vmatpush3.bf16.msra.mxu0 %v16231_v31  ;;  %v636_v31 = vor.u32 %v635_v50, %v460_v28  ;;  %v647_v28 = vrot.slane %v505_v21, 1  ;;  %v17275_v21 = vsel %vm17218_vm5, %v644_v38, 0  ;;  %v657_v38 = vrot.slane %v540_v39, 1 }
 0x10b   : > { %13516 = vmatprep.subr.bf16.mxu0 %v16232_v52  ;;  %v20006_v39 = vshrl.u32 %v17130_v4, 16 }
 0x10c   : > { %v17256_v53 = vsel %vm17218_vm5, %v636_v31, 0  ;;  %v648_v50 = vor.u32 %v647_v28, %v502_v16  ;;  %v16233_v16 = vld [vmem:[#allocation6 + $0xc8] sm:$0xff]   ;;  %v17304_v31 = vsel %vm17218_vm5, %v652_v51, 0  ;;  %v16236_v28 = vld [vmem:[#allocation6 + $0xe0] sm:$0xff]   ;;  %v20007_v51 = vshll.u32 %v17137_v12, 16 }
 0x10d   : > { %13453 = vmatmul.mubr.bf16.gmra.mrb[16].mxu0 %v17147_v30 }
 0x10e   : > { %13456 = vmatprep.mubr.bf16.mxu0 %v17166_v5  ;;  %v17289_v1 = vsel %vm17218_vm5, %v648_v50, 0  ;;  %v16239_v50 = vld [vmem:[#allocation6 + $0xf8] sm:$0xff]  }
 0x115   : > { %13457 = vmatmul.mubr.bf16.gmra.mrb[20].mxu0 %v17175_v7 }
 0x116   : > { %13460 = vmatprep.mubr.bf16.mxu0 %v17186_v23 }
 0x11d   : > { %13461 = vmatmul.mubr.bf16.gmra.mrb[24].mxu0 %v17196_v6 }
 0x11e   : > { %13464 = vmatprep.mubr.bf16.mxu0 %v17212_v19 }
 0x125   : > { %13465 = vmatmul.mubr.bf16.gmra.mrb[28].mxu0 %v17239_v8 }
 0x126   : > { %13484 = vmatprep.mubr.bf16.mxu0 %v19803_v0 }
 0x12d   : > { %13485 = vmatmul.mubr.bf16.vlgmr.msra.gmra.mrb[0].mxu0 %v17243_v54 }
 0x12e   : > { %13517 = vmatpush3.bf16.msra.mxu0 %v16232_v52  ;;  %13488 = vmatprep.mubr.bf16.mxu0 %v17256_v53  ;;  %v16237_v52 = vld [vmem:[#allocation6 + $0xe8] sm:$0xff]  }
 0x12f   : > { %13518 = vmatprep.subr.bf16.mxu0 %v16233_v16 }
 0x132   : > { %13519 = vmatpush3.bf16.msra.mxu0 %v16233_v16  ;;  %v658_v16 = vor.u32 %v657_v38, %v20006_v39  ;;  %v16241_v38 = vld [vmem:[#allocation6 + $0x108] sm:$0xff]   ;;  %v434_v39 = vld [vmem:[%s16955_s27 + $0xf0] sm:$0xff] }
 0x133   : > { %13520 = vmatprep.subr.bf16.mxu0 %v16234_v45 }
 0x134   : > { %v17336_v33 = vsel %vm17218_vm5, %v658_v16, 0  ;;  %v435_v16 = vld [vmem:[%s16955_s27 + $0xf8] sm:$0xff] }
 0x135   : > { %13489 = vmatmul.mubr.bf16.gmra.mrb[4].mxu0 %v17263_v13 }
 0x136   : > { %13492 = vmatprep.mubr.bf16.mxu0 %v17267_v49  ;;  %13521 = vmatpush3.bf16.msra.mxu0 %v16234_v45  ;;  %v659_v45 = vrot.slane %v20007_v51, 1  ;;  %v17373_v51 = vpack.c.bf16 %v435_v16, %v434_v39  ;;  %v16259_v39 = vld [vmem:[#allocation6 + $0x198] sm:$0xff]   ;;  %v16260_v16 = vld [vmem:[#allocation6 + $0x1a0] sm:$0xff]  }
 0x137   : > { %13522 = vmatprep.subr.bf16.mxu0 %v16235_v58 }
 0x13a   : > { %13523 = vmatpush3.bf16.msra.mxu0 %v16235_v58  ;;  %v660_v58 = vor.u32 %v659_v45, %v20008_v24  ;;  %v558_v45 = vshrl.u32 %v17373_v51, 16 }
 0x13b   : > { %13524 = vmatprep.subr.bf16.mxu0 %v16236_v28 }
 0x13c   : > { %v17346_v56 = vsel %vm17218_vm5, %v660_v58, 0  ;;  %v560_v24 = vrot.slane %v558_v45, 7  ;;  %v561_v58 = vshll.u32 %v17373_v51, 16 }
 0x13d   : > { %13493 = vmatmul.mubr.bf16.gmra.mrb[8].mxu0 %v17271_v57 }
 0x13e   : > { %13496 = vmatprep.mubr.bf16.mxu0 %v17275_v21  ;;  %13525 = vmatpush3.bf16.msra.mxu0 %v16236_v28  ;;  %v20009_v28 = vshrl.u32 %v17154_v41, 16 }
 0x13f   : > { %13526 = vmatprep.subr.bf16.mxu0 %v16237_v52 }
 0x140   : > { %v662_v3 = vor.u32 %v661_v17, %v20009_v28  ;;  %v563_v17 = vor.u32 %v561_v58, %v560_v24  ;;  %v16262_v24 = vld [vmem:[#allocation6 + $0x1b0] sm:$0xff]  }
 0x142   : > { %13527 = vmatpush3.bf16.msra.mxu0 %v16237_v52  ;;  %v17356_v52 = vsel %vm17218_vm5, %v662_v3, 0  ;;  %v17387_v28 = vsel %vm16993_vm2, 0, %v563_v17  ;;  %v16249_v3 = vld [vmem:[#allocation6 + $0x148] sm:$0xff]   ;;  %v16263_v17 = vld [vmem:[#allocation6 + $0x1b8] sm:$0xff]  }
 0x143   : > { %13528 = vmatprep.subr.bf16.mxu0 %v16238_v55 }
 0x145   : > { %13497 = vmatmul.mubr.bf16.gmra.mrb[12].mxu0 %v17285_v36 }
 0x146   : > { %13500 = vmatprep.mubr.bf16.mxu0 %v17289_v1  ;;  %13529 = vmatpush3.bf16.msra.mxu0 %v16238_v55  ;;  %v16243_v55 = vld [vmem:[#allocation6 + $0x118] sm:$0xff]  }
 0x147   : > { %13530 = vmatprep.subr.bf16.mxu0 %v16239_v50 }
 0x14a   : > { %13531 = vmatpush3.bf16.msra.mxu0 %v16239_v50  ;;  %v16247_v50 = vld [vmem:[#allocation6 + $0x138] sm:$0xff]  }
 0x14b   : > { %13564 = vmatprep.subr.bf16.mxu0 %v16240_v10 }
 0x14d   : > { %13501 = vmatmul.mubr.bf16.gmra.mrb[16].mxu0 %v17294_v9 }
 0x14e   : > { %13504 = vmatprep.mubr.bf16.mxu0 %v17304_v31 }
 0x155   : > { %13505 = vmatmul.mubr.bf16.gmra.mrb[20].mxu0 %v17314_v29 }
 0x156   : > { %13508 = vmatprep.mubr.bf16.mxu0 %v17328_v35 }
 0x15d   : > { %13509 = vmatmul.mubr.bf16.gmra.mrb[24].mxu0 %v17336_v33 }
 0x15e   : > { %13512 = vmatprep.mubr.bf16.mxu0 %v17346_v56 }
 0x165   : > { %13513 = vmatmul.mubr.bf16.gmra.mrb[28].mxu0 %v17356_v52 }
 0x166   : > { %13532 = vmatprep.mubr.bf16.mxu0 %v17016_v42  ;;  %v16245_v42 = vld [vmem:[#allocation6 + $0x128] sm:$0xff]  }
 0x16d   : > { %13533 = vmatmul.mubr.bf16.vlgmr.msra.gmra.mrb[0].mxu0 %v17042_v59 }
 0x16e   : > { %13565 = vmatpush3.bf16.msra.mxu0 %v16240_v10  ;;  %13536 = vmatprep.mubr.bf16.mxu0 %v17048_v61  ;;  %v16248_v10 = vld [vmem:[#allocation6 + $0x140] sm:$0xff]  }
 0x16f   : > { %13566 = vmatprep.subr.bf16.mxu0 %v16241_v38 }
 0x172   : > { %13567 = vmatpush3.bf16.msra.mxu0 %v16241_v38  ;;  %v16250_v38 = vld [vmem:[#allocation6 + $0x150] sm:$0xff]  }
 0x173   : > { %13568 = vmatprep.subr.bf16.mxu0 %v16242_v22 }
 0x175   : > { %13537 = vmatmul.mubr.bf16.gmra.mrb[4].mxu0 %v17052_v62 }
 0x176   : > { %13540 = vmatprep.mubr.bf16.mxu0 %v17091_v32  ;;  %13569 = vmatpush3.bf16.msra.mxu0 %v16242_v22  ;;  %v16251_v22 = vld [vmem:[#allocation6 + $0x158] sm:$0xff]  }
 0x177   : > { %13570 = vmatprep.subr.bf16.mxu0 %v16243_v55 }
 0x17a   : > { %13571 = vmatpush3.bf16.msra.mxu0 %v16243_v55  ;;  %v16252_v55 = vld [vmem:[#allocation6 + $0x160] sm:$0xff]  }
 0x17b   : > { %13572 = vmatprep.subr.bf16.mxu0 %v16244_v44 }
 0x17d   : > { %13541 = vmatmul.mubr.bf16.gmra.mrb[8].mxu0 %v17097_v34 }
 0x17e   : > { %13544 = vmatprep.mubr.bf16.mxu0 %v17112_v48  ;;  %13573 = vmatpush3.bf16.msra.mxu0 %v16244_v44  ;;  %v16254_v44 = vld [vmem:[#allocation6 + $0x170] sm:$0xff]  }
 0x17f   : > { %13574 = vmatprep.subr.bf16.mxu0 %v16245_v42 }
 0x182   : > { %13575 = vmatpush3.bf16.msra.mxu0 %v16245_v42  ;;  %v16255_v42 = vld [vmem:[#allocation6 + $0x178] sm:$0xff]  }
 0x183   : > { %13576 = vmatprep.subr.bf16.mxu0 %v16246_v20 }
 0x185   : > { %13545 = vmatmul.mubr.bf16.gmra.mrb[12].mxu0 %v17127_v2 }
 0x186   : > { %13548 = vmatprep.mubr.bf16.mxu0 %v17147_v30  ;;  %13577 = vmatpush3.bf16.msra.mxu0 %v16246_v20  ;;  %v16256_v20 = vld [vmem:[#allocation6 + $0x180] sm:$0xff]  }
 0x187   : > { %13578 = vmatprep.subr.bf16.mxu0 %v16247_v50 }
 0x18a   : > { %13579 = vmatpush3.bf16.msra.mxu0 %v16247_v50  ;;  %v16257_v50 = vld [vmem:[#allocation6 + $0x188] sm:$0xff]  }
 0x18b   : > { %13612 = vmatprep.subr.bf16.mxu0 %v16248_v10 }
 0x18d   : > { %13549 = vmatmul.mubr.bf16.gmra.mrb[16].mxu0 %v17166_v5 }
 0x18e   : > { %13552 = vmatprep.mubr.bf16.mxu0 %v17175_v7 }
 0x195   : > { %13553 = vmatmul.mubr.bf16.gmra.mrb[20].mxu0 %v17186_v23 }
 0x196   : > { %13556 = vmatprep.mubr.bf16.mxu0 %v17196_v6 }
 0x19d   : > { %13557 = vmatmul.mubr.bf16.gmra.mrb[24].mxu0 %v17212_v19 }
 0x19e   : > { %13560 = vmatprep.mubr.bf16.mxu0 %v17239_v8 }
 0x1a5   : > { %13561 = vmatmul.mubr.bf16.gmra.mrb[28].mxu0 %v17387_v28 }
 0x1a6   : > { %13580 = vmatprep.mubr.bf16.mxu0 %v16975_v14  ;;  %v16253_v14 = vld [vmem:[#allocation6 + $0x168] sm:$0xff]  }
 0x1ad   : > { %13581 = vmatmul.mubr.bf16.vlgmr.msra.gmra.mrb[0].mxu0 %v16977_v15 }
 0x1ae   : > { %13613 = vmatpush3.bf16.msra.mxu0 %v16248_v10  ;;  %13584 = vmatprep.mubr.bf16.mxu0 %v16989_v25  ;;  %v16258_v10 = vld [vmem:[#allocation6 + $0x190] sm:$0xff]  }
 0x1af   : > { %13614 = vmatprep.subr.bf16.mxu0 %v16249_v3 }
 0x1b2   : > { %13615 = vmatpush3.bf16.msra.mxu0 %v16249_v3  ;;  %v16264_v3 = vld [vmem:[#allocation6 + $0x1c0] sm:$0xff]  }
 0x1b3   : > { %13616 = vmatprep.subr.bf16.mxu0 %v16250_v38 }
 0x1b5   : > { %13585 = vmatmul.mubr.bf16.gmra.mrb[4].mxu0 %v16991_v26 }
 0x1b6   : > { %13588 = vmatprep.mubr.bf16.mxu0 %v17018_v43  ;;  %13617 = vmatpush3.bf16.msra.mxu0 %v16250_v38  ;;  %v663_v38 = vrot.slane %v561_v58, 1  ;;  %v16266_v58 = vld [vmem:[#allocation6 + $0x1d0] sm:$0xff]  }
 0x1b7   : > { %13618 = vmatprep.subr.bf16.mxu0 %v16251_v22 }
 0x1ba   : > { %13619 = vmatpush3.bf16.msra.mxu0 %v16251_v22  ;;  %v664_v22 = vor.u32 %v663_v38, %v558_v45  ;;  %v16268_v45 = vld [vmem:[#allocation6 + $0x1e0] sm:$0xff]  }
 0x1bb   : > { %13620 = vmatprep.subr.bf16.mxu0 %v16252_v55 }
 0x1bd   : > { %13589 = vmatmul.mubr.bf16.gmra.mrb[8].mxu0 %v17023_v46 }
 0x1be   : > { %13592 = vmatprep.mubr.bf16.mxu0 %v17044_v60  ;;  %13621 = vmatpush3.bf16.msra.mxu0 %v16252_v55  ;;  %v17427_v55 = vsel %vm17218_vm5, %v664_v22, 0 }
 0x1bf   : > { %13622 = vmatprep.subr.bf16.mxu0 %v16253_v14 }
 0x1c2   : > { %13623 = vmatpush3.bf16.msra.mxu0 %v16253_v14  ;;  %v16265_v14 = vld [vmem:[#allocation6 + $0x1c8] sm:$0xff]  }
 0x1c3   : > { %13624 = vmatprep.subr.bf16.mxu0 %v16254_v44 }
 0x1c5   : > { %13593 = vmatmul.mubr.bf16.gmra.mrb[12].mxu0 %v17054_v63 }
 0x1c6   : > { %13596 = vmatprep.mubr.bf16.mxu0 %v17070_v11  ;;  %13625 = vmatpush3.bf16.msra.mxu0 %v16254_v44  ;;  %v16267_v44 = vld [vmem:[#allocation6 + $0x1d8] sm:$0xff]  }
 0x1c7   : > { %13626 = vmatprep.subr.bf16.mxu0 %v16255_v42 }
 0x1ca   : > { %13627 = vmatpush3.bf16.msra.mxu0 %v16255_v42  ;;  %v16292_v42 = vld [vmem:[#allocation6 + $0x20] sm:$0xff]  }
 0x1cb   : > { %13660 = vmatprep.subr.bf16.mxu0 %v16256_v20 }
 0x1cd   : > { %13597 = vmatmul.mubr.bf16.gmra.mrb[16].mxu0 %v17076_v18 }
 0x1ce   : > { %13600 = vmatprep.mubr.bf16.mxu0 %v17103_v40 }
 0x1d5   : > { %13601 = vmatmul.mubr.bf16.gmra.mrb[20].mxu0 %v17108_v47 }
 0x1d6   : > { %13604 = vmatprep.mubr.bf16.mxu0 %v17130_v4 }
 0x1dd   : > { %13605 = vmatmul.mubr.bf16.gmra.mrb[24].mxu0 %v17137_v12 }
 0x1de   : > { %13608 = vmatprep.mubr.bf16.mxu0 %v17154_v41 }
 0x1e5   : > { %13609 = vmatmul.mubr.bf16.gmra.mrb[28].mxu0 %v17373_v51 }
 0x1e6   : > { %13628 = vmatprep.mubr.bf16.mxu0 %v17243_v54  ;;  %v16261_v54 = vld [vmem:[#allocation6 + $0x1a8] sm:$0xff]  }
 0x1ed   : > { %13629 = vmatmul.mubr.bf16.vlgmr.msra.gmra.mrb[0].mxu0 %v17256_v53 }
 0x1ee   : > { %13661 = vmatpush3.bf16.msra.mxu0 %v16256_v20  ;;  %13632 = vmatprep.mubr.bf16.mxu0 %v17263_v13 }
 0x1ef   : > { %13662 = vmatprep.subr.bf16.mxu0 %v16257_v50 }
 0x1f2   : > { %13663 = vmatpush3.bf16.msra.mxu0 %v16257_v50 }
 0x1f3   : > { %13664 = vmatprep.subr.bf16.mxu0 %v16258_v10 }
 0x1f5   : > { %13633 = vmatmul.mubr.bf16.gmra.mrb[4].mxu0 %v17267_v49 }
 0x1f6   : > { %13636 = vmatprep.mubr.bf16.mxu0 %v17271_v57  ;;  %13665 = vmatpush3.bf16.msra.mxu0 %v16258_v10  ;;  %v16293_v10 = vld [vmem:[#allocation6 + $0x28] sm:$0xff]  }
 0x1f7   : > { %13666 = vmatprep.subr.bf16.mxu0 %v16259_v39 }
 0x1fa   : > { %13667 = vmatpush3.bf16.msra.mxu0 %v16259_v39  ;;  %v12265_v39 = vld [vmem:[%s16955_s27 + $0x160] sm:$0xff] }
 0x1fb   : > { %13668 = vmatprep.subr.bf16.mxu0 %v16260_v16 }
 0x1fd   : > { %13637 = vmatmul.mubr.bf16.gmra.mrb[8].mxu0 %v17275_v21 }
 0x1fe   : > { %13640 = vmatprep.mubr.bf16.mxu0 %v17285_v36  ;;  %13669 = vmatpush3.bf16.msra.mxu0 %v16260_v16  ;;  %v12266_v16 = vld [vmem:[%s16955_s27 + $0x168] sm:$0xff] }
 0x1ff   : > { %13670 = vmatprep.subr.bf16.mxu0 %v16261_v54  ;;  %v17513_v38 = vpack.c.bf16 %v12266_v16, %v12265_v39 }
 0x201   : > { %20015 = vst [vmem:[#allocation23_spill] sm:$0xff] %v17513_v38 }
 0x202   : > { %13671 = vmatpush3.bf16.msra.mxu0 %v16261_v54  ;;  %v16312_v54 = vld [vmem:[#allocation8 + $0x68] sm:$0xff]  }
 0x203   : > { %13672 = vmatprep.subr.bf16.mxu0 %v16262_v24 }
 0x205   : > { %13641 = vmatmul.mubr.bf16.gmra.mrb[12].mxu0 %v17289_v1 }
 0x206   : > { %13644 = vmatprep.mubr.bf16.mxu0 %v17294_v9  ;;  %13673 = vmatpush3.bf16.msra.mxu0 %v16262_v24  ;;  %v12267_v24 = vld [vmem:[%s16955_s27 + $0x170] sm:$0xff] }
 0x207   : > { %13674 = vmatprep.subr.bf16.mxu0 %v16263_v17 }
 0x20a   : > { %13675 = vmatpush3.bf16.msra.mxu0 %v16263_v17  ;;  %v12268_v17 = vld [vmem:[%s16955_s27 + $0x178] sm:$0xff] }
 0x20b   : > { %13708 = vmatprep.subr.bf16.mxu0 %v16264_v3  ;;  %v17515_v22 = vpack.c.bf16 %v12268_v17, %v12267_v24 }
 0x20d   : > { %13645 = vmatmul.mubr.bf16.gmra.mrb[16].mxu0 %v17304_v31  ;;  %20016 = vst [vmem:[#allocation24_spill] sm:$0xff] %v17515_v22 }
 0x20e   : > { %13648 = vmatprep.mubr.bf16.mxu0 %v17314_v29 }
 0x215   : > { %13649 = vmatmul.mubr.bf16.gmra.mrb[20].mxu0 %v17328_v35 }
 0x216   : > { %13652 = vmatprep.mubr.bf16.mxu0 %v17336_v33 }
 0x21d   : > { %13653 = vmatmul.mubr.bf16.gmra.mrb[24].mxu0 %v17346_v56 }
 0x21e   : > { %13656 = vmatprep.mubr.bf16.mxu0 %v17356_v52 }
 0x225   : > { %13657 = vmatmul.mubr.bf16.gmra.mrb[28].mxu0 %v17427_v55 }
 0x226   : > { %13676 = vmatprep.mubr.bf16.mxu0 %v17042_v59  ;;  %v16269_v59 = vld [vmem:[#allocation6 + $0x1e8] sm:$0xff]  }
 0x22d   : > { %13677 = vmatmul.mubr.bf16.vlgmr.msra.gmra.mrb[0].mxu0 %v17048_v61  ;;  %v16270_v61 = vld [vmem:[#allocation6 + $0x1f0] sm:$0xff]  }
 0x22e   : > { %13709 = vmatpush3.bf16.msra.mxu0 %v16264_v3  ;;  %13680 = vmatprep.mubr.bf16.mxu0 %v17052_v62  ;;  %v16271_v62 = vld [vmem:[#allocation6 + $0x1f8] sm:$0xff]   ;;  %v16294_v3 = vld [vmem:[#allocation6 + $0x30] sm:$0xff]  }
 0x22f   : > { %13710 = vmatprep.subr.bf16.mxu0 %v16265_v14 }
 0x232   : > { %13711 = vmatpush3.bf16.msra.mxu0 %v16265_v14  ;;  %v16295_v14 = vld [vmem:[#allocation6 + $0x38] sm:$0xff]  }
 0x233   : > { %13712 = vmatprep.subr.bf16.mxu0 %v16266_v58 }
 0x235   : > { %13681 = vmatmul.mubr.bf16.gmra.mrb[4].mxu0 %v17091_v32  ;;  %v16272_v32 = vld [vmem:[#allocation6 + $0x200] sm:$0xff]  }
 0x236   : > { %13684 = vmatprep.mubr.bf16.mxu0 %v17097_v34  ;;  %13713 = vmatpush3.bf16.msra.mxu0 %v16266_v58  ;;  %v16273_v34 = vld [vmem:[#allocation6 + $0x208] sm:$0xff]   ;;  %v12269_v58 = vld [vmem:[%s16955_s27 + $0x180] sm:$0xff] }
 0x237   : > { %13714 = vmatprep.subr.bf16.mxu0 %v16267_v44 }
 0x23a   : > { %13715 = vmatpush3.bf16.msra.mxu0 %v16267_v44  ;;  %v12270_v44 = vld [vmem:[%s16955_s27 + $0x188] sm:$0xff] }
 0x23b   : > { %13716 = vmatprep.subr.bf16.mxu0 %v16268_v45 }
 0x23d   : > { %13685 = vmatmul.mubr.bf16.gmra.mrb[8].mxu0 %v17112_v48  ;;  %v16274_v48 = vld [vmem:[#allocation6 + $0x210] sm:$0xff]  }
 0x23e   : > { %13688 = vmatprep.mubr.bf16.mxu0 %v17127_v2  ;;  %13717 = vmatpush3.bf16.msra.mxu0 %v16268_v45  ;;  %v16275_v2 = vld [vmem:[#allocation6 + $0x218] sm:$0xff]  }
 0x23f   : > { %13718 = vmatprep.subr.bf16.mxu0 %v16269_v59  ;;  %v16315_v45 = vld [vmem:[#allocation8 + $0x78] sm:$0xff]  }
 0x242   : > { %13719 = vmatpush3.bf16.msra.mxu0 %v16269_v59  ;;  %v12271_v59 = vld [vmem:[%s16955_s27 + $0x190] sm:$0xff] }
 0x243   : > { %13720 = vmatprep.subr.bf16.mxu0 %v16270_v61 }
 0x245   : > { %13689 = vmatmul.mubr.bf16.gmra.mrb[12].mxu0 %v17147_v30  ;;  %v12253_v30 = vld [vmem:[%s16955_s27 + $0x100] sm:$0xff] }
 0x246   : > { %13692 = vmatprep.mubr.bf16.mxu0 %v17166_v5  ;;  %13721 = vmatpush3.bf16.msra.mxu0 %v16270_v61  ;;  %v12255_v5 = vld [vmem:[%s16955_s27 + $0x110] sm:$0xff]  ;;  %v12272_v61 = vld [vmem:[%s16955_s27 + $0x198] sm:$0xff] }
 0x247   : > { %13722 = vmatprep.subr.bf16.mxu0 %v16271_v62 }
 0x24a   : > { %13723 = vmatpush3.bf16.msra.mxu0 %v16271_v62  ;;  %v16296_v62 = vld [vmem:[#allocation6 + $0x80] sm:$0xff]  }
 0x24b   : > { %13756 = vmatprep.subr.bf16.mxu0 %v16272_v32 }
 0x24d   : > { %13693 = vmatmul.mubr.bf16.gmra.mrb[16].mxu0 %v17175_v7  ;;  %v16276_v7 = vld [vmem:[#allocation6 + $0x220] sm:$0xff]  }
 0x24e   : > { %13696 = vmatprep.mubr.bf16.mxu0 %v17186_v23  ;;  %v12256_v23 = vld [vmem:[%s16955_s27 + $0x118] sm:$0xff] }
 0x255   : > { %13697 = vmatmul.mubr.bf16.gmra.mrb[20].mxu0 %v17196_v6 }
 0x256   : > { %13700 = vmatprep.mubr.bf16.mxu0 %v17212_v19  ;;  %v17485_v19 = vpack.c.bf16 %v12256_v23, %v12255_v5 }
 0x258   : > { %20010 = vst [vmem:[#allocation18_spill] sm:$0xff] %v17485_v19 }
 0x25d   : > { %13701 = vmatmul.mubr.bf16.gmra.mrb[24].mxu0 %v17239_v8  ;;  %v16289_v8 = vld [vmem:[#allocation6 + $0x8] sm:$0xff]  }
 0x25e   : > { %13704 = vmatprep.mubr.bf16.mxu0 %v17387_v28  ;;  %v12264_v28 = vld [vmem:[%s16955_s27 + $0x158] sm:$0xff] }
 0x265   : > { %13705 = vmatmul.mubr.bf16.gmra.mrb[28].mxu0 %v19803_v0 }
 0x266   : > { %13724 = vmatprep.mubr.bf16.mxu0 %v16977_v15  ;;  %v16277_v15 = vld [vmem:[#allocation6 + $0x228] sm:$0xff]  }
 0x26d   : > { %13725 = vmatmul.mubr.bf16.vlgmr.msra.gmra.mrb[0].mxu0 %v16989_v25  ;;  %v16278_v25 = vld [vmem:[#allocation6 + $0x230] sm:$0xff]  }
 0x26e   : > { %13757 = vmatpush3.bf16.msra.mxu0 %v16272_v32  ;;  %13728 = vmatprep.mubr.bf16.mxu0 %v16991_v26  ;;  %v16279_v26 = vld [vmem:[#allocation6 + $0x238] sm:$0xff]   ;;  %v17523_v32 = vpack.c.bf16 %v12270_v44, %v12269_v58  ;;  %v6294_v44 = vshrl.u32 %v17513_v38, 16 }
 0x26f   : > { %13758 = vmatprep.subr.bf16.mxu0 %v16273_v34 }
 0x272   : > { %13759 = vmatpush3.bf16.msra.mxu0 %v16273_v34  ;;  %v17525_v34 = vpack.c.bf16 %v12272_v61, %v12271_v59  ;;  %v6301_v59 = vshrl.u32 %v17515_v22, 16  ;;  %v16300_v61 = vld [vmem:[#allocation6 + $0xa0] sm:$0xff]  }
 0x273   : > { %13760 = vmatprep.subr.bf16.mxu0 %v16274_v48 }
 0x275   : > { %13729 = vmatmul.mubr.bf16.gmra.mrb[4].mxu0 %v17018_v43  ;;  %v16280_v43 = vld [vmem:[#allocation6 + $0x40] sm:$0xff]  }
 0x276   : > { %13732 = vmatprep.mubr.bf16.mxu0 %v17023_v46  ;;  %13761 = vmatpush3.bf16.msra.mxu0 %v16274_v48  ;;  %v16281_v46 = vld [vmem:[#allocation6 + $0x48] sm:$0xff]   ;;  %v12273_v48 = vld [vmem:[%s16955_s27 + $0x1a0] sm:$0xff] }
 0x277   : > { %13762 = vmatprep.subr.bf16.mxu0 %v16275_v2 }
 0x27a   : > { %13763 = vmatpush3.bf16.msra.mxu0 %v16275_v2  ;;  %v12274_v2 = vld [vmem:[%s16955_s27 + $0x1a8] sm:$0xff] }
 0x27b   : > { %13764 = vmatprep.subr.bf16.mxu0 %v16276_v7 }
 0x27d   : > { %13733 = vmatmul.mubr.bf16.gmra.mrb[8].mxu0 %v17044_v60  ;;  %v16282_v60 = vld [vmem:[#allocation6 + $0x50] sm:$0xff]  }
 0x27e   : > { %13736 = vmatprep.mubr.bf16.mxu0 %v17054_v63  ;;  %13765 = vmatpush3.bf16.msra.mxu0 %v16276_v7  ;;  %v16283_v63 = vld [vmem:[#allocation6 + $0x58] sm:$0xff]   ;;  %v12275_v7 = vld [vmem:[%s16955_s27 + $0x1b0] sm:$0xff] }
 0x27f   : > { %13766 = vmatprep.subr.bf16.mxu0 %v16277_v15 }
 0x282   : > { %13767 = vmatpush3.bf16.msra.mxu0 %v16277_v15  ;;  %v12276_v15 = vld [vmem:[%s16955_s27 + $0x1b8] sm:$0xff] }
 0x283   : > { %13768 = vmatprep.subr.bf16.mxu0 %v16278_v25 }
 0x285   : > { %13737 = vmatmul.mubr.bf16.gmra.mrb[12].mxu0 %v17070_v11  ;;  %v16284_v11 = vld [vmem:[#allocation6 + $0x60] sm:$0xff]  }
 0x286   : > { %13740 = vmatprep.mubr.bf16.mxu0 %v17076_v18  ;;  %13769 = vmatpush3.bf16.msra.mxu0 %v16278_v25  ;;  %v16285_v18 = vld [vmem:[#allocation6 + $0x68] sm:$0xff]   ;;  %v17533_v25 = vpack.c.bf16 %v12274_v2, %v12273_v48  ;;  %v6296_v48 = vrot.slane %v6294_v44, 7  ;;  %v6297_v2 = vshll.u32 %v17513_v38, 16 }
 0x287   : > { %13770 = vmatprep.subr.bf16.mxu0 %v16279_v26 }
 0x288   : > { %20017 = vst [vmem:[#allocation25_spill] sm:$0xff] %v17533_v25 }
 0x28a   : > { %13771 = vmatpush3.bf16.msra.mxu0 %v16279_v26  ;;  %v17535_v26 = vpack.c.bf16 %v12276_v15, %v12275_v7  ;;  %v6303_v15 = vrot.slane %v6301_v59, 7 }
 0x28b   : > { %14236 = vmatprep.subr.bf16.mxu0 %v16280_v43 }
 0x28d   : > { %13741 = vmatmul.mubr.bf16.gmra.mrb[16].mxu0 %v17103_v40  ;;  %v16286_v40 = vld [vmem:[#allocation6 + $0x70] sm:$0xff]  }
 0x28e   : > { %13744 = vmatprep.mubr.bf16.mxu0 %v17108_v47  ;;  %v16287_v47 = vld [vmem:[#allocation6 + $0x78] sm:$0xff]  }
 0x295   : > { %13745 = vmatmul.mubr.bf16.gmra.mrb[20].mxu0 %v17130_v4  ;;  %v16288_v4 = vld [vmem:[#allocation6] sm:$0xff]  }
 0x296   : > { %13748 = vmatprep.mubr.bf16.mxu0 %v17137_v12  ;;  %v16304_v12 = vld [vmem:[#allocation8 + $0x40] sm:$0xff]  }
 0x297   : > { %13804 = vmatprep.subr.bf16.mxu1 %v16304_v12 }
 0x298   : > { %13805 = vmatpush3.bf16.msra.mxu1 %v16304_v12 }
 0x29d   : > { %13749 = vmatmul.mubr.bf16.gmra.mrb[24].mxu0 %v17154_v41  ;;  %v12254_v41 = vld [vmem:[%s16955_s27 + $0x108] sm:$0xff] }
 0x29e   : > { %13752 = vmatprep.mubr.bf16.mxu0 %v17373_v51  ;;  %v17483_v6 = vpack.c.bf16 %v12254_v41, %v12253_v30  ;;  %v12263_v51 = vld [vmem:[%s16955_s27 + $0x150] sm:$0xff]  ;;  %v6259_v30 = vshrl.u32 %v17485_v19, 16 }
 0x29f   : > { %v17505_v50 = vpack.c.bf16 %v12264_v28, %v12263_v51 }
 0x2a0   : > { %v6252_v12 = vshrl.u32 %v17483_v6, 16  ;;  %v6255_v23 = vshll.u32 %v17483_v6, 16 }
 0x2a1   : > { %20014 = vst [vmem:[#allocation22_spill] sm:$0xff] %v17505_v50  ;;  %v6287_v39 = vshrl.u32 %v17505_v50, 16 }
 0x2a2   : > { %v6254_v5 = vrot.slane %v6252_v12, 7 }
 0x2a5   : > { %13753 = vmatmul.mubr.bf16.gmra.mrb[28].mxu0 %v19803_v0 }
 0x2a6   : > { %13772 = vmatprep.mubr.bf16.mxu0 %v17256_v53  ;;  %v12257_v53 = vld [vmem:[%s16955_s27 + $0x120] sm:$0xff] }
 0x2ad   : > { %13773 = vmatmul.mubr.bf16.vlgmr.msra.gmra.mrb[0].mxu0 %v17263_v13  ;;  %v12258_v13 = vld [vmem:[%s16955_s27 + $0x128] sm:$0xff] }
 0x2ae   : > { %14237 = vmatpush3.bf16.msra.mxu0 %v16280_v43  ;;  %13776 = vmatprep.mubr.bf16.mxu0 %v17267_v49  ;;  %v16306_v49 = vld [vmem:[#allocation8 + $0x48] sm:$0xff]   ;;  %v17537_v43 = vld [vmem:[#allocation8] sm:$0xff]  }
 0x2af   : > { %14238 = vmatprep.subr.bf16.mxu0 %v16281_v46  ;;  %13806 = vmatprep.subr.bf16.mxu1 %v16306_v49 }
 0x2b0   : > { %13807 = vmatpush3.bf16.msra.mxu1 %v16306_v49 }
 0x2b2   : > { %14239 = vmatpush3.bf16.msra.mxu0 %v16281_v46  ;;  %v12277_v46 = vld [vmem:[%s16955_s27 + $0x1c0] sm:$0xff] }
 0x2b3   : > { %14240 = vmatprep.subr.bf16.mxu0 %v16282_v60 }
 0x2b5   : > { %13777 = vmatmul.mubr.bf16.gmra.mrb[4].mxu0 %v17271_v57  ;;  %v16307_v57 = vld [vmem:[#allocation8 + $0x50] sm:$0xff]  }
 0x2b6   : > { %13780 = vmatprep.mubr.bf16.mxu0 %v17275_v21  ;;  %14241 = vmatpush3.bf16.msra.mxu0 %v16282_v60  ;;  %v12259_v21 = vld [vmem:[%s16955_s27 + $0x130] sm:$0xff]  ;;  %v12278_v60 = vld [vmem:[%s16955_s27 + $0x1c8] sm:$0xff] }
 0x2b7   : > { %14242 = vmatprep.subr.bf16.mxu0 %v16283_v63  ;;  %13808 = vmatprep.subr.bf16.mxu1 %v16307_v57 }
 0x2b8   : > { %13809 = vmatpush3.bf16.msra.mxu1 %v16307_v57 }
 0x2ba   : > { %14243 = vmatpush3.bf16.msra.mxu0 %v16283_v63  ;;  %v12279_v63 = vld [vmem:[%s16955_s27 + $0x1d0] sm:$0xff] }
 0x2bb   : > { %14244 = vmatprep.subr.bf16.mxu0 %v16284_v11 }
 0x2bd   : > { %13781 = vmatmul.mubr.bf16.gmra.mrb[8].mxu0 %v17285_v36  ;;  %v12260_v36 = vld [vmem:[%s16955_s27 + $0x138] sm:$0xff] }
 0x2be   : > { %13784 = vmatprep.mubr.bf16.mxu0 %v17289_v1  ;;  %14245 = vmatpush3.bf16.msra.mxu0 %v16284_v11  ;;  %v16290_v1 = vld [vmem:[#allocation6 + $0x10] sm:$0xff]   ;;  %v12280_v11 = vld [vmem:[%s16955_s27 + $0x1d8] sm:$0xff] }
 0x2bf   : > { %14246 = vmatprep.subr.bf16.mxu0 %v16285_v18 }
 0x2c2   : > { %14247 = vmatpush3.bf16.msra.mxu0 %v16285_v18  ;;  %v17546_v18 = vpack.c.bf16 %v12278_v60, %v12277_v46  ;;  %v6304_v46 = vshll.u32 %v17515_v22, 16  ;;  %v16301_v60 = vld [vmem:[#allocation6 + $0xa8] sm:$0xff]  }
 0x2c3   : > { %14248 = vmatprep.subr.bf16.mxu0 %v16286_v40 }
 0x2c4   : > { %20018 = vst [vmem:[#allocation26_spill] sm:$0xff] %v17546_v18 }
 0x2c5   : > { %13785 = vmatmul.mubr.bf16.gmra.mrb[12].mxu0 %v17294_v9  ;;  %v17493_v9 = vpack.c.bf16 %v12258_v13, %v12257_v53  ;;  %v6262_v53 = vshll.u32 %v17485_v19, 16  ;;  %v6257_v13 = vor.u32 %v6255_v23, %v6254_v5  ;;  %v16302_v5 = vld [vmem:[#allocation6 + $0xb0] sm:$0xff]  }
 0x2c6   : > { %13788 = vmatprep.mubr.bf16.mxu0 %v17304_v31  ;;  %14249 = vmatpush3.bf16.msra.mxu0 %v16286_v40  ;;  %v17495_v31 = vpack.c.bf16 %v12260_v36, %v12259_v21  ;;  %v17548_v40 = vpack.c.bf16 %v12280_v11, %v12279_v63  ;;  %v6299_v63 = vor.u32 %v6297_v2, %v6296_v48  ;;  %v6308_v11 = vshrl.u32 %v17523_v32, 16 }
 0x2c7   : > { %14250 = vmatprep.subr.bf16.mxu0 %v16287_v47  ;;  %20011 = vst [vmem:[#allocation19_spill] sm:$0xff] %v17493_v9  ;;  %v6266_v49 = vshrl.u32 %v17493_v9, 16  ;;  %v17574_v36 = vsel %vm16993_vm2, 0, %v6257_v13 }
 0x2c8   : > { %20012 = vst [vmem:[#allocation20_spill] sm:$0xff] %v17495_v31  ;;  %v6273_v21 = vshrl.u32 %v17495_v31, 16  ;;  %v6310_v13 = vrot.slane %v6308_v11, 7 }
 0x2ca   : > { %14251 = vmatpush3.bf16.msra.mxu0 %v16287_v47  ;;  %v12281_v47 = vld [vmem:[%s16955_s27 + $0x1e0] sm:$0xff] }
 0x2cb   : > { %14284 = vmatprep.subr.bf16.mxu0 %v16288_v4 }
 0x2cd   : > { %13789 = vmatmul.mubr.bf16.gmra.mrb[16].mxu0 %v17314_v29  ;;  %v16291_v29 = vld [vmem:[#allocation6 + $0x18] sm:$0xff]  }
 0x2ce   : > { %13792 = vmatprep.mubr.bf16.mxu0 %v17328_v35  ;;  %v16309_v35 = vld [vmem:[#allocation8 + $0x58] sm:$0xff]  }
 0x2cf   : > { %13810 = vmatprep.subr.bf16.mxu1 %v16309_v35 }
 0x2d0   : > { %13811 = vmatpush3.bf16.msra.mxu1 %v16309_v35 }
 0x2d5   : > { %13793 = vmatmul.mubr.bf16.gmra.mrb[20].mxu0 %v17336_v33  ;;  %v12261_v33 = vld [vmem:[%s16955_s27 + $0x140] sm:$0xff] }
 0x2d6   : > { %13796 = vmatprep.mubr.bf16.mxu0 %v17346_v56  ;;  %v12262_v56 = vld [vmem:[%s16955_s27 + $0x148] sm:$0xff] }
 0x2d7   : > { %v17503_v20 = vpack.c.bf16 %v12262_v56, %v12261_v33  ;;  %v16297_v33 = vld [vmem:[#allocation6 + $0x88] sm:$0xff]   ;;  %v6275_v56 = vrot.slane %v6273_v21, 7 }
 0x2d9   : > { %20013 = vst [vmem:[#allocation21_spill] sm:$0xff] %v17503_v20  ;;  %v6280_v28 = vshrl.u32 %v17503_v20, 16  ;;  %v6283_v24 = vshll.u32 %v17503_v20, 16 }
 0x2dd   : > { %13797 = vmatmul.mubr.bf16.gmra.mrb[24].mxu0 %v17356_v52  ;;  %v16310_v52 = vld [vmem:[#allocation8 + $0x60] sm:$0xff]  }
 0x2de   : > { %13800 = vmatprep.mubr.bf16.mxu0 %v17427_v55  ;;  %13812 = vmatprep.subr.bf16.mxu1 %v16310_v52  ;;  %v16313_v55 = vld [vmem:[#allocation8 + $0x70] sm:$0xff]  }
 0x2df   : > { %13813 = vmatpush3.bf16.msra.mxu1 %v16310_v52  ;;  %v6276_v52 = vshll.u32 %v17495_v31, 16 }
 0x2e0   : > { %13814 = vmatprep.subr.bf16.mxu1 %v16312_v54 }
 0x2e3   : > { %13815 = vmatpush3.bf16.msra.mxu1 %v16312_v54  ;;  %v6282_v54 = vrot.slane %v6280_v28, 7 }
 0x2e4   : > { %13816 = vmatprep.subr.bf16.mxu1 %v16313_v55 }
 0x2e5   : > { %13801 = vmatmul.mubr.bf16.gmra.mrb[28].mxu0 %v19803_v0  ;;  %v6285_v58 = vor.u32 %v6283_v24, %v6282_v54 }
 0x2e6   : > { %14252 = vmatprep.mubr.bf16.mxu0 %v19803_v0 }
 0x2e7   : > { %13817 = vmatpush3.bf16.msra.mxu1 %v16313_v55  ;;  %v6290_v55 = vshll.u32 %v17505_v50, 16 }
 0x2e8   : > { %13818 = vmatprep.subr.bf16.mxu1 %v16315_v45 }
 0x2eb   : > { %13819 = vmatpush3.bf16.msra.mxu1 %v16315_v45 }
 0x2ec   : > { %13852 = vmatprep.subr.bf16.mxu1 %v17537_v43 }
 0x2ed   : > { %14253 = vmatmul.mubr.bf16.vlgmr.msra.gmra.mrb[32].mxu0 %v17483_v6 }
 0x2ee   : > { %14285 = vmatpush3.bf16.msra.mxu0 %v16288_v4  ;;  %14256 = vmatprep.mubr.bf16.mxu0 %v17485_v19  ;;  %v12282_v4 = vld [vmem:[%s16955_s27 + $0x1e8] sm:$0xff] }
 0x2ef   : > { %14286 = vmatprep.subr.bf16.mxu0 %v16289_v8  ;;  %v17556_v41 = vpack.c.bf16 %v12282_v4, %v12281_v47  ;;  %v6306_v47 = vor.u32 %v6304_v46, %v6303_v15  ;;  %v6315_v4 = vshrl.u32 %v17525_v34, 16 }
 0x2f1   : > { %20019 = vst [vmem:[#allocation27_spill] sm:$0xff] %v17556_v41 }
 0x2f2   : > { %14287 = vmatpush3.bf16.msra.mxu0 %v16289_v8  ;;  %v6261_v8 = vrot.slane %v6259_v30, 7 }
 0x2f3   : > { %14288 = vmatprep.subr.bf16.mxu0 %v16290_v1 }
 0x2f4   : > { %v6264_v57 = vor.u32 %v6262_v53, %v6261_v8  ;;  %v17640_v8 = vsel %vm16993_vm2, 0, %v6299_v63 }
 0x2f5   : > { %14257 = vmatmul.mubr.bf16.gmra.mrb[36].mxu0 %v17493_v9 }
 0x2f6   : > { %14260 = vmatprep.mubr.bf16.mxu0 %v17495_v31  ;;  %14289 = vmatpush3.bf16.msra.mxu0 %v16290_v1  ;;  %v6268_v1 = vrot.slane %v6266_v49, 7  ;;  %v17581_v35 = vsel %vm16993_vm2, 0, %v6264_v57  ;;  %v6311_v57 = vshll.u32 %v17523_v32, 16 }
 0x2f7   : > { %14290 = vmatprep.subr.bf16.mxu0 %v16291_v29  ;;  %20020 = vst [vmem:[#allocation28_spill] sm:$0xff] %v17581_v35 }
 0x2fa   : > { %14291 = vmatpush3.bf16.msra.mxu0 %v16291_v29  ;;  %v6269_v29 = vshll.u32 %v17493_v9, 16 }
 0x2fb   : > { %14292 = vmatprep.subr.bf16.mxu0 %v16292_v42 }
 0x2fc   : > { %v6271_v51 = vor.u32 %v6269_v29, %v6268_v1  ;;  %v17647_v1 = vsel %vm16993_vm2, 0, %v6306_v47  ;;  %v19796_v47 = vshrl.u32 %v17546_v18, 16 }
 0x2fd   : > { %14261 = vmatmul.mubr.bf16.gmra.mrb[40].mxu0 %v17503_v20  ;;  %20023 = vst [vmem:[#allocation31_spill] sm:$0xff] %v17647_v1 }
 0x2fe   : > { %14264 = vmatprep.mubr.bf16.mxu0 %v17505_v50  ;;  %14293 = vmatpush3.bf16.msra.mxu0 %v16292_v42  ;;  %v6278_v42 = vor.u32 %v6276_v52, %v6275_v56  ;;  %v17596_v16 = vsel %vm16993_vm2, 0, %v6271_v51  ;;  %v6318_v56 = vshll.u32 %v17525_v34, 16  ;;  %v16303_v51 = vld [vmem:[#allocation6 + $0xb8] sm:$0xff]  }
 0x2ff   : > { %14294 = vmatprep.subr.bf16.mxu0 %v16293_v10  ;;  %20021 = vst [vmem:[#allocation29_spill] sm:$0xff] %v17596_v16 }
 0x300   : > { %v17603_v17 = vsel %vm16993_vm2, 0, %v6278_v42  ;;  %v6313_v42 = vor.u32 %v6311_v57, %v6310_v13  ;;  %v19798_v13 = vshrl.u32 %v17548_v40, 16 }
 0x301   : > { %20022 = vst [vmem:[#allocation30_spill] sm:$0xff] %v17603_v17 }
 0x302   : > { %14295 = vmatpush3.bf16.msra.mxu0 %v16293_v10  ;;  %v16298_v10 = vld [vmem:[#allocation6 + $0x90] sm:$0xff]  }
 0x303   : > { %14296 = vmatprep.subr.bf16.mxu0 %v16294_v3 }
 0x305   : > { %14265 = vmatmul.mubr.bf16.gmra.mrb[44].mxu0 %v17513_v38 }
 0x306   : > { %14268 = vmatprep.mubr.bf16.mxu0 %v17515_v22  ;;  %14297 = vmatpush3.bf16.msra.mxu0 %v16294_v3  ;;  %v6289_v3 = vrot.slane %v6287_v39, 7 }
 0x307   : > { %14298 = vmatprep.subr.bf16.mxu0 %v16295_v14 }
 0x308   : > { %v6292_v45 = vor.u32 %v6290_v55, %v6289_v3  ;;  %v19797_v3 = vshrl.u32 %v17535_v26, 16 }
 0x30a   : > { %14299 = vmatpush3.bf16.msra.mxu0 %v16295_v14  ;;  %v16299_v14 = vld [vmem:[#allocation6 + $0x98] sm:$0xff]   ;;  %v17625_v7 = vsel %vm16993_vm2, 0, %v6292_v45  ;;  %v6331_v15 = vrot.slane %v19797_v3, 7 }
 0x30b   : > { %14332 = vmatprep.subr.bf16.mxu0 %v16296_v62 }
 0x30d   : > { %14269 = vmatmul.mubr.bf16.gmra.mrb[48].mxu0 %v17523_v32 }
 0x30e   : > { %14272 = vmatprep.mubr.bf16.mxu0 %v17525_v34 }
 0x315   : > { %14273 = vmatmul.mubr.bf16.gmra.mrb[52].mxu0 %v17533_v25 }
 0x316   : > { %14276 = vmatprep.mubr.bf16.mxu0 %v17535_v26 }
 0x31d   : > { %14277 = vmatmul.mubr.bf16.gmra.mrb[56].mxu0 %v17546_v18 }
 0x31e   : > { %14280 = vmatprep.mubr.bf16.mxu0 %v17548_v40 }
 0x325   : > { %14281 = vmatmul.mubr.bf16.gmra.mrb[60].mxu0 %v17556_v41 }
 0x326   : > { %14300 = vmatprep.mubr.bf16.mxu0 %v19803_v0 }
 0x32d   : > { %14301 = vmatmul.mubr.bf16.vlgmr.msra.gmra.mrb[32].mxu0 %v17574_v36 }
 0x32e   : > { %14333 = vmatpush3.bf16.msra.mxu0 %v16296_v62  ;;  %14304 = vmatprep.mubr.bf16.mxu0 %v17581_v35  ;;  %v17618_v62 = vsel %vm16993_vm2, 0, %v6285_v58  ;;  %v17662_v58 = vsel %vm16993_vm2, 0, %v6313_v42  ;;  %v19806_v42 = vshll.u32 %v17546_v18, 16 }
 0x32f   : > { %14334 = vmatprep.subr.bf16.mxu0 %v16297_v33  ;;  %20024 = vst [vmem:[#allocation32_spill] sm:$0xff] %v17662_v58 }
 0x332   : > { %14335 = vmatpush3.bf16.msra.mxu0 %v16297_v33  ;;  %v6317_v33 = vrot.slane %v6315_v4, 7 }
 0x333   : > { %14336 = vmatprep.subr.bf16.mxu0 %v16298_v10 }
 0x334   : > { %v6320_v54 = vor.u32 %v6318_v56, %v6317_v33 }
 0x335   : > { %14305 = vmatmul.mubr.bf16.gmra.mrb[36].mxu0 %v17596_v16 }
 0x336   : > { %14308 = vmatprep.mubr.bf16.mxu0 %v17603_v17  ;;  %14337 = vmatpush3.bf16.msra.mxu0 %v16298_v10  ;;  %v19799_v10 = vshrl.u32 %v17533_v25, 16  ;;  %v17669_v48 = vsel %vm16993_vm2, 0, %v6320_v54 }
 0x337   : > { %14338 = vmatprep.subr.bf16.mxu0 %v16299_v14  ;;  %20025 = vst [vmem:[#allocation33_spill] sm:$0xff] %v17669_v48 }
 0x338   : > { %v6324_v45 = vrot.slane %v19799_v10, 7  ;;  %v19802_v10 = vshll.u32 %v17556_v41, 16 }
 0x33a   : > { %14339 = vmatpush3.bf16.msra.mxu0 %v16299_v14  ;;  %v16305_v14 = vld [vmem:[#allocation6 + $0xc0] sm:$0xff]  }
 0x33b   : > { %14340 = vmatprep.subr.bf16.mxu0 %v16300_v61 }
 0x33d   : > { %14309 = vmatmul.mubr.bf16.gmra.mrb[40].mxu0 %v17618_v62 }
 0x33e   : > { %14312 = vmatprep.mubr.bf16.mxu0 %v17625_v7  ;;  %14341 = vmatpush3.bf16.msra.mxu0 %v16300_v61  ;;  %v19807_v61 = vshll.u32 %v17533_v25, 16 }
 0x33f   : > { %14342 = vmatprep.subr.bf16.mxu0 %v16301_v60 }
 0x340   : > { %v6327_v63 = vor.u32 %v19807_v61, %v6324_v45  ;;  %v6345_v45 = vrot.slane %v19798_v13, 7 }
 0x342   : > { %14343 = vmatpush3.bf16.msra.mxu0 %v16301_v60  ;;  %v19800_v60 = vshll.u32 %v17535_v26, 16  ;;  %v17684_v33 = vsel %vm16993_vm2, 0, %v6327_v63 }
 0x343   : > { %14344 = vmatprep.subr.bf16.mxu0 %v16302_v5  ;;  %20026 = vst [vmem:[#allocation34_spill] sm:$0xff] %v17684_v33 }
 0x345   : > { %14313 = vmatmul.mubr.bf16.gmra.mrb[44].mxu0 %v17640_v8 }
 0x346   : > { %14316 = vmatprep.mubr.bf16.mxu0 %v17647_v1  ;;  %14345 = vmatpush3.bf16.msra.mxu0 %v16302_v5  ;;  %v6334_v5 = vor.u32 %v19800_v60, %v6331_v15  ;;  %v19805_v15 = vshll.u32 %v17548_v40, 16 }
 0x347   : > { %14346 = vmatprep.subr.bf16.mxu0 %v16303_v51 }
 0x348   : > { %v17691_v54 = vsel %vm16993_vm2, 0, %v6334_v5  ;;  %v6348_v3 = vor.u32 %v19805_v15, %v6345_v45 }
 0x349   : > { %20027 = vst [vmem:[#allocation35_spill] sm:$0xff] %v17691_v54 }
 0x34a   : > { %14347 = vmatpush3.bf16.msra.mxu0 %v16303_v51  ;;  %v6338_v51 = vrot.slane %v19796_v47, 7  ;;  %v19801_v47 = vshrl.u32 %v17556_v41, 16  ;;  %v17712_v60 = vsel %vm16993_vm2, 0, %v6348_v3 }
 0x34b   : > { %14380 = vmatprep.subr.bf16.mxu0 %v16305_v14  ;;  %20029 = vst [vmem:[#allocation37_spill] sm:$0xff] %v17712_v60 }
 0x34c   : > { %v6341_v63 = vor.u32 %v19806_v42, %v6338_v51  ;;  %v6352_v13 = vrot.slane %v19801_v47, 7  ;;  %v6429_v47 = vrot.slane %v6262_v53, 1 }
 0x34d   : > { %14317 = vmatmul.mubr.bf16.gmra.mrb[48].mxu0 %v17662_v58 }
 0x34e   : > { %14320 = vmatprep.mubr.bf16.mxu0 %v17669_v48  ;;  %v17705_v5 = vsel %vm16993_vm2, 0, %v6341_v63  ;;  %v6355_v51 = vor.u32 %v19802_v10, %v6352_v13  ;;  %v6427_v63 = vrot.slane %v6255_v23, 1  ;;  %v6430_v13 = vor.u32 %v6429_v47, %v6259_v30  ;;  %v16308_v10 = vld [vmem:[#allocation6 + $0xc8] sm:$0xff]  }
 0x34f   : > { %20028 = vst [vmem:[#allocation36_spill] sm:$0xff] %v17705_v5  ;;  %v6431_v23 = vrot.slane %v6269_v29, 1  ;;  %v16311_v29 = vld [vmem:[#allocation6 + $0xd0] sm:$0xff]  }
 0x350   : > { %v17720_v45 = vsel %vm16993_vm2, 0, %v6355_v51  ;;  %v6428_v3 = vor.u32 %v6427_v63, %v6252_v12  ;;  %v17740_v53 = vsel %vm17218_vm5, %v6430_v13, 0  ;;  %v16314_v63 = vld [vmem:[#allocation6 + $0xd8] sm:$0xff]   ;;  %v16319_v13 = vld [vmem:[#allocation6 + $0xe8] sm:$0xff]  }
 0x351   : > { %20030 = vst [vmem:[#allocation38_spill] sm:$0xff] %v17740_v53  ;;  %v6432_v12 = vor.u32 %v6431_v23, %v6266_v49  ;;  %v6437_v49 = vrot.slane %v6290_v55, 1  ;;  %v6439_v55 = vrot.slane %v6297_v2, 1 }
 0x352   : > { %v17734_v51 = vsel %vm17218_vm5, %v6428_v3, 0 }
 0x353   : > { %v17752_v47 = vsel %vm17218_vm5, %v6432_v12, 0  ;;  %v6440_v2 = vor.u32 %v6439_v55, %v6294_v44  ;;  %v6443_v55 = vrot.slane %v6311_v57, 1 }
 0x354   : > { %20031 = vst [vmem:[#allocation39_spill] sm:$0xff] %v17752_v47 }
 0x355   : > { %14321 = vmatmul.mubr.bf16.gmra.mrb[52].mxu0 %v17684_v33  ;;  %v17800_v44 = vsel %vm17218_vm5, %v6440_v2, 0 }
 0x356   : > { %14324 = vmatprep.mubr.bf16.mxu0 %v17691_v54  ;;  %20035 = vst [vmem:[#allocation43_spill] sm:$0xff] %v17800_v44 }
 0x35d   : > { %14325 = vmatmul.mubr.bf16.gmra.mrb[56].mxu0 %v17705_v5 }
 0x35e   : > { %14328 = vmatprep.mubr.bf16.mxu0 %v17712_v60 }
 0x365   : > { %14329 = vmatmul.mubr.bf16.gmra.mrb[60].mxu0 %v17720_v45 }
 0x366   : > { %14348 = vmatprep.mubr.bf16.mxu0 %v19803_v0  ;;  %v6433_v0 = vrot.slane %v6276_v52, 1  ;;  %v6435_v52 = vrot.slane %v6283_v24, 1  ;;  %v16317_v24 = vld [vmem:[#allocation6 + $0xe0] sm:$0xff]  }
 0x368   : > { %v6434_v30 = vor.u32 %v6433_v0, %v6273_v21  ;;  %v6436_v0 = vor.u32 %v6435_v52, %v6280_v28  ;;  %v6438_v21 = vor.u32 %v6437_v49, %v6287_v39  ;;  %v6441_v28 = vrot.slane %v6304_v46, 1  ;;  %v17784_v39 = vld [vmem:[%s19775_s2] ss:$0 sm:$0xff]  ;;  %v16321_v46 = vld [vmem:[#allocation6 + $0xf0] sm:$0xff]  }
 0x36a   : > { %v17776_v3 = vsel %vm17218_vm5, %v6438_v21, 0  ;;  %v6442_v23 = vor.u32 %v6441_v28, %v6301_v59  ;;  %v16323_v28 = vld [vmem:[#allocation6 + $0xf8] sm:$0xff]  }
 0x36b   : > { %20034 = vst [vmem:[#allocation42_spill] sm:$0xff] %v17776_v3 }
 0x36d   : > { %14349 = vmatmul.mubr.bf16.vlgmr.msra.gmra.mrb[32].mxu0 %v17734_v51 }
 0x36e   : > { %14381 = vmatpush3.bf16.msra.mxu0 %v16305_v14  ;;  %14352 = vmatprep.mubr.bf16.mxu0 %v17740_v53  ;;  %v17758_v14 = vsel %vm17218_vm5, %v6434_v30, 0  ;;  %v17794_v30 = vld [vmem:[%s19776_s3] ss:$0 sm:$0xff] }
 0x36f   : > { %14382 = vmatprep.subr.bf16.mxu0 %v16308_v10  ;;  %20032 = vst [vmem:[#allocation40_spill] sm:$0xff] %v17758_v14 }
 0x372   : > { %14383 = vmatpush3.bf16.msra.mxu0 %v16308_v10  ;;  %v17770_v10 = vsel %vm17218_vm5, %v6436_v0, 0 }
 0x373   : > { %14384 = vmatprep.subr.bf16.mxu0 %v16311_v29  ;;  %20033 = vst [vmem:[#allocation41_spill] sm:$0xff] %v17770_v10 }
 0x375   : > { %14353 = vmatmul.mubr.bf16.gmra.mrb[36].mxu0 %v17752_v47 }
 0x376   : > { %14356 = vmatprep.mubr.bf16.mxu0 %v17758_v14  ;;  %14385 = vmatpush3.bf16.msra.mxu0 %v16311_v29 }
 0x377   : > { %14386 = vmatprep.subr.bf16.mxu0 %v16314_v63 }
 0x37a   : > { %14387 = vmatpush3.bf16.msra.mxu0 %v16314_v63 }
 0x37b   : > { %14388 = vmatprep.subr.bf16.mxu0 %v16317_v24 }
 0x37d   : > { %14357 = vmatmul.mubr.bf16.gmra.mrb[40].mxu0 %v17770_v10 }
 0x37e   : > { %14360 = vmatprep.mubr.bf16.mxu0 %v17776_v3  ;;  %14389 = vmatpush3.bf16.msra.mxu0 %v16317_v24  ;;  %v17806_v24 = vsel %vm17218_vm5, %v6442_v23, 0 }
 0x37f   : > { %14390 = vmatprep.subr.bf16.mxu0 %v16319_v13  ;;  %20036 = vst [vmem:[#allocation44_spill] sm:$0xff] %v17806_v24 }
 0x380   : > { %v13774_v12 = vpop.f32.mrb[0].mxu0 }
 0x381   : > { %v3132_v29 = vmul.f32 %v13774_v12, %v17784_v39  ;;  %v2964_v52 = vpop.f32.mrb[1].mxu0 }
 0x382   : > { %v3130_v49 = vmul.f32 %v17784_v39, %v2964_v52  ;;  %v13775_v63 = vpop.f32.mrb[2].mxu0  ;;  %14391 = vmatpush3.bf16.msra.mxu0 %v16319_v13  ;;  %v6445_v13 = vrot.slane %v6318_v56, 1 }
 0x383   : > { %v3171_v59 = vadd.f32 %v17794_v30, %v3132_v29  ;;  %v3133_v0 = vmul.f32 %v13775_v63, %v17784_v39  ;;  %v2967_v21 = vpop.f32.mrb[3].mxu0  ;;  %14392 = vmatprep.subr.bf16.mxu0 %v16321_v46  ;;  %v6444_v63 = vor.u32 %v6443_v55, %v6308_v11  ;;  %v16318_v11 = vld [vmem:[#allocation8 + $0x8] sm:$0xff]  }
 0x384   : > { %v3169_v12 = vadd.f32 %v17794_v30, %v3130_v49  ;;  %v3131_v2 = vmul.f32 %v17784_v39, %v2967_v21  ;;  %v17820_v49 = vld [vmem:[#allocation6 + $0x100] sm:$0xff]  }
 0x385   : > { %v3172_v29 = vadd.f32 %v17794_v30, %v3133_v0  ;;  %14361 = vmatmul.mubr.bf16.gmra.mrb[44].mxu0 %v17800_v44  ;;  %v3203_v23 = vmax.f32 %v3171_v59, 0.0  ;;  %v6446_v0 = vor.u32 %v6445_v13, %v6315_v4  ;;  %v17834_v4 = vsel %vm17218_vm5, %v6444_v63, 0 }
 0x386   : > { %v3170_v52 = vadd.f32 %v17794_v30, %v3131_v2  ;;  %14364 = vmatprep.mubr.bf16.mxu0 %v17806_v24  ;;  %14393 = vmatpush3.bf16.msra.mxu0 %v16321_v46  ;;  %v3201_v21 = vmax.f32 %v3169_v12, 0.0  ;;  %20037 = vst [vmem:[#allocation45_spill] sm:$0xff] %v17834_v4  ;;  %v20038_v13 = vshll.u32 %v17533_v25, 16  ;;  %v20042_v24 = vshrl.u32 %v17535_v26, 16 }
 0x387   : > { %v3204_v57 = vmax.f32 %v3172_v29, 0.0  ;;  %14394 = vmatprep.subr.bf16.mxu0 %v16323_v28 }
 0x388   : > { %v3202_v15 = vmax.f32 %v3170_v52, 0.0  ;;  %v13778_v56 = vpop.f32.mrb[4].mxu0 }
 0x389   : > { %v17824_v42 = vpack.c.bf16 %v3204_v57, %v3203_v23  ;;  %v3136_v2 = vmul.f32 %v13778_v56, %v17784_v39  ;;  %v2980_v61 = vpop.f32.mrb[5].mxu0  ;;  %v6447_v23 = vrot.slane %v20038_v13, 1  ;;  %v20040_v57 = vshll.u32 %v17535_v26, 16 }
 0x38a   : > { %v17827_v46 = vpack.c.bf16 %v3202_v15, %v3201_v21  ;;  %v3134_v59 = vmul.f32 %v17784_v39, %v2980_v61  ;;  %v13779_v29 = vpop.f32.mrb[6].mxu0  ;;  %14395 = vmatpush3.bf16.msra.mxu0 %v16323_v28  ;;  %v17844_v28 = vsel %vm17218_vm5, %v6446_v0, 0  ;;  %v20041_v0 = vshrl.u32 %v17533_v25, 16 }
 0x38b   : > { %v3175_v55 = vadd.f32 %v17794_v30, %v3136_v2  ;;  %v3137_v12 = vmul.f32 %v13779_v29, %v17784_v39  ;;  %v2983_v52 = vpop.f32.mrb[7].mxu0  ;;  %14428 = vmatprep.subr.bf16.mxu0 %v17820_v49  ;;  %20039 = vst [vmem:[#allocation46_spill] sm:$0xff] %v17844_v28  ;;  %v6449_v21 = vrot.slane %v20040_v57, 1  ;;  %v16320_v2 = vld [vmem:[#allocation8 + $0x10] sm:$0xff]  }
 0x38c   : > { %v3173_v15 = vadd.f32 %v17794_v30, %v3134_v59  ;;  %v3135_v61 = vmul.f32 %v17784_v39, %v2983_v52  ;;  %13821 = vmatmul.mubr.bf16.vlgmr.msra.gmra.mrb[0].mxu1 %v17827_v46  ;;  %v6448_v52 = vor.u32 %v6447_v23, %v20041_v0  ;;  %v20046_v0 = vshll.u32 %v17548_v40, 16 }
 0x38d   : > { %v3176_v63 = vadd.f32 %v17794_v30, %v3137_v12  ;;  %13824 = vmatprep.mubr.bf16.mxu1 %v17824_v42  ;;  %13853 = vmatpush3.bf16.msra.mxu1 %v17537_v43  ;;  %v3207_v59 = vmax.f32 %v3175_v55, 0.0  ;;  %v6450_v44 = vor.u32 %v6449_v21, %v20042_v24  ;;  %v20044_v21 = vshll.u32 %v17546_v18, 16 }
 0x38e   : > { %v3174_v56 = vadd.f32 %v17794_v30, %v3135_v61  ;;  %14365 = vmatmul.mubr.bf16.gmra.mrb[48].mxu0 %v17834_v4  ;;  %13854 = vmatprep.subr.bf16.mxu1 %v16318_v11  ;;  %v3205_v13 = vmax.f32 %v3173_v15, 0.0  ;;  %v17868_v24 = vsel %vm17218_vm5, %v6448_v52, 0 }
 0x38f   : > { %v3208_v29 = vmax.f32 %v3176_v63, 0.0  ;;  %14368 = vmatprep.mubr.bf16.mxu0 %v17844_v28  ;;  %v16322_v28 = vld [vmem:[#allocation8 + $0x18] sm:$0xff]   ;;  %20043 = vst [vmem:[#allocation47_spill] sm:$0xff] %v17868_v24 }
 0x390   : > { %v3206_v57 = vmax.f32 %v3174_v56, 0.0  ;;  %v13782_v12 = vpop.f32.mrb[8].mxu0 }
 0x391   : > { %v17858_v43 = vpack.c.bf16 %v3208_v29, %v3207_v59  ;;  %v3140_v61 = vmul.f32 %v13782_v12, %v17784_v39  ;;  %v2996_v4 = vpop.f32.mrb[9].mxu0  ;;  %13855 = vmatpush3.bf16.msra.mxu1 %v16318_v11  ;;  %v6451_v59 = vrot.slane %v20044_v21, 1  ;;  %v16324_v12 = vld [vmem:[#allocation8 + $0x20] sm:$0xff]  }
 0x392   : > { %v17861_v3 = vpack.c.bf16 %v3206_v57, %v3205_v13  ;;  %v3138_v55 = vmul.f32 %v17784_v39, %v2996_v4  ;;  %v13783_v63 = vpop.f32.mrb[10].mxu0  ;;  %13856 = vmatprep.subr.bf16.mxu1 %v16320_v2  ;;  %v17877_v4 = vsel %vm17218_vm5, %v6450_v44, 0  ;;  %v6453_v13 = vrot.slane %v20046_v0, 1 }
 0x393   : > { %v3179_v23 = vadd.f32 %v17794_v30, %v3140_v61  ;;  %v3141_v15 = vmul.f32 %v13783_v63, %v17784_v39  ;;  %v2999_v56 = vpop.f32.mrb[11].mxu0  ;;  %20045 = vst [vmem:[#allocation48_spill] sm:$0xff] %v17877_v4  ;;  %v20047_v44 = vshrl.u32 %v17546_v18, 16 }
 0x394   : > { %v3177_v11 = vadd.f32 %v17794_v30, %v3138_v55  ;;  %v3139_v29 = vmul.f32 %v17784_v39, %v2999_v56  ;;  %13825 = vmatmul.mubr.bf16.gmra.mrb[4].mxu1 %v17861_v3 }
 0x395   : > { %v3180_v57 = vadd.f32 %v17794_v30, %v3141_v15  ;;  %13828 = vmatprep.mubr.bf16.mxu1 %v17858_v43  ;;  %13857 = vmatpush3.bf16.msra.mxu1 %v16320_v2  ;;  %v3211_v61 = vmax.f32 %v3179_v23, 0.0  ;;  %v6452_v63 = vor.u32 %v6451_v59, %v20047_v44  ;;  %v20048_v15 = vshrl.u32 %v17548_v40, 16 }
 0x396   : > { %v3178_v52 = vadd.f32 %v17794_v30, %v3139_v29  ;;  %14369 = vmatmul.mubr.bf16.gmra.mrb[52].mxu0 %v17868_v24  ;;  %13858 = vmatprep.subr.bf16.mxu1 %v16322_v28  ;;  %v3209_v56 = vmax.f32 %v3177_v11, 0.0 }
 0x397   : > { %v3212_v55 = vmax.f32 %v3180_v57, 0.0  ;;  %14372 = vmatprep.mubr.bf16.mxu0 %v17877_v4  ;;  %v6454_v10 = vor.u32 %v6453_v13, %v20048_v15  ;;  %v16326_v4 = vld [vmem:[#allocation8 + $0x28] sm:$0xff]   ;;  %v17900_v13 = vsel %vm17218_vm5, %v6452_v63, 0 }
 0x398   : > { %v3210_v21 = vmax.f32 %v3178_v52, 0.0  ;;  %v13786_v0 = vpop.f32.mrb[12].mxu0  ;;  %20049 = vst [vmem:[#allocation49_spill] sm:$0xff] %v17900_v13 }
 0x399   : > { %v17890_v2 = vpack.c.bf16 %v3212_v55, %v3211_v61  ;;  %v3144_v29 = vmul.f32 %v13786_v0, %v17784_v39  ;;  %v3012_v24 = vpop.f32.mrb[13].mxu0  ;;  %13859 = vmatpush3.bf16.msra.mxu1 %v16322_v28  ;;  %v20050_v61 = vshll.u32 %v17556_v41, 16 }
 0x39a   : > { %v17893_v14 = vpack.c.bf16 %v3210_v21, %v3209_v56  ;;  %v3142_v23 = vmul.f32 %v17784_v39, %v3012_v24  ;;  %v13787_v57 = vpop.f32.mrb[14].mxu0  ;;  %13860 = vmatprep.subr.bf16.mxu1 %v16324_v12  ;;  %v17909_v24 = vsel %vm17218_vm5, %v6454_v10, 0  ;;  %v16328_v21 = vld [vmem:[#allocation8 + $0x30] sm:$0xff]  }
 0x39b   : > { %v3183_v59 = vadd.f32 %v17794_v30, %v3144_v29  ;;  %v3145_v11 = vmul.f32 %v13787_v57, %v17784_v39  ;;  %v3015_v52 = vpop.f32.mrb[15].mxu0  ;;  %v6455_v55 = vrot.slane %v20050_v61, 1  ;;  %20051 = vst [vmem:[#allocation50_spill] sm:$0xff] %v17909_v24  ;;  %v20052_v29 = vshrl.u32 %v17556_v41, 16 }
 0x39c   : > { %v3181_v28 = vadd.f32 %v17794_v30, %v3142_v23  ;;  %v3143_v44 = vmul.f32 %v17784_v39, %v3015_v52  ;;  %13829 = vmatmul.mubr.bf16.gmra.mrb[8].mxu1 %v17893_v14 }
 0x39d   : > { %v3184_v56 = vadd.f32 %v17794_v30, %v3145_v11  ;;  %13832 = vmatprep.mubr.bf16.mxu1 %v17890_v2  ;;  %13861 = vmatpush3.bf16.msra.mxu1 %v16324_v12  ;;  %v3215_v0 = vmax.f32 %v3183_v59, 0.0  ;;  %v6456_v23 = vor.u32 %v6455_v55, %v20052_v29 }
 0x39e   : > { %v3182_v63 = vadd.f32 %v17794_v30, %v3143_v44  ;;  %14373 = vmatmul.mubr.bf16.gmra.mrb[56].mxu0 %v17900_v13  ;;  %13862 = vmatprep.subr.bf16.mxu1 %v16326_v4  ;;  %v3213_v10 = vmax.f32 %v3181_v28, 0.0 }
 0x39f   : > { %v3216_v15 = vmax.f32 %v3184_v56, 0.0  ;;  %14376 = vmatprep.mubr.bf16.mxu0 %v17909_v24  ;;  %v16330_v56 = vld [vmem:[#allocation8 + $0x38] sm:$0xff]  }
 0x3a0   : > { %v3214_v57 = vmax.f32 %v3182_v63, 0.0  ;;  %v13790_v52 = vpop.f32.mrb[16].mxu0  ;;  %v17928_v63 = vsel %vm17218_vm5, %v6456_v23, 0 }
 0x3a1   : > { %v17918_v11 = vpack.c.bf16 %v3216_v15, %v3215_v0  ;;  %v3148_v12 = vmul.f32 %v13790_v52, %v17784_v39  ;;  %v3028_v61 = vpop.f32.mrb[17].mxu0  ;;  %13863 = vmatpush3.bf16.msra.mxu1 %v16326_v4  ;;  %20053 = vst [vmem:[#allocation51_spill] sm:$0xff] %v17928_v63 }
 0x3a2   : > { %v17921_v44 = vpack.c.bf16 %v3214_v57, %v3213_v10  ;;  %v3146_v13 = vmul.f32 %v17784_v39, %v3028_v61  ;;  %v13791_v59 = vpop.f32.mrb[18].mxu0  ;;  %13864 = vmatprep.subr.bf16.mxu1 %v16328_v21  ;;  %v17937_v10 = vld [vmem:[#allocation8 + $0x80] sm:$0xff]  }
 0x3a3   : > { %v3187_v24 = vadd.f32 %v17794_v30, %v3148_v12  ;;  %v3149_v55 = vmul.f32 %v13791_v59, %v17784_v39  ;;  %v3031_v28 = vpop.f32.mrb[19].mxu0 }
 0x3a4   : > { %v3185_v0 = vadd.f32 %v17794_v30, %v3146_v13  ;;  %v3147_v4 = vmul.f32 %v17784_v39, %v3031_v28  ;;  %13833 = vmatmul.mubr.bf16.gmra.mrb[12].mxu1 %v17921_v44 }
 0x3a5   : > { %v3188_v15 = vadd.f32 %v17794_v30, %v3149_v55  ;;  %13836 = vmatprep.mubr.bf16.mxu1 %v17918_v11  ;;  %13865 = vmatpush3.bf16.msra.mxu1 %v16328_v21  ;;  %v3219_v23 = vmax.f32 %v3187_v24, 0.0 }
 0x3a6   : > { %v3186_v29 = vadd.f32 %v17794_v30, %v3147_v4  ;;  %14377 = vmatmul.mubr.bf16.gmra.mrb[60].mxu0 %v17928_v63  ;;  %13866 = vmatprep.subr.bf16.mxu1 %v16330_v56  ;;  %v3217_v13 = vmax.f32 %v3185_v0, 0.0 }
 0x3a7   : > { %v3220_v57 = vmax.f32 %v3188_v15, 0.0  ;;  %14396 = vmatprep.mubr.bf16.mxu0 %v17574_v36 }
 0x3a8   : > { %v3218_v52 = vmax.f32 %v3186_v29, 0.0  ;;  %v13794_v12 = vpop.f32.mrb[20].mxu0 }
 0x3a9   : > { %v17940_v61 = vpack.c.bf16 %v3220_v57, %v3219_v23  ;;  %v3152_v59 = vmul.f32 %v13794_v12, %v17784_v39  ;;  %v3044_v55 = vpop.f32.mrb[21].mxu0  ;;  %13867 = vmatpush3.bf16.msra.mxu1 %v16330_v56  ;;  %v16327_v23 = vld [vmem:[#allocation6 + $0x108] sm:$0xff]  }
 0x3aa   : > { %v17943_v21 = vpack.c.bf16 %v3218_v52, %v3217_v13  ;;  %v3150_v28 = vmul.f32 %v17784_v39, %v3044_v55  ;;  %v13795_v4 = vpop.f32.mrb[22].mxu0  ;;  %13900 = vmatprep.subr.bf16.mxu1 %v17937_v10 }
 0x3ab   : > { %v3191_v24 = vadd.f32 %v17794_v30, %v3152_v59  ;;  %v3153_v36 = vmul.f32 %v13795_v4, %v17784_v39  ;;  %v3047_v0 = vpop.f32.mrb[23].mxu0 }
 0x3ac   : > { %v3189_v15 = vadd.f32 %v17794_v30, %v3150_v28  ;;  %v3151_v29 = vmul.f32 %v17784_v39, %v3047_v0  ;;  %13837 = vmatmul.mubr.bf16.gmra.mrb[16].mxu1 %v17943_v21  ;;  %v16329_v28 = vld [vmem:[#allocation6 + $0x110] sm:$0xff]  }
 0x3ad   : > { %v3192_v56 = vadd.f32 %v17794_v30, %v3153_v36  ;;  %13840 = vmatprep.mubr.bf16.mxu1 %v17940_v61  ;;  %v3223_v13 = vmax.f32 %v3191_v24, 0.0 }
 0x3ae   : > { %v3190_v57 = vadd.f32 %v17794_v30, %v3151_v29  ;;  %14397 = vmatmul.mubr.bf16.vlgmr.msra.gmra.mrb[32].mxu0 %v17581_v35  ;;  %v3221_v12 = vmax.f32 %v3189_v15, 0.0 }
 0x3af   : > { %v3224_v52 = vmax.f32 %v3192_v56, 0.0  ;;  %14429 = vmatpush3.bf16.msra.mxu0 %v17820_v49  ;;  %14400 = vmatprep.mubr.bf16.mxu0 %v17596_v16 }
 0x3b0   : > { %v3222_v59 = vmax.f32 %v3190_v57, 0.0  ;;  %v13798_v55 = vpop.f32.mrb[24].mxu0  ;;  %14430 = vmatprep.subr.bf16.mxu0 %v16327_v23 }
 0x3b1   : > { %v17958_v4 = vpack.c.bf16 %v3224_v52, %v3223_v13  ;;  %v3156_v36 = vmul.f32 %v13798_v55, %v17784_v39  ;;  %v3060_v0 = vpop.f32.mrb[25].mxu0  ;;  %v16331_v13 = vld [vmem:[#allocation6 + $0x118] sm:$0xff]  }
 0x3b2   : > { %v17961_v63 = vpack.c.bf16 %v3222_v59, %v3221_v12  ;;  %v3154_v29 = vmul.f32 %v17784_v39, %v3060_v0  ;;  %v13799_v24 = vpop.f32.mrb[26].mxu0  ;;  %v16333_v0 = vld [vmem:[#allocation6 + $0x120] sm:$0xff]  }
 0x3b3   : > { %v3195_v56 = vadd.f32 %v17794_v30, %v3156_v36  ;;  %v3157_v49 = vmul.f32 %v13799_v24, %v17784_v39  ;;  %v3063_v16 = vpop.f32.mrb[27].mxu0  ;;  %14431 = vmatpush3.bf16.msra.mxu0 %v16327_v23 }
 0x3b4   : > { %v3193_v15 = vadd.f32 %v17794_v30, %v3154_v29  ;;  %v3155_v57 = vmul.f32 %v17784_v39, %v3063_v16  ;;  %13841 = vmatmul.mubr.bf16.gmra.mrb[20].mxu1 %v17961_v63  ;;  %14432 = vmatprep.subr.bf16.mxu0 %v16329_v28 }
 0x3b5   : > { %v3196_v52 = vadd.f32 %v17794_v30, %v3157_v49  ;;  %13844 = vmatprep.mubr.bf16.mxu1 %v17958_v4  ;;  %v3227_v59 = vmax.f32 %v3195_v56, 0.0 }
 0x3b6   : > { %v3194_v12 = vadd.f32 %v17794_v30, %v3155_v57  ;;  %14401 = vmatmul.mubr.bf16.gmra.mrb[36].mxu0 %v17603_v17  ;;  %v3225_v23 = vmax.f32 %v3193_v15, 0.0 }
 0x3b7   : > { %v3228_v55 = vmax.f32 %v3196_v52, 0.0  ;;  %14404 = vmatprep.mubr.bf16.mxu0 %v17618_v62  ;;  %14433 = vmatpush3.bf16.msra.mxu0 %v16329_v28 }
 0x3b8   : > { %v3226_v36 = vmax.f32 %v3194_v12, 0.0  ;;  %v13802_v16 = vpop.f32.mrb[28].mxu0  ;;  %14434 = vmatprep.subr.bf16.mxu0 %v16331_v13 }
 0x3b9   : > { %v17974_v29 = vpack.c.bf16 %v3228_v55, %v3227_v59  ;;  %v3160_v24 = vmul.f32 %v13802_v16, %v17784_v39  ;;  %v3076_v49 = vpop.f32.mrb[29].mxu0  ;;  %v16335_v59 = vld [vmem:[#allocation6 + $0x128] sm:$0xff]  }
 0x3ba   : > { %v17977_v35 = vpack.c.bf16 %v3226_v36, %v3225_v23  ;;  %v3158_v57 = vmul.f32 %v17784_v39, %v3076_v49  ;;  %v13803_v17 = vpop.f32.mrb[30].mxu0  ;;  %v16337_v49 = vld [vmem:[#allocation6 + $0x130] sm:$0xff]  }
 0x3bb   : > { %v3199_v56 = vadd.f32 %v17794_v30, %v3160_v24  ;;  %v3161_v52 = vmul.f32 %v13803_v17, %v17784_v39  ;;  %v3079_v28 = vpop.f32.mrb[31].mxu0  ;;  %14435 = vmatpush3.bf16.msra.mxu0 %v16331_v13  ;;  %v19837_v13 = vshrl.u32 %v17827_v46, 16  ;;  %v19836_v24 = vshrl.u32 %v17824_v42, 16 }
 0x3bc   : > { %v3197_v15 = vadd.f32 %v17794_v30, %v3158_v57  ;;  %v3159_v12 = vmul.f32 %v17784_v39, %v3079_v28  ;;  %13845 = vmatmul.mubr.bf16.gmra.mrb[24].mxu1 %v17977_v35  ;;  %14436 = vmatprep.subr.bf16.mxu0 %v16333_v0  ;;  %v16339_v28 = vld [vmem:[#allocation6 + $0x138] sm:$0xff]  }
 0x3bd   : > { %v3200_v55 = vadd.f32 %v17794_v30, %v3161_v52  ;;  %13848 = vmatprep.mubr.bf16.mxu1 %v17974_v29  ;;  %v3231_v36 = vmax.f32 %v3199_v56, 0.0 }
 0x3be   : > { %v3198_v23 = vadd.f32 %v17794_v30, %v3159_v12  ;;  %14405 = vmatmul.mubr.bf16.gmra.mrb[40].mxu0 %v17625_v7  ;;  %v3229_v39 = vmax.f32 %v3197_v15, 0.0  ;;  %v3252_v30 = vrot.slane %v19837_v13, 7  ;;  %v20054_v15 = vmov 0   ;;  %v16334_v13 = vld [vmem:[#allocation8 + $0x88] sm:$0xff]  }
 0x3bf   : > { %v3232_v17 = vmax.f32 %v3200_v55, 0.0  ;;  %14408 = vmatprep.mubr.bf16.mxu0 %v17640_v8  ;;  %14437 = vmatpush3.bf16.msra.mxu0 %v16333_v0  ;;  %v3259_v0 = vrot.slane %v19836_v24, 7  ;;  %v19842_v12 = vshll.u32 %v17827_v46, 16  ;;  %v18020_v24 = vld [vmem:[#allocation6 + $0x140] sm:$0xff]  }
 0x3c0   : > { %v3230_v16 = vmax.f32 %v3198_v23, 0.0  ;;  %14438 = vmatprep.subr.bf16.mxu0 %v16335_v59 }
 0x3c1   : > { %v17992_v57 = vpack.c.bf16 %v3232_v17, %v3231_v36  ;;  %v3255_v36 = vor.u32 %v19842_v12, %v3252_v30  ;;  %v19840_v17 = vshrl.u32 %v17861_v3, 16  ;;  %v12284_v12 = vld [vmem:[%s16955_s27 + $0x1f8] sm:$0xff] }
 0x3c2   : > { %v17994_v52 = vpack.c.bf16 %v3230_v16, %v3229_v39 }
 0x3c3   : > { %14439 = vmatpush3.bf16.msra.mxu0 %v16335_v59  ;;  %v19835_v56 = vshll.u32 %v17992_v57, 16  ;;  %v19838_v55 = vshrl.u32 %v17992_v57, 16  ;;  %v19841_v59 = vshll.u32 %v17824_v42, 16  ;;  %v18024_v30 = vsel %vm16993_vm2, 0, %v3255_v36 }
 0x3c4   : > { %13849 = vmatmul.mubr.bf16.gmra.mrb[28].mxu1 %v17994_v52  ;;  %14440 = vmatprep.subr.bf16.mxu0 %v16337_v49  ;;  %v19844_v36 = vshll.u32 %v17861_v3, 16 }
 0x3c5   : > { %13868 = vmatprep.mubr.bf16.mxu1 %v20054_v15  ;;  %v3455_v23 = vrot.slane %v19835_v56, 1  ;;  %v3262_v16 = vor.u32 %v19841_v59, %v3259_v0  ;;  %v19839_v56 = vshrl.u32 %v17858_v43, 16  ;;  %v12283_v59 = vld [vmem:[%s16955_s27 + $0x1f0] sm:$0xff] }
 0x3c6   : > { %14409 = vmatmul.mubr.bf16.gmra.mrb[44].mxu0 %v17647_v1 }
 0x3c7   : > { %14412 = vmatprep.mubr.bf16.mxu0 %v17662_v58  ;;  %14441 = vmatpush3.bf16.msra.mxu0 %v16337_v49  ;;  %v18015_v39 = vor.u32 %v3455_v23, %v19838_v55  ;;  %v3266_v49 = vrot.slane %v19840_v17, 7  ;;  %v18031_v0 = vsel %vm16993_vm2, 0, %v3262_v16  ;;  %v3273_v23 = vrot.slane %v19839_v56, 7  ;;  %v16336_v55 = vld [vmem:[#allocation8 + $0x90] sm:$0xff]  }
 0x3c8   : > { %14442 = vmatprep.subr.bf16.mxu0 %v16339_v28  ;;  %v19847_v56 = vshrl.u32 %v17893_v14, 16 }
 0x3c9   : > { %20055 = vst [vmem:[#allocation52_spill] sm:$0xff] %v18015_v39  ;;  %v3269_v16 = vor.u32 %v19844_v36, %v3266_v49  ;;  %v16338_v39 = vld [vmem:[#allocation8 + $0x98] sm:$0xff]   ;;  %v18056_v36 = vpack.c.bf16 %v12284_v12, %v12283_v59  ;;  %v16340_v12 = vld [vmem:[#allocation8 + $0xa0] sm:$0xff]  }
 0x3ca   : > { %v3280_v49 = vrot.slane %v19847_v56, 7 }
 0x3cb   : > { %14443 = vmatpush3.bf16.msra.mxu0 %v16339_v28  ;;  %v19845_v28 = vshll.u32 %v17858_v43, 16 }
 0x3cc   : > { %13869 = vmatmul.mubr.bf16.vlgmr.msra.gmra.mrb[0].mxu1 %v18024_v30  ;;  %14476 = vmatprep.subr.bf16.mxu0 %v18020_v24 }
 0x3cd   : > { %13872 = vmatprep.mubr.bf16.mxu1 %v18031_v0  ;;  %13901 = vmatpush3.bf16.msra.mxu1 %v17937_v10  ;;  %v3276_v17 = vor.u32 %v19845_v28, %v3273_v23  ;;  %v19846_v10 = vshrl.u32 %v17890_v2, 16  ;;  %v19850_v28 = vshll.u32 %v17893_v14, 16 }
 0x3ce   : > { %14413 = vmatmul.mubr.bf16.gmra.mrb[48].mxu0 %v17669_v48  ;;  %13902 = vmatprep.subr.bf16.mxu1 %v16334_v13  ;;  %v18052_v48 = vsel %vm16993_vm2, 0, %v3269_v16  ;;  %v19854_v16 = vshll.u32 %v17890_v2, 16 }
 0x3cf   : > { %14416 = vmatprep.mubr.bf16.mxu0 %v17684_v33  ;;  %20056 = vst [vmem:[#allocation53_spill] sm:$0xff] %v18052_v48  ;;  %v18061_v23 = vsel %vm16993_vm2, 0, %v3276_v17  ;;  %v3283_v59 = vor.u32 %v19850_v28, %v3280_v49  ;;  %v19853_v17 = vshrl.u32 %v17921_v44, 16 }
 0x3d1   : > { %13903 = vmatpush3.bf16.msra.mxu1 %v16334_v13  ;;  %v3287_v13 = vrot.slane %v19846_v10, 7  ;;  %v19852_v10 = vshrl.u32 %v18056_v36, 16  ;;  %v18079_v33 = vsel %vm16993_vm2, 0, %v3283_v59  ;;  %v3294_v49 = vrot.slane %v19853_v17, 7  ;;  %v16344_v17 = vld [vmem:[#allocation8 + $0xb0] sm:$0xff]  }
 0x3d2   : > { %13904 = vmatprep.subr.bf16.mxu1 %v16336_v55  ;;  %20057 = vst [vmem:[#allocation54_spill] sm:$0xff] %v18079_v33  ;;  %v19863_v59 = vshll.u32 %v17921_v44, 16 }
 0x3d3   : > { %v3290_v56 = vor.u32 %v19854_v16, %v3287_v13  ;;  %v6359_v28 = vrot.slane %v19852_v10, 7  ;;  %v19862_v10 = vshll.u32 %v17918_v11, 16 }
 0x3d4   : > { %13873 = vmatmul.mubr.bf16.gmra.mrb[4].mxu1 %v18052_v48  ;;  %v3297_v16 = vor.u32 %v19863_v59, %v3294_v49 }
 0x3d5   : > { %13876 = vmatprep.mubr.bf16.mxu1 %v18061_v23  ;;  %13905 = vmatpush3.bf16.msra.mxu1 %v16336_v55  ;;  %v19855_v55 = vshrl.u32 %v17918_v11, 16  ;;  %v18089_v13 = vsel %vm16993_vm2, 0, %v3290_v56 }
 0x3d6   : > { %14417 = vmatmul.mubr.bf16.gmra.mrb[52].mxu0 %v17691_v54  ;;  %13906 = vmatprep.subr.bf16.mxu1 %v16338_v39  ;;  %v16342_v54 = vld [vmem:[#allocation8 + $0xa8] sm:$0xff]   ;;  %v18108_v1 = vsel %vm16993_vm2, 0, %v3297_v16  ;;  %v19867_v16 = vshll.u32 %v17943_v21, 16 }
 0x3d7   : > { %14420 = vmatprep.mubr.bf16.mxu0 %v17705_v5  ;;  %v19859_v5 = vshll.u32 %v18056_v36, 16 }
 0x3d9   : > { %13907 = vmatpush3.bf16.msra.mxu1 %v16338_v39  ;;  %v3301_v39 = vrot.slane %v19855_v55, 7  ;;  %v6362_v56 = vor.u32 %v19859_v5, %v6359_v28  ;;  %v19860_v55 = vshrl.u32 %v17943_v21, 16  ;;  %v18127_v5 = vld [vmem:[#allocation8 + $0xc0] sm:$0xff]  }
 0x3da   : > { %13908 = vmatprep.subr.bf16.mxu1 %v16340_v12 }
 0x3db   : > { %v3304_v58 = vor.u32 %v19862_v10, %v3301_v39  ;;  %v18112_v49 = vsel %vm16993_vm2, 0, %v6362_v56  ;;  %v3308_v28 = vrot.slane %v19860_v55, 7  ;;  %v19866_v56 = vshll.u32 %v17940_v61, 16 }
 0x3dc   : > { %13877 = vmatmul.mubr.bf16.gmra.mrb[8].mxu1 %v18079_v33  ;;  %v19865_v10 = vshrl.u32 %v17958_v4, 16 }
 0x3dd   : > { %13880 = vmatprep.mubr.bf16.mxu1 %v18089_v13  ;;  %13909 = vmatpush3.bf16.msra.mxu1 %v16340_v12  ;;  %v19861_v12 = vshrl.u32 %v17940_v61, 16  ;;  %v18119_v39 = vsel %vm16993_vm2, 0, %v3304_v58  ;;  %v3311_v55 = vor.u32 %v19867_v16, %v3308_v28  ;;  %v19864_v58 = vshrl.u32 %v17961_v63, 16  ;;  %v16345_v16 = vld [vmem:[#allocation6 + $0x150] sm:$0xff]  }
 0x3de   : > { %14421 = vmatmul.mubr.bf16.gmra.mrb[56].mxu0 %v17712_v60  ;;  %13910 = vmatprep.subr.bf16.mxu1 %v16342_v54  ;;  %v16346_v60 = vld [vmem:[#allocation8 + $0xb8] sm:$0xff]   ;;  %v3329_v28 = vrot.slane %v19865_v10, 7 }
 0x3df   : > { %14424 = vmatprep.mubr.bf16.mxu0 %v17720_v45  ;;  %v3322_v59 = vrot.slane %v19864_v58, 7 }
 0x3e1   : > { %13911 = vmatpush3.bf16.msra.mxu1 %v16342_v54  ;;  %v3315_v54 = vrot.slane %v19861_v12, 7 }
 0x3e2   : > { %13912 = vmatprep.subr.bf16.mxu1 %v16344_v17 }
 0x3e3   : > { %v3318_v12 = vor.u32 %v19866_v56, %v3315_v54  ;;  %v16343_v54 = vld [vmem:[#allocation6 + $0x148] sm:$0xff]   ;;  %v19871_v56 = vshrl.u32 %v17974_v29, 16 }
 0x3e4   : > { %13881 = vmatmul.mubr.bf16.gmra.mrb[12].mxu1 %v18108_v1 }
 0x3e5   : > { %13884 = vmatprep.mubr.bf16.mxu1 %v18119_v39  ;;  %13913 = vmatpush3.bf16.msra.mxu1 %v16344_v17  ;;  %v18139_v17 = vsel %vm16993_vm2, 0, %v3311_v55  ;;  %v19869_v55 = vshll.u32 %v17958_v4, 16 }
 0x3e6   : > { %14425 = vmatmul.mubr.bf16.gmra.mrb[60].mxu0 %v18112_v49  ;;  %13914 = vmatprep.subr.bf16.mxu1 %v16346_v60 }
 0x3e7   : > { %14444 = vmatprep.mubr.bf16.mxu0 %v17483_v6  ;;  %v18146_v6 = vsel %vm16993_vm2, 0, %v3318_v12  ;;  %v19870_v12 = vshrl.u32 %v17977_v35, 16  ;;  %v3332_v10 = vor.u32 %v19869_v55, %v3329_v28  ;;  %v3343_v28 = vrot.slane %v19871_v56, 7  ;;  %v16347_v55 = vld [vmem:[#allocation6 + $0x158] sm:$0xff]  }
 0x3e9   : > { %13915 = vmatpush3.bf16.msra.mxu1 %v16346_v60  ;;  %v19872_v60 = vshll.u32 %v17961_v63, 16 }
 0x3ea   : > { %13948 = vmatprep.subr.bf16.mxu1 %v18127_v5 }
 0x3eb   : > { %v3325_v58 = vor.u32 %v19872_v60, %v3322_v59  ;;  %v18171_v59 = vsel %vm16993_vm2, 0, %v3332_v10  ;;  %v19875_v10 = vshrl.u32 %v17994_v52, 16  ;;  %v16349_v60 = vld [vmem:[#allocation6 + $0x160] sm:$0xff]  }
 0x3ec   : > { %13885 = vmatmul.mubr.bf16.gmra.mrb[16].mxu1 %v18139_v17 }
 0x3ed   : > { %13888 = vmatprep.mubr.bf16.mxu1 %v18146_v6 }
 0x3ee   : > { %14445 = vmatmul.mubr.bf16.vlgmr.msra.gmra.mrb[32].mxu0 %v17485_v19  ;;  %v18164_v19 = vsel %vm16993_vm2, 0, %v3325_v58  ;;  %v19877_v58 = vshll.u32 %v17977_v35, 16 }
 0x3ef   : > { %14477 = vmatpush3.bf16.msra.mxu0 %v18020_v24  ;;  %14448 = vmatprep.mubr.bf16.mxu0 %v17493_v9  ;;  %v3336_v24 = vrot.slane %v19870_v12, 7 }
 0x3f0   : > { %14478 = vmatprep.subr.bf16.mxu0 %v16343_v54 }
 0x3f1   : > { %v3339_v12 = vor.u32 %v19877_v58, %v3336_v24  ;;  %v16351_v24 = vld [vmem:[#allocation6 + $0x168] sm:$0xff]   ;;  %v20059_v58 = vshll.u32 %v17824_v42, 16 }
 0x3f3   : > { %14479 = vmatpush3.bf16.msra.mxu0 %v16343_v54  ;;  %v19876_v54 = vshll.u32 %v17974_v29, 16  ;;  %v18187_v9 = vsel %vm16993_vm2, 0, %v3339_v12 }
 0x3f4   : > { %13889 = vmatmul.mubr.bf16.gmra.mrb[20].mxu1 %v18164_v19  ;;  %14480 = vmatprep.subr.bf16.mxu0 %v16345_v16 }
 0x3f5   : > { %13892 = vmatprep.mubr.bf16.mxu1 %v18171_v59  ;;  %v3346_v56 = vor.u32 %v19876_v54, %v3343_v28  ;;  %v19879_v28 = vshll.u32 %v17994_v52, 16 }
 0x3f6   : > { %14449 = vmatmul.mubr.bf16.gmra.mrb[36].mxu0 %v17495_v31  ;;  %v3350_v31 = vrot.slane %v19875_v10, 7  ;;  %v20058_v10 = vshll.u32 %v17827_v46, 16 }
 0x3f7   : > { %14452 = vmatprep.mubr.bf16.mxu0 %v17503_v20  ;;  %14481 = vmatpush3.bf16.msra.mxu0 %v16345_v16  ;;  %v18194_v16 = vsel %vm16993_vm2, 0, %v3346_v56  ;;  %v20062_v20 = vshll.u32 %v17861_v3, 16 }
 0x3f8   : > { %14482 = vmatprep.subr.bf16.mxu0 %v16347_v55  ;;  %v3353_v12 = vor.u32 %v19879_v28, %v3350_v31  ;;  %v3425_v54 = vrot.slane %v20058_v10, 1  ;;  %v16355_v31 = vld [vmem:[#allocation6 + $0x178] sm:$0xff]   ;;  %v20061_v10 = vshrl.u32 %v17824_v42, 16 }
 0x3fa   : > { %v18204_v56 = vsel %vm16993_vm2, 0, %v3353_v12  ;;  %v18218_v12 = vld [vmem:[#allocation6 + $0x180] sm:$0xff]  }
 0x3fb   : > { %14483 = vmatpush3.bf16.msra.mxu0 %v16347_v55  ;;  %v16353_v55 = vld [vmem:[#allocation6 + $0x170] sm:$0xff]  }
 0x3fc   : > { %13893 = vmatmul.mubr.bf16.gmra.mrb[24].mxu1 %v18187_v9  ;;  %14484 = vmatprep.subr.bf16.mxu0 %v16349_v60 }
 0x3fd   : > { %13896 = vmatprep.mubr.bf16.mxu1 %v18194_v16 }
 0x3fe   : > { %14453 = vmatmul.mubr.bf16.gmra.mrb[40].mxu0 %v17505_v50  ;;  %v3427_v50 = vrot.slane %v20059_v58, 1 }
 0x3ff   : > { %14456 = vmatprep.mubr.bf16.mxu0 %v17513_v38  ;;  %14485 = vmatpush3.bf16.msra.mxu0 %v16349_v60  ;;  %v20060_v60 = vshrl.u32 %v17827_v46, 16  ;;  %v16350_v38 = vld [vmem:[#allocation8 + $0xc8] sm:$0xff]  }
 0x400   : > { %14486 = vmatprep.subr.bf16.mxu0 %v16351_v24 }
 0x401   : > { %v3426_v28 = vor.u32 %v3425_v54, %v20060_v60  ;;  %v20066_v60 = vshrl.u32 %v17858_v43, 16 }
 0x403   : > { %14487 = vmatpush3.bf16.msra.mxu0 %v16351_v24  ;;  %v3428_v24 = vor.u32 %v3427_v50, %v20061_v10  ;;  %v18222_v58 = vsel %vm17218_vm5, %v3426_v28, 0  ;;  %v20064_v50 = vshll.u32 %v17858_v43, 16  ;;  %v20065_v28 = vshrl.u32 %v17861_v3, 16 }
 0x404   : > { %13897 = vmatmul.mubr.bf16.gmra.mrb[28].mxu1 %v18204_v56  ;;  %14488 = vmatprep.subr.bf16.mxu0 %v16353_v55 }
 0x405   : > { %13916 = vmatprep.mubr.bf16.mxu1 %v20054_v15  ;;  %v18229_v54 = vsel %vm17218_vm5, %v3428_v24, 0  ;;  %v16354_v24 = vld [vmem:[#allocation8 + $0xd8] sm:$0xff]  }
 0x406   : > { %14457 = vmatmul.mubr.bf16.gmra.mrb[44].mxu0 %v17515_v22  ;;  %v3429_v22 = vrot.slane %v20062_v20, 1  ;;  %20063 = vst [vmem:[#allocation55_spill] sm:$0xff] %v18229_v54  ;;  %v16352_v20 = vld [vmem:[#allocation8 + $0xd0] sm:$0xff]  }
 0x407   : > { %14460 = vmatprep.mubr.bf16.mxu0 %v17523_v32  ;;  %14489 = vmatpush3.bf16.msra.mxu0 %v16353_v55  ;;  %v3431_v55 = vrot.slane %v20064_v50, 1 }
 0x408   : > { %14490 = vmatprep.subr.bf16.mxu0 %v16355_v31 }
 0x409   : > { %v3432_v10 = vor.u32 %v3431_v55, %v20066_v60  ;;  %v20070_v55 = vshrl.u32 %v17893_v14, 16  ;;  %v20071_v60 = vshrl.u32 %v17890_v2, 16 }
 0x40b   : > { %14491 = vmatpush3.bf16.msra.mxu0 %v16355_v31  ;;  %v3430_v31 = vor.u32 %v3429_v22, %v20065_v28  ;;  %v18251_v22 = vsel %vm17218_vm5, %v3432_v10, 0  ;;  %v20069_v28 = vshll.u32 %v17890_v2, 16  ;;  %v16358_v10 = vld [vmem:[#allocation8 + $0xe8] sm:$0xff]  }
 0x40c   : > { %13917 = vmatmul.mubr.bf16.vlgmr.msra.gmra.mrb[0].mxu1 %v18222_v58  ;;  %14524 = vmatprep.subr.bf16.mxu0 %v18218_v12  ;;  %20068 = vst [vmem:[#allocation56_spill] sm:$0xff] %v18251_v22 }
 0x40d   : > { %13920 = vmatprep.mubr.bf16.mxu1 %v18229_v54  ;;  %13949 = vmatpush3.bf16.msra.mxu1 %v18127_v5  ;;  %v18244_v50 = vsel %vm17218_vm5, %v3430_v31, 0  ;;  %v20067_v5 = vshll.u32 %v17893_v14, 16 }
 0x40e   : > { %14461 = vmatmul.mubr.bf16.gmra.mrb[48].mxu0 %v17525_v34  ;;  %13950 = vmatprep.subr.bf16.mxu1 %v16350_v38 }
 0x40f   : > { %14464 = vmatprep.mubr.bf16.mxu0 %v17533_v25  ;;  %v3433_v54 = vrot.slane %v20067_v5, 1  ;;  %v3435_v25 = vrot.slane %v20069_v28, 1 }
 0x411   : > { %13951 = vmatpush3.bf16.msra.mxu1 %v16350_v38  ;;  %v16356_v38 = vld [vmem:[#allocation8 + $0xe0] sm:$0xff]   ;;  %v3434_v31 = vor.u32 %v3433_v54, %v20070_v55  ;;  %v3436_v5 = vor.u32 %v3435_v25, %v20071_v60  ;;  %v20074_v55 = vshll.u32 %v17918_v11, 16  ;;  %v16360_v25 = vld [vmem:[#allocation8 + $0xf0] sm:$0xff]   ;;  %v20076_v60 = vshrl.u32 %v17918_v11, 16 }
 0x412   : > { %13952 = vmatprep.subr.bf16.mxu1 %v16352_v20 }
 0x413   : > { %v18264_v28 = vsel %vm17218_vm5, %v3434_v31, 0  ;;  %v18271_v54 = vsel %vm17218_vm5, %v3436_v5, 0  ;;  %v16362_v5 = vld [vmem:[#allocation8 + $0xf8] sm:$0xff]  }
 0x414   : > { %13921 = vmatmul.mubr.bf16.gmra.mrb[4].mxu1 %v18244_v50  ;;  %20073 = vst [vmem:[#allocation57_spill] sm:$0xff] %v18271_v54 }
 0x415   : > { %13924 = vmatprep.mubr.bf16.mxu1 %v18251_v22  ;;  %13953 = vmatpush3.bf16.msra.mxu1 %v16352_v20  ;;  %v20072_v20 = vshll.u32 %v17921_v44, 16 }
 0x416   : > { %14465 = vmatmul.mubr.bf16.gmra.mrb[52].mxu0 %v17535_v26  ;;  %13954 = vmatprep.subr.bf16.mxu1 %v16354_v24 }
 0x417   : > { %14468 = vmatprep.mubr.bf16.mxu0 %v17546_v18  ;;  %v3437_v22 = vrot.slane %v20072_v20, 1  ;;  %v3439_v18 = vrot.slane %v20074_v55, 1 }
 0x419   : > { %13955 = vmatpush3.bf16.msra.mxu1 %v16354_v24  ;;  %v20075_v24 = vshrl.u32 %v17921_v44, 16  ;;  %v3440_v20 = vor.u32 %v3439_v18, %v20076_v60  ;;  %v18297_v18 = vld [vmem:[#allocation8 + $0x100] sm:$0xff]   ;;  %v20080_v60 = vshrl.u32 %v17940_v61, 16 }
 0x41a   : > { %13956 = vmatprep.subr.bf16.mxu1 %v16356_v38 }
 0x41b   : > { %v3438_v31 = vor.u32 %v3437_v22, %v20075_v24  ;;  %v18291_v22 = vsel %vm17218_vm5, %v3440_v20, 0  ;;  %v20078_v24 = vshll.u32 %v17940_v61, 16 }
 0x41c   : > { %13925 = vmatmul.mubr.bf16.gmra.mrb[8].mxu1 %v18264_v28 }
 0x41d   : > { %13928 = vmatprep.mubr.bf16.mxu1 %v18271_v54  ;;  %13957 = vmatpush3.bf16.msra.mxu1 %v16356_v38  ;;  %v18284_v55 = vsel %vm17218_vm5, %v3438_v31, 0  ;;  %v20077_v38 = vshll.u32 %v17943_v21, 16 }
 0x41e   : > { %14469 = vmatmul.mubr.bf16.gmra.mrb[56].mxu0 %v17548_v40  ;;  %13958 = vmatprep.subr.bf16.mxu1 %v16358_v10 }
 0x41f   : > { %14472 = vmatprep.mubr.bf16.mxu0 %v17556_v41  ;;  %v3441_v54 = vrot.slane %v20077_v38, 1  ;;  %v3443_v41 = vrot.slane %v20078_v24, 1 }
 0x421   : > { %13959 = vmatpush3.bf16.msra.mxu1 %v16358_v10  ;;  %v20079_v10 = vshrl.u32 %v17943_v21, 16  ;;  %v3444_v20 = vor.u32 %v3443_v41, %v20080_v60  ;;  %v16359_v41 = vld [vmem:[#allocation6 + $0x188] sm:$0xff]   ;;  %v20086_v60 = vshrl.u32 %v17958_v4, 16 }
 0x422   : > { %13960 = vmatprep.subr.bf16.mxu1 %v16360_v25 }
 0x423   : > { %v3442_v31 = vor.u32 %v3441_v54, %v20079_v10  ;;  %v18314_v54 = vsel %vm17218_vm5, %v3444_v20, 0  ;;  %v16361_v20 = vld [vmem:[#allocation6 + $0x190] sm:$0xff]  }
 0x424   : > { %13929 = vmatmul.mubr.bf16.gmra.mrb[12].mxu1 %v18284_v55  ;;  %20083 = vst [vmem:[#allocation59_spill] sm:$0xff] %v18314_v54 }
 0x425   : > { %13932 = vmatprep.mubr.bf16.mxu1 %v18291_v22  ;;  %13961 = vmatpush3.bf16.msra.mxu1 %v16360_v25  ;;  %v18307_v38 = vsel %vm17218_vm5, %v3442_v31, 0  ;;  %v20082_v25 = vshll.u32 %v17961_v63, 16 }
 0x426   : > { %14473 = vmatmul.mubr.bf16.gmra.mrb[60].mxu0 %v18056_v36  ;;  %13962 = vmatprep.subr.bf16.mxu1 %v16362_v5  ;;  %20081 = vst [vmem:[#allocation58_spill] sm:$0xff] %v18307_v38 }
 0x427   : > { %14492 = vmatprep.mubr.bf16.mxu0 %v17734_v51  ;;  %v3445_v24 = vrot.slane %v20082_v25, 1  ;;  %v20084_v51 = vshll.u32 %v17958_v4, 16 }
 0x429   : > { %13963 = vmatpush3.bf16.msra.mxu1 %v16362_v5  ;;  %v3447_v10 = vrot.slane %v20084_v51, 1  ;;  %v20085_v5 = vshrl.u32 %v17961_v63, 16 }
 0x42a   : > { %13996 = vmatprep.subr.bf16.mxu1 %v18297_v18 }
 0x42b   : > { %v3446_v31 = vor.u32 %v3445_v24, %v20085_v5  ;;  %v3448_v25 = vor.u32 %v3447_v10, %v20086_v60  ;;  %v20090_v24 = vshll.u32 %v17974_v29, 16  ;;  %v16363_v10 = vld [vmem:[#allocation6 + $0x198] sm:$0xff]  }
 0x42c   : > { %13933 = vmatmul.mubr.bf16.gmra.mrb[16].mxu1 %v18307_v38  ;;  %v20091_v60 = vld [vmem:[#allocation40_spill] sm:$0xff]  ;;  %v20095_v38 = vshll.u32 %v17994_v52, 16 }
 0x42d   : > { %13936 = vmatprep.mubr.bf16.mxu1 %v18314_v54  ;;  %v18328_v51 = vsel %vm17218_vm5, %v3446_v31, 0  ;;  %v20088_v54 = vshll.u32 %v17977_v35, 16  ;;  %v3451_v5 = vrot.slane %v20090_v24, 1 }
 0x42e   : > { %14493 = vmatmul.mubr.bf16.vlgmr.msra.gmra.mrb[32].mxu0 %v17740_v53  ;;  %20087 = vst [vmem:[#allocation60_spill] sm:$0xff] %v18328_v51 }
 0x42f   : > { %14525 = vmatpush3.bf16.msra.mxu0 %v18218_v12  ;;  %14496 = vmatprep.mubr.bf16.mxu0 %v17752_v47  ;;  %v3449_v53 = vrot.slane %v20088_v54, 1  ;;  %v18335_v12 = vsel %vm17218_vm5, %v3448_v25, 0  ;;  %v20093_v47 = vld [vmem:[#allocation41_spill] sm:$0xff]  ;;  %v20094_v54 = vshrl.u32 %v17974_v29, 16 }
 0x430   : > { %14526 = vmatprep.subr.bf16.mxu0 %v16359_v41  ;;  %20089 = vst [vmem:[#allocation61_spill] sm:$0xff] %v18335_v12  ;;  %v16365_v25 = vld [vmem:[#allocation6 + $0x1a0] sm:$0xff]  }
 0x433   : > { %14527 = vmatpush3.bf16.msra.mxu0 %v16359_v41  ;;  %v20092_v41 = vshrl.u32 %v17977_v35, 16 }
 0x434   : > { %13937 = vmatmul.mubr.bf16.gmra.mrb[20].mxu1 %v18328_v51  ;;  %14528 = vmatprep.subr.bf16.mxu0 %v16361_v20  ;;  %v3452_v51 = vor.u32 %v3451_v5, %v20094_v54  ;;  %v20097_v5 = vld [vmem:[#allocation42_spill] sm:$0xff]  ;;  %v20099_v54 = vld [vmem:[#allocation43_spill] sm:$0xff] }
 0x435   : > { %13940 = vmatprep.mubr.bf16.mxu1 %v18335_v12  ;;  %v3450_v31 = vor.u32 %v3449_v53, %v20092_v41  ;;  %v3453_v12 = vrot.slane %v20095_v38, 1  ;;  %v20098_v41 = vshrl.u32 %v17994_v52, 16  ;;  %v16369_v38 = vld [vmem:[#allocation6 + $0x1b0] sm:$0xff]  }
 0x436   : > { %14497 = vmatmul.mubr.bf16.gmra.mrb[36].mxu0 %v20091_v60  ;;  %v18355_v53 = vsel %vm17218_vm5, %v3452_v51, 0  ;;  %v16371_v51 = vld [vmem:[#allocation6 + $0x1b8] sm:$0xff]  }
 0x437   : > { %14500 = vmatprep.mubr.bf16.mxu0 %v20093_v47  ;;  %14529 = vmatpush3.bf16.msra.mxu0 %v16361_v20  ;;  %v18348_v24 = vsel %vm17218_vm5, %v3450_v31, 0  ;;  %20096 = vst [vmem:[#allocation40_spill] sm:$0xff] %v18355_v53  ;;  %v16367_v20 = vld [vmem:[#allocation6 + $0x1a8] sm:$0xff]   ;;  %v3454_v31 = vor.u32 %v3453_v12, %v20098_v41  ;;  %v16373_v12 = vld [vmem:[#allocation6 + $0x1c0] sm:$0xff]  }
 0x438   : > { %14530 = vmatprep.subr.bf16.mxu0 %v16363_v10  ;;  %v20103_v41 = vld [vmem:[#allocation47_spill] sm:$0xff] }
 0x43b   : > { %14531 = vmatpush3.bf16.msra.mxu0 %v16363_v10  ;;  %v18364_v10 = vsel %vm17218_vm5, %v3454_v31, 0  ;;  %v16370_v31 = vld [vmem:[#allocation8 + $0x118] sm:$0xff]  }
 0x43c   : > { %13941 = vmatmul.mubr.bf16.gmra.mrb[24].mxu1 %v18348_v24  ;;  %14532 = vmatprep.subr.bf16.mxu0 %v16365_v25 }
 0x43d   : > { %13944 = vmatprep.mubr.bf16.mxu1 %v18355_v53  ;;  %v20100_v53 = vld [vmem:[#allocation44_spill] sm:$0xff] }
 0x43e   : > { %14501 = vmatmul.mubr.bf16.gmra.mrb[40].mxu0 %v20097_v5  ;;  %v20101_v5 = vld [vmem:[#allocation45_spill] sm:$0xff] }
 0x43f   : > { %14504 = vmatprep.mubr.bf16.mxu0 %v20099_v54  ;;  %14533 = vmatpush3.bf16.msra.mxu0 %v16365_v25  ;;  %v16366_v25 = vld [vmem:[#allocation8 + $0x108] sm:$0xff]  }
 0x440   : > { %14534 = vmatprep.subr.bf16.mxu0 %v16367_v20 }
 0x443   : > { %14535 = vmatpush3.bf16.msra.mxu0 %v16367_v20  ;;  %v20102_v20 = vld [vmem:[#allocation46_spill] sm:$0xff] }
 0x444   : > { %13945 = vmatmul.mubr.bf16.gmra.mrb[28].mxu1 %v18364_v10  ;;  %14536 = vmatprep.subr.bf16.mxu0 %v16369_v38 }
 0x445   : > { %13964 = vmatprep.mubr.bf16.mxu1 %v18024_v30  ;;  %v16368_v30 = vld [vmem:[#allocation8 + $0x110] sm:$0xff]  }
 0x446   : > { %14505 = vmatmul.mubr.bf16.gmra.mrb[44].mxu0 %v20100_v53 }
 0x447   : > { %14508 = vmatprep.mubr.bf16.mxu0 %v20101_v5  ;;  %14537 = vmatpush3.bf16.msra.mxu0 %v16369_v38  ;;  %v20104_v38 = vld [vmem:[#allocation48_spill] sm:$0xff] }
 0x448   : > { %14538 = vmatprep.subr.bf16.mxu0 %v16371_v51 }
 0x44b   : > { %14539 = vmatpush3.bf16.msra.mxu0 %v16371_v51  ;;  %v16372_v51 = vld [vmem:[#allocation8 + $0x120] sm:$0xff]  }
 0x44c   : > { %13965 = vmatmul.mubr.bf16.vlgmr.msra.gmra.mrb[0].mxu1 %v18031_v0  ;;  %14572 = vmatprep.subr.bf16.mxu0 %v16373_v12 }
 0x44d   : > { %13968 = vmatprep.mubr.bf16.mxu1 %v18052_v48  ;;  %13997 = vmatpush3.bf16.msra.mxu1 %v18297_v18  ;;  %v20105_v48 = vld [vmem:[#allocation49_spill] sm:$0xff]  ;;  %v16374_v18 = vld [vmem:[#allocation8 + $0x128] sm:$0xff]  }
 0x44e   : > { %14509 = vmatmul.mubr.bf16.gmra.mrb[48].mxu0 %v20102_v20  ;;  %13998 = vmatprep.subr.bf16.mxu1 %v16366_v25  ;;  %v20106_v20 = vshll.u32 %v18056_v36, 16 }
 0x44f   : > { %14512 = vmatprep.mubr.bf16.mxu0 %v20103_v41 }
 0x450   : > { %v6457_v41 = vrot.slane %v20106_v20, 1 }
 0x451   : > { %13999 = vmatpush3.bf16.msra.mxu1 %v16366_v25  ;;  %v20107_v25 = vld [vmem:[#allocation50_spill] sm:$0xff] }
 0x452   : > { %14000 = vmatprep.subr.bf16.mxu1 %v16368_v30 }
 0x454   : > { %13969 = vmatmul.mubr.bf16.gmra.mrb[4].mxu1 %v18061_v23 }
 0x455   : > { %13972 = vmatprep.mubr.bf16.mxu1 %v18079_v33  ;;  %14001 = vmatpush3.bf16.msra.mxu1 %v16368_v30  ;;  %v16376_v30 = vld [vmem:[#allocation8 + $0x130] sm:$0xff]  }
 0x456   : > { %14513 = vmatmul.mubr.bf16.gmra.mrb[52].mxu0 %v20104_v38  ;;  %14002 = vmatprep.subr.bf16.mxu1 %v16370_v31  ;;  %v20108_v33 = vld [vmem:[#allocation51_spill] sm:$0xff]  ;;  %v20109_v38 = vshrl.u32 %v18056_v36, 16 }
 0x457   : > { %14516 = vmatprep.mubr.bf16.mxu0 %v20105_v48 }
 0x458   : > { %v6458_v48 = vor.u32 %v6457_v41, %v20109_v38  ;;  %v16375_v41 = vld [vmem:[#allocation6 + $0x1c8] sm:$0xff]  }
 0x459   : > { %14003 = vmatpush3.bf16.msra.mxu1 %v16370_v31  ;;  %v16378_v31 = vld [vmem:[#allocation8 + $0x138] sm:$0xff]   ;;  %v20112_v38 = vld [vmem:[#allocation30_spill] sm:$0xff] }
 0x45a   : > { %14004 = vmatprep.subr.bf16.mxu1 %v16372_v51  ;;  %v18389_v20 = vsel %vm17218_vm5, %v6458_v48, 0  ;;  %v20111_v48 = vld [vmem:[#allocation29_spill] sm:$0xff] }
 0x45c   : > { %13973 = vmatmul.mubr.bf16.gmra.mrb[8].mxu1 %v18089_v13 }
 0x45d   : > { %13976 = vmatprep.mubr.bf16.mxu1 %v18108_v1  ;;  %14005 = vmatpush3.bf16.msra.mxu1 %v16372_v51  ;;  %v16380_v51 = vld [vmem:[#allocation8 + $0x140] sm:$0xff]  }
 0x45e   : > { %14517 = vmatmul.mubr.bf16.gmra.mrb[56].mxu0 %v20107_v25  ;;  %14006 = vmatprep.subr.bf16.mxu1 %v16374_v18 }
 0x45f   : > { %14520 = vmatprep.mubr.bf16.mxu0 %v20108_v33  ;;  %v20110_v33 = vld [vmem:[#allocation28_spill] sm:$0xff] }
 0x461   : > { %14007 = vmatpush3.bf16.msra.mxu1 %v16374_v18  ;;  %v16377_v18 = vld [vmem:[#allocation6 + $0x1d0] sm:$0xff]  }
 0x462   : > { %14008 = vmatprep.subr.bf16.mxu1 %v16376_v30 }
 0x464   : > { %13977 = vmatmul.mubr.bf16.gmra.mrb[12].mxu1 %v18119_v39 }
 0x465   : > { %13980 = vmatprep.mubr.bf16.mxu1 %v18139_v17  ;;  %14009 = vmatpush3.bf16.msra.mxu1 %v16376_v30  ;;  %v16379_v30 = vld [vmem:[#allocation6 + $0x1d8] sm:$0xff]  }
 0x466   : > { %14521 = vmatmul.mubr.bf16.gmra.mrb[60].mxu0 %v18389_v20  ;;  %14010 = vmatprep.subr.bf16.mxu1 %v16378_v31 }
 0x467   : > { %14540 = vmatprep.mubr.bf16.mxu0 %v20110_v33  ;;  %v16381_v33 = vld [vmem:[#allocation6 + $0x1e0] sm:$0xff]  }
 0x469   : > { %14011 = vmatpush3.bf16.msra.mxu1 %v16378_v31 }
 0x46a   : > { %14044 = vmatprep.subr.bf16.mxu1 %v16380_v51 }
 0x46c   : > { %13981 = vmatmul.mubr.bf16.gmra.mrb[16].mxu1 %v18146_v6 }
 0x46d   : > { %13984 = vmatprep.mubr.bf16.mxu1 %v18164_v19 }
 0x46e   : > { %14541 = vmatmul.mubr.bf16.vlgmr.msra.gmra.mrb[32].mxu0 %v20111_v48  ;;  %v20114_v48 = vshll.u32 %v17992_v57, 16 }
 0x46f   : > { %14573 = vmatpush3.bf16.msra.mxu0 %v16373_v12  ;;  %14544 = vmatprep.mubr.bf16.mxu0 %v20112_v38  ;;  %v20113_v12 = vshrl.u32 %v17992_v57, 16  ;;  %v20115_v38 = vld [vmem:[#allocation31_spill] sm:$0xff] }
 0x470   : > { %14574 = vmatprep.subr.bf16.mxu0 %v16375_v41 }
 0x471   : > { %v3357_v31 = vrot.slane %v20113_v12, 7  ;;  %v20117_v12 = vld [vmem:[#allocation33_spill] sm:$0xff] }
 0x473   : > { %14575 = vmatpush3.bf16.msra.mxu0 %v16375_v41  ;;  %v16383_v41 = vld [vmem:[#allocation6 + $0x1e8] sm:$0xff]  }
 0x474   : > { %13985 = vmatmul.mubr.bf16.gmra.mrb[20].mxu1 %v18171_v59  ;;  %14576 = vmatprep.subr.bf16.mxu0 %v16377_v18 }
 0x475   : > { %13988 = vmatprep.mubr.bf16.mxu1 %v18187_v9 }
 0x476   : > { %14545 = vmatmul.mubr.bf16.gmra.mrb[36].mxu0 %v17618_v62  ;;  %v3360_v62 = vor.u32 %v20114_v48, %v3357_v31  ;;  %v16382_v31 = vld [vmem:[#allocation8 + $0x148] sm:$0xff]   ;;  %v16384_v48 = vld [vmem:[#allocation8 + $0x150] sm:$0xff]  }
 0x477   : > { %14548 = vmatprep.mubr.bf16.mxu0 %v17625_v7  ;;  %14577 = vmatpush3.bf16.msra.mxu0 %v16377_v18  ;;  %v16385_v7 = vld [vmem:[#allocation6 + $0x1f0] sm:$0xff]  }
 0x478   : > { %14578 = vmatprep.subr.bf16.mxu0 %v16379_v30  ;;  %v18413_v18 = vsel %vm16993_vm2, 0, %v3360_v62  ;;  %v16386_v62 = vld [vmem:[#allocation8 + $0x158] sm:$0xff]  }
 0x47b   : > { %14579 = vmatpush3.bf16.msra.mxu0 %v16379_v30  ;;  %v16387_v30 = vld [vmem:[#allocation6 + $0x1f8] sm:$0xff]  }
 0x47c   : > { %13989 = vmatmul.mubr.bf16.gmra.mrb[24].mxu1 %v18194_v16  ;;  %14580 = vmatprep.subr.bf16.mxu0 %v16381_v33 }
 0x47d   : > { %13992 = vmatprep.mubr.bf16.mxu1 %v18204_v56 }
 0x47e   : > { %14549 = vmatmul.mubr.bf16.gmra.mrb[40].mxu0 %v17640_v8  ;;  %v20116_v8 = vld [vmem:[#allocation32_spill] sm:$0xff] }
 0x47f   : > { %14552 = vmatprep.mubr.bf16.mxu0 %v20115_v38  ;;  %14581 = vmatpush3.bf16.msra.mxu0 %v16381_v33  ;;  %v16389_v33 = vld [vmem:[#allocation6 + $0x200] sm:$0xff]   ;;  %v20120_v38 = vld [vmem:[#allocation36_spill] sm:$0xff] }
 0x480   : > { %14582 = vmatprep.subr.bf16.mxu0 %v16383_v41 }
 0x483   : > { %14583 = vmatpush3.bf16.msra.mxu0 %v16383_v41  ;;  %v20118_v41 = vld [vmem:[#allocation34_spill] sm:$0xff] }
 0x484   : > { %13993 = vmatmul.mubr.bf16.gmra.mrb[28].mxu1 %v18413_v18  ;;  %14584 = vmatprep.subr.bf16.mxu0 %v16385_v7 }
 0x485   : > { %14012 = vmatprep.mubr.bf16.mxu1 %v17827_v46  ;;  %v20119_v46 = vld [vmem:[#allocation35_spill] sm:$0xff] }
 0x486   : > { %14553 = vmatmul.mubr.bf16.gmra.mrb[44].mxu0 %v20116_v8  ;;  %v16392_v8 = vld [vmem:[#allocation8 + $0x170] sm:$0xff]  }
 0x487   : > { %14556 = vmatprep.mubr.bf16.mxu0 %v20117_v12  ;;  %14585 = vmatpush3.bf16.msra.mxu0 %v16385_v7  ;;  %v16388_v7 = vld [vmem:[#allocation8 + $0x160] sm:$0xff]   ;;  %v16394_v12 = vld [vmem:[#allocation8 + $0x178] sm:$0xff]  }
 0x488   : > { %14586 = vmatprep.subr.bf16.mxu0 %v16387_v30 }
 0x48b   : > { %14587 = vmatpush3.bf16.msra.mxu0 %v16387_v30  ;;  %v20121_v30 = vld [vmem:[#allocation37_spill] sm:$0xff] }
 0x48c   : > { %14013 = vmatmul.mubr.bf16.vlgmr.msra.gmra.mrb[0].mxu1 %v17824_v42  ;;  %14620 = vmatprep.subr.bf16.mxu0 %v16389_v33 }
 0x48d   : > { %14016 = vmatprep.mubr.bf16.mxu1 %v17861_v3  ;;  %14045 = vmatpush3.bf16.msra.mxu1 %v16380_v51  ;;  %v16390_v51 = vld [vmem:[#allocation8 + $0x168] sm:$0xff]  }
 0x48e   : > { %14557 = vmatmul.mubr.bf16.gmra.mrb[48].mxu0 %v20118_v41  ;;  %14046 = vmatprep.subr.bf16.mxu1 %v16382_v31  ;;  %v20122_v41 = vld [vmem:[#allocation18_spill] sm:$0xff] }
 0x48f   : > { %14560 = vmatprep.mubr.bf16.mxu0 %v20119_v46  ;;  %v16393_v46 = vld [vmem:[#allocation6 + $0x210] sm:$0xff]  }
 0x491   : > { %14047 = vmatpush3.bf16.msra.mxu1 %v16382_v31  ;;  %v16396_v31 = vld [vmem:[#allocation8 + $0x180] sm:$0xff]  }
 0x492   : > { %14048 = vmatprep.subr.bf16.mxu1 %v16384_v48 }
 0x494   : > { %14017 = vmatmul.mubr.bf16.gmra.mrb[4].mxu1 %v17858_v43 }
 0x495   : > { %14020 = vmatprep.mubr.bf16.mxu1 %v17893_v14  ;;  %14049 = vmatpush3.bf16.msra.mxu1 %v16384_v48  ;;  %v20124_v48 = vld [vmem:[#allocation20_spill] sm:$0xff] }
 0x496   : > { %14561 = vmatmul.mubr.bf16.gmra.mrb[52].mxu0 %v20120_v38  ;;  %14050 = vmatprep.subr.bf16.mxu1 %v16386_v62  ;;  %v20125_v38 = vld [vmem:[#allocation21_spill] sm:$0xff] }
 0x497   : > { %14564 = vmatprep.mubr.bf16.mxu0 %v20121_v30  ;;  %v16397_v30 = vld [vmem:[#allocation6 + $0x220] sm:$0xff]  }
 0x499   : > { %14051 = vmatpush3.bf16.msra.mxu1 %v16386_v62  ;;  %v16395_v62 = vld [vmem:[#allocation6 + $0x218] sm:$0xff]  }
 0x49a   : > { %14052 = vmatprep.subr.bf16.mxu1 %v16388_v7 }
 0x49c   : > { %14021 = vmatmul.mubr.bf16.gmra.mrb[8].mxu1 %v17890_v2 }
 0x49d   : > { %14024 = vmatprep.mubr.bf16.mxu1 %v17921_v44  ;;  %14053 = vmatpush3.bf16.msra.mxu1 %v16388_v7  ;;  %v20126_v7 = vld [vmem:[#allocation22_spill] sm:$0xff] }
 0x49e   : > { %14565 = vmatmul.mubr.bf16.gmra.mrb[56].mxu0 %v17720_v45  ;;  %14054 = vmatprep.subr.bf16.mxu1 %v16390_v51  ;;  %v16391_v45 = vld [vmem:[#allocation6 + $0x208] sm:$0xff]  }
 0x49f   : > { %14568 = vmatprep.mubr.bf16.mxu0 %v18112_v49  ;;  %v20123_v49 = vld [vmem:[#allocation19_spill] sm:$0xff] }
 0x4a1   : > { %14055 = vmatpush3.bf16.msra.mxu1 %v16390_v51  ;;  %v20127_v51 = vld [vmem:[#allocation23_spill] sm:$0xff] }
 0x4a2   : > { %14056 = vmatprep.subr.bf16.mxu1 %v16392_v8 }
 0x4a4   : > { %14025 = vmatmul.mubr.bf16.gmra.mrb[12].mxu1 %v17918_v11 }
 0x4a5   : > { %14028 = vmatprep.mubr.bf16.mxu1 %v17943_v21  ;;  %14057 = vmatpush3.bf16.msra.mxu1 %v16392_v8  ;;  %v20128_v8 = vld [vmem:[#allocation24_spill] sm:$0xff] }
 0x4a6   : > { %14569 = vmatmul.mubr.bf16.gmra.mrb[60].mxu0 %v20054_v15  ;;  %14058 = vmatprep.subr.bf16.mxu1 %v16394_v12 }
 0x4a7   : > { %14588 = vmatprep.mubr.bf16.mxu0 %v20122_v41  ;;  %v16403_v41 = vld [vmem:[#allocation6 + $0x238] sm:$0xff]  }
 0x4a9   : > { %14059 = vmatpush3.bf16.msra.mxu1 %v16394_v12  ;;  %v16401_v12 = vld [vmem:[#allocation6 + $0x230] sm:$0xff]  }
 0x4aa   : > { %14092 = vmatprep.subr.bf16.mxu1 %v16396_v31 }
 0x4ac   : > { %14029 = vmatmul.mubr.bf16.gmra.mrb[16].mxu1 %v17940_v61 }
 0x4ad   : > { %14032 = vmatprep.mubr.bf16.mxu1 %v17961_v63 }
 0x4ae   : > { %14589 = vmatmul.mubr.bf16.vlgmr.msra.gmra.mrb[32].mxu0 %v20123_v49  ;;  %v20129_v49 = vld [vmem:[#allocation55_spill] sm:$0xff] }
 0x4af   : > { %14621 = vmatpush3.bf16.msra.mxu0 %v16389_v33  ;;  %14592 = vmatprep.mubr.bf16.mxu0 %v20124_v48  ;;  %v16399_v33 = vld [vmem:[#allocation6 + $0x228] sm:$0xff]   ;;  %v20130_v48 = vld [vmem:[#allocation25_spill] sm:$0xff] }
 0x4b0   : > { %14622 = vmatprep.subr.bf16.mxu0 %v16391_v45 }
 0x4b3   : > { %14623 = vmatpush3.bf16.msra.mxu0 %v16391_v45  ;;  %v16398_v45 = vld [vmem:[#allocation8 + $0x188] sm:$0xff]  }
 0x4b4   : > { %14033 = vmatmul.mubr.bf16.gmra.mrb[20].mxu1 %v17958_v4  ;;  %14624 = vmatprep.subr.bf16.mxu0 %v16393_v46 }
 0x4b5   : > { %14036 = vmatprep.mubr.bf16.mxu1 %v17977_v35 }
 0x4b6   : > { %14593 = vmatmul.mubr.bf16.gmra.mrb[36].mxu0 %v20125_v38  ;;  %v20133_v38 = vld [vmem:[#allocation57_spill] sm:$0xff] }
 0x4b7   : > { %14596 = vmatprep.mubr.bf16.mxu0 %v20126_v7  ;;  %14625 = vmatpush3.bf16.msra.mxu0 %v16393_v46  ;;  %v16400_v46 = vld [vmem:[#allocation8 + $0x190] sm:$0xff]  }
 0x4b8   : > { %14626 = vmatprep.subr.bf16.mxu0 %v16395_v62  ;;  %v16406_v7 = vld [vmem:[#allocation8 + $0x1b0] sm:$0xff]  }
 0x4bb   : > { %14627 = vmatpush3.bf16.msra.mxu0 %v16395_v62  ;;  %v16404_v62 = vld [vmem:[#allocation8 + $0x1a0] sm:$0xff]  }
 0x4bc   : > { %14037 = vmatmul.mubr.bf16.gmra.mrb[24].mxu1 %v17974_v29  ;;  %14628 = vmatprep.subr.bf16.mxu0 %v16397_v30 }
 0x4bd   : > { %14040 = vmatprep.mubr.bf16.mxu1 %v17994_v52 }
 0x4be   : > { %14597 = vmatmul.mubr.bf16.gmra.mrb[40].mxu0 %v20127_v51  ;;  %v20136_v51 = vld [vmem:[#allocation38_spill] sm:$0xff] }
 0x4bf   : > { %14600 = vmatprep.mubr.bf16.mxu0 %v20128_v8  ;;  %14629 = vmatpush3.bf16.msra.mxu0 %v16397_v30  ;;  %v16407_v30 = vld [vmem:[#allocation8 + $0x1b8] sm:$0xff]   ;;  %v20137_v8 = vld [vmem:[#allocation59_spill] sm:$0xff] }
 0x4c0   : > { %14630 = vmatprep.subr.bf16.mxu0 %v16399_v33 }
 0x4c3   : > { %14631 = vmatpush3.bf16.msra.mxu0 %v16399_v33  ;;  %v16408_v33 = vld [vmem:[#allocation8 + $0x1c0] sm:$0xff]  }
 0x4c4   : > { %14041 = vmatmul.mubr.bf16.gmra.mrb[28].mxu1 %v17992_v57  ;;  %14632 = vmatprep.subr.bf16.mxu0 %v16401_v12 }
 0x4c5   : > { %14060 = vmatprep.mubr.bf16.mxu1 %v18222_v58  ;;  %v20131_v58 = vld [vmem:[#allocation56_spill] sm:$0xff] }
 0x4c6   : > { %14601 = vmatmul.mubr.bf16.gmra.mrb[44].mxu0 %v17523_v32  ;;  %v16402_v32 = vld [vmem:[#allocation8 + $0x198] sm:$0xff]  }
 0x4c7   : > { %14604 = vmatprep.mubr.bf16.mxu0 %v17525_v34  ;;  %14633 = vmatpush3.bf16.msra.mxu0 %v16401_v12  ;;  %v20132_v34 = vld [vmem:[#allocation26_spill] sm:$0xff]  ;;  %v20138_v12 = vld [vmem:[#allocation60_spill] sm:$0xff] }
 0x4c8   : > { %14634 = vmatprep.subr.bf16.mxu0 %v16403_v41 }
 0x4cb   : > { %14635 = vmatpush3.bf16.msra.mxu0 %v16403_v41  ;;  %v20140_v41 = vld [vmem:[#allocation61_spill] sm:$0xff] }
 0x4cc   : > { %14061 = vmatmul.mubr.bf16.vlgmr.msra.gmra.mrb[0].mxu1 %v20129_v49 }
 0x4cd   : > { %14064 = vmatprep.mubr.bf16.mxu1 %v18244_v50  ;;  %14093 = vmatpush3.bf16.msra.mxu1 %v16396_v31  ;;  %v16405_v31 = vld [vmem:[#allocation8 + $0x1a8] sm:$0xff]  }
 0x4ce   : > { %14605 = vmatmul.mubr.bf16.gmra.mrb[48].mxu0 %v20130_v48  ;;  %14094 = vmatprep.subr.bf16.mxu1 %v16398_v45  ;;  %v20142_v48 = vld [vmem:[#allocation40_spill] sm:$0xff] }
 0x4cf   : > { %14608 = vmatprep.mubr.bf16.mxu0 %v17535_v26  ;;  %v20134_v26 = vld [vmem:[#allocation27_spill] sm:$0xff] }
 0x4d1   : > { %14095 = vmatpush3.bf16.msra.mxu1 %v16398_v45  ;;  %v20141_v45 = vld [vmem:[#allocation42_spill] sm:$0xff] }
 0x4d2   : > { %14096 = vmatprep.subr.bf16.mxu1 %v16400_v46 }
 0x4d4   : > { %14065 = vmatmul.mubr.bf16.gmra.mrb[4].mxu1 %v20131_v58 }
 0x4d5   : > { %14068 = vmatprep.mubr.bf16.mxu1 %v18264_v28  ;;  %14097 = vmatpush3.bf16.msra.mxu1 %v16400_v46  ;;  %v20143_v46 = vld [vmem:[#allocation52_spill] sm:$0xff] }
 0x4d6   : > { %14609 = vmatmul.mubr.bf16.gmra.mrb[52].mxu0 %v20132_v34  ;;  %14098 = vmatprep.subr.bf16.mxu1 %v16402_v32  ;;  %v20145_v34 = vld [vmem:[#allocation53_spill] sm:$0xff] }
 0x4d7   : > { %14612 = vmatprep.mubr.bf16.mxu0 %v17548_v40  ;;  %v20135_v40 = vld [vmem:[#allocation58_spill] sm:$0xff] }
 0x4d9   : > { %14099 = vmatpush3.bf16.msra.mxu1 %v16402_v32  ;;  %v16409_v32 = vld [vmem:[#allocation8 + $0x1c8] sm:$0xff]  }
 0x4da   : > { %14100 = vmatprep.subr.bf16.mxu1 %v16404_v62 }
 0x4dc   : > { %14069 = vmatmul.mubr.bf16.gmra.mrb[8].mxu1 %v20133_v38 }
 0x4dd   : > { %14072 = vmatprep.mubr.bf16.mxu1 %v18284_v55  ;;  %14101 = vmatpush3.bf16.msra.mxu1 %v16404_v62  ;;  %v20147_v62 = vld [vmem:[#allocation48_spill] sm:$0xff] }
 0x4de   : > { %14613 = vmatmul.mubr.bf16.gmra.mrb[56].mxu0 %v20134_v26  ;;  %14102 = vmatprep.subr.bf16.mxu1 %v16405_v31  ;;  %v16412_v26 = vld [vmem:[#allocation8 + $0x1e0] sm:$0xff]  }
 0x4df   : > { %14616 = vmatprep.mubr.bf16.mxu0 %v18056_v36  ;;  %v20139_v36 = vld [vmem:[#allocation39_spill] sm:$0xff] }
 0x4e1   : > { %14103 = vmatpush3.bf16.msra.mxu1 %v16405_v31  ;;  %v16411_v31 = vld [vmem:[#allocation8 + $0x1d8] sm:$0xff]  }
 0x4e2   : > { %14104 = vmatprep.subr.bf16.mxu1 %v16406_v7 }
 0x4e4   : > { %14073 = vmatmul.mubr.bf16.gmra.mrb[12].mxu1 %v18291_v22 }
 0x4e5   : > { %14076 = vmatprep.mubr.bf16.mxu1 %v20135_v40  ;;  %14105 = vmatpush3.bf16.msra.mxu1 %v16406_v7  ;;  %v20150_v7 = vld [vmem:[#allocation51_spill] sm:$0xff] }
 0x4e6   : > { %14617 = vmatmul.mubr.bf16.gmra.mrb[60].mxu0 %v20054_v15  ;;  %14106 = vmatprep.subr.bf16.mxu1 %v16407_v30 }
 0x4e7   : > { %14636 = vmatprep.mubr.bf16.mxu0 %v20136_v51 }
 0x4e9   : > { %14107 = vmatpush3.bf16.msra.mxu1 %v16407_v30  ;;  %v16414_v30 = vld [vmem:[#allocation8 + $0x1f0] sm:$0xff]  }
 0x4ea   : > { %14140 = vmatprep.subr.bf16.mxu1 %v16408_v33 }
 0x4ec   : > { %14077 = vmatmul.mubr.bf16.gmra.mrb[16].mxu1 %v20137_v8 }
 0x4ed   : > { %14080 = vmatprep.mubr.bf16.mxu1 %v20138_v12 }
 0x4ee   : > { %14637 = vmatmul.mubr.bf16.vlgmr.msra.gmra.mrb[32].mxu0 %v20139_v36 }
 0x4ef   : > { %14640 = vmatprep.mubr.bf16.mxu0 %v20091_v60  ;;  %v18482_v60 = vsel %vm17218_vm5, %v20143_v46, 0 }
 0x4f4   : > { %14081 = vmatmul.mubr.bf16.gmra.mrb[20].mxu1 %v20140_v41 }
 0x4f5   : > { %14084 = vmatprep.mubr.bf16.mxu1 %v18348_v24 }
 0x4f6   : > { %14641 = vmatmul.mubr.bf16.gmra.mrb[36].mxu0 %v20093_v47  ;;  %v20144_v47 = vld [vmem:[#allocation46_spill] sm:$0xff] }
 0x4f7   : > { %14644 = vmatprep.mubr.bf16.mxu0 %v20141_v45 }
 0x4fc   : > { %14085 = vmatmul.mubr.bf16.gmra.mrb[24].mxu1 %v20142_v48 }
 0x4fd   : > { %14088 = vmatprep.mubr.bf16.mxu1 %v18364_v10 }
 0x4fe   : > { %14645 = vmatmul.mubr.bf16.gmra.mrb[40].mxu0 %v20099_v54  ;;  %v16410_v54 = vld [vmem:[#allocation8 + $0x1d0] sm:$0xff]  }
 0x4ff   : > { %14648 = vmatprep.mubr.bf16.mxu0 %v20100_v53  ;;  %v20146_v53 = vld [vmem:[#allocation47_spill] sm:$0xff] }
 0x504   : > { %14089 = vmatmul.mubr.bf16.gmra.mrb[28].mxu1 %v18482_v60 }
 0x505   : > { %14108 = vmatprep.mubr.bf16.mxu1 %v18031_v0  ;;  %v20148_v0 = vld [vmem:[#allocation54_spill] sm:$0xff] }
 0x506   : > { %14649 = vmatmul.mubr.bf16.gmra.mrb[44].mxu0 %v20101_v5  ;;  %v20149_v5 = vld [vmem:[#allocation49_spill] sm:$0xff] }
 0x507   : > { %14652 = vmatprep.mubr.bf16.mxu0 %v20144_v47 }
 0x50c   : > { %14109 = vmatmul.mubr.bf16.vlgmr.msra.gmra.mrb[0].mxu1 %v20145_v34 }
 0x50d   : > { %14112 = vmatprep.mubr.bf16.mxu1 %v18061_v23  ;;  %14141 = vmatpush3.bf16.msra.mxu1 %v16408_v33  ;;  %v16413_v23 = vld [vmem:[#allocation8 + $0x1e8] sm:$0xff]  }
 0x50e   : > { %14653 = vmatmul.mubr.bf16.gmra.mrb[48].mxu0 %v20146_v53  ;;  %14142 = vmatprep.subr.bf16.mxu1 %v16409_v32  ;;  %v16434_v53 = vld [vmem:[#allocation8 + $0x10] sm:$0xff]  }
 0x50f   : > { %14656 = vmatprep.mubr.bf16.mxu0 %v20147_v62 }
 0x511   : > { %14143 = vmatpush3.bf16.msra.mxu1 %v16409_v32 }
 0x512   : > { %14144 = vmatprep.subr.bf16.mxu1 %v16410_v54 }
 0x514   : > { %14113 = vmatmul.mubr.bf16.gmra.mrb[4].mxu1 %v20148_v0 }
 0x515   : > { %14116 = vmatprep.mubr.bf16.mxu1 %v18089_v13  ;;  %14145 = vmatpush3.bf16.msra.mxu1 %v16410_v54  ;;  %v16415_v13 = vld [vmem:[#allocation8 + $0x1f8] sm:$0xff]  }
 0x516   : > { %14657 = vmatmul.mubr.bf16.gmra.mrb[52].mxu0 %v20149_v5  ;;  %14146 = vmatprep.subr.bf16.mxu1 %v16411_v31 }
 0x517   : > { %14660 = vmatprep.mubr.bf16.mxu0 %v20107_v25 }
 0x519   : > { %14147 = vmatpush3.bf16.msra.mxu1 %v16411_v31 }
 0x51a   : > { %14148 = vmatprep.subr.bf16.mxu1 %v16412_v26 }
 0x51c   : > { %14117 = vmatmul.mubr.bf16.gmra.mrb[8].mxu1 %v18108_v1  ;;  %v16416_v1 = vld [vmem:[#allocation8 + $0x200] sm:$0xff]  }
 0x51d   : > { %14120 = vmatprep.mubr.bf16.mxu1 %v18119_v39  ;;  %14149 = vmatpush3.bf16.msra.mxu1 %v16412_v26  ;;  %v16417_v39 = vld [vmem:[#allocation8 + $0x208] sm:$0xff]  }
 0x51e   : > { %14661 = vmatmul.mubr.bf16.gmra.mrb[56].mxu0 %v20150_v7  ;;  %14150 = vmatprep.subr.bf16.mxu1 %v16413_v23 }
 0x51f   : > { %14664 = vmatprep.mubr.bf16.mxu0 %v18389_v20 }
 0x521   : > { %14151 = vmatpush3.bf16.msra.mxu1 %v16413_v23 }
 0x522   : > { %14152 = vmatprep.subr.bf16.mxu1 %v16414_v30 }
 0x524   : > { %14121 = vmatmul.mubr.bf16.gmra.mrb[12].mxu1 %v18139_v17  ;;  %v16420_v17 = vld [vmem:[#allocation8 + $0x220] sm:$0xff]  }
 0x525   : > { %14124 = vmatprep.mubr.bf16.mxu1 %v18146_v6  ;;  %14153 = vmatpush3.bf16.msra.mxu1 %v16414_v30 }
 0x526   : > { %14665 = vmatmul.mubr.bf16.gmra.mrb[60].mxu0 %v20054_v15  ;;  %14154 = vmatprep.subr.bf16.mxu1 %v16415_v13 }
 0x529   : > { %14155 = vmatpush3.bf16.msra.mxu1 %v16415_v13 }
 0x52a   : > { %14188 = vmatprep.subr.bf16.mxu1 %v16416_v1 }
 0x52c   : > { %14125 = vmatmul.mubr.bf16.gmra.mrb[16].mxu1 %v18164_v19  ;;  %v16418_v19 = vld [vmem:[#allocation8 + $0x210] sm:$0xff]  }
 0x52d   : > { %14128 = vmatprep.mubr.bf16.mxu1 %v18171_v59 }
 0x534   : > { %14129 = vmatmul.mubr.bf16.gmra.mrb[20].mxu1 %v18187_v9  ;;  %v16419_v9 = vld [vmem:[#allocation8 + $0x218] sm:$0xff]  }
 0x535   : > { %14132 = vmatprep.mubr.bf16.mxu1 %v18194_v16 }
 0x53c   : > { %14133 = vmatmul.mubr.bf16.gmra.mrb[24].mxu1 %v18204_v56 }
 0x53d   : > { %14136 = vmatprep.mubr.bf16.mxu1 %v18413_v18 }
 0x544   : > { %14137 = vmatmul.mubr.bf16.gmra.mrb[28].mxu1 %v20054_v15 }
 0x545   : > { %14156 = vmatprep.mubr.bf16.mxu1 %v17824_v42  ;;  %v16421_v42 = vld [vmem:[#allocation8 + $0x228] sm:$0xff]  }
 0x54c   : > { %14157 = vmatmul.mubr.bf16.vlgmr.msra.gmra.mrb[0].mxu1 %v17861_v3  ;;  %v16422_v3 = vld [vmem:[#allocation8 + $0x230] sm:$0xff]  }
 0x54d   : > { %14160 = vmatprep.mubr.bf16.mxu1 %v17858_v43  ;;  %14189 = vmatpush3.bf16.msra.mxu1 %v16416_v1  ;;  %v16423_v43 = vld [vmem:[#allocation8 + $0x238] sm:$0xff]  }
 0x54e   : > { %14190 = vmatprep.subr.bf16.mxu1 %v16417_v39 }
 0x551   : > { %14191 = vmatpush3.bf16.msra.mxu1 %v16417_v39  ;;  %v16435_v39 = vld [vmem:[#allocation8 + $0x18] sm:$0xff]  }
 0x552   : > { %14192 = vmatprep.subr.bf16.mxu1 %v16418_v19 }
 0x554   : > { %14161 = vmatmul.mubr.bf16.gmra.mrb[4].mxu1 %v17893_v14  ;;  %v16424_v14 = vld [vmem:[#allocation8 + $0x40] sm:$0xff]  }
 0x555   : > { %14164 = vmatprep.mubr.bf16.mxu1 %v17890_v2  ;;  %14193 = vmatpush3.bf16.msra.mxu1 %v16418_v19  ;;  %v16425_v2 = vld [vmem:[#allocation8 + $0x48] sm:$0xff]  }
 0x556   : > { %14194 = vmatprep.subr.bf16.mxu1 %v16419_v9 }
 0x559   : > { %14195 = vmatpush3.bf16.msra.mxu1 %v16419_v9 }
 0x55a   : > { %14196 = vmatprep.subr.bf16.mxu1 %v16420_v17 }
 0x55c   : > { %14165 = vmatmul.mubr.bf16.gmra.mrb[8].mxu1 %v17921_v44  ;;  %v16428_v44 = vld [vmem:[#allocation8 + $0x60] sm:$0xff]  }
 0x55d   : > { %14168 = vmatprep.mubr.bf16.mxu1 %v17918_v11  ;;  %14197 = vmatpush3.bf16.msra.mxu1 %v16420_v17  ;;  %v16426_v11 = vld [vmem:[#allocation8 + $0x50] sm:$0xff]  }
 0x55e   : > { %14198 = vmatprep.subr.bf16.mxu1 %v16421_v42 }
 0x561   : > { %14199 = vmatpush3.bf16.msra.mxu1 %v16421_v42 }
 0x562   : > { %14200 = vmatprep.subr.bf16.mxu1 %v16422_v3 }
 0x564   : > { %14169 = vmatmul.mubr.bf16.gmra.mrb[12].mxu1 %v17943_v21  ;;  %v16431_v21 = vld [vmem:[#allocation8 + $0x78] sm:$0xff]  }
 0x565   : > { %14172 = vmatprep.mubr.bf16.mxu1 %v17940_v61  ;;  %14201 = vmatpush3.bf16.msra.mxu1 %v16422_v3  ;;  %v16430_v61 = vld [vmem:[#allocation8 + $0x70] sm:$0xff]  }
 0x566   : > { %14202 = vmatprep.subr.bf16.mxu1 %v16423_v43 }
 0x569   : > { %14203 = vmatpush3.bf16.msra.mxu1 %v16423_v43 }
 0x56a   : > { %14668 = vmatprep.subr.bf16.mxu1 %v16424_v14 }
 0x56c   : > { %14173 = vmatmul.mubr.bf16.gmra.mrb[16].mxu1 %v17961_v63  ;;  %v16429_v63 = vld [vmem:[#allocation8 + $0x68] sm:$0xff]  }
 0x56d   : > { %14176 = vmatprep.mubr.bf16.mxu1 %v17958_v4  ;;  %v16432_v4 = vld [vmem:[#allocation8] sm:$0xff]  }
 0x574   : > { %14177 = vmatmul.mubr.bf16.gmra.mrb[20].mxu1 %v17977_v35  ;;  %v16427_v35 = vld [vmem:[#allocation8 + $0x58] sm:$0xff]  }
 0x575   : > { %14180 = vmatprep.mubr.bf16.mxu1 %v17974_v29  ;;  %v18544_v29 = vld [vmem:[%s19775_s2] ss:$0 sm:$0xff] }
 0x57c   : > { %14181 = vmatmul.mubr.bf16.gmra.mrb[24].mxu1 %v17994_v52  ;;  %v18549_v52 = vld [vmem:[%s19776_s3] ss:$0 sm:$0xff] }
 0x57d   : > { %14184 = vmatprep.mubr.bf16.mxu1 %v17992_v57 }
 0x584   : > { %14185 = vmatmul.mubr.bf16.gmra.mrb[28].mxu1 %v20054_v15 }
 0x585   : > { %14204 = vmatprep.mubr.bf16.mxu1 %v20129_v49 }
 0x58c   : > { %14205 = vmatmul.mubr.bf16.vlgmr.msra.gmra.mrb[0].mxu1 %v18244_v50 }
 0x58d   : > { %14208 = vmatprep.mubr.bf16.mxu1 %v20131_v58  ;;  %14669 = vmatpush3.bf16.msra.mxu1 %v16424_v14 }
 0x58e   : > { %14670 = vmatprep.subr.bf16.mxu1 %v16425_v2 }
 0x591   : > { %14671 = vmatpush3.bf16.msra.mxu1 %v16425_v2  ;;  %v16436_v2 = vld [vmem:[#allocation8 + $0x20] sm:$0xff]  }
 0x592   : > { %14672 = vmatprep.subr.bf16.mxu1 %v16426_v11 }
 0x594   : > { %14209 = vmatmul.mubr.bf16.gmra.mrb[4].mxu1 %v18264_v28 }
 0x595   : > { %14212 = vmatprep.mubr.bf16.mxu1 %v20133_v38  ;;  %14673 = vmatpush3.bf16.msra.mxu1 %v16426_v11 }
 0x596   : > { %14674 = vmatprep.subr.bf16.mxu1 %v16427_v35 }
 0x599   : > { %14675 = vmatpush3.bf16.msra.mxu1 %v16427_v35 }
 0x59a   : > { %14676 = vmatprep.subr.bf16.mxu1 %v16428_v44 }
 0x59c   : > { %14213 = vmatmul.mubr.bf16.gmra.mrb[8].mxu1 %v18284_v55 }
 0x59d   : > { %14216 = vmatprep.mubr.bf16.mxu1 %v18291_v22  ;;  %14677 = vmatpush3.bf16.msra.mxu1 %v16428_v44 }
 0x59e   : > { %14678 = vmatprep.subr.bf16.mxu1 %v16429_v63 }
 0x5a1   : > { %14679 = vmatpush3.bf16.msra.mxu1 %v16429_v63 }
 0x5a2   : > { %14680 = vmatprep.subr.bf16.mxu1 %v16430_v61 }
 0x5a4   : > { %14217 = vmatmul.mubr.bf16.gmra.mrb[12].mxu1 %v20135_v40 }
 0x5a5   : > { %14220 = vmatprep.mubr.bf16.mxu1 %v20137_v8  ;;  %14681 = vmatpush3.bf16.msra.mxu1 %v16430_v61 }
 0x5a6   : > { %14682 = vmatprep.subr.bf16.mxu1 %v16431_v21 }
 0x5a9   : > { %14683 = vmatpush3.bf16.msra.mxu1 %v16431_v21 }
 0x5aa   : > { %14716 = vmatprep.subr.bf16.mxu1 %v16432_v4 }
 0x5ac   : > { %14221 = vmatmul.mubr.bf16.gmra.mrb[16].mxu1 %v20138_v12 }
 0x5ad   : > { %14224 = vmatprep.mubr.bf16.mxu1 %v20140_v41  ;;  %v16433_v41 = vld [vmem:[#allocation8 + $0x8] sm:$0xff]  }
 0x5b4   : > { %14225 = vmatmul.mubr.bf16.gmra.mrb[20].mxu1 %v18348_v24 }
 0x5b5   : > { %14228 = vmatprep.mubr.bf16.mxu1 %v20142_v48 }
 0x5bc   : > { %14229 = vmatmul.mubr.bf16.gmra.mrb[24].mxu1 %v18364_v10 }
 0x5bd   : > { %14232 = vmatprep.mubr.bf16.mxu1 %v18482_v60 }
 0x5c1   : > { %v14638_v57 = vpop.f32.mrb[32].mxu0 }
 0x5c2   : > { %v8909_v6 = vmul.f32 %v14638_v57, %v18544_v29  ;;  %v8741_v59 = vpop.f32.mrb[33].mxu0 }
 0x5c3   : > { %v8907_v16 = vmul.f32 %v18544_v29, %v8741_v59  ;;  %v14639_v56 = vpop.f32.mrb[34].mxu0 }
 0x5c4   : > { %v8948_v50 = vadd.f32 %v18549_v52, %v8909_v6  ;;  %v8910_v28 = vmul.f32 %v14639_v56, %v18544_v29  ;;  %v8744_v55 = vpop.f32.mrb[35].mxu0  ;;  %14233 = vmatmul.mubr.bf16.gmra.mrb[28].mxu1 %v20054_v15  ;;  %v16437_v56 = vld [vmem:[#allocation8 + $0x28] sm:$0xff]  }
 0x5c5   : > { %v8946_v22 = vadd.f32 %v18549_v52, %v8907_v16  ;;  %v8908_v24 = vmul.f32 %v18544_v29, %v8744_v55  ;;  %14684 = vmatprep.mubr.bf16.mxu1 %v20054_v15 }
 0x5c6   : > { %v8949_v10 = vadd.f32 %v18549_v52, %v8910_v28  ;;  %v8980_v20 = vmax.f32 %v8948_v50, 0.0 }
 0x5c7   : > { %v8947_v25 = vadd.f32 %v18549_v52, %v8908_v24  ;;  %v8978_v49 = vmax.f32 %v8946_v22, 0.0 }
 0x5c8   : > { %v8981_v18 = vmax.f32 %v8949_v10, 0.0 }
 0x5c9   : > { %v8979_v58 = vmax.f32 %v8947_v25, 0.0  ;;  %v14642_v38 = vpop.f32.mrb[36].mxu0 }
 0x5ca   : > { %v18561_v40 = vpack.c.bf16 %v8981_v18, %v8980_v20  ;;  %v8913_v33 = vmul.f32 %v14642_v38, %v18544_v29  ;;  %v8757_v51 = vpop.f32.mrb[37].mxu0  ;;  %v16438_v20 = vld [vmem:[#allocation8 + $0x30] sm:$0xff]  }
 0x5cb   : > { %v18564_v8 = vpack.c.bf16 %v8979_v58, %v8978_v49  ;;  %v8911_v12 = vmul.f32 %v18544_v29, %v8757_v51  ;;  %v14643_v36 = vpop.f32.mrb[38].mxu0 }
 0x5cc   : > { %20151 = vst [vmem:[#allocation41_spill] sm:$0xff] %v18561_v40  ;;  %v8952_v45 = vadd.f32 %v18549_v52, %v8913_v33  ;;  %v8914_v48 = vmul.f32 %v14643_v36, %v18544_v29  ;;  %v8760_v46 = vpop.f32.mrb[39].mxu0 }
 0x5cd   : > { %v8950_v60 = vadd.f32 %v18549_v52, %v8911_v12  ;;  %v8912_v47 = vmul.f32 %v18544_v29, %v8760_v46  ;;  %14685 = vmatmul.mubr.bf16.vlgmr.msra.gmra.mrb[32].mxu1 %v18564_v8  ;;  %v16439_v46 = vld [vmem:[#allocation8 + $0x38] sm:$0xff]  }
 0x5ce   : > { %v8953_v32 = vadd.f32 %v18549_v52, %v8914_v48  ;;  %14688 = vmatprep.mubr.bf16.mxu1 %v18561_v40  ;;  %14717 = vmatpush3.bf16.msra.mxu1 %v16432_v4  ;;  %v8984_v54 = vmax.f32 %v8952_v45, 0.0 }
 0x5cf   : > { %v8951_v34 = vadd.f32 %v18549_v52, %v8912_v47  ;;  %14718 = vmatprep.subr.bf16.mxu1 %v16433_v41  ;;  %v8982_v31 = vmax.f32 %v8950_v60, 0.0 }
 0x5d0   : > { %v8985_v62 = vmax.f32 %v8953_v32, 0.0 }
 0x5d1   : > { %v8983_v0 = vmax.f32 %v8951_v34, 0.0  ;;  %v14646_v5 = vpop.f32.mrb[40].mxu0 }
 0x5d2   : > { %v18575_v26 = vpack.c.bf16 %v8985_v62, %v8984_v54  ;;  %v8917_v23 = vmul.f32 %v14646_v5, %v18544_v29  ;;  %v8773_v7 = vpop.f32.mrb[41].mxu0  ;;  %14719 = vmatpush3.bf16.msra.mxu1 %v16433_v41 }
 0x5d3   : > { %v18578_v30 = vpack.c.bf16 %v8983_v0, %v8982_v31  ;;  %v8915_v13 = vmul.f32 %v18544_v29, %v8773_v7  ;;  %v14647_v1 = vpop.f32.mrb[42].mxu0  ;;  %14720 = vmatprep.subr.bf16.mxu1 %v16434_v53  ;;  %v18617_v31 = vld [vmem:[#allocation8 + $0x80] sm:$0xff]  }
 0x5d4   : > { %20152 = vst [vmem:[#allocation43_spill] sm:$0xff] %v18575_v26  ;;  %v8956_v19 = vadd.f32 %v18549_v52, %v8917_v23  ;;  %v8918_v9 = vmul.f32 %v14647_v1, %v18544_v29  ;;  %v8776_v17 = vpop.f32.mrb[43].mxu0 }
 0x5d5   : > { %20153 = vst [vmem:[#allocation44_spill] sm:$0xff] %v18578_v30  ;;  %v8954_v42 = vadd.f32 %v18549_v52, %v8915_v13  ;;  %v8916_v3 = vmul.f32 %v18544_v29, %v8776_v17  ;;  %14689 = vmatmul.mubr.bf16.gmra.mrb[36].mxu1 %v18578_v30 }
 0x5d6   : > { %v8957_v43 = vadd.f32 %v18549_v52, %v8918_v9  ;;  %14692 = vmatprep.mubr.bf16.mxu1 %v18575_v26  ;;  %14721 = vmatpush3.bf16.msra.mxu1 %v16434_v53  ;;  %v8988_v11 = vmax.f32 %v8956_v19, 0.0 }
 0x5d7   : > { %v8955_v14 = vadd.f32 %v18549_v52, %v8916_v3  ;;  %14722 = vmatprep.subr.bf16.mxu1 %v16435_v39  ;;  %v8986_v44 = vmax.f32 %v8954_v42, 0.0 }
 0x5d8   : > { %v8989_v35 = vmax.f32 %v8957_v43, 0.0 }
 0x5d9   : > { %v8987_v63 = vmax.f32 %v8955_v14, 0.0  ;;  %v14650_v61 = vpop.f32.mrb[44].mxu0 }
 0x5da   : > { %v18589_v21 = vpack.c.bf16 %v8989_v35, %v8988_v11  ;;  %v8921_v4 = vmul.f32 %v14650_v61, %v18544_v29  ;;  %v8789_v57 = vpop.f32.mrb[45].mxu0  ;;  %14723 = vmatpush3.bf16.msra.mxu1 %v16435_v39 }
 0x5db   : > { %v18592_v6 = vpack.c.bf16 %v8987_v63, %v8986_v44  ;;  %v8919_v59 = vmul.f32 %v18544_v29, %v8789_v57  ;;  %v14651_v16 = vpop.f32.mrb[46].mxu0  ;;  %14724 = vmatprep.subr.bf16.mxu1 %v16436_v2 }
 0x5dc   : > { %20154 = vst [vmem:[#allocation45_spill] sm:$0xff] %v18589_v21  ;;  %v8960_v50 = vadd.f32 %v18549_v52, %v8921_v4  ;;  %v8922_v28 = vmul.f32 %v14651_v16, %v18544_v29  ;;  %v8792_v55 = vpop.f32.mrb[47].mxu0 }
 0x5dd   : > { %20155 = vst [vmem:[#allocation50_spill] sm:$0xff] %v18592_v6  ;;  %v8958_v22 = vadd.f32 %v18549_v52, %v8919_v59  ;;  %v8920_v24 = vmul.f32 %v18544_v29, %v8792_v55  ;;  %14693 = vmatmul.mubr.bf16.gmra.mrb[40].mxu1 %v18592_v6 }
 0x5de   : > { %v8961_v10 = vadd.f32 %v18549_v52, %v8922_v28  ;;  %14696 = vmatprep.mubr.bf16.mxu1 %v18589_v21  ;;  %14725 = vmatpush3.bf16.msra.mxu1 %v16436_v2  ;;  %v8992_v18 = vmax.f32 %v8960_v50, 0.0 }
 0x5df   : > { %v8959_v25 = vadd.f32 %v18549_v52, %v8920_v24  ;;  %14726 = vmatprep.subr.bf16.mxu1 %v16437_v56  ;;  %v8990_v58 = vmax.f32 %v8958_v22, 0.0 }
 0x5e0   : > { %v8993_v49 = vmax.f32 %v8961_v10, 0.0 }
 0x5e1   : > { %v8991_v38 = vmax.f32 %v8959_v25, 0.0  ;;  %v14654_v33 = vpop.f32.mrb[48].mxu0 }
 0x5e2   : > { %v18603_v51 = vpack.c.bf16 %v8993_v49, %v8992_v18  ;;  %v8925_v12 = vmul.f32 %v14654_v33, %v18544_v29  ;;  %v8805_v36 = vpop.f32.mrb[49].mxu0  ;;  %14727 = vmatpush3.bf16.msra.mxu1 %v16437_v56 }
 0x5e3   : > { %v18606_v41 = vpack.c.bf16 %v8991_v38, %v8990_v58  ;;  %v8923_v45 = vmul.f32 %v18544_v29, %v8805_v36  ;;  %v14655_v48 = vpop.f32.mrb[50].mxu0  ;;  %14728 = vmatprep.subr.bf16.mxu1 %v16438_v20 }
 0x5e4   : > { %20156 = vst [vmem:[#allocation28_spill] sm:$0xff] %v18603_v51  ;;  %v8964_v60 = vadd.f32 %v18549_v52, %v8925_v12  ;;  %v8926_v47 = vmul.f32 %v14655_v48, %v18544_v29  ;;  %v8808_v32 = vpop.f32.mrb[51].mxu0 }
 0x5e5   : > { %20157 = vst [vmem:[#allocation29_spill] sm:$0xff] %v18606_v41  ;;  %v8962_v34 = vadd.f32 %v18549_v52, %v8923_v45  ;;  %v8924_v53 = vmul.f32 %v18544_v29, %v8808_v32  ;;  %14697 = vmatmul.mubr.bf16.gmra.mrb[44].mxu1 %v18606_v41 }
 0x5e6   : > { %v8965_v54 = vadd.f32 %v18549_v52, %v8926_v47  ;;  %14700 = vmatprep.mubr.bf16.mxu1 %v18603_v51  ;;  %14729 = vmatpush3.bf16.msra.mxu1 %v16438_v20  ;;  %v8996_v0 = vmax.f32 %v8964_v60, 0.0 }
 0x5e7   : > { %v8963_v62 = vadd.f32 %v18549_v52, %v8924_v53  ;;  %14730 = vmatprep.subr.bf16.mxu1 %v16439_v46  ;;  %v8994_v23 = vmax.f32 %v8962_v34, 0.0 }
 0x5e8   : > { %v8997_v5 = vmax.f32 %v8965_v54, 0.0 }
 0x5e9   : > { %v8995_v7 = vmax.f32 %v8963_v62, 0.0  ;;  %v14658_v13 = vpop.f32.mrb[52].mxu0 }
 0x5ea   : > { %v18619_v1 = vpack.c.bf16 %v8997_v5, %v8996_v0  ;;  %v8929_v39 = vmul.f32 %v14658_v13, %v18544_v29  ;;  %v8821_v19 = vpop.f32.mrb[53].mxu0  ;;  %14731 = vmatpush3.bf16.msra.mxu1 %v16439_v46 }
 0x5eb   : > { %v18622_v9 = vpack.c.bf16 %v8995_v7, %v8994_v23  ;;  %v8927_v17 = vmul.f32 %v18544_v29, %v8821_v19  ;;  %v14659_v42 = vpop.f32.mrb[54].mxu0  ;;  %14764 = vmatprep.subr.bf16.mxu1 %v18617_v31  ;;  %v9027_v19 = vshrl.u32 %v18564_v8, 16 }
 0x5ec   : > { %20158 = vst [vmem:[#allocation30_spill] sm:$0xff] %v18619_v1  ;;  %v8968_v3 = vadd.f32 %v18549_v52, %v8929_v39  ;;  %v8930_v43 = vmul.f32 %v14659_v42, %v18544_v29  ;;  %v8824_v14 = vpop.f32.mrb[55].mxu0 }
 0x5ed   : > { %20159 = vst [vmem:[#allocation31_spill] sm:$0xff] %v18622_v9  ;;  %v8966_v2 = vadd.f32 %v18549_v52, %v8927_v17  ;;  %v8928_v11 = vmul.f32 %v18544_v29, %v8824_v14  ;;  %14701 = vmatmul.mubr.bf16.gmra.mrb[48].mxu1 %v18622_v9 }
 0x5ee   : > { %v8969_v35 = vadd.f32 %v18549_v52, %v8930_v43  ;;  %14704 = vmatprep.mubr.bf16.mxu1 %v18619_v1  ;;  %v9000_v63 = vmax.f32 %v8968_v3, 0.0  ;;  %v9034_v3 = vshrl.u32 %v18561_v40, 16 }
 0x5ef   : > { %v8967_v44 = vadd.f32 %v18549_v52, %v8928_v11  ;;  %v8998_v4 = vmax.f32 %v8966_v2, 0.0  ;;  %v9030_v11 = vshll.u32 %v18564_v8, 16 }
 0x5f0   : > { %v9001_v61 = vmax.f32 %v8969_v35, 0.0 }
 0x5f1   : > { %v8999_v57 = vmax.f32 %v8967_v44, 0.0  ;;  %v14662_v59 = vpop.f32.mrb[56].mxu0 }
 0x5f2   : > { %v18634_v16 = vpack.c.bf16 %v9001_v61, %v9000_v63  ;;  %v8933_v56 = vmul.f32 %v14662_v59, %v18544_v29  ;;  %v8837_v50 = vpop.f32.mrb[57].mxu0  ;;  %v9037_v63 = vshll.u32 %v18561_v40, 16 }
 0x5f3   : > { %v18637_v28 = vpack.c.bf16 %v8999_v57, %v8998_v4  ;;  %v8931_v55 = vmul.f32 %v18544_v29, %v8837_v50  ;;  %v14663_v22 = vpop.f32.mrb[58].mxu0  ;;  %v9041_v4 = vshrl.u32 %v18578_v30, 16  ;;  %v16441_v50 = vld [vmem:[#allocation8 + $0x88] sm:$0xff]  }
 0x5f4   : > { %20160 = vst [vmem:[#allocation32_spill] sm:$0xff] %v18634_v16  ;;  %v8972_v24 = vadd.f32 %v18549_v52, %v8933_v56  ;;  %v8934_v10 = vmul.f32 %v14663_v22, %v18544_v29  ;;  %v8840_v25 = vpop.f32.mrb[59].mxu0  ;;  %v9048_v56 = vshrl.u32 %v18575_v26, 16 }
 0x5f5   : > { %20161 = vst [vmem:[#allocation33_spill] sm:$0xff] %v18637_v28  ;;  %v8970_v20 = vadd.f32 %v18549_v52, %v8931_v55  ;;  %v8932_v18 = vmul.f32 %v18544_v29, %v8840_v25  ;;  %14705 = vmatmul.mubr.bf16.gmra.mrb[52].mxu1 %v18637_v28  ;;  %v9043_v22 = vrot.slane %v9041_v4, 7  ;;  %v9044_v25 = vshll.u32 %v18578_v30, 16 }
 0x5f6   : > { %v8973_v49 = vadd.f32 %v18549_v52, %v8934_v10  ;;  %14708 = vmatprep.mubr.bf16.mxu1 %v18634_v16  ;;  %v9004_v38 = vmax.f32 %v8972_v24, 0.0  ;;  %v9050_v10 = vrot.slane %v9048_v56, 7 }
 0x5f7   : > { %v8971_v58 = vadd.f32 %v18549_v52, %v8932_v18  ;;  %v9002_v12 = vmax.f32 %v8970_v20, 0.0  ;;  %v9051_v20 = vshll.u32 %v18575_v26, 16  ;;  %v16442_v18 = vld [vmem:[#allocation8 + $0x90] sm:$0xff]  }
 0x5f8   : > { %v9005_v33 = vmax.f32 %v8973_v49, 0.0  ;;  %v9046_v49 = vor.u32 %v9044_v25, %v9043_v22 }
 0x5f9   : > { %v9003_v36 = vmax.f32 %v8971_v58, 0.0  ;;  %v14666_v45 = vpop.f32.mrb[60].mxu0  ;;  %v9055_v58 = vshrl.u32 %v18592_v6, 16 }
 0x5fa   : > { %v18648_v48 = vpack.c.bf16 %v9005_v33, %v9004_v38  ;;  %v8937_v46 = vmul.f32 %v14666_v45, %v18544_v29  ;;  %v8853_v60 = vpop.f32.mrb[61].mxu0  ;;  %v9053_v38 = vor.u32 %v9051_v20, %v9050_v10  ;;  %v9062_v33 = vshrl.u32 %v18589_v21, 16 }
 0x5fb   : > { %v18651_v47 = vpack.c.bf16 %v9003_v36, %v9002_v12  ;;  %v8935_v32 = vmul.f32 %v18544_v29, %v8853_v60  ;;  %v14667_v34 = vpop.f32.mrb[62].mxu0  ;;  %v16443_v12 = vld [vmem:[#allocation8 + $0x98] sm:$0xff]   ;;  %v9057_v36 = vrot.slane %v9055_v58, 7  ;;  %v9058_v60 = vshll.u32 %v18592_v6, 16 }
 0x5fc   : > { %20162 = vst [vmem:[#allocation34_spill] sm:$0xff] %v18648_v48  ;;  %v8976_v53 = vadd.f32 %v18549_v52, %v8937_v46  ;;  %v8938_v54 = vmul.f32 %v14667_v34, %v18544_v29  ;;  %v8856_v62 = vpop.f32.mrb[63].mxu0  ;;  %v18722_v45 = vsel %vm16993_vm2, 0, %v9053_v38  ;;  %v9064_v46 = vrot.slane %v9062_v33, 7  ;;  %v16444_v34 = vld [vmem:[#allocation8 + $0xa0] sm:$0xff]  }
 0x5fd   : > { %20163 = vst [vmem:[#allocation35_spill] sm:$0xff] %v18651_v47  ;;  %v8974_v0 = vadd.f32 %v18549_v52, %v8935_v32  ;;  %v8936_v5 = vmul.f32 %v18544_v29, %v8856_v62  ;;  %14709 = vmatmul.mubr.bf16.gmra.mrb[56].mxu1 %v18651_v47  ;;  %v9029_v29 = vrot.slane %v9027_v19, 7  ;;  %v9065_v32 = vshll.u32 %v18589_v21, 16 }
 0x5fe   : > { %v8977_v23 = vadd.f32 %v18549_v52, %v8938_v54  ;;  %14712 = vmatprep.mubr.bf16.mxu1 %v18648_v48  ;;  %v9008_v13 = vmax.f32 %v8976_v53, 0.0  ;;  %v9060_v53 = vor.u32 %v9058_v60, %v9057_v36  ;;  %v9069_v54 = vshrl.u32 %v18606_v41, 16  ;;  %v16448_v36 = vld [vmem:[#allocation8 + $0xc0] sm:$0xff]  }
 0x5ff   : > { %v8975_v7 = vadd.f32 %v18549_v52, %v8936_v5  ;;  %v9006_v17 = vmax.f32 %v8974_v0, 0.0  ;;  %v9036_v52 = vrot.slane %v9034_v3, 7  ;;  %v9032_v61 = vor.u32 %v9030_v11, %v9029_v29  ;;  %v16445_v5 = vld [vmem:[#allocation8 + $0xa8] sm:$0xff]   ;;  %v16446_v29 = vld [vmem:[#allocation8 + $0xb0] sm:$0xff]  }
 0x600   : > { %v9009_v39 = vmax.f32 %v8977_v23, 0.0  ;;  %v9067_v62 = vor.u32 %v9065_v32, %v9064_v46  ;;  %v9076_v0 = vshrl.u32 %v18603_v51, 16  ;;  %v18737_v23 = vsel %vm16993_vm2, 0, %v9060_v53 }
 0x601   : > { %v9007_v42 = vmax.f32 %v8975_v7, 0.0  ;;  %v9039_v59 = vor.u32 %v9037_v63, %v9036_v52  ;;  %v18692_v55 = vsel %vm16993_vm2, 0, %v9032_v61  ;;  %v9071_v7 = vrot.slane %v9069_v54, 7 }
 0x602   : > { %v18664_v43 = vpack.c.bf16 %v9009_v39, %v9008_v13  ;;  %v18744_v13 = vsel %vm16993_vm2, 0, %v9067_v62  ;;  %v9078_v39 = vrot.slane %v9076_v0, 7  ;;  %v9086_v38 = vshll.u32 %v18622_v9, 16 }
 0x603   : > { %v18666_v14 = vpack.c.bf16 %v9007_v42, %v9006_v17  ;;  %v18699_v24 = vsel %vm16993_vm2, 0, %v9039_v59  ;;  %v9072_v17 = vshll.u32 %v18606_v41, 16  ;;  %v9079_v42 = vshll.u32 %v18603_v51, 16 }
 0x604   : > { %20164 = vst [vmem:[#allocation36_spill] sm:$0xff] %v18664_v43  ;;  %v19906_v2 = vshll.u32 %v18664_v43, 16  ;;  %v19907_v35 = vshrl.u32 %v18664_v43, 16  ;;  %v9090_v59 = vshrl.u32 %v18619_v1, 16  ;;  %v19908_v62 = vshrl.u32 %v18634_v16, 16 }
 0x605   : > { %20165 = vst [vmem:[#allocation37_spill] sm:$0xff] %v18666_v14  ;;  %14713 = vmatmul.mubr.bf16.gmra.mrb[60].mxu1 %v18666_v14  ;;  %v9074_v52 = vor.u32 %v9072_v17, %v9071_v7  ;;  %v9081_v61 = vor.u32 %v9079_v42, %v9078_v39 }
 0x606   : > { %14732 = vmatprep.mubr.bf16.mxu1 %v20054_v15  ;;  %v9232_v44 = vrot.slane %v19906_v2, 1 }
 0x607   : > { %v18759_v22 = vsel %vm16993_vm2, 0, %v9074_v52  ;;  %v19917_v52 = vshll.u32 %v18637_v28, 16 }
 0x608   : > { %v18685_v57 = vor.u32 %v9232_v44, %v19907_v35  ;;  %v9083_v44 = vshrl.u32 %v18622_v9, 16 }
 0x60a   : > { %20166 = vst [vmem:[#allocation18_spill] sm:$0xff] %v18685_v57  ;;  %v9085_v10 = vrot.slane %v9083_v44, 7 }
 0x60c   : > { %v9088_v46 = vor.u32 %v9086_v38, %v9085_v10  ;;  %v19909_v10 = vshrl.u32 %v18651_v47, 16 }
 0x60d   : > { %14733 = vmatmul.mubr.bf16.vlgmr.msra.gmra.mrb[32].mxu1 %v18692_v55 }
 0x60e   : > { %14736 = vmatprep.mubr.bf16.mxu1 %v18699_v24  ;;  %14765 = vmatpush3.bf16.msra.mxu1 %v18617_v31  ;;  %v18715_v31 = vsel %vm16993_vm2, 0, %v9046_v49  ;;  %v9092_v49 = vrot.slane %v9090_v59, 7  ;;  %v9113_v2 = vrot.slane %v19909_v10, 7  ;;  %v19913_v10 = vshrl.u32 %v18666_v14, 16 }
 0x60f   : > { %14766 = vmatprep.subr.bf16.mxu1 %v16441_v50 }
 0x612   : > { %14767 = vmatpush3.bf16.msra.mxu1 %v16441_v50  ;;  %v16447_v50 = vld [vmem:[#allocation8 + $0xb8] sm:$0xff]  }
 0x613   : > { %14768 = vmatprep.subr.bf16.mxu1 %v16442_v18 }
 0x615   : > { %14737 = vmatmul.mubr.bf16.gmra.mrb[36].mxu1 %v18715_v31 }
 0x616   : > { %14740 = vmatprep.mubr.bf16.mxu1 %v18722_v45  ;;  %14769 = vmatpush3.bf16.msra.mxu1 %v16442_v18  ;;  %v18766_v18 = vsel %vm16993_vm2, 0, %v9081_v61  ;;  %v19912_v61 = vshll.u32 %v18634_v16, 16 }
 0x617   : > { %14770 = vmatprep.subr.bf16.mxu1 %v16443_v12 }
 0x61a   : > { %14771 = vmatpush3.bf16.msra.mxu1 %v16443_v12  ;;  %v9093_v12 = vshll.u32 %v18619_v1, 16 }
 0x61b   : > { %14772 = vmatprep.subr.bf16.mxu1 %v16444_v34 }
 0x61c   : > { %v9095_v53 = vor.u32 %v9093_v12, %v9092_v49 }
 0x61d   : > { %14741 = vmatmul.mubr.bf16.gmra.mrb[40].mxu1 %v18737_v23 }
 0x61e   : > { %14744 = vmatprep.mubr.bf16.mxu1 %v18744_v13  ;;  %14773 = vmatpush3.bf16.msra.mxu1 %v16444_v34  ;;  %v19910_v34 = vshrl.u32 %v18637_v28, 16  ;;  %v18788_v39 = vsel %vm16993_vm2, 0, %v9095_v53 }
 0x61f   : > { %14774 = vmatprep.subr.bf16.mxu1 %v16445_v5 }
 0x620   : > { %v9099_v7 = vrot.slane %v19910_v34, 7 }
 0x622   : > { %14775 = vmatpush3.bf16.msra.mxu1 %v16445_v5  ;;  %v18781_v5 = vsel %vm16993_vm2, 0, %v9088_v46  ;;  %v19911_v46 = vshrl.u32 %v18648_v48, 16 }
 0x623   : > { %14776 = vmatprep.subr.bf16.mxu1 %v16446_v29 }
 0x625   : > { %14745 = vmatmul.mubr.bf16.gmra.mrb[44].mxu1 %v18759_v22 }
 0x626   : > { %14748 = vmatprep.mubr.bf16.mxu1 %v18766_v18  ;;  %14777 = vmatpush3.bf16.msra.mxu1 %v16446_v29  ;;  %v9106_v29 = vrot.slane %v19908_v62, 7  ;;  %v19914_v62 = vshll.u32 %v18648_v48, 16 }
 0x627   : > { %14778 = vmatprep.subr.bf16.mxu1 %v16447_v50 }
 0x628   : > { %v9109_v49 = vor.u32 %v19912_v61, %v9106_v29  ;;  %v19916_v29 = vshll.u32 %v18651_v47, 16 }
 0x62a   : > { %14779 = vmatpush3.bf16.msra.mxu1 %v16447_v50  ;;  %v9102_v50 = vor.u32 %v19917_v52, %v9099_v7  ;;  %v18810_v35 = vsel %vm16993_vm2, 0, %v9109_v49  ;;  %v9120_v7 = vrot.slane %v19911_v46, 7  ;;  %v9127_v46 = vrot.slane %v19913_v10, 7 }
 0x62b   : > { %14812 = vmatprep.subr.bf16.mxu1 %v16448_v36  ;;  %v9202_v10 = vrot.slane %v9030_v11, 1  ;;  %v9206_v11 = vrot.slane %v9044_v25, 1 }
 0x62c   : > { %v18803_v53 = vsel %vm16993_vm2, 0, %v9102_v50  ;;  %v9116_v50 = vor.u32 %v19916_v29, %v9113_v2  ;;  %v9123_v34 = vor.u32 %v19914_v62, %v9120_v7  ;;  %v19915_v2 = vshll.u32 %v18666_v14, 16  ;;  %v16455_v29 = vld [vmem:[#allocation8 + $0xf8] sm:$0xff]  }
 0x62d   : > { %14749 = vmatmul.mubr.bf16.gmra.mrb[48].mxu1 %v18781_v5  ;;  %v9203_v62 = vor.u32 %v9202_v10, %v9027_v19  ;;  %v9208_v19 = vrot.slane %v9051_v20, 1  ;;  %v16451_v10 = vld [vmem:[#allocation8 + $0xd8] sm:$0xff]   ;;  %v9210_v20 = vrot.slane %v9058_v60, 1 }
 0x62e   : > { %14752 = vmatprep.mubr.bf16.mxu1 %v18788_v39  ;;  %v18824_v49 = vsel %vm16993_vm2, 0, %v9116_v50  ;;  %v18831_v61 = vsel %vm16993_vm2, 0, %v9123_v34  ;;  %v9130_v7 = vor.u32 %v19915_v2, %v9127_v46  ;;  %v9204_v34 = vrot.slane %v9037_v63, 1  ;;  %v16449_v2 = vld [vmem:[#allocation8 + $0xc8] sm:$0xff]  }
 0x62f   : > { %20167 = vst [vmem:[#allocation19_spill] sm:$0xff] %v18831_v61  ;;  %v9209_v25 = vor.u32 %v9208_v19, %v9048_v56  ;;  %v16452_v56 = vld [vmem:[#allocation8 + $0xe0] sm:$0xff]   ;;  %v9216_v19 = vrot.slane %v9079_v42, 1 }
 0x630   : > { %v18839_v50 = vsel %vm16993_vm2, 0, %v9130_v7  ;;  %v9205_v46 = vor.u32 %v9204_v34, %v9034_v3  ;;  %v18853_v7 = vsel %vm17218_vm5, %v9203_v62, 0  ;;  %v16450_v3 = vld [vmem:[#allocation8 + $0xd0] sm:$0xff]   ;;  %v9207_v62 = vor.u32 %v9206_v11, %v9041_v4 }
 0x631   : > { %20168 = vst [vmem:[#allocation20_spill] sm:$0xff] %v18839_v50  ;;  %v9212_v4 = vrot.slane %v9065_v32, 1  ;;  %v9214_v32 = vrot.slane %v9072_v17, 1  ;;  %v9217_v42 = vor.u32 %v9216_v19, %v9076_v0 }
 0x632   : > { %v18860_v63 = vsel %vm17218_vm5, %v9205_v46, 0  ;;  %v18871_v34 = vsel %vm17218_vm5, %v9207_v62, 0  ;;  %v16453_v46 = vld [vmem:[#allocation8 + $0xe8] sm:$0xff]   ;;  %v16454_v62 = vld [vmem:[#allocation8 + $0xf0] sm:$0xff]  }
 0x633   : > { %20169 = vst [vmem:[#allocation21_spill] sm:$0xff] %v18860_v63  ;;  %20170 = vst [vmem:[#allocation22_spill] sm:$0xff] %v18871_v34  ;;  %v9213_v60 = vor.u32 %v9212_v4, %v9062_v33  ;;  %v18901_v33 = vld [vmem:[#allocation9] ss:$0 sm:$0xff]  ;;  %v9215_v17 = vor.u32 %v9214_v32, %v9069_v54  ;;  %v18921_v0 = vsel %vm17218_vm5, %v9217_v42, 0  ;;  %v9218_v32 = vrot.slane %v9086_v38, 1 }
 0x634   : > { %v18911_v4 = vld [vmem:[%s19779_s6] ss:$0 sm:$0xff]  ;;  %20175 = vst [vmem:[#allocation56_spill] sm:$0xff] %v18921_v0 }
 0x635   : > { %14753 = vmatmul.mubr.bf16.gmra.mrb[52].mxu1 %v18803_v53  ;;  %v18917_v54 = vsel %vm17218_vm5, %v9215_v17, 0 }
 0x636   : > { %14756 = vmatprep.mubr.bf16.mxu1 %v18810_v35  ;;  %20174 = vst [vmem:[#allocation25_spill] sm:$0xff] %v18917_v54 }
 0x63d   : > { %14757 = vmatmul.mubr.bf16.gmra.mrb[56].mxu1 %v18824_v49 }
 0x63e   : > { %14760 = vmatprep.mubr.bf16.mxu1 %v18831_v61 }
 0x645   : > { %14761 = vmatmul.mubr.bf16.gmra.mrb[60].mxu1 %v18839_v50 }
 0x646   : > { %14780 = vmatprep.mubr.bf16.mxu1 %v20054_v15 }
 0x64d   : > { %14781 = vmatmul.mubr.bf16.vlgmr.msra.gmra.mrb[32].mxu1 %v18853_v7 }
 0x64e   : > { %14784 = vmatprep.mubr.bf16.mxu1 %v18860_v63  ;;  %14813 = vmatpush3.bf16.msra.mxu1 %v16448_v36  ;;  %v18878_v36 = vsel %vm17218_vm5, %v9209_v25, 0 }
 0x64f   : > { %14814 = vmatprep.subr.bf16.mxu1 %v16449_v2  ;;  %20171 = vst [vmem:[#allocation23_spill] sm:$0xff] %v18878_v36 }
 0x652   : > { %14815 = vmatpush3.bf16.msra.mxu1 %v16449_v2  ;;  %v9211_v2 = vor.u32 %v9210_v20, %v9055_v58  ;;  %v18898_v58 = vsel %vm17218_vm5, %v9213_v60, 0 }
 0x653   : > { %14816 = vmatprep.subr.bf16.mxu1 %v16450_v3  ;;  %20173 = vst [vmem:[#allocation55_spill] sm:$0xff] %v18898_v58 }
 0x654   : > { %v18889_v11 = vsel %vm17218_vm5, %v9211_v2, 0 }
 0x655   : > { %14785 = vmatmul.mubr.bf16.gmra.mrb[36].mxu1 %v18871_v34  ;;  %20172 = vst [vmem:[#allocation24_spill] sm:$0xff] %v18889_v11 }
 0x656   : > { %14788 = vmatprep.mubr.bf16.mxu1 %v18878_v36  ;;  %14817 = vmatpush3.bf16.msra.mxu1 %v16450_v3 }
 0x657   : > { %14818 = vmatprep.subr.bf16.mxu1 %v16451_v10 }
 0x65a   : > { %14819 = vmatpush3.bf16.msra.mxu1 %v16451_v10 }
 0x65b   : > { %14820 = vmatprep.subr.bf16.mxu1 %v16452_v56 }
 0x65d   : > { %14789 = vmatmul.mubr.bf16.gmra.mrb[40].mxu1 %v18889_v11 }
 0x65e   : > { %14792 = vmatprep.mubr.bf16.mxu1 %v18898_v58  ;;  %14821 = vmatpush3.bf16.msra.mxu1 %v16452_v56 }
 0x65f   : > { %v14206_v3 = vpop.f32.mrb[0].mxu1  ;;  %14822 = vmatprep.subr.bf16.mxu1 %v16453_v46 }
 0x660   : > { %v5747_v25 = vpop.f32.mrb[1].mxu1  ;;  %v5915_v56 = vmul.f32 %v14206_v3, %v18901_v33 }
 0x661   : > { %v5913_v10 = vmul.f32 %v18901_v33, %v5747_v25  ;;  %v14207_v20 = vpop.f32.mrb[2].mxu1  ;;  %v9220_v25 = vrot.slane %v9093_v12, 1 }
 0x662   : > { %v5750_v2 = vpop.f32.mrb[3].mxu1  ;;  %14823 = vmatpush3.bf16.msra.mxu1 %v16453_v46  ;;  %v5916_v46 = vmul.f32 %v14207_v20, %v18901_v33  ;;  %v18937_v17 = vadd.f32 %v18911_v4, %v5915_v56 }
 0x663   : > { %v5914_v60 = vmul.f32 %v18901_v33, %v5750_v2  ;;  %14824 = vmatprep.subr.bf16.mxu1 %v16454_v62  ;;  %v18926_v19 = vadd.f32 %v18911_v4, %v5913_v10  ;;  %v18941_v10 = vld [vmem:[#allocation8 + $0x100] sm:$0xff]   ;;  %v9219_v2 = vor.u32 %v9218_v32, %v9083_v44  ;;  %v9221_v52 = vor.u32 %v9220_v25, %v9090_v59 }
 0x664   : > { %20178 = vst [vmem:[#allocation27_spill] sm:$0xff] %v18937_v17 }
 0x665   : > { %20176 = vst [vmem:[#allocation26_spill] sm:$0xff] %v18926_v19  ;;  %v18930_v3 = vadd.f32 %v18911_v4, %v5914_v60  ;;  %14793 = vmatmul.mubr.bf16.gmra.mrb[44].mxu1 %v18917_v54  ;;  %v18946_v60 = vadd.f32 %v18911_v4, %v5916_v46  ;;  %v18961_v46 = vsel %vm17218_vm5, %v9219_v2, 0 }
 0x666   : > { %14796 = vmatprep.mubr.bf16.mxu1 %v18921_v0  ;;  %14825 = vmatpush3.bf16.msra.mxu1 %v16454_v62  ;;  %20181 = vst [vmem:[#allocation59_spill] sm:$0xff] %v18961_v46 }
 0x667   : > { %20177 = vst [vmem:[#allocation57_spill] sm:$0xff] %v18930_v3  ;;  %v5984_v38 = vadd.f32 %v18930_v3, %v18926_v19  ;;  %v14210_v42 = vpop.f32.mrb[4].mxu1  ;;  %14826 = vmatprep.subr.bf16.mxu1 %v16455_v29  ;;  %20179 = vst [vmem:[#allocation58_spill] sm:$0xff] %v18946_v60 }
 0x668   : > { %v5763_v20 = vpop.f32.mrb[5].mxu1  ;;  %v5919_v3 = vmul.f32 %v14210_v42, %v18901_v33 }
 0x669   : > { %v5985_v12 = vadd.f32 %v5984_v38, %v18937_v17  ;;  %v5917_v62 = vmul.f32 %v18901_v33, %v5763_v20  ;;  %v14211_v56 = vpop.f32.mrb[6].mxu1  ;;  %v20182_v38 = vshll.u32 %v18637_v28, 16 }
 0x66a   : > { %v5766_v15 = vpop.f32.mrb[7].mxu1  ;;  %14827 = vmatpush3.bf16.msra.mxu1 %v16455_v29  ;;  %v20183_v29 = vshll.u32 %v18634_v16, 16  ;;  %v5920_v20 = vmul.f32 %v14211_v56, %v18901_v33  ;;  %v18979_v2 = vadd.f32 %v18911_v4, %v5919_v3  ;;  %v20187_v56 = vshrl.u32 %v18637_v28, 16 }
 0x66b   : > { %v18954_v19 = vadd.f32 %v18911_v4, %v5917_v62  ;;  %v5986_v44 = vadd.f32 %v5985_v12, %v18946_v60  ;;  %v5918_v32 = vmul.f32 %v18901_v33, %v5766_v15  ;;  %14860 = vmatprep.subr.bf16.mxu1 %v18941_v10  ;;  %v9222_v59 = vrot.slane %v20182_v38, 1 }
 0x66c   : > { %v9224_v25 = vrot.slane %v20183_v29, 1  ;;  %v18975_v15 = vsel %vm17218_vm5, %v9221_v52, 0  ;;  %20186 = vst [vmem:[#allocation61_spill] sm:$0xff] %v18979_v2  ;;  %v18987_v60 = vadd.f32 %v18911_v4, %v5920_v20 }
 0x66d   : > { %20180 = vst [vmem:[#allocation38_spill] sm:$0xff] %v18954_v19  ;;  %v5987_v42 = vadd.f32 %v5986_v44, %v18954_v19  ;;  %v18970_v12 = vadd.f32 %v18911_v4, %v5918_v32  ;;  %14797 = vmatmul.mubr.bf16.gmra.mrb[48].mxu1 %v18961_v46  ;;  %20185 = vst [vmem:[#allocation39_spill] sm:$0xff] %v18975_v15  ;;  %v9223_v29 = vor.u32 %v9222_v59, %v20187_v56 }
 0x66e   : > { %14800 = vmatprep.mubr.bf16.mxu1 %v18975_v15  ;;  %v20188_v32 = vshrl.u32 %v18634_v16, 16  ;;  %20189 = vst [vmem:[#allocation42_spill] sm:$0xff] %v18987_v60 }
 0x66f   : > { %20184 = vst [vmem:[#allocation60_spill] sm:$0xff] %v18970_v12  ;;  %v5988_v62 = vadd.f32 %v5987_v42, %v18970_v12  ;;  %v14214_v38 = vpop.f32.mrb[8].mxu1 }
 0x670   : > { %v5779_v44 = vpop.f32.mrb[9].mxu1  ;;  %v9225_v19 = vor.u32 %v9224_v25, %v20188_v32  ;;  %v5923_v15 = vmul.f32 %v14214_v38, %v18901_v33  ;;  %v18999_v25 = vsel %vm17218_vm5, %v9223_v29, 0  ;;  %v20195_v32 = vshll.u32 %v18648_v48, 16 }
 0x671   : > { %v5989_v52 = vadd.f32 %v5988_v62, %v18979_v2  ;;  %v5921_v17 = vmul.f32 %v18901_v33, %v5779_v44  ;;  %v14215_v57 = vpop.f32.mrb[10].mxu1  ;;  %20191 = vst [vmem:[#allocation52_spill] sm:$0xff] %v18999_v25  ;;  %v20193_v62 = vshll.u32 %v18651_v47, 16  ;;  %v20199_v2 = vshrl.u32 %v18648_v48, 16 }
 0x672   : > { %v5782_v3 = vpop.f32.mrb[11].mxu1  ;;  %v19003_v20 = vsel %vm17218_vm5, %v9225_v19, 0  ;;  %v9228_v29 = vrot.slane %v20195_v32, 1  ;;  %v19017_v19 = vadd.f32 %v18911_v4, %v5923_v15 }
 0x673   : > { %v18993_v42 = vadd.f32 %v18911_v4, %v5921_v17  ;;  %v5990_v12 = vadd.f32 %v5989_v52, %v18987_v60  ;;  %v5922_v59 = vmul.f32 %v18901_v33, %v5782_v3  ;;  %20192 = vst [vmem:[#allocation46_spill] sm:$0xff] %v19003_v20  ;;  %v9226_v44 = vrot.slane %v20193_v62, 1 }
 0x674   : > { %v5924_v17 = vmul.f32 %v14215_v57, %v18901_v33  ;;  %20196 = vst [vmem:[#allocation47_spill] sm:$0xff] %v19017_v19 }
 0x675   : > { %20190 = vst [vmem:[#allocation40_spill] sm:$0xff] %v18993_v42  ;;  %v5991_v38 = vadd.f32 %v5990_v12, %v18993_v42  ;;  %v19010_v56 = vadd.f32 %v18911_v4, %v5922_v59  ;;  %14801 = vmatmul.mubr.bf16.gmra.mrb[52].mxu1 %v18999_v25  ;;  %v20197_v12 = vshrl.u32 %v18651_v47, 16 }
 0x676   : > { %14804 = vmatprep.mubr.bf16.mxu1 %v19003_v20  ;;  %v19023_v59 = vadd.f32 %v18911_v4, %v5924_v17  ;;  %v9229_v20 = vor.u32 %v9228_v29, %v20199_v2 }
 0x677   : > { %20194 = vst [vmem:[#allocation53_spill] sm:$0xff] %v19010_v56  ;;  %v5992_v52 = vadd.f32 %v5991_v38, %v19010_v56  ;;  %v14218_v3 = vpop.f32.mrb[12].mxu1  ;;  %v9227_v57 = vor.u32 %v9226_v44, %v20197_v12 }
 0x678   : > { %v5795_v62 = vpop.f32.mrb[13].mxu1  ;;  %20198 = vst [vmem:[#allocation48_spill] sm:$0xff] %v19023_v59  ;;  %v5927_v25 = vmul.f32 %v14218_v3, %v18901_v33 }
 0x679   : > { %v5993_v42 = vadd.f32 %v5992_v52, %v19017_v19  ;;  %v5925_v60 = vmul.f32 %v18901_v33, %v5795_v62  ;;  %v14219_v32 = vpop.f32.mrb[14].mxu1  ;;  %v19037_v17 = vsel %vm17218_vm5, %v9227_v57, 0  ;;  %v20202_v52 = vshll.u32 %v18666_v14, 16 }
 0x67a   : > { %v5798_v15 = vpop.f32.mrb[15].mxu1  ;;  %20201 = vst [vmem:[#allocation49_spill] sm:$0xff] %v19037_v17  ;;  %v5928_v2 = vmul.f32 %v14219_v32, %v18901_v33  ;;  %v20205_v32 = vshrl.u32 %v18666_v14, 16 }
 0x67b   : > { %v19031_v38 = vadd.f32 %v18911_v4, %v5925_v60  ;;  %v5994_v56 = vadd.f32 %v5993_v42, %v19023_v59  ;;  %v5926_v44 = vmul.f32 %v18901_v33, %v5798_v15  ;;  %v9230_v62 = vrot.slane %v20202_v52, 1 }
 0x67c   : > { %v19049_v60 = vsel %vm17218_vm5, %v9229_v20, 0  ;;  %v19053_v42 = vadd.f32 %v18911_v4, %v5927_v25 }
 0x67d   : > { %20200 = vst [vmem:[#allocation54_spill] sm:$0xff] %v19031_v38  ;;  %v5995_v12 = vadd.f32 %v5994_v56, %v19031_v38  ;;  %v19044_v29 = vadd.f32 %v18911_v4, %v5926_v44  ;;  %14805 = vmatmul.mubr.bf16.gmra.mrb[56].mxu1 %v19037_v17  ;;  %20204 = vst [vmem:[#allocation62_spill] sm:$0xff] %v19049_v60  ;;  %v9231_v15 = vor.u32 %v9230_v62, %v20205_v32 }
 0x67e   : > { %14808 = vmatprep.mubr.bf16.mxu1 %v19049_v60  ;;  %v19059_v44 = vadd.f32 %v18911_v4, %v5928_v2 }
 0x67f   : > { %20203 = vst [vmem:[#allocation51_spill] sm:$0xff] %v19044_v29  ;;  %v5996_v3 = vadd.f32 %v5995_v12, %v19044_v29  ;;  %v14222_v57 = vpop.f32.mrb[16].mxu1  ;;  %v19071_v62 = vsel %vm17218_vm5, %v9231_v15, 0 }
 0x680   : > { %v5811_v56 = vpop.f32.mrb[17].mxu1  ;;  %20206 = vst [vmem:[#allocation63_spill] sm:$0xff] %v19059_v44  ;;  %v5931_v19 = vmul.f32 %v14222_v57, %v18901_v33  ;;  %20208 = vst [vmem:[#allocation65_spill] sm:$0xff] %v19071_v62 }
 0x681   : > { %v5997_v52 = vadd.f32 %v5996_v3, %v19053_v42  ;;  %v5929_v20 = vmul.f32 %v18901_v33, %v5811_v56  ;;  %v14223_v38 = vpop.f32.mrb[18].mxu1 }
 0x682   : > { %v5814_v59 = vpop.f32.mrb[19].mxu1  ;;  %v5932_v3 = vmul.f32 %v14223_v38, %v18901_v33  ;;  %v19081_v57 = vadd.f32 %v18911_v4, %v5931_v19 }
 0x683   : > { %v19065_v25 = vadd.f32 %v18911_v4, %v5929_v20  ;;  %v5998_v12 = vadd.f32 %v5997_v52, %v19059_v44  ;;  %v5930_v29 = vmul.f32 %v18901_v33, %v5814_v59 }
 0x684   : > { %20210 = vst [vmem:[#allocation67_spill] sm:$0xff] %v19081_v57  ;;  %v19085_v15 = vadd.f32 %v18911_v4, %v5932_v3 }
 0x685   : > { %20207 = vst [vmem:[#allocation64_spill] sm:$0xff] %v19065_v25  ;;  %v5999_v2 = vadd.f32 %v5998_v12, %v19065_v25  ;;  %v19076_v56 = vadd.f32 %v18911_v4, %v5930_v29  ;;  %14809 = vmatmul.mubr.bf16.gmra.mrb[60].mxu1 %v19071_v62 }
 0x686   : > { %14828 = vmatprep.mubr.bf16.mxu1 %v18692_v55  ;;  %20211 = vst [vmem:[#allocation68_spill] sm:$0xff] %v19085_v15 }
 0x687   : > { %20209 = vst [vmem:[#allocation66_spill] sm:$0xff] %v19076_v56  ;;  %v6000_v59 = vadd.f32 %v5999_v2, %v19076_v56  ;;  %v14226_v32 = vpop.f32.mrb[20].mxu1  ;;  %v16457_v56 = vld [vmem:[#allocation8 + $0x108] sm:$0xff]  }
 0x688   : > { %v5827_v52 = vpop.f32.mrb[21].mxu1  ;;  %v5935_v25 = vmul.f32 %v14226_v32, %v18901_v33 }
 0x689   : > { %v6001_v20 = vadd.f32 %v6000_v59, %v19081_v57  ;;  %v5933_v38 = vmul.f32 %v18901_v33, %v5827_v52  ;;  %v14227_v29 = vpop.f32.mrb[22].mxu1  ;;  %v16459_v57 = vld [vmem:[#allocation8 + $0x118] sm:$0xff]  }
 0x68a   : > { %v5830_v12 = vpop.f32.mrb[23].mxu1  ;;  %v5936_v3 = vmul.f32 %v14227_v29, %v18901_v33  ;;  %v19104_v32 = vadd.f32 %v18911_v4, %v5935_v25 }
 0x68b   : > { %v19091_v55 = vadd.f32 %v18911_v4, %v5933_v38  ;;  %v6002_v19 = vadd.f32 %v6001_v20, %v19085_v15  ;;  %v5934_v2 = vmul.f32 %v18901_v33, %v5830_v12  ;;  %v16458_v38 = vld [vmem:[#allocation8 + $0x110] sm:$0xff]  }
 0x68c   : > { %20214 = vst [vmem:[#allocation71_spill] sm:$0xff] %v19104_v32  ;;  %v19108_v29 = vadd.f32 %v18911_v4, %v5936_v3 }
 0x68d   : > { %20212 = vst [vmem:[#allocation69_spill] sm:$0xff] %v19091_v55  ;;  %v6003_v44 = vadd.f32 %v6002_v19, %v19091_v55  ;;  %v19098_v59 = vadd.f32 %v18911_v4, %v5934_v2  ;;  %14829 = vmatmul.mubr.bf16.vlgmr.msra.gmra.mrb[32].mxu1 %v18699_v24 }
 0x68e   : > { %14832 = vmatprep.mubr.bf16.mxu1 %v18715_v31  ;;  %14861 = vmatpush3.bf16.msra.mxu1 %v18941_v10  ;;  %20215 = vst [vmem:[#allocation72_spill] sm:$0xff] %v19108_v29 }
 0x68f   : > { %20213 = vst [vmem:[#allocation70_spill] sm:$0xff] %v19098_v59  ;;  %v6004_v52 = vadd.f32 %v6003_v44, %v19098_v59  ;;  %v14230_v20 = vpop.f32.mrb[24].mxu1  ;;  %14862 = vmatprep.subr.bf16.mxu1 %v16457_v56 }
 0x690   : > { %v5843_v12 = vpop.f32.mrb[25].mxu1  ;;  %v5939_v10 = vmul.f32 %v14230_v20, %v18901_v33 }
 0x691   : > { %v6005_v19 = vadd.f32 %v6004_v52, %v19104_v32  ;;  %v5937_v2 = vmul.f32 %v18901_v33, %v5843_v12  ;;  %v14231_v55 = vpop.f32.mrb[26].mxu1  ;;  %v16461_v32 = vld [vmem:[#allocation8 + $0x128] sm:$0xff]  }
 0x692   : > { %v5846_v15 = vpop.f32.mrb[27].mxu1  ;;  %14863 = vmatpush3.bf16.msra.mxu1 %v16457_v56  ;;  %v5940_v52 = vmul.f32 %v14231_v55, %v18901_v33  ;;  %v19126_v56 = vadd.f32 %v18911_v4, %v5939_v10 }
 0x693   : > { %v19114_v25 = vadd.f32 %v18911_v4, %v5937_v2  ;;  %v6006_v44 = vadd.f32 %v6005_v19, %v19108_v29  ;;  %v5938_v59 = vmul.f32 %v18901_v33, %v5846_v15  ;;  %14864 = vmatprep.subr.bf16.mxu1 %v16458_v38  ;;  %v16460_v19 = vld [vmem:[#allocation8 + $0x120] sm:$0xff]  }
 0x695   : > { %20216 = vst [vmem:[#allocation73_spill] sm:$0xff] %v19114_v25  ;;  %v6007_v3 = vadd.f32 %v6006_v44, %v19114_v25  ;;  %v19121_v12 = vadd.f32 %v18911_v4, %v5938_v59  ;;  %14833 = vmatmul.mubr.bf16.gmra.mrb[36].mxu1 %v18722_v45  ;;  %v19130_v44 = vadd.f32 %v18911_v4, %v5940_v52 }
 0x696   : > { %14836 = vmatprep.mubr.bf16.mxu1 %v18737_v23  ;;  %14865 = vmatpush3.bf16.msra.mxu1 %v16458_v38 }
 0x697   : > { %20217 = vst [vmem:[#allocation74_spill] sm:$0xff] %v19121_v12  ;;  %v6008_v20 = vadd.f32 %v6007_v3, %v19121_v12  ;;  %v14234_v15 = vpop.f32.mrb[28].mxu1  ;;  %14866 = vmatprep.subr.bf16.mxu1 %v16459_v57 }
 0x698   : > { %v5859_v2 = vpop.f32.mrb[29].mxu1  ;;  %v5943_v38 = vmul.f32 %v14234_v15, %v18901_v33 }
 0x699   : > { %v6009_v55 = vadd.f32 %v6008_v20, %v19126_v56  ;;  %v5941_v59 = vmul.f32 %v18901_v33, %v5859_v2  ;;  %v14235_v25 = vpop.f32.mrb[30].mxu1 }
 0x69a   : > { %v5862_v29 = vpop.f32.mrb[31].mxu1  ;;  %14867 = vmatpush3.bf16.msra.mxu1 %v16459_v57  ;;  %v5944_v20 = vmul.f32 %v14235_v25, %v18901_v33  ;;  %v19148_v57 = vadd.f32 %v18911_v4, %v5943_v38  ;;  %v16464_v38 = vld [vmem:[#allocation8 + $0x140] sm:$0xff]  }
 0x69b   : > { %v19136_v10 = vadd.f32 %v18911_v4, %v5941_v59  ;;  %v6010_v3 = vadd.f32 %v6009_v55, %v19130_v44  ;;  %v5942_v12 = vmul.f32 %v18901_v33, %v5862_v29  ;;  %14868 = vmatprep.subr.bf16.mxu1 %v16460_v19  ;;  %v16462_v29 = vld [vmem:[#allocation8 + $0x130] sm:$0xff]  }
 0x69c   : > { %v19152_v55 = vadd.f32 %v18911_v4, %v5944_v20  ;;  %v6023_v20 = vld [vmem:[%s19780_s7] sm:$0xff] }
 0x69d   : > { %v6011_v52 = vadd.f32 %v6010_v3, %v19136_v10  ;;  %v19143_v2 = vadd.f32 %v18911_v4, %v5942_v12  ;;  %14837 = vmatmul.mubr.bf16.gmra.mrb[40].mxu1 %v18744_v13  ;;  %v16463_v12 = vld [vmem:[#allocation8 + $0x138] sm:$0xff]  }
 0x69e   : > { %14840 = vmatprep.mubr.bf16.mxu1 %v18759_v22  ;;  %14869 = vmatpush3.bf16.msra.mxu1 %v16460_v19 }
 0x69f   : > { %v6012_v15 = vadd.f32 %v6011_v52, %v19143_v2  ;;  %14870 = vmatprep.subr.bf16.mxu1 %v16461_v32 }
 0x6a1   : > { %v6013_v33 = vadd.f32 %v6012_v15, %v19148_v57 }
 0x6a2   : > { %14871 = vmatpush3.bf16.msra.mxu1 %v16461_v32 }
 0x6a3   : > { %v6014_v25 = vadd.f32 %v6013_v33, %v19152_v55  ;;  %14872 = vmatprep.subr.bf16.mxu1 %v16462_v29 }
 0x6a5   : > { %14841 = vmatmul.mubr.bf16.gmra.mrb[44].mxu1 %v18766_v18  ;;  %v6015_v19 = vrot.slane %v6014_v25, 4 }
 0x6a6   : > { %14844 = vmatprep.mubr.bf16.mxu1 %v18781_v5  ;;  %14873 = vmatpush3.bf16.msra.mxu1 %v16462_v29  ;;  %v20218_v29 = vshrl.u32 %v18664_v43, 16 }
 0x6a7   : > { %v6016_v59 = vadd.f32 %v6015_v19, %v6014_v25  ;;  %14874 = vmatprep.subr.bf16.mxu1 %v16463_v12 }
 0x6a8   : > { %v9134_v25 = vrot.slane %v20218_v29, 7  ;;  %v16475_v29 = vld [vmem:[#allocation8 + $0x198] sm:$0xff]  }
 0x6a9   : > { %v6017_v3 = vrot.slane %v6016_v59, 2 }
 0x6aa   : > { %14875 = vmatpush3.bf16.msra.mxu1 %v16463_v12  ;;  %v20219_v12 = vshll.u32 %v18664_v43, 16 }
 0x6ab   : > { %v6018_v4 = vadd.f32 %v6017_v3, %v6016_v59  ;;  %14908 = vmatprep.subr.bf16.mxu1 %v16464_v38  ;;  %v16465_v3 = vld [vmem:[#allocation8 + $0x148] sm:$0xff]  }
 0x6ac   : > { %v9137_v19 = vor.u32 %v20219_v12, %v9134_v25  ;;  %v16476_v25 = vld [vmem:[#allocation8 + $0x1a0] sm:$0xff]   ;;  %v16478_v12 = vld [vmem:[#allocation8 + $0x1b0] sm:$0xff]  }
 0x6ad   : > { %14845 = vmatmul.mubr.bf16.gmra.mrb[48].mxu1 %v18788_v39  ;;  %v6019_v32 = vrot.slane %v6018_v4, 1 }
 0x6ae   : > { %14848 = vmatprep.mubr.bf16.mxu1 %v18803_v53  ;;  %v19173_v59 = vsel %vm16993_vm2, 0, %v9137_v19  ;;  %v16479_v19 = vld [vmem:[#allocation8 + $0x1b8] sm:$0xff]  }
 0x6af   : > { %v6020_v52 = vadd.f32 %v6019_v32, %v6018_v4  ;;  %20220 = vst [vmem:[#allocation75_spill] sm:$0xff] %v19173_v59  ;;  %v16466_v4 = vld [vmem:[#allocation8 + $0x150] sm:$0xff]   ;;  %v16467_v32 = vld [vmem:[#allocation8 + $0x158] sm:$0xff]  }
 0x6b1   : > { %v6022_v15 = vmul.f32 0.00390625, %v6020_v52  ;;  %v16471_v52 = vld [vmem:[#allocation8 + $0x178] sm:$0xff]  }
 0x6b3   : > { %v6024_v33 = vmul.f32 %v6023_v20, %v6022_v15  ;;  %v16472_v20 = vld [vmem:[#allocation8 + $0x180] sm:$0xff]   ;;  %v16473_v15 = vld [vmem:[#allocation8 + $0x188] sm:$0xff]  }
 0x6b5   : > { %14849 = vmatmul.mubr.bf16.gmra.mrb[52].mxu1 %v18810_v35  ;;  %6025 = vadd.xlane.f32.xlu0 %v6024_v33  ;;  %v16474_v33 = vld [vmem:[#allocation8 + $0x190] sm:$0xff]  }
 0x6b6   : > { %14852 = vmatprep.mubr.bf16.mxu1 %v18824_v49 }
 0x6bd   : > { %14853 = vmatmul.mubr.bf16.gmra.mrb[56].mxu1 %v18831_v61 }
 0x6be   : > { %14856 = vmatprep.mubr.bf16.mxu1 %v18839_v50 }
 0x6c5   : > { %14857 = vmatmul.mubr.bf16.gmra.mrb[60].mxu1 %v19173_v59 }
 0x6c6   : > { %14876 = vmatprep.mubr.bf16.mxu1 %v18564_v8  ;;  %v16469_v8 = vld [vmem:[#allocation8 + $0x168] sm:$0xff]  }
 0x6cd   : > { %14877 = vmatmul.mubr.bf16.vlgmr.msra.gmra.mrb[32].mxu1 %v18561_v40 }
 0x6ce   : > { %14880 = vmatprep.mubr.bf16.mxu1 %v18578_v30  ;;  %14909 = vmatpush3.bf16.msra.mxu1 %v16464_v38  ;;  %v16470_v38 = vld [vmem:[#allocation8 + $0x170] sm:$0xff]  }
 0x6cf   : > { %14910 = vmatprep.subr.bf16.mxu1 %v16465_v3 }
 0x6d2   : > { %14911 = vmatpush3.bf16.msra.mxu1 %v16465_v3  ;;  %v16480_v3 = vld [vmem:[#allocation8 + $0x1c0] sm:$0xff]  }
 0x6d3   : > { %14912 = vmatprep.subr.bf16.mxu1 %v16466_v4 }
 0x6d5   : > { %14881 = vmatmul.mubr.bf16.gmra.mrb[36].mxu1 %v18575_v26  ;;  %v6058_v26 = vld [vmem:[%s16955_s27 + $0x80] sm:$0xff] }
 0x6d6   : > { %14884 = vmatprep.mubr.bf16.mxu1 %v18592_v6  ;;  %14913 = vmatpush3.bf16.msra.mxu1 %v16466_v4  ;;  %v20221_v4 = vld [vmem:[#allocation39_spill] sm:$0xff] }
 0x6d7   : > { %14914 = vmatprep.subr.bf16.mxu1 %v16467_v32 }
 0x6da   : > { %14915 = vmatpush3.bf16.msra.mxu1 %v16467_v32  ;;  %v20222_v32 = vld [vmem:[#allocation52_spill] sm:$0xff] }
 0x6db   : > { %14916 = vmatprep.subr.bf16.mxu1 %v16468_v27 }
 0x6dd   : > { %14885 = vmatmul.mubr.bf16.gmra.mrb[40].mxu1 %v18589_v21  ;;  %v6060_v21 = vld [vmem:[%s16955_s27 + $0x90] sm:$0xff] }
 0x6de   : > { %14888 = vmatprep.mubr.bf16.mxu1 %v18606_v41  ;;  %14917 = vmatpush3.bf16.msra.mxu1 %v16468_v27  ;;  %v20223_v27 = vld [vmem:[#allocation46_spill] sm:$0xff] }
 0x6df   : > { %14918 = vmatprep.subr.bf16.mxu1 %v16469_v8 }
 0x6e2   : > { %14919 = vmatpush3.bf16.msra.mxu1 %v16469_v8  ;;  %v19210_v8 = vld [vmem:[%s19781_s8] sm:$0xff] }
 0x6e3   : > { %14920 = vmatprep.subr.bf16.mxu1 %v16470_v38  ;;  %20224 = vst [vmem:[#allocation76_spill] sm:$0xff] %v19210_v8 }
 0x6e5   : > { %14889 = vmatmul.mubr.bf16.gmra.mrb[44].mxu1 %v18603_v51 }
 0x6e6   : > { %14892 = vmatprep.mubr.bf16.mxu1 %v18622_v9  ;;  %14921 = vmatpush3.bf16.msra.mxu1 %v16470_v38  ;;  %v20252_v9 = vld [vmem:[#allocation74_spill] sm:$0xff] }
 0x6e7   : > { %14922 = vmatprep.subr.bf16.mxu1 %v16471_v52 }
 0x6ea   : > { %14923 = vmatpush3.bf16.msra.mxu1 %v16471_v52 }
 0x6eb   : > { %14956 = vmatprep.subr.bf16.mxu1 %v16472_v20 }
 0x6ed   : > { %14893 = vmatmul.mubr.bf16.gmra.mrb[48].mxu1 %v18619_v1 }
 0x6ee   : > { %14896 = vmatprep.mubr.bf16.mxu1 %v18637_v28  ;;  %v6054_v28 = vld [vmem:[%s16955_s27 + $0x60] sm:$0xff] }
 0x6f5   : > { %14897 = vmatmul.mubr.bf16.gmra.mrb[52].mxu1 %v18634_v16  ;;  %v20250_v16 = vld [vmem:[#allocation72_spill] sm:$0xff] }
 0x6f6   : > { %14900 = vmatprep.mubr.bf16.mxu1 %v18651_v47 }
 0x6fd   : > { %14901 = vmatmul.mubr.bf16.gmra.mrb[56].mxu1 %v18648_v48  ;;  %v20249_v48 = vld [vmem:[#allocation71_spill] sm:$0xff] }
 0x6fe   : > { %14904 = vmatprep.mubr.bf16.mxu1 %v18666_v14 }
 0x705   : > { %14905 = vmatmul.mubr.bf16.gmra.mrb[60].mxu1 %v18664_v43  ;;  %v20248_v43 = vld [vmem:[#allocation70_spill] sm:$0xff] }
 0x706   : > { %14924 = vmatprep.mubr.bf16.mxu1 %v18853_v7  ;;  %v16477_v7 = vld [vmem:[#allocation8 + $0x1a8] sm:$0xff]  }
 0x70d   : > { %14925 = vmatmul.mubr.bf16.vlgmr.msra.gmra.mrb[32].mxu1 %v18860_v63 }
 0x70e   : > { %14928 = vmatprep.mubr.bf16.mxu1 %v18871_v34  ;;  %14957 = vmatpush3.bf16.msra.mxu1 %v16472_v20  ;;  %v20225_v20 = vld [vmem:[#allocation18_spill] sm:$0xff]  ;;  %v20247_v34 = vld [vmem:[#allocation69_spill] sm:$0xff] }
 0x70f   : > { %14958 = vmatprep.subr.bf16.mxu1 %v16473_v15 }
 0x712   : > { %14959 = vmatpush3.bf16.msra.mxu1 %v16473_v15  ;;  %v19215_v15 = vsel %vm17218_vm5, %v20225_v20, 0 }
 0x713   : > { %14960 = vmatprep.subr.bf16.mxu1 %v16474_v33  ;;  %20226 = vst [vmem:[#allocation18_spill] sm:$0xff] %v19215_v15 }
 0x715   : > { %14929 = vmatmul.mubr.bf16.gmra.mrb[36].mxu1 %v18878_v36  ;;  %v6053_v36 = vld [vmem:[%s16955_s27 + $0x58] sm:$0xff] }
 0x716   : > { %14932 = vmatprep.mubr.bf16.mxu1 %v18889_v11  ;;  %14961 = vmatpush3.bf16.msra.mxu1 %v16474_v33 }
 0x717   : > { %14962 = vmatprep.subr.bf16.mxu1 %v16475_v29 }
 0x71a   : > { %14963 = vmatpush3.bf16.msra.mxu1 %v16475_v29 }
 0x71b   : > { %14964 = vmatprep.subr.bf16.mxu1 %v16476_v25 }
 0x71d   : > { %14933 = vmatmul.mubr.bf16.gmra.mrb[40].mxu1 %v18898_v58  ;;  %v20245_v58 = vld [vmem:[#allocation67_spill] sm:$0xff] }
 0x71e   : > { %14936 = vmatprep.mubr.bf16.mxu1 %v18917_v54  ;;  %14965 = vmatpush3.bf16.msra.mxu1 %v16476_v25 }
 0x71f   : > { %14966 = vmatprep.subr.bf16.mxu1 %v16477_v7 }
 0x722   : > { %14967 = vmatpush3.bf16.msra.mxu1 %v16477_v7 }
 0x723   : > { %14968 = vmatprep.subr.bf16.mxu1 %v16478_v12 }
 0x725   : > { %14937 = vmatmul.mubr.bf16.gmra.mrb[44].mxu1 %v18921_v0  ;;  %v20244_v0 = vld [vmem:[#allocation66_spill] sm:$0xff] }
 0x726   : > { %14940 = vmatprep.mubr.bf16.mxu1 %v18961_v46  ;;  %14969 = vmatpush3.bf16.msra.mxu1 %v16478_v12  ;;  %v16481_v12 = vld [vmem:[#allocation8 + $0x1c8] sm:$0xff]  }
 0x727   : > { %14970 = vmatprep.subr.bf16.mxu1 %v16479_v19 }
 0x72a   : > { %14971 = vmatpush3.bf16.msra.mxu1 %v16479_v19 }
 0x72b   : > { %15004 = vmatprep.subr.bf16.mxu1 %v16480_v3 }
 0x72d   : > { %14941 = vmatmul.mubr.bf16.gmra.mrb[48].mxu1 %v20221_v4  ;;  %v20243_v4 = vld [vmem:[#allocation64_spill] sm:$0xff] }
 0x72e   : > { %14944 = vmatprep.mubr.bf16.mxu1 %v20222_v32  ;;  %v6047_v32 = vld [vmem:[%s16955_s27 + $0x28] sm:$0xff] }
 0x735   : > { %14945 = vmatmul.mubr.bf16.gmra.mrb[52].mxu1 %v20223_v27 }
 0x736   : > { %14948 = vmatprep.mubr.bf16.mxu1 %v19037_v17 }
 0x73d   : > { %14949 = vmatmul.mubr.bf16.gmra.mrb[56].mxu1 %v19049_v60  ;;  %v20241_v60 = vld [vmem:[#allocation51_spill] sm:$0xff] }
 0x73e   : > { %14952 = vmatprep.mubr.bf16.mxu1 %v19071_v62 }
 0x742   : > { %v6026_v38 = vpop.xlane.xlu0 %6025 }
 0x743   : > { %v6027_v52 = vmax.f32 %v6026_v38, 0.0 }
 0x745   : > { %v6029_v33 = vmul.f32 %v19210_v8, %v6027_v52  ;;  %14953 = vmatmul.mubr.bf16.gmra.mrb[60].mxu1 %v19215_v15  ;;  %v16483_v8 = vld [vmem:[#allocation8 + $0x1d8] sm:$0xff]   ;;  %v6043_v15 = vld [vmem:[%s16955_s27 + $0x8] sm:$0xff] }
 0x746   : > { %14972 = vmatprep.mubr.bf16.mxu1 %v18699_v24  ;;  %v16484_v24 = vld [vmem:[#allocation8 + $0x1e0] sm:$0xff]  }
 0x747   : > { %v6030_v29 = vrot.slane %v6029_v33, 4 }
 0x749   : > { %v6031_v25 = vadd.f32 %v6030_v29, %v6029_v33  ;;  %v20229_v29 = vld [vmem:[#allocation57_spill] sm:$0xff] }
 0x74b   : > { %v6032_v7 = vrot.slane %v6031_v25, 2 }
 0x74d   : > { %v6033_v19 = vadd.f32 %v6032_v7, %v6031_v25  ;;  %14973 = vmatmul.mubr.bf16.vlgmr.msra.gmra.mrb[32].mxu1 %v18715_v31  ;;  %v16485_v31 = vld [vmem:[#allocation8 + $0x1e8] sm:$0xff]  }
 0x74e   : > { %14976 = vmatprep.mubr.bf16.mxu1 %v18722_v45  ;;  %15005 = vmatpush3.bf16.msra.mxu1 %v16480_v3  ;;  %v16486_v3 = vld [vmem:[#allocation8 + $0x1f0] sm:$0xff]  }
 0x74f   : > { %v6034_v38 = vrot.slane %v6033_v19, 1  ;;  %15006 = vmatprep.subr.bf16.mxu1 %v16481_v12  ;;  %v20230_v7 = vld [vmem:[#allocation27_spill] sm:$0xff] }
 0x751   : > { %v6035_v20 = vadd.f32 %v6034_v38, %v6033_v19  ;;  %v20232_v19 = vld [vmem:[#allocation38_spill] sm:$0xff] }
 0x752   : > { %15007 = vmatpush3.bf16.msra.mxu1 %v16481_v12  ;;  %v20231_v12 = vld [vmem:[#allocation58_spill] sm:$0xff] }
 0x753   : > { %v12252_v52 = vmul.f32 -1.442695, %v6035_v20  ;;  %15008 = vmatprep.subr.bf16.mxu1 %v16482_v37 }
 0x755   : > { %16496 = vpow2.f32 %v12252_v52  ;;  %14977 = vmatmul.mubr.bf16.gmra.mrb[36].mxu1 %v18737_v23  ;;  %v16487_v23 = vld [vmem:[#allocation8 + $0x1f8] sm:$0xff]  }
 0x756   : > { %14980 = vmatprep.mubr.bf16.mxu1 %v18744_v13  ;;  %15009 = vmatpush3.bf16.msra.mxu1 %v16482_v37  ;;  %v19228_v13 = vld [vmem:[#allocation8 + $0x200] sm:$0xff]   ;;  %v20233_v37 = vld [vmem:[#allocation60_spill] sm:$0xff] }
 0x757   : > { %15010 = vmatprep.subr.bf16.mxu1 %v16483_v8  ;;  %20227 = vst [vmem:[#allocation77_spill] sm:$0xff] %v19228_v13  ;;  %v20234_v52 = vld [vmem:[#allocation61_spill] sm:$0xff] }
 0x75a   : > { %15011 = vmatpush3.bf16.msra.mxu1 %v16483_v8 }
 0x75b   : > { %15012 = vmatprep.subr.bf16.mxu1 %v16484_v24 }
 0x75d   : > { %14981 = vmatmul.mubr.bf16.gmra.mrb[40].mxu1 %v18759_v22 }
 0x75e   : > { %14984 = vmatprep.mubr.bf16.mxu1 %v18766_v18  ;;  %15013 = vmatpush3.bf16.msra.mxu1 %v16484_v24  ;;  %v20228_v18 = vld [vmem:[#allocation26_spill] sm:$0xff] }
 0x75f   : > { %v16497_v45 = vpop.eup %16496  ;;  %15014 = vmatprep.subr.bf16.mxu1 %v16485_v31 }
 0x760   : > { %v6039_v33 = vadd.f32 1.0, %v16497_v45 }
 0x762   : > { %16498 = vrcp.f32 %v6039_v33  ;;  %15015 = vmatpush3.bf16.msra.mxu1 %v16485_v31  ;;  %v20235_v31 = vld [vmem:[#allocation42_spill] sm:$0xff] }
 0x763   : > { %15016 = vmatprep.subr.bf16.mxu1 %v16486_v3 }
 0x765   : > { %14985 = vmatmul.mubr.bf16.gmra.mrb[44].mxu1 %v18781_v5 }
 0x766   : > { %14988 = vmatprep.mubr.bf16.mxu1 %v18788_v39  ;;  %15017 = vmatpush3.bf16.msra.mxu1 %v16486_v3  ;;  %v20236_v3 = vld [vmem:[#allocation40_spill] sm:$0xff] }
 0x767   : > { %15018 = vmatprep.subr.bf16.mxu1 %v16487_v23 }
 0x76a   : > { %15019 = vmatpush3.bf16.msra.mxu1 %v16487_v23  ;;  %v20237_v23 = vld [vmem:[#allocation53_spill] sm:$0xff] }
 0x76b   : > { %15052 = vmatprep.subr.bf16.mxu1 %v19228_v13 }
 0x76c   : > { %v16499_v22 = vpop.eup %16498 }
 0x76d   : > { %v6074_v8 = vmul.f32 %v16499_v22, %v20228_v18  ;;  %v6075_v25 = vmul.f32 %v16499_v22, %v20229_v29  ;;  %v6076_v5 = vmul.f32 %v16499_v22, %v20230_v7  ;;  %v6077_v39 = vmul.f32 %v16499_v22, %v20231_v12  ;;  %14989 = vmatmul.mubr.bf16.gmra.mrb[48].mxu1 %v18803_v53  ;;  %v20238_v29 = vld [vmem:[#allocation47_spill] sm:$0xff]  ;;  %v20239_v7 = vld [vmem:[#allocation48_spill] sm:$0xff] }
 0x76e   : > { %v6078_v38 = vmul.f32 %v16499_v22, %v20232_v19  ;;  %v6079_v20 = vmul.f32 %v16499_v22, %v20233_v37  ;;  %v6080_v24 = vmul.f32 %v16499_v22, %v20234_v52  ;;  %v6081_v45 = vmul.f32 %v16499_v22, %v20235_v31  ;;  %14992 = vmatprep.mubr.bf16.mxu1 %v18810_v35  ;;  %v6044_v19 = vld [vmem:[%s16955_s27 + $0x10] sm:$0xff]  ;;  %v6042_v37 = vld [vmem:[%s16955_s27] sm:$0xff]  ;;  %v6045_v52 = vld [vmem:[%s16955_s27 + $0x18] sm:$0xff] }
 0x76f   : > { %v6082_v33 = vmul.f32 %v16499_v22, %v20236_v3  ;;  %v6083_v18 = vmul.f32 %v16499_v22, %v20237_v23  ;;  %v6084_v53 = vmul.f32 %v16499_v22, %v20238_v29  ;;  %v6085_v12 = vmul.f32 %v16499_v22, %v20239_v7  ;;  %v20240_v31 = vld [vmem:[#allocation54_spill] sm:$0xff]  ;;  %v20242_v3 = vld [vmem:[#allocation63_spill] sm:$0xff]  ;;  %v6049_v7 = vld [vmem:[%s16955_s27 + $0x38] sm:$0xff] }
 0x770   : > { %v6086_v62 = vmul.f32 %v16499_v22, %v20240_v31  ;;  %v6087_v35 = vmul.f32 %v16499_v22, %v20241_v60  ;;  %v6088_v17 = vmul.f32 %v16499_v22, %v19053_v42  ;;  %v6089_v27 = vmul.f32 %v16499_v22, %v20242_v3  ;;  %v6048_v23 = vld [vmem:[%s16955_s27 + $0x30] sm:$0xff]  ;;  %v6046_v29 = vld [vmem:[%s16955_s27 + $0x20] sm:$0xff] }
 0x771   : > { %v6090_v46 = vmul.f32 %v16499_v22, %v20243_v4  ;;  %v6091_v54 = vmul.f32 %v16499_v22, %v20244_v0  ;;  %v6092_v11 = vmul.f32 %v16499_v22, %v20245_v58  ;;  %v20246_v31 = vld [vmem:[#allocation68_spill] sm:$0xff]  ;;  %v6050_v3 = vld [vmem:[%s16955_s27 + $0x40] sm:$0xff]  ;;  %v6094_v63 = vmul.f32 %v16499_v22, %v20247_v34  ;;  %v6051_v0 = vld [vmem:[%s16955_s27 + $0x48] sm:$0xff] }
 0x772   : > { %v6093_v60 = vmul.f32 %v16499_v22, %v20246_v31  ;;  %v6052_v42 = vld [vmem:[%s16955_s27 + $0x50] sm:$0xff]  ;;  %v6095_v14 = vmul.f32 %v16499_v22, %v20248_v43  ;;  %v6096_v47 = vmul.f32 %v16499_v22, %v20249_v48  ;;  %v6097_v4 = vmul.f32 %v16499_v22, %v20250_v16  ;;  %v20251_v31 = vld [vmem:[#allocation73_spill] sm:$0xff]  ;;  %v6055_v48 = vld [vmem:[%s16955_s27 + $0x68] sm:$0xff] }
 0x773   : > { %v6056_v58 = vld [vmem:[%s16955_s27 + $0x70] sm:$0xff]  ;;  %v6098_v1 = vmul.f32 %v16499_v22, %v20251_v31  ;;  %v6099_v51 = vmul.f32 %v16499_v22, %v20252_v9  ;;  %v6100_v41 = vmul.f32 %v16499_v22, %v19126_v56  ;;  %v6101_v34 = vmul.f32 %v16499_v22, %v19130_v44  ;;  %v6057_v43 = vld [vmem:[%s16955_s27 + $0x78] sm:$0xff]  ;;  %v6059_v56 = vld [vmem:[%s16955_s27 + $0x88] sm:$0xff] }
 0x774   : > { %v6102_v16 = vmul.f32 %v16499_v22, %v19136_v10  ;;  %v6103_v6 = vmul.f32 %v16499_v22, %v19143_v2  ;;  %v6104_v13 = vmul.f32 %v16499_v22, %v19148_v57  ;;  %v6105_v31 = vmul.f32 %v16499_v22, %v19152_v55  ;;  %v6061_v9 = vld [vmem:[%s16955_s27 + $0x98] sm:$0xff]  ;;  %v6064_v10 = vld [vmem:[%s16955_s27 + $0xb0] sm:$0xff]  ;;  %v6062_v2 = vld [vmem:[%s16955_s27 + $0xa0] sm:$0xff] }
 0x775   : > { %v6106_v44 = vadd.f32 %v6074_v8, %v6042_v37  ;;  %v6107_v30 = vadd.f32 %v6075_v25, %v6043_v15  ;;  %v6108_v40 = vadd.f32 %v6076_v5, %v6044_v19  ;;  %v6109_v59 = vadd.f32 %v6077_v39, %v6045_v52  ;;  %14993 = vmatmul.mubr.bf16.gmra.mrb[52].mxu1 %v18824_v49  ;;  %v6065_v57 = vld [vmem:[%s16955_s27 + $0xb8] sm:$0xff]  ;;  %v20253_v8 = vld [vmem:[#allocation19_spill] sm:$0xff]  ;;  %v6066_v25 = vld [vmem:[%s16955_s27 + $0xc0] sm:$0xff] }
 0x776   : > { %v6110_v50 = vadd.f32 %v6078_v38, %v6046_v29  ;;  %v6111_v55 = vadd.f32 %v6079_v20, %v6047_v32  ;;  %v6112_v22 = vadd.f32 %v6080_v24, %v6048_v23  ;;  %v6113_v61 = vadd.f32 %v6081_v45, %v6049_v7  ;;  %14996 = vmatprep.mubr.bf16.mxu1 %v20253_v8  ;;  %v6063_v37 = vld [vmem:[%s16955_s27 + $0xa8] sm:$0xff]  ;;  %v6068_v15 = vld [vmem:[%s16955_s27 + $0xd0] sm:$0xff]  ;;  %v6069_v52 = vld [vmem:[%s16955_s27 + $0xd8] sm:$0xff] }
 0x777   : > { %v6114_v5 = vadd.f32 %v6082_v33, %v6050_v3  ;;  %v6115_v49 = vadd.f32 %v6083_v18, %v6051_v0  ;;  %v6116_v39 = vadd.f32 %v6084_v53, %v6052_v42  ;;  %v6117_v19 = vadd.f32 %v6085_v12, %v6053_v36  ;;  %v6067_v29 = vld [vmem:[%s16955_s27 + $0xc8] sm:$0xff]  ;;  %v6072_v38 = vld [vmem:[%s16955_s27 + $0xf0] sm:$0xff]  ;;  %v6070_v45 = vld [vmem:[%s16955_s27 + $0xe0] sm:$0xff] }
 0x778   : > { %v6118_v20 = vadd.f32 %v6086_v62, %v6054_v28  ;;  %v6119_v32 = vadd.f32 %v6087_v35, %v6055_v48  ;;  %v6120_v23 = vadd.f32 %v6088_v17, %v6056_v58  ;;  %v6121_v24 = vadd.f32 %v6089_v27, %v6057_v43  ;;  %v6073_v7 = vld [vmem:[%s16955_s27 + $0xf8] sm:$0xff]  ;;  %v6071_v8 = vld [vmem:[%s16955_s27 + $0xe8] sm:$0xff] }
 0x779   : > { %v19299_v3 = vadd.f32 %v6090_v46, %v6058_v26  ;;  %v19301_v33 = vadd.f32 %v6091_v54, %v6059_v56  ;;  %v19303_v0 = vadd.f32 %v6092_v11, %v6060_v21  ;;  %v19305_v18 = vadd.f32 %v6093_v60, %v6061_v9  ;;  %v20254_v35 = vld [vmem:[#allocation20_spill] sm:$0xff] }
 0x77a   : > { %v19307_v53 = vadd.f32 %v6094_v63, %v6062_v2  ;;  %v19309_v36 = vadd.f32 %v6095_v14, %v6063_v37  ;;  %v19311_v12 = vadd.f32 %v6096_v47, %v6064_v10  ;;  %v19313_v28 = vadd.f32 %v6097_v4, %v6065_v57  ;;  %v20255_v4 = vld [vmem:[#allocation75_spill] sm:$0xff] }
 0x77b   : > { %v19315_v17 = vadd.f32 %v6098_v1, %v6066_v25  ;;  %v19317_v62 = vadd.f32 %v6099_v51, %v6067_v29  ;;  %v19319_v26 = vadd.f32 %v6100_v41, %v6068_v15  ;;  %v19321_v54 = vadd.f32 %v6101_v34, %v6069_v52  ;;  %v20259_v52 = vld [vmem:[#allocation43_spill] sm:$0xff]  ;;  %v20260_v29 = vld [vmem:[#allocation77_spill] sm:$0xff] }
 0x77c   : > { %v19323_v21 = vadd.f32 %v6102_v16, %v6070_v45  ;;  %v19325_v11 = vadd.f32 %v6103_v6, %v6071_v8  ;;  %v19327_v63 = vadd.f32 %v6104_v13, %v6072_v38  ;;  %v19329_v14 = vadd.f32 %v6105_v31, %v6073_v7  ;;  %v16490_v38 = vld [vmem:[#allocation8 + $0x210] sm:$0xff]   ;;  %v16493_v45 = vld [vmem:[#allocation8 + $0x228] sm:$0xff]   ;;  %v20263_v7 = vld [vmem:[#allocation29_spill] sm:$0xff] }
 0x77d   : > { %v6138_v47 = vmax.f32 %v6106_v44, 0.0  ;;  %v6139_v46 = vmax.f32 %v6107_v30, 0.0  ;;  %v6140_v27 = vmax.f32 %v6108_v40, 0.0  ;;  %v6141_v1 = vmax.f32 %v6109_v59, 0.0  ;;  %14997 = vmatmul.mubr.bf16.gmra.mrb[56].mxu1 %v20254_v35  ;;  %v20264_v8 = vld [vmem:[#allocation28_spill] sm:$0xff]  ;;  %v20283_v35 = vld [vmem:[#allocation46_spill] sm:$0xff] }
 0x77e   : > { %v6142_v51 = vmax.f32 %v6110_v50, 0.0  ;;  %v6143_v41 = vmax.f32 %v6111_v55, 0.0  ;;  %v6144_v60 = vmax.f32 %v6112_v22, 0.0  ;;  %v6145_v42 = vmax.f32 %v6113_v61, 0.0  ;;  %15000 = vmatprep.mubr.bf16.mxu1 %v20255_v4  ;;  %v19419_v4 = vld [vmem:[#allocation9] ss:$0 sm:$0xff] }
 0x77f   : > { %v6146_v58 = vmax.f32 %v6114_v5, 0.0  ;;  %v6147_v6 = vmax.f32 %v6115_v49, 0.0  ;;  %v6148_v34 = vmax.f32 %v6116_v39, 0.0  ;;  %v6149_v13 = vmax.f32 %v6117_v19, 0.0  ;;  %6170 = vst [vmem:[%s19335_s21] sm:$0xff] %v6138_v47  ;;  %6171 = vst [vmem:[%s19335_s21 + $0x8] sm:$0xff] %v6139_v46  ;;  %v20257_v49 = vld [vmem:[#allocation41_spill] sm:$0xff] }
 0x780   : > { %6172 = vst [vmem:[%s19335_s21 + $0x10] sm:$0xff] %v6140_v27  ;;  %6173 = vst [vmem:[%s19335_s21 + $0x18] sm:$0xff] %v6141_v1  ;;  %v6150_v40 = vmax.f32 %v6118_v20, 0.0  ;;  %v6151_v30 = vmax.f32 %v6119_v32, 0.0  ;;  %v6152_v61 = vmax.f32 %v6120_v23, 0.0  ;;  %v6153_v50 = vmax.f32 %v6121_v24, 0.0 }
 0x781   : > { %6174 = vst [vmem:[%s19335_s21 + $0x20] sm:$0xff] %v6142_v51  ;;  %6175 = vst [vmem:[%s19335_s21 + $0x28] sm:$0xff] %v6143_v41  ;;  %v6154_v59 = vmax.f32 %v19299_v3, 0.0  ;;  %v6155_v43 = vmax.f32 %v19301_v33, 0.0  ;;  %v6156_v48 = vmax.f32 %v19303_v0, 0.0  ;;  %v6157_v16 = vmax.f32 %v19305_v18, 0.0 }
 0x782   : > { %6176 = vst [vmem:[%s19335_s21 + $0x30] sm:$0xff] %v6144_v60  ;;  %6177 = vst [vmem:[%s19335_s21 + $0x38] sm:$0xff] %v6145_v42  ;;  %v6158_v31 = vmax.f32 %v19307_v53, 0.0  ;;  %v6159_v9 = vmax.f32 %v19309_v36, 0.0  ;;  %v6160_v56 = vmax.f32 %v19311_v12, 0.0  ;;  %v6161_v44 = vmax.f32 %v19313_v28, 0.0 }
 0x783   : > { %6178 = vst [vmem:[%s19335_s21 + $0x40] sm:$0xff] %v6146_v58  ;;  %6179 = vst [vmem:[%s19335_s21 + $0x48] sm:$0xff] %v6147_v6  ;;  %v6162_v10 = vmax.f32 %v19315_v17, 0.0  ;;  %v6163_v2 = vmax.f32 %v19317_v62, 0.0  ;;  %v6164_v57 = vmax.f32 %v19319_v26, 0.0  ;;  %v6165_v55 = vmax.f32 %v19321_v54, 0.0 }
 0x784   : > { %6180 = vst [vmem:[%s19335_s21 + $0x50] sm:$0xff] %v6148_v34  ;;  %6181 = vst [vmem:[%s19335_s21 + $0x58] sm:$0xff] %v6149_v13  ;;  %v6166_v22 = vmax.f32 %v19323_v21, 0.0  ;;  %v6167_v37 = vmax.f32 %v19325_v11, 0.0  ;;  %v6168_v15 = vmax.f32 %v19327_v63, 0.0  ;;  %v6169_v25 = vmax.f32 %v19329_v14, 0.0 }
 0x785   : > { %6182 = vst [vmem:[%s19335_s21 + $0x60] sm:$0xff] %v6150_v40  ;;  %6183 = vst [vmem:[%s19335_s21 + $0x68] sm:$0xff] %v6151_v30  ;;  %v20256_v5 = vmov 0   ;;  %v16489_v39 = vld [vmem:[#allocation8 + $0x208] sm:$0xff]   ;;  %v20258_v19 = vld [vmem:[#allocation44_spill] sm:$0xff] }
 0x786   : > { %6184 = vst [vmem:[%s19335_s21 + $0x70] sm:$0xff] %v6152_v61  ;;  %6185 = vst [vmem:[%s19335_s21 + $0x78] sm:$0xff] %v6153_v50  ;;  %15001 = vmatmul.mubr.bf16.gmra.mrb[60].mxu1 %v20256_v5  ;;  %v16491_v20 = vld [vmem:[#allocation8 + $0x218] sm:$0xff]   ;;  %v20261_v32 = vld [vmem:[#allocation50_spill] sm:$0xff] }
 0x787   : > { %6186 = vst [vmem:[%s19335_s21 + $0x80] sm:$0xff] %v6154_v59  ;;  %6187 = vst [vmem:[%s19335_s21 + $0x88] sm:$0xff] %v6155_v43  ;;  %15020 = vmatprep.mubr.bf16.mxu1 %v20257_v49  ;;  %v20262_v23 = vld [vmem:[#allocation45_spill] sm:$0xff]  ;;  %v16494_v3 = vld [vmem:[#allocation8 + $0x230] sm:$0xff]  }
 0x788   : > { %6188 = vst [vmem:[%s19335_s21 + $0x90] sm:$0xff] %v6156_v48  ;;  %6189 = vst [vmem:[%s19335_s21 + $0x98] sm:$0xff] %v6157_v16  ;;  %v16492_v24 = vld [vmem:[#allocation8 + $0x220] sm:$0xff]   ;;  %v16495_v33 = vld [vmem:[#allocation8 + $0x238] sm:$0xff]  }
 0x789   : > { %6190 = vst [vmem:[%s19335_s21 + $0xa0] sm:$0xff] %v6158_v31  ;;  %6191 = vst [vmem:[%s19335_s21 + $0xa8] sm:$0xff] %v6159_v9  ;;  %v20265_v0 = vld [vmem:[#allocation31_spill] sm:$0xff]  ;;  %v20266_v18 = vld [vmem:[#allocation30_spill] sm:$0xff] }
 0x78a   : > { %6192 = vst [vmem:[%s19335_s21 + $0xb0] sm:$0xff] %v6160_v56  ;;  %6193 = vst [vmem:[%s19335_s21 + $0xb8] sm:$0xff] %v6161_v44  ;;  %v20267_v53 = vld [vmem:[#allocation33_spill] sm:$0xff]  ;;  %v20268_v36 = vld [vmem:[#allocation32_spill] sm:$0xff] }
 0x78b   : > { %6194 = vst [vmem:[%s19335_s21 + $0xc0] sm:$0xff] %v6162_v10  ;;  %6195 = vst [vmem:[%s19335_s21 + $0xc8] sm:$0xff] %v6163_v2  ;;  %v20269_v12 = vld [vmem:[#allocation35_spill] sm:$0xff]  ;;  %v20270_v28 = vld [vmem:[#allocation34_spill] sm:$0xff] }
 0x78c   : > { %6196 = vst [vmem:[%s19335_s21 + $0xd0] sm:$0xff] %v6164_v57  ;;  %6197 = vst [vmem:[%s19335_s21 + $0xd8] sm:$0xff] %v6165_v55  ;;  %v20271_v17 = vld [vmem:[#allocation37_spill] sm:$0xff]  ;;  %v20272_v62 = vld [vmem:[#allocation36_spill] sm:$0xff] }
 0x78d   : > { %6198 = vst [vmem:[%s19335_s21 + $0xe0] sm:$0xff] %v6166_v22  ;;  %6199 = vst [vmem:[%s19335_s21 + $0xe8] sm:$0xff] %v6167_v37  ;;  %v20273_v26 = vld [vmem:[#allocation21_spill] sm:$0xff]  ;;  %v20274_v54 = vld [vmem:[#allocation22_spill] sm:$0xff] }
 0x78e   : > { %6200 = vst [vmem:[%s19335_s21 + $0xf0] sm:$0xff] %v6168_v15  ;;  %6201 = vst [vmem:[%s19335_s21 + $0xf8] sm:$0xff] %v6169_v25  ;;  %15021 = vmatmul.mubr.bf16.vlgmr.msra.gmra.mrb[32].mxu1 %v20258_v19  ;;  %v20275_v21 = vld [vmem:[#allocation23_spill] sm:$0xff]  ;;  %v20276_v11 = vld [vmem:[#allocation24_spill] sm:$0xff] }
 0x78f   : > { %15024 = vmatprep.mubr.bf16.mxu1 %v20259_v52  ;;  %15053 = vmatpush3.bf16.msra.mxu1 %v20260_v29  ;;  %v20277_v63 = vld [vmem:[#allocation55_spill] sm:$0xff]  ;;  %v20278_v14 = vld [vmem:[#allocation25_spill] sm:$0xff]  ;;  %v20279_v47 = vld [vmem:[#allocation56_spill] sm:$0xff] }
 0x790   : > { %15054 = vmatprep.subr.bf16.mxu1 %v16489_v39  ;;  %v20280_v46 = vld [vmem:[#allocation59_spill] sm:$0xff]  ;;  %v20282_v1 = vld [vmem:[#allocation52_spill] sm:$0xff]  ;;  %v20284_v51 = vld [vmem:[#allocation49_spill] sm:$0xff] }
 0x791   : > { %v20281_v27 = vld [vmem:[#allocation39_spill] sm:$0xff]  ;;  %v20285_v41 = vld [vmem:[#allocation62_spill] sm:$0xff]  ;;  %v20286_v60 = vld [vmem:[#allocation65_spill] sm:$0xff] }
 0x792   : > { %v20287_v42 = vld [vmem:[#allocation18_spill] sm:$0xff]  ;;  %v19425_v40 = vld [vmem:[%s19779_s6] ss:$0 sm:$0xff] }
 0x793   : > { %15055 = vmatpush3.bf16.msra.mxu1 %v16489_v39 }
 0x794   : > { %15056 = vmatprep.subr.bf16.mxu1 %v16490_v38 }
 0x796   : > { %15025 = vmatmul.mubr.bf16.gmra.mrb[36].mxu1 %v20261_v32 }
 0x797   : > { %15028 = vmatprep.mubr.bf16.mxu1 %v20262_v23  ;;  %15057 = vmatpush3.bf16.msra.mxu1 %v16490_v38 }
 0x798   : > { %15058 = vmatprep.subr.bf16.mxu1 %v16491_v20 }
 0x79b   : > { %15059 = vmatpush3.bf16.msra.mxu1 %v16491_v20 }
 0x79c   : > { %15060 = vmatprep.subr.bf16.mxu1 %v16492_v24 }
 0x79e   : > { %15029 = vmatmul.mubr.bf16.gmra.mrb[40].mxu1 %v20263_v7 }
 0x79f   : > { %15032 = vmatprep.mubr.bf16.mxu1 %v20264_v8  ;;  %15061 = vmatpush3.bf16.msra.mxu1 %v16492_v24 }
 0x7a0   : > { %15062 = vmatprep.subr.bf16.mxu1 %v16493_v45 }
 0x7a3   : > { %15063 = vmatpush3.bf16.msra.mxu1 %v16493_v45 }
 0x7a4   : > { %15064 = vmatprep.subr.bf16.mxu1 %v16494_v3 }
 0x7a6   : > { %15033 = vmatmul.mubr.bf16.gmra.mrb[44].mxu1 %v20265_v0 }
 0x7a7   : > { %15036 = vmatprep.mubr.bf16.mxu1 %v20266_v18  ;;  %15065 = vmatpush3.bf16.msra.mxu1 %v16494_v3 }
 0x7a8   : > { %15066 = vmatprep.subr.bf16.mxu1 %v16495_v33 }
 0x7ab   : > { %15067 = vmatpush3.bf16.msra.mxu1 %v16495_v33 }
 0x7ae   : > { %15037 = vmatmul.mubr.bf16.gmra.mrb[48].mxu1 %v20267_v53 }
 0x7af   : > { %15040 = vmatprep.mubr.bf16.mxu1 %v20268_v36 }
 0x7b6   : > { %15041 = vmatmul.mubr.bf16.gmra.mrb[52].mxu1 %v20269_v12 }
 0x7b7   : > { %15044 = vmatprep.mubr.bf16.mxu1 %v20270_v28 }
 0x7be   : > { %15045 = vmatmul.mubr.bf16.gmra.mrb[56].mxu1 %v20271_v17 }
 0x7bf   : > { %15048 = vmatprep.mubr.bf16.mxu1 %v20272_v62 }
 0x7c6   : > { %15049 = vmatmul.mubr.bf16.gmra.mrb[60].mxu1 %v20256_v5 }
 0x7c7   : > { %15068 = vmatprep.mubr.bf16.mxu1 %v20273_v26 }
 0x7ce   : > { %15069 = vmatmul.mubr.bf16.vlgmr.msra.gmra.mrb[32].mxu1 %v20274_v54 }
 0x7cf   : > { %15072 = vmatprep.mubr.bf16.mxu1 %v20275_v21 }
 0x7d6   : > { %15073 = vmatmul.mubr.bf16.gmra.mrb[36].mxu1 %v20276_v11 }
 0x7d7   : > { %15076 = vmatprep.mubr.bf16.mxu1 %v20277_v63 }
 0x7de   : > { %15077 = vmatmul.mubr.bf16.gmra.mrb[40].mxu1 %v20278_v14 }
 0x7df   : > { %15080 = vmatprep.mubr.bf16.mxu1 %v20279_v47 }
 0x7e6   : > { %15081 = vmatmul.mubr.bf16.gmra.mrb[44].mxu1 %v20280_v46 }
 0x7e7   : > { %15084 = vmatprep.mubr.bf16.mxu1 %v20281_v27 }
 0x7ee   : > { %15085 = vmatmul.mubr.bf16.gmra.mrb[48].mxu1 %v20282_v1 }
 0x7ef   : > { %15088 = vmatprep.mubr.bf16.mxu1 %v20283_v35 }
 0x7f6   : > { %15089 = vmatmul.mubr.bf16.gmra.mrb[52].mxu1 %v20284_v51 }
 0x7f7   : > { %15092 = vmatprep.mubr.bf16.mxu1 %v20285_v41 }
 0x7fe   : > { %15093 = vmatmul.mubr.bf16.gmra.mrb[56].mxu1 %v20286_v60 }
 0x7ff   : > { %15096 = vmatprep.mubr.bf16.mxu1 %v20287_v42 }
 0x806   : > { %15097 = vmatmul.mubr.bf16.gmra.mrb[60].mxu1 %v20256_v5 }
 0x8a1   : > { %v15070_v58 = vpop.f32.mrb[32].mxu1 }
 0x8a2   : > { %v11516_v6 = vpop.f32.mrb[33].mxu1  ;;  %v11684_v61 = vmul.f32 %v15070_v58, %v19419_v4 }
 0x8a3   : > { %v11682_v34 = vmul.f32 %v19419_v4, %v11516_v6  ;;  %v15071_v13 = vpop.f32.mrb[34].mxu1 }
 0x8a4   : > { %v11519_v30 = vpop.f32.mrb[35].mxu1  ;;  %v11685_v43 = vmul.f32 %v15071_v13, %v19419_v4  ;;  %v19437_v16 = vadd.f32 %v19425_v40, %v11684_v61 }
 0x8a5   : > { %v11683_v50 = vmul.f32 %v19419_v4, %v11519_v30  ;;  %v19430_v59 = vadd.f32 %v19425_v40, %v11682_v34 }
 0x8a6   : > { %v19442_v44 = vadd.f32 %v19425_v40, %v11685_v43 }
 0x8a7   : > { %v19434_v48 = vadd.f32 %v19425_v40, %v11683_v50 }
 0x8a9   : > { %v11753_v31 = vadd.f32 %v19434_v48, %v19430_v59  ;;  %v15074_v9 = vpop.f32.mrb[36].mxu1 }
 0x8aa   : > { %v11532_v56 = vpop.f32.mrb[37].mxu1  ;;  %v11688_v22 = vmul.f32 %v15074_v9, %v19419_v4 }
 0x8ab   : > { %v11754_v10 = vadd.f32 %v11753_v31, %v19437_v16  ;;  %v11686_v2 = vmul.f32 %v19419_v4, %v11532_v56  ;;  %v15075_v57 = vpop.f32.mrb[38].mxu1 }
 0x8ac   : > { %v11535_v55 = vpop.f32.mrb[39].mxu1  ;;  %v11689_v49 = vmul.f32 %v15075_v57, %v19419_v4  ;;  %v19458_v19 = vadd.f32 %v19425_v40, %v11688_v22 }
 0x8ad   : > { %v19448_v37 = vadd.f32 %v19425_v40, %v11686_v2  ;;  %v11755_v15 = vadd.f32 %v11754_v10, %v19442_v44  ;;  %v11687_v25 = vmul.f32 %v19419_v4, %v11535_v55 }
 0x8ae   : > { %v19462_v20 = vadd.f32 %v19425_v40, %v11689_v49 }
 0x8af   : > { %v11756_v5 = vadd.f32 %v11755_v15, %v19448_v37  ;;  %v19455_v39 = vadd.f32 %v19425_v40, %v11687_v25 }
 0x8b1   : > { %v11757_v52 = vadd.f32 %v11756_v5, %v19455_v39  ;;  %v15078_v29 = vpop.f32.mrb[40].mxu1 }
 0x8b2   : > { %v11548_v38 = vpop.f32.mrb[41].mxu1  ;;  %v11692_v7 = vmul.f32 %v15078_v29, %v19419_v4 }
 0x8b3   : > { %v11758_v32 = vadd.f32 %v11757_v52, %v19458_v19  ;;  %v11690_v23 = vmul.f32 %v19419_v4, %v11548_v38  ;;  %v15079_v24 = vpop.f32.mrb[42].mxu1 }
 0x8b4   : > { %v11551_v45 = vpop.f32.mrb[43].mxu1  ;;  %v11693_v18 = vmul.f32 %v15079_v24, %v19419_v4  ;;  %v19478_v36 = vadd.f32 %v19425_v40, %v11692_v7 }
 0x8b5   : > { %v19468_v8 = vadd.f32 %v19425_v40, %v11690_v23  ;;  %v11759_v3 = vadd.f32 %v11758_v32, %v19462_v20  ;;  %v11691_v33 = vmul.f32 %v19419_v4, %v11551_v45 }
 0x8b6   : > { %v19482_v62 = vadd.f32 %v19425_v40, %v11693_v18 }
 0x8b7   : > { %v11760_v0 = vadd.f32 %v11759_v3, %v19468_v8  ;;  %v19475_v53 = vadd.f32 %v19425_v40, %v11691_v33 }
 0x8b9   : > { %v11761_v12 = vadd.f32 %v11760_v0, %v19475_v53  ;;  %v15082_v28 = vpop.f32.mrb[44].mxu1 }
 0x8ba   : > { %v11564_v17 = vpop.f32.mrb[45].mxu1  ;;  %v11696_v63 = vmul.f32 %v15082_v28, %v19419_v4 }
 0x8bb   : > { %v11762_v26 = vadd.f32 %v11761_v12, %v19478_v36  ;;  %v11694_v54 = vmul.f32 %v19419_v4, %v11564_v17  ;;  %v15083_v21 = vpop.f32.mrb[46].mxu1 }
 0x8bc   : > { %v11567_v11 = vpop.f32.mrb[47].mxu1  ;;  %v11697_v1 = vmul.f32 %v15083_v21, %v19419_v4  ;;  %v19498_v51 = vadd.f32 %v19425_v40, %v11696_v63 }
 0x8bd   : > { %v19488_v14 = vadd.f32 %v19425_v40, %v11694_v54  ;;  %v11763_v47 = vadd.f32 %v11762_v26, %v19482_v62  ;;  %v11695_v46 = vmul.f32 %v19419_v4, %v11567_v11 }
 0x8be   : > { %v19502_v58 = vadd.f32 %v19425_v40, %v11697_v1 }
 0x8bf   : > { %v11764_v27 = vadd.f32 %v11763_v47, %v19488_v14  ;;  %v19495_v35 = vadd.f32 %v19425_v40, %v11695_v46 }
 0x8c1   : > { %v11765_v41 = vadd.f32 %v11764_v27, %v19495_v35  ;;  %v15086_v60 = vpop.f32.mrb[48].mxu1 }
 0x8c2   : > { %v11580_v42 = vpop.f32.mrb[49].mxu1  ;;  %v11700_v61 = vmul.f32 %v15086_v60, %v19419_v4 }
 0x8c3   : > { %v11766_v6 = vadd.f32 %v11765_v41, %v19498_v51  ;;  %v11698_v34 = vmul.f32 %v19419_v4, %v11580_v42  ;;  %v15087_v13 = vpop.f32.mrb[50].mxu1 }
 0x8c4   : > { %v11583_v30 = vpop.f32.mrb[51].mxu1  ;;  %v11701_v56 = vmul.f32 %v15087_v13, %v19419_v4  ;;  %v19518_v2 = vadd.f32 %v19425_v40, %v11700_v61 }
 0x8c5   : > { %v19508_v50 = vadd.f32 %v19425_v40, %v11698_v34  ;;  %v11767_v43 = vadd.f32 %v11766_v6, %v19502_v58  ;;  %v11699_v31 = vmul.f32 %v19419_v4, %v11583_v30 }
 0x8c6   : > { %v19522_v15 = vadd.f32 %v19425_v40, %v11701_v56 }
 0x8c7   : > { %v11768_v9 = vadd.f32 %v11767_v43, %v19508_v50  ;;  %v19515_v10 = vadd.f32 %v19425_v40, %v11699_v31 }
 0x8c9   : > { %v11769_v57 = vadd.f32 %v11768_v9, %v19515_v10  ;;  %v15090_v55 = vpop.f32.mrb[52].mxu1 }
 0x8ca   : > { %v11596_v22 = vpop.f32.mrb[53].mxu1  ;;  %v11704_v29 = vmul.f32 %v15090_v55, %v19419_v4 }
 0x8cb   : > { %v11770_v25 = vadd.f32 %v11769_v57, %v19518_v2  ;;  %v11702_v5 = vmul.f32 %v19419_v4, %v11596_v22  ;;  %v15091_v49 = vpop.f32.mrb[54].mxu1 }
 0x8cc   : > { %v11599_v52 = vpop.f32.mrb[55].mxu1  ;;  %v11705_v45 = vmul.f32 %v15091_v49, %v19419_v4  ;;  %v19538_v3 = vadd.f32 %v19425_v40, %v11704_v29 }
 0x8cd   : > { %v19528_v38 = vadd.f32 %v19425_v40, %v11702_v5  ;;  %v11771_v32 = vadd.f32 %v11770_v25, %v19522_v15  ;;  %v11703_v23 = vmul.f32 %v19419_v4, %v11599_v52 }
 0x8ce   : > { %v19542_v12 = vadd.f32 %v19425_v40, %v11705_v45 }
 0x8cf   : > { %v11772_v24 = vadd.f32 %v11771_v32, %v19528_v38  ;;  %v19535_v7 = vadd.f32 %v19425_v40, %v11703_v23 }
 0x8d1   : > { %v11773_v33 = vadd.f32 %v11772_v24, %v19535_v7  ;;  %v15094_v0 = vpop.f32.mrb[56].mxu1 }
 0x8d2   : > { %v11612_v18 = vpop.f32.mrb[57].mxu1  ;;  %v11708_v21 = vmul.f32 %v15094_v0, %v19419_v4 }
 0x8d3   : > { %v11774_v28 = vadd.f32 %v11773_v33, %v19538_v3  ;;  %v11706_v17 = vmul.f32 %v19419_v4, %v11612_v18  ;;  %v15095_v26 = vpop.f32.mrb[58].mxu1  ;;  %v11791_v18 = vld [vmem:[%s19780_s7] sm:$0xff] }
 0x8d4   : > { %v11615_v54 = vpop.f32.mrb[59].mxu1  ;;  %v11709_v27 = vmul.f32 %v15095_v26, %v19419_v4  ;;  %v19558_v41 = vadd.f32 %v19425_v40, %v11708_v21 }
 0x8d5   : > { %v19548_v11 = vadd.f32 %v19425_v40, %v11706_v17  ;;  %v11775_v63 = vadd.f32 %v11774_v28, %v19542_v12  ;;  %v11707_v47 = vmul.f32 %v19419_v4, %v11615_v54  ;;  %v20288_v54 = vld [vmem:[#allocation76_spill] sm:$0xff] }
 0x8d6   : > { %v19562_v34 = vadd.f32 %v19425_v40, %v11709_v27 }
 0x8d7   : > { %v11776_v46 = vadd.f32 %v11775_v63, %v19548_v11  ;;  %v19555_v1 = vadd.f32 %v19425_v40, %v11707_v47 }
 0x8d9   : > { %v11777_v60 = vadd.f32 %v11776_v46, %v19555_v1  ;;  %v15098_v42 = vpop.f32.mrb[60].mxu1 }
 0x8da   : > { %v11628_v6 = vpop.f32.mrb[61].mxu1  ;;  %v11712_v31 = vmul.f32 %v15098_v42, %v19419_v4 }
 0x8db   : > { %v11778_v13 = vadd.f32 %v11777_v60, %v19558_v41  ;;  %v11710_v30 = vmul.f32 %v19419_v4, %v11628_v6  ;;  %v15099_v61 = vpop.f32.mrb[62].mxu1 }
 0x8dc   : > { %v11631_v43 = vpop.f32.mrb[63].mxu1  ;;  %v11713_v22 = vmul.f32 %v15099_v61, %v19419_v4  ;;  %v19578_v5 = vadd.f32 %v19425_v40, %v11712_v31 }
 0x8dd   : > { %v19568_v9 = vadd.f32 %v19425_v40, %v11710_v30  ;;  %v11779_v56 = vadd.f32 %v11778_v13, %v19562_v34  ;;  %v11711_v57 = vmul.f32 %v19419_v4, %v11631_v43 }
 0x8de   : > { %v19582_v52 = vadd.f32 %v19425_v40, %v11713_v22 }
 0x8df   : > { %v11780_v55 = vadd.f32 %v11779_v56, %v19568_v9  ;;  %v19575_v25 = vadd.f32 %v19425_v40, %v11711_v57 }
 0x8e1   : > { %v11781_v49 = vadd.f32 %v11780_v55, %v19575_v25 }
 0x8e3   : > { %v11782_v29 = vadd.f32 %v11781_v49, %v19578_v5 }
 0x8e5   : > { %v11783_v32 = vadd.f32 %v11782_v29, %v19582_v52 }
 0x8e7   : > { %v11784_v23 = vrot.slane %v11783_v32, 4 }
 0x8e9   : > { %v11785_v24 = vadd.f32 %v11784_v23, %v11783_v32  ;;  %v12436_v32 = vld [vmem:[%s16955_s27 + $0x110] sm:$0xff]  ;;  %v12435_v23 = vld [vmem:[%s16955_s27 + $0x108] sm:$0xff] }
 0x8eb   : > { %v11786_v45 = vrot.slane %v11785_v24, 2 }
 0x8ed   : > { %v11787_v33 = vadd.f32 %v11786_v45, %v11785_v24  ;;  %v12439_v45 = vld [vmem:[%s16955_s27 + $0x128] sm:$0xff] }
 0x8ef   : > { %v11788_v4 = vrot.slane %v11787_v33, 1 }
 0x8f1   : > { %v11789_v0 = vadd.f32 %v11788_v4, %v11787_v33 }
 0x8f3   : > { %v11790_v28 = vmul.f32 0.00390625, %v11789_v0 }
 0x8f5   : > { %v11792_v17 = vmul.f32 %v11791_v18, %v11790_v28 }
 0x8f7   : > { %11793 = vadd.xlane.f32.xlu0 %v11792_v17 }
 0x984   : > { %v11794_v26 = vpop.xlane.xlu0 %11793 }
 0x985   : > { %v11795_v40 = vmax.f32 %v11794_v26, 0.0  ;;  %v12446_v26 = vld [vmem:[%s16955_s27 + $0x160] sm:$0xff] }
 0x987   : > { %v11797_v21 = vmul.f32 %v11795_v40, %v20288_v54 }
 0x989   : > { %v11798_v63 = vrot.slane %v11797_v21, 4 }
 0x98b   : > { %v11799_v47 = vadd.f32 %v11798_v63, %v11797_v21  ;;  %v12452_v21 = vld [vmem:[%s16955_s27 + $0x190] sm:$0xff] }
 0x98d   : > { %v11800_v46 = vrot.slane %v11799_v47, 2 }
 0x98f   : > { %v11801_v27 = vadd.f32 %v11800_v46, %v11799_v47  ;;  %v12451_v46 = vld [vmem:[%s16955_s27 + $0x188] sm:$0xff] }
 0x991   : > { %v11802_v60 = vrot.slane %v11801_v27, 1 }
 0x993   : > { %v11803_v42 = vadd.f32 %v11802_v60, %v11801_v27 }
 0x995   : > { %v12433_v6 = vmul.f32 -1.442695, %v11803_v42 }
 0x997   : > { %16500 = vpow2.f32 %v12433_v6  ;;  %v12456_v6 = vld [vmem:[%s16955_s27 + $0x1b0] sm:$0xff] }
 0x9a1   : > { %v16501_v13 = vpop.eup %16500 }
 0x9a2   : > { %v11807_v30 = vadd.f32 1.0, %v16501_v13 }
 0x9a4   : > { %16502 = vrcp.f32 %v11807_v30 }
 0x9ae   : > { %v16503_v61 = vpop.eup %16502 }
 0x9af   : > { %v11842_v43 = vmul.f32 %v16503_v61, %v19430_v59  ;;  %v11843_v31 = vmul.f32 %v16503_v61, %v19434_v48  ;;  %v11844_v56 = vmul.f32 %v16503_v61, %v19437_v16  ;;  %v11845_v57 = vmul.f32 %v16503_v61, %v19442_v44 }
 0x9b0   : > { %v11846_v55 = vmul.f32 %v16503_v61, %v19448_v37  ;;  %v11847_v22 = vmul.f32 %v16503_v61, %v19455_v39  ;;  %v11848_v49 = vmul.f32 %v16503_v61, %v19458_v19  ;;  %v11849_v29 = vmul.f32 %v16503_v61, %v19462_v20  ;;  %v12434_v37 = vld [vmem:[%s16955_s27 + $0x100] sm:$0xff]  ;;  %v12437_v39 = vld [vmem:[%s16955_s27 + $0x118] sm:$0xff] }
 0x9b1   : > { %v11850_v59 = vmul.f32 %v16503_v61, %v19468_v8  ;;  %v11851_v48 = vmul.f32 %v16503_v61, %v19475_v53  ;;  %v11852_v16 = vmul.f32 %v16503_v61, %v19478_v36  ;;  %v11853_v44 = vmul.f32 %v16503_v61, %v19482_v62  ;;  %v12440_v53 = vld [vmem:[%s16955_s27 + $0x130] sm:$0xff]  ;;  %v12438_v36 = vld [vmem:[%s16955_s27 + $0x120] sm:$0xff]  ;;  %v12441_v62 = vld [vmem:[%s16955_s27 + $0x138] sm:$0xff] }
 0x9b2   : > { %v11854_v19 = vmul.f32 %v16503_v61, %v19488_v14  ;;  %v11855_v20 = vmul.f32 %v16503_v61, %v19495_v35  ;;  %v11856_v24 = vmul.f32 %v16503_v61, %v19498_v51  ;;  %v11857_v8 = vmul.f32 %v16503_v61, %v19502_v58  ;;  %v12444_v35 = vld [vmem:[%s16955_s27 + $0x150] sm:$0xff]  ;;  %v12442_v51 = vld [vmem:[%s16955_s27 + $0x140] sm:$0xff]  ;;  %v12445_v58 = vld [vmem:[%s16955_s27 + $0x158] sm:$0xff] }
 0x9b3   : > { %v11858_v33 = vmul.f32 %v16503_v61, %v19508_v50  ;;  %v11859_v4 = vmul.f32 %v16503_v61, %v19515_v10  ;;  %v11860_v0 = vmul.f32 %v16503_v61, %v19518_v2  ;;  %v11861_v14 = vmul.f32 %v16503_v61, %v19522_v15  ;;  %v12443_v10 = vld [vmem:[%s16955_s27 + $0x148] sm:$0xff]  ;;  %v12448_v2 = vld [vmem:[%s16955_s27 + $0x170] sm:$0xff] }
 0x9b4   : > { %v11862_v18 = vmul.f32 %v16503_v61, %v19528_v38  ;;  %v11863_v28 = vmul.f32 %v16503_v61, %v19535_v7  ;;  %v11864_v17 = vmul.f32 %v16503_v61, %v19538_v3  ;;  %v11865_v50 = vmul.f32 %v16503_v61, %v19542_v12  ;;  %v12449_v7 = vld [vmem:[%s16955_s27 + $0x178] sm:$0xff]  ;;  %v12447_v3 = vld [vmem:[%s16955_s27 + $0x168] sm:$0xff] }
 0x9b5   : > { %v11866_v15 = vmul.f32 %v16503_v61, %v19548_v11  ;;  %v11867_v40 = vmul.f32 %v16503_v61, %v19555_v1  ;;  %v11868_v54 = vmul.f32 %v16503_v61, %v19558_v41  ;;  %v11869_v38 = vmul.f32 %v16503_v61, %v19562_v34  ;;  %v12450_v1 = vld [vmem:[%s16955_s27 + $0x180] sm:$0xff]  ;;  %v12453_v41 = vld [vmem:[%s16955_s27 + $0x198] sm:$0xff] }
 0x9b6   : > { %v11870_v12 = vmul.f32 %v16503_v61, %v19568_v9  ;;  %v11871_v63 = vmul.f32 %v16503_v61, %v19575_v25  ;;  %v11872_v47 = vmul.f32 %v16503_v61, %v19578_v5  ;;  %v11873_v11 = vmul.f32 %v16503_v61, %v19582_v52  ;;  %v12454_v9 = vld [vmem:[%s16955_s27 + $0x1a0] sm:$0xff]  ;;  %v12457_v25 = vld [vmem:[%s16955_s27 + $0x1b8] sm:$0xff]  ;;  %v12455_v61 = vld [vmem:[%s16955_s27 + $0x1a8] sm:$0xff] }
 0x9b7   : > { %v11874_v34 = vadd.f32 %v12434_v37, %v11842_v43  ;;  %v11875_v27 = vadd.f32 %v12435_v23, %v11843_v31  ;;  %v11876_v60 = vadd.f32 %v12436_v32, %v11844_v56  ;;  %v11877_v42 = vadd.f32 %v12437_v39, %v11845_v57  ;;  %v12460_v37 = vld [vmem:[%s16955_s27 + $0x1d0] sm:$0xff]  ;;  %v12458_v43 = vld [vmem:[%s16955_s27 + $0x1c0] sm:$0xff]  ;;  %v12461_v57 = vld [vmem:[%s16955_s27 + $0x1d8] sm:$0xff] }
 0x9b8   : > { %v11878_v13 = vadd.f32 %v12438_v36, %v11846_v55  ;;  %v11879_v5 = vadd.f32 %v12439_v45, %v11847_v22  ;;  %v11880_v30 = vadd.f32 %v12440_v53, %v11848_v49  ;;  %v11881_v52 = vadd.f32 %v12441_v62, %v11849_v29  ;;  %v12459_v39 = vld [vmem:[%s16955_s27 + $0x1c8] sm:$0xff]  ;;  %v12464_v36 = vld [vmem:[%s16955_s27 + $0x1f0] sm:$0xff]  ;;  %v12462_v53 = vld [vmem:[%s16955_s27 + $0x1e0] sm:$0xff] }
 0x9b9   : > { %v11882_v23 = vadd.f32 %v12442_v51, %v11850_v59  ;;  %v11883_v31 = vadd.f32 %v12443_v10, %v11851_v48  ;;  %v11884_v56 = vadd.f32 %v12444_v35, %v11852_v16  ;;  %v11885_v32 = vadd.f32 %v12445_v58, %v11853_v44  ;;  %v12465_v29 = vld [vmem:[%s16955_s27 + $0x1f8] sm:$0xff]  ;;  %v12463_v62 = vld [vmem:[%s16955_s27 + $0x1e8] sm:$0xff]  ;;  %s12507_s27 = sshll.u32 %s16777_s13, 13 }
 0x9ba   : > { %v11886_v55 = vadd.f32 %v12446_v26, %v11854_v19  ;;  %v11887_v22 = vadd.f32 %v12447_v3, %v11855_v20  ;;  %v11888_v45 = vadd.f32 %v12448_v2, %v11856_v24  ;;  %v11889_v49 = vadd.f32 %v12449_v7, %v11857_v8  ;;  %s19711_s26 = scalar_lea.hbm %s20289_s9, %s12507_s27 }
 0x9bb   : > { %v11890_v51 = vadd.f32 %v12450_v1, %v11858_v33  ;;  %v11891_v59 = vadd.f32 %v12451_v46, %v11859_v4  ;;  %v11892_v10 = vadd.f32 %v12452_v21, %v11860_v0  ;;  %v11893_v48 = vadd.f32 %v12453_v41, %v11861_v14 }
 0x9bc   : > { %v19654_v16 = vadd.f32 %v12454_v9, %v11862_v18  ;;  %v19656_v35 = vadd.f32 %v12455_v61, %v11863_v28  ;;  %v19658_v44 = vadd.f32 %v12456_v6, %v11864_v17  ;;  %v19660_v58 = vadd.f32 %v12457_v25, %v11865_v50 }
 0x9bd   : > { %v19662_v19 = vadd.f32 %v12458_v43, %v11866_v15  ;;  %v19664_v20 = vadd.f32 %v12459_v39, %v11867_v40  ;;  %v19666_v24 = vadd.f32 %v12460_v37, %v11868_v54  ;;  %v19668_v8 = vadd.f32 %v12461_v57, %v11869_v38 }
 0x9be   : > { %v19670_v33 = vadd.f32 %v12462_v53, %v11870_v12  ;;  %v19672_v4 = vadd.f32 %v12463_v62, %v11871_v63  ;;  %v19674_v0 = vadd.f32 %v12464_v36, %v11872_v47  ;;  %v19676_v14 = vadd.f32 %v12465_v29, %v11873_v11 }
 0x9bf   : > { %v11906_v18 = vmax.f32 %v11874_v34, 0.0  ;;  %v11907_v28 = vmax.f32 %v11875_v27, 0.0  ;;  %v11908_v17 = vmax.f32 %v11876_v60, 0.0  ;;  %v11909_v50 = vmax.f32 %v11877_v42, 0.0 }
 0x9c0   : > { %v11910_v2 = vmax.f32 %v11878_v13, 0.0  ;;  %v11911_v26 = vmax.f32 %v11879_v5, 0.0  ;;  %v11912_v15 = vmax.f32 %v11880_v30, 0.0  ;;  %v11913_v40 = vmax.f32 %v11881_v52, 0.0 }
 0x9c1   : > { %v11914_v54 = vmax.f32 %v11882_v23, 0.0  ;;  %v11915_v38 = vmax.f32 %v11883_v31, 0.0  ;;  %v11916_v7 = vmax.f32 %v11884_v56, 0.0  ;;  %v11917_v3 = vmax.f32 %v11885_v32, 0.0  ;;  %12466 = vst [vmem:[%s19335_s21 + $0x100] sm:$0xff] %v11906_v18  ;;  %12467 = vst [vmem:[%s19335_s21 + $0x108] sm:$0xff] %v11907_v28 }
 0x9c2   : > { %12468 = vst [vmem:[%s19335_s21 + $0x110] sm:$0xff] %v11908_v17  ;;  %12469 = vst [vmem:[%s19335_s21 + $0x118] sm:$0xff] %v11909_v50  ;;  %v11918_v21 = vmax.f32 %v11886_v55, 0.0  ;;  %v11919_v12 = vmax.f32 %v11887_v22, 0.0  ;;  %v11920_v63 = vmax.f32 %v11888_v45, 0.0  ;;  %v11921_v47 = vmax.f32 %v11889_v49, 0.0 }
 0x9c3   : > { %12470 = vst [vmem:[%s19335_s21 + $0x120] sm:$0xff] %v11910_v2  ;;  %12471 = vst [vmem:[%s19335_s21 + $0x128] sm:$0xff] %v11911_v26  ;;  %v11922_v11 = vmax.f32 %v11890_v51, 0.0  ;;  %v11923_v1 = vmax.f32 %v11891_v59, 0.0  ;;  %v11924_v41 = vmax.f32 %v11892_v10, 0.0  ;;  %v11925_v46 = vmax.f32 %v11893_v48, 0.0 }
 0x9c4   : > { %12472 = vst [vmem:[%s19335_s21 + $0x130] sm:$0xff] %v11912_v15  ;;  %12473 = vst [vmem:[%s19335_s21 + $0x138] sm:$0xff] %v11913_v40  ;;  %v11926_v34 = vmax.f32 %v19654_v16, 0.0  ;;  %v11927_v27 = vmax.f32 %v19656_v35, 0.0  ;;  %v11928_v60 = vmax.f32 %v19658_v44, 0.0  ;;  %v11929_v42 = vmax.f32 %v19660_v58, 0.0 }
 0x9c5   : > { %12474 = vst [vmem:[%s19335_s21 + $0x140] sm:$0xff] %v11914_v54  ;;  %12475 = vst [vmem:[%s19335_s21 + $0x148] sm:$0xff] %v11915_v38  ;;  %v11930_v6 = vmax.f32 %v19662_v19, 0.0  ;;  %v11931_v9 = vmax.f32 %v19664_v20, 0.0  ;;  %v11932_v25 = vmax.f32 %v19666_v24, 0.0  ;;  %v11933_v13 = vmax.f32 %v19668_v8, 0.0 }
 0x9c6   : > { %12476 = vst [vmem:[%s19335_s21 + $0x150] sm:$0xff] %v11916_v7  ;;  %12477 = vst [vmem:[%s19335_s21 + $0x158] sm:$0xff] %v11917_v3  ;;  %v11934_v5 = vmax.f32 %v19670_v33, 0.0  ;;  %v11935_v30 = vmax.f32 %v19672_v4, 0.0  ;;  %v11936_v52 = vmax.f32 %v19674_v0, 0.0  ;;  %v11937_v61 = vmax.f32 %v19676_v14, 0.0 }
 0x9c7   : > { %12478 = vst [vmem:[%s19335_s21 + $0x160] sm:$0xff] %v11918_v21  ;;  %12479 = vst [vmem:[%s19335_s21 + $0x168] sm:$0xff] %v11919_v12 }
 0x9c8   : > { %12480 = vst [vmem:[%s19335_s21 + $0x170] sm:$0xff] %v11920_v63  ;;  %12481 = vst [vmem:[%s19335_s21 + $0x178] sm:$0xff] %v11921_v47 }
 0x9c9   : > { %12482 = vst [vmem:[%s19335_s21 + $0x180] sm:$0xff] %v11922_v11  ;;  %12483 = vst [vmem:[%s19335_s21 + $0x188] sm:$0xff] %v11923_v1 }
 0x9ca   : > { %12484 = vst [vmem:[%s19335_s21 + $0x190] sm:$0xff] %v11924_v41  ;;  %12485 = vst [vmem:[%s19335_s21 + $0x198] sm:$0xff] %v11925_v46 }
 0x9cb   : > { %12486 = vst [vmem:[%s19335_s21 + $0x1a0] sm:$0xff] %v11926_v34  ;;  %12487 = vst [vmem:[%s19335_s21 + $0x1a8] sm:$0xff] %v11927_v27 }
 0x9cc   : > { %12488 = vst [vmem:[%s19335_s21 + $0x1b0] sm:$0xff] %v11928_v60  ;;  %12489 = vst [vmem:[%s19335_s21 + $0x1b8] sm:$0xff] %v11929_v42 }
 0x9cd   : > { %12490 = vst [vmem:[%s19335_s21 + $0x1c0] sm:$0xff] %v11930_v6  ;;  %12491 = vst [vmem:[%s19335_s21 + $0x1c8] sm:$0xff] %v11931_v9 }
 0x9ce   : > { %12492 = vst [vmem:[%s19335_s21 + $0x1d0] sm:$0xff] %v11932_v25  ;;  %12493 = vst [vmem:[%s19335_s21 + $0x1d8] sm:$0xff] %v11933_v13 }
 0x9cf   : > { %12494 = vst [vmem:[%s19335_s21 + $0x1e0] sm:$0xff] %v11934_v5  ;;  %12495 = vst [vmem:[%s19335_s21 + $0x1e8] sm:$0xff] %v11935_v30 }
 0x9d0   : > { %12496 = vst [vmem:[%s19335_s21 + $0x1f0] sm:$0xff] %v11936_v52  ;;  %12497 = vst [vmem:[%s19335_s21 + $0x1f8] sm:$0xff] %v11937_v61 }
 0x9d1   : > { %16631 = shalt.err (!%p16628_p4)
}
 0x9d2   : > { %s16632_s21 = scalar_lea.hbm %s19711_s26, 8192  ;;  %s16636_s25 = scalar_lea.hbm %s20289_s9, 16384 }
 0x9d3   : > { %p16633_p9 = scmp.ne.s32.totalorder %s19711_s26, %s16632_s21  ;;  %p16637_p8 = scmp.lt.u32.totalorder %s19711_s26, %s20289_s9 }
 0x9d4   : > { %p16638_p13 = scmp.lt.u32.totalorder %s16636_s25, %s16632_s21  ;;  %p16640_p10 = scmp.lt.u32.totalorder %s16632_s21, %s19711_s26 }
 0x9d5   : > { %p16634_p0 = pnand %p16633_p9, %p16901_p5 }
 0x9d6   : > { %p16639_p6 = por %p16638_p13, %p16637_p8 }
 0x9d7   : > { %p16635_p11 = pneg %p16634_p0 }
 0x9d8   : > { %p16641_p3 = por %p16640_p10, %p16639_p6 }
 0x9da   : > { %p16642_p7 = pnand %p16641_p3, %p16635_p11 }
 0x9dc   : > { %16645 = shalt.err (!%p16642_p7)
}
 0x9dd   : > { %s16704_s23 = smov 128   ;;  %s16705_s29 = smov 8  }
 0x9de   : > { %16138 = dma.vmem_to_hbm [thread:$0]  (%p16901_p5), %s19713_s18, 8192, %s19711_s26, %s11972_s20, %s16704_s23, %s16704_s23, %s16705_s29  }
 0x9df PF: > { %s20290_s15 = sld [smem:[#allocation16_spill]]  ;;  %s20291_s17 = sld [smem:[#allocation17_spill]] }
 0x9e0   : > { %p20293_p2 = scmp.ge.s32.totalorder %s16692_s12, 2 }
 0x9e5   : > { %s12001_s24 = sand.u32 1, %s20290_s15   ;;  %p20292_p12 = scmp.ne.s32.totalorder %s20291_s17, 0 }
 0x9e6   : > { %s12002_s21 = scalar_lea.sflag [#allocation5], %s12001_s24 }
 0x9e7   : > { %p16155_p1 = pnand %p20293_p2, %p20292_p12 }
 0x9e9   : > { %16675 = dma.done.wait (!%p16155_p1), %s12002_s21, 8192  }
 0x9ea   : > { %16677 = vsyncadd (!%p16155_p1), %s12002_s21, 4294959104  ;;  %s20294_s19 = smov %s16897_s30  ;;  %p24_p4 = scmp.ge.s32.totalorder %s16887_s14, 4  }
 0x9eb   : > { %s20295_s30 = smov %s16684_s10  ;;  %s20296_s10 = smov %s16688_s11 }
 0x9ec   : > { %s20297_s11 = smov %s20294_s19  ;;  %s20298_s12 = smov %s16887_s14 }
 0x9ed   :  { %26 = sbr.rel (!%p24_p4) target bundleno = 9 (0x9), region = 140 }
 0x9f4   :  { %12007 = vsyncpa [#allocation4], 1 }
 0x9f5   :  { %12009 = vsyncpa [#allocation4 + $0x1], 1 }
 0x9f6   :  { %12010 = vsyncpa [#allocation7], 1 }
 0x9f7   :  { %12011 = vsyncpa [#allocation10], 1 }
 0x9f8   :  { %12012 = vsyncpa [#allocation5], 1 }
 0x9f9   :  { %12014 = vsyncpa [#allocation5 + $0x1], 1 }

</bundles_post_ra>
